<compile_context>
chip_gen: v5e
topology: v5e:2x2
jax: 0.10.0
libtpu: 0.0.40
codegen_flags: <defaults>
</compile_context>

<pallas_src>
import functools

import jax
import jax.numpy as jnp
import numpy as np
from jax.experimental import pallas as pl
from jax.experimental.pallas import tpu as pltpu


# ---------------------------------------------------------------------------
# Trace-time (numpy, float64) construction of the per-axis linear operators of
# the edge path.  Every op is linear and separable:
#   reflect-pad(2) + 5-tap gauss + [::2]        -> D_n  (n/2, n)
#   zero-interleave + reflect-pad(2) + 2*gauss  -> U_n  (2n, n)
#   bilinear resize, align_corners=True         -> B    (out, in)
# ---------------------------------------------------------------------------
_K1D = np.array([1.0, 4.0, 6.0, 4.0, 1.0], dtype=np.float64) / 16.0


def _reflect_pad_mat(n, p=2):
    m = np.zeros((n + 2 * p, n), np.float64)
    for r in range(n + 2 * p):
        s = r - p
        if s < 0:
            s = -s
        elif s >= n:
            s = 2 * (n - 1) - s
        m[r, s] = 1.0
    return m


def _conv_valid_mat(n, k):
    t = len(k)
    m = np.zeros((n, n + t - 1), np.float64)
    for r in range(n):
        m[r, r:r + t] = k
    return m


def _down_op(n):
    # gauss5 (reflect pad 2) then [::2]
    assert n % 2 == 0
    s = np.zeros((n // 2, n), np.float64)
    s[np.arange(n // 2), 2 * np.arange(n // 2)] = 1.0
    return s @ _conv_valid_mat(n, _K1D) @ _reflect_pad_mat(n)


def _up_op(n):
    # zero-interleave to 2n (even slots), reflect pad 2, conv with 2*k1d per axis
    m = 2 * n
    z = np.zeros((m, n), np.float64)
    z[2 * np.arange(n), np.arange(n)] = 1.0
    return _conv_valid_mat(m, 2.0 * _K1D) @ _reflect_pad_mat(m) @ z


def _bilinear_mat(n_out, n_in):
    # F.interpolate(..., mode='bilinear', align_corners=True) along one axis
    m = np.zeros((n_out, n_in), np.float64)
    if n_out == 1:
        m[0, 0] = 1.0
        return m
    for r in range(n_out):
        pos = r * (n_in - 1) / (n_out - 1)
        lo = min(int(np.floor(pos)), n_in - 1)
        hi = min(lo + 1, n_in - 1)
        w = pos - lo
        m[r, lo] += 1.0 - w
        m[r, hi] += w
    return m


def _edge_operator_mats(Hg, Wg, Hx, Wx):
    """Stacked operators so the kernel needs only 2 MXU dots for edge_input."""
    assert Hg % 4 == 0 and Wg % 4 == 0 and Hx % 2 == 0 and Wx % 2 == 0
    d_r0, d_c0 = _down_op(Hg), _down_op(Wg)           # gray -> d0
    h1, w1 = Hg // 2, Wg // 2
    m_r = _up_op(h1 // 2) @ _down_op(h1)              # d0 -> low-pass(d0)
    m_c = _up_op(w1 // 2) @ _down_op(w1)
    b_r, b_c = _bilinear_mat(Hx, h1), _bilinear_mat(Wx, w1)
    a1_r, a1_c = b_r @ d_r0, b_c @ d_c0               # bilinear(d0)
    a2_r, a2_c = b_r @ m_r @ d_r0, b_c @ m_c @ d_c0   # bilinear(low-pass(d0))
    mp_r = _up_op(Hx // 2) @ _down_op(Hx)             # make_laplace on sigmoid(pred)
    mp_c = _up_op(Wx // 2) @ _down_op(Wx)
    f32 = lambda a: jnp.asarray(a, jnp.float32)
    return dict(
        elr=f32(np.concatenate([a1_r, a2_r], axis=0)),        # (2Hx, Hg)
        erc=f32(np.concatenate([a1_c.T, -a2_c.T], axis=0)),   # (2Wg, Wx)
        mr=f32(mp_r), mct=f32(mp_c.T))


def _spatial_band(sw, W):
    """Banded weight matrix so the 7x7 SpatialGate conv is one MXU matmul.

    sw: (2, 7, 7) conv weights (channel 0 = max, channel 1 = mean).
    Returns (7*2*(W+6), W) with row index (i, c, p) matching the kernel's
    concat of 7 row-shifted (H, 2*(W+6)) slabs.
    """
    sel = np.zeros((7, W + 6, W), np.float32)
    for j in range(7):
        sel[j, j + np.arange(W), np.arange(W)] = 1.0
    band = jnp.einsum('cij,jpw->icpw', sw, jnp.asarray(sel))
    return band.reshape(7 * 2 * (W + 6), W)


# ---------------------------------------------------------------------------
# The single fused MEGA kernel (one grid step = one batch item).
# ---------------------------------------------------------------------------
def _mega_kernel(org_ref, x_ref, pred_ref,
                 elr_ref, erc_ref, mr_ref, mct_ref,
                 fw_ref, fsb_ref, aw_ref,
                 w1_ref, b1_ref, w2_ref, b2_ref,
                 sband_ref, ab_ref, sb_ref,
                 out_ref, *, H, W, C):
    f32, bf16 = jnp.float32, jnp.bfloat16
    C3, HW = 3 * C, H * W

    # --- grayscale (torchvision coefficients), fused in-kernel ---
    gray = (0.2989 * org_ref[0, 0] + 0.587 * org_ref[0, 1]
            + 0.114 * org_ref[0, 2])                              # (Hg, Wg)

    # --- edge_input: Laplacian level-1 + bilinear resize, stacked operators:
    #     e1 - e2 = ([a1r;a2r] g) reassembled (H,2Wg) @ [a1c^T; -a2c^T] ---
    t = jnp.dot(elr_ref[...], gray, preferred_element_type=f32)  # (2H, Wg)
    t2 = jnp.concatenate([t[:H, :], t[H:, :]], axis=1)           # (H, 2Wg)
    edge_input = jnp.dot(t2, erc_ref[...],
                         preferred_element_type=f32)             # (H, W)

    # --- edge_pred = make_laplace(sigmoid(pred), 1) = ps - M ps Mc^T ---
    ps = jax.nn.sigmoid(pred_ref[0])                             # (H, W)
    low = jnp.dot(jnp.dot(mr_ref[...], ps, preferred_element_type=f32),
                  mct_ref[...], preferred_element_type=f32)
    edge_pred = ps - low

    # --- x arrives channel-major (C, H*W) lane-dense; one transpose to HWC ---
    x3 = jnp.transpose(x_ref[0]).reshape(H, W, C)                # (H, W, C)

    # --- gated fusion input, cast to bf16 ONCE ---
    f_in = jnp.concatenate([x3 * (1.0 - ps)[:, :, None],         # background
                            x3 * edge_pred[:, :, None],          # pred edge
                            x3 * edge_input[:, :, None]],        # input edge
                           axis=-1).astype(bf16)                 # (H, W, 3C)

    # --- zero halo by value-level concat (no scratch, nothing to re-zero) ---
    def _pad1(a, cc):
        zc = jnp.zeros((a.shape[0], 1, cc), bf16)
        a = jnp.concatenate([zc, a, zc], axis=1)
        zr = jnp.zeros((1, a.shape[1], cc), bf16)
        return jnp.concatenate([zr, a, zr], axis=0)

    fpad = _pad1(f_in, C3)                                       # (H+2, W+2, 3C)

    # --- fusion conv 3x3 + folded BN + ReLU: ONE deep-K bf16 MXU matmul ---
    cols = [fpad[dh:dh + H, dw:dw + W, :].reshape(HW, C3)
            for dh in range(3) for dw in range(3)]
    im2col = jnp.concatenate(cols, axis=-1)                      # (HW, 9*3C) bf16
    acc = jnp.dot(im2col, fw_ref[...],
                  preferred_element_type=f32)                    # (HW, C)
    ff = jnp.maximum(acc * fsb_ref[0][None, :] + fsb_ref[1][None, :], 0.0)
    ff3 = ff.reshape(H, W, C)                                    # fusion_feature

    # --- attention conv 3x3 -> 1 channel (+folded BN, sigmoid) on the MXU ---
    apad = _pad1(ff.astype(bf16).reshape(H, W, C), C)            # (H+2, W+2, C)
    acols = [apad[dh:dh + H, dw:dw + W, :].reshape(HW, C)
             for dh in range(3) for dw in range(3)]
    att = jax.nn.sigmoid(
        jnp.dot(jnp.concatenate(acols, axis=-1), aw_ref[...],
                preferred_element_type=f32) + ab_ref[0])         # (HW, 1)

    # --- attention apply + residual ---
    out1 = ff3 * att.reshape(H, W, 1) + x3                       # (H, W, C)

    # --- CBAM ChannelGate: avg & max pooled rows through the shared MLP once ---
    flat = out1.reshape(HW, C)
    pooled = jnp.concatenate([jnp.mean(flat, axis=0, keepdims=True),
                              jnp.max(flat, axis=0, keepdims=True)], axis=0)
    h1 = jnp.maximum(jnp.dot(pooled, w1_ref[...], preferred_element_type=f32)
                     + b1_ref[...], 0.0)                         # (2, Ch)
    h2 = jnp.dot(h1, w2_ref[...], preferred_element_type=f32) + b2_ref[...]
    c_att = jax.nn.sigmoid(h2[0:1, :] + h2[1:2, :])              # (1, C)
    xc = flat * c_att                                            # (HW, C)
    xc3 = xc.reshape(H, W, C)

    # --- CBAM SpatialGate: 7x7 conv (+bias) as ONE banded MXU matmul ---
    zr3 = jnp.zeros((3, W), f32)
    zc3 = jnp.zeros((H + 6, 3), f32)

    def _pad3(a):
        a = jnp.concatenate([zr3, a, zr3], axis=0)               # (H+6, W)
        return jnp.concatenate([zc3, a, zc3], axis=1)            # (H+6, W+6)

    spad = jnp.concatenate([_pad3(jnp.max(xc3, axis=-1)),        # channel 0: max
                            _pad3(jnp.mean(xc3, axis=-1))],      # channel 1: mean
                           axis=1)                               # (H+6, 2*(W+6))
    slabs = jnp.concatenate([spad[i:i + H, :] for i in range(7)],
                            axis=1)                              # (H, 14*(W+6))
    s_att = jax.nn.sigmoid(
        jnp.dot(slabs, sband_ref[...], preferred_element_type=f32)
        + sb_ref[0])                                             # (H, W)

    out_flat = (xc3 * s_att[:, :, None]).reshape(HW, C)

    # --- lane-dense (C, H*W) store: pad lanes to 128 before the transpose ---
    lane_pad = (-C) % 128
    if lane_pad:
        out_flat = jnp.concatenate(
            [out_flat, jnp.zeros((HW, lane_pad), f32)], axis=-1)
    out_ref[0] = jnp.transpose(out_flat)[:C, :]


def _mega_pallas(org_img, x_cm, pred_hw, mats, sband, params):
    B, C, HW = x_cm.shape
    Hg, Wg = org_img.shape[2], org_img.shape[3]
    H, W = pred_hw.shape[1], pred_hw.shape[2]
    Ch = params["mlp_w1"].shape[-1]
    kernel = functools.partial(_mega_kernel, H=H, W=W, C=C)

    def _const2(shape):
        return pl.BlockSpec(shape, lambda b: (0, 0))

    return pl.pallas_call(
        kernel,
        out_shape=jax.ShapeDtypeStruct((B, C, HW), jnp.float32),
        grid=(B,),
        in_specs=[
            pl.BlockSpec((1, 3, Hg, Wg), lambda b: (b, 0, 0, 0)),  # org_img (NCHW)
            pl.BlockSpec((1, C, HW), lambda b: (b, 0, 0)),         # x (NCHW, flat HW)
            pl.BlockSpec((1, H, W), lambda b: (b, 0, 0)),          # pred logits
            _const2((2 * H, Hg)),                                  # stacked edge row op
            _const2((2 * Wg, W)),                                  # stacked edge col op (+/- ^T)
            _const2((H, H)),                                       # pred-laplace row op
            _const2((W, W)),                                       # pred-laplace col op ^T
            _const2((9 * 3 * C, C)),                               # fusion conv weights (bf16)
            _const2((2, C)),                                       # fusion BN scale / bias
            _const2((9 * C, 1)),                                   # attention weights (bf16, BN-folded)
            _const2((C, Ch)),                                      # CBAM MLP w1
            _const2((1, Ch)),                                      # CBAM MLP b1
            _const2((Ch, C)),                                      # CBAM MLP w2
            _const2((1, C)),                                       # CBAM MLP b2
            _const2((14 * (W + 6), W)),                            # spatial banded 7x7 weights
            pl.BlockSpec(memory_space=pltpu.MemorySpace.SMEM),     # attention bias (1,)
            pl.BlockSpec(memory_space=pltpu.MemorySpace.SMEM),     # spatial bias (1,)
        ],
        out_specs=pl.BlockSpec((1, C, HW), lambda b: (b, 0, 0)),
        compiler_params=pltpu.CompilerParams(
            dimension_semantics=("parallel",),
            vmem_limit_bytes=32 * 1024 * 1024),
    )(org_img, x_cm, pred_hw,
      mats["elr"], mats["erc"], mats["mr"], mats["mct"],
      params["fusion_w"], params["fusion_sb"], params["attn_w"],
      params["mlp_w1"], params["mlp_b1"], params["mlp_w2"], params["mlp_b2"],
      sband, params["attn_b"], params["spatial_b"])


# ---------------------------------------------------------------------------
# Parameters (deterministic synthetic init, BN folded in eval mode)
# ---------------------------------------------------------------------------
def init_params(key, C, r=16):
    Ch = max(C // r, 1)
    ks = jax.random.split(key, 10)
    eps = 1e-5
    # fusion_conv: Conv2d(3C -> C, 3x3, pad 1, bias) + BN(C) + ReLU (folded, eval stats)
    fw = jax.random.normal(ks[0], (3, 3, 3 * C, C), jnp.float32) * 0.05
    fb = jax.random.normal(ks[1], (C,), jnp.float32) * 0.05
    f_scale = jnp.ones((C,)) / jnp.sqrt(jnp.ones((C,)) + eps)      # gamma=1, var=1
    f_bias = f_scale * fb                                          # beta=0, mean=0
    # attention: Conv2d(C -> 1, 3x3, pad 1, bias) + BN(1) + Sigmoid (folded into w/b)
    aw = jax.random.normal(ks[2], (3, 3, C, 1), jnp.float32) * 0.05
    ab_conv = jax.random.normal(ks[3], (1,), jnp.float32) * 0.05
    a_scale = 1.0 / jnp.sqrt(1.0 + eps)
    # CBAM ChannelGate MLP: Linear(C -> C//r), ReLU, Linear(C//r -> C)
    w1 = jax.random.normal(ks[4], (C, Ch), jnp.float32) * 0.1
    b1 = jax.random.normal(ks[5], (1, Ch), jnp.float32) * 0.1
    w2 = jax.random.normal(ks[6], (Ch, C), jnp.float32) * 0.1
    b2 = jax.random.normal(ks[7], (1, C), jnp.float32) * 0.1
    # CBAM SpatialGate: Conv2d(2 -> 1, 7x7, pad 3, bias)
    sw = jax.random.normal(ks[8], (2, 7, 7), jnp.float32) * 0.05
    sb = jax.random.normal(ks[9], (1,), jnp.float32) * 0.05
    return dict(
        fusion_w=fw.reshape(9 * 3 * C, C).astype(jnp.bfloat16),    # (kh,kw,Cin) rows
        fusion_sb=jnp.stack([f_scale, f_bias]),                    # f32 epilogue
        attn_w=(aw.reshape(9 * C, 1) * a_scale).astype(jnp.bfloat16),
        attn_b=(a_scale * ab_conv).astype(jnp.float32),
        mlp_w1=w1, mlp_b1=b1, mlp_w2=w2, mlp_b2=b2,
        spatial_w=sw, spatial_b=sb)


# ---------------------------------------------------------------------------
# MEGA forward (NCHW in / NCHW out, like the PyTorch module).  No HBM
# transposes: only free row-major reshapes around the kernel.
# ---------------------------------------------------------------------------
def mega_forward(org_img, x, pred, params):
    B, C, H, W = x.shape
    Hg, Wg = org_img.shape[2], org_img.shape[3]
    mats = _edge_operator_mats(Hg, Wg, H, W)       # trace-time numpy constants
    sband = _spatial_band(params["spatial_w"], W)  # tiny per-call einsum
    x_cm = x.reshape(B, C, H * W)                  # free reshape, lane-dense block
    pred_hw = pred.reshape(B, H, W)
    out_cm = _mega_pallas(org_img, x_cm, pred_hw, mats, sband, params)
    return out_cm.reshape(B, C, H, W)


if __name__ == "__main__":
    B, C, H, W = 2, 32, 16, 16
    key = jax.random.PRNGKey(0)
    k_img, k_x, k_pred, k_par = jax.random.split(key, 4)
    org_img = jax.random.uniform(k_img, (B, 3, 4 * H, 4 * W), dtype=jnp.float32)  # (2,3,64,64)
    x = jax.random.normal(k_x, (B, C, H, W), dtype=jnp.float32)
    pred = jax.random.normal(k_pred, (B, 1, H, W), dtype=jnp.float32)
    params = init_params(k_par, C)

    out = jax.jit(mega_forward)(org_img, x, pred, params)
    out = jax.block_until_ready(out)
    assert out.shape == (B, C, H, W) and out.dtype == jnp.float32
    assert bool(jnp.all(jnp.isfinite(out)))
    print("KERNEL_OK")
</pallas_src>

<mosaic_0001>
module attributes {stable_mosaic.version = 11 : i64} {
  func.func @_mega_kernel(%arg0: i32, %arg1: memref<1x3x64x64xf32, #tpu.memory_space<vmem>>, %arg2: memref<1x32x256xf32, #tpu.memory_space<vmem>>, %arg3: memref<1x16x16xf32, #tpu.memory_space<vmem>>, %arg4: memref<32x64xf32, #tpu.memory_space<vmem>>, %arg5: memref<128x16xf32, #tpu.memory_space<vmem>>, %arg6: memref<16x16xf32, #tpu.memory_space<vmem>>, %arg7: memref<16x16xf32, #tpu.memory_space<vmem>>, %arg8: memref<864x32xbf16, #tpu.memory_space<vmem>>, %arg9: memref<2x32xf32, #tpu.memory_space<vmem>>, %arg10: memref<288x1xbf16, #tpu.memory_space<vmem>>, %arg11: memref<32x2xf32, #tpu.memory_space<vmem>>, %arg12: memref<1x2xf32, #tpu.memory_space<vmem>>, %arg13: memref<2x32xf32, #tpu.memory_space<vmem>>, %arg14: memref<1x32xf32, #tpu.memory_space<vmem>>, %arg15: memref<308x16xf32, #tpu.memory_space<vmem>>, %arg16: memref<1xf32, #tpu.memory_space<smem>>, %arg17: memref<1xf32, #tpu.memory_space<smem>>, %arg18: memref<1x32x256xf32, #tpu.memory_space<vmem>>) attributes {dimension_semantics = [#tpu.dimension_semantics<parallel>], iteration_bounds = array<i64: 2>, scalar_prefetch = 0 : i64, scratch_operands = 0 : i64, tpu.core_type = #tpu.core_type<tc>, window_params = [{transform_indices = @transform_0, window_bounds = array<i64: 1, 3, 64, 64>}, {transform_indices = @transform_1, window_bounds = array<i64: 1, 32, 256>}, {transform_indices = @transform_2, window_bounds = array<i64: 1, 16, 16>}, {pipeline_mode = #tpu.pipeline_mode<synchronous>, transform_indices = @transform_3, window_bounds = array<i64: 32, 64>}, {pipeline_mode = #tpu.pipeline_mode<synchronous>, transform_indices = @transform_4, window_bounds = array<i64: 128, 16>}, {pipeline_mode = #tpu.pipeline_mode<synchronous>, transform_indices = @transform_5, window_bounds = array<i64: 16, 16>}, {pipeline_mode = #tpu.pipeline_mode<synchronous>, transform_indices = @transform_6, window_bounds = array<i64: 16, 16>}, {pipeline_mode = #tpu.pipeline_mode<synchronous>, transform_indices = @transform_7, window_bounds = array<i64: 864, 32>}, {pipeline_mode = #tpu.pipeline_mode<synchronous>, transform_indices = @transform_8, window_bounds = array<i64: 2, 32>}, {pipeline_mode = #tpu.pipeline_mode<synchronous>, transform_indices = @transform_9, window_bounds = array<i64: 288, 1>}, {pipeline_mode = #tpu.pipeline_mode<synchronous>, transform_indices = @transform_10, window_bounds = array<i64: 32, 2>}, {pipeline_mode = #tpu.pipeline_mode<synchronous>, transform_indices = @transform_11, window_bounds = array<i64: 1, 2>}, {pipeline_mode = #tpu.pipeline_mode<synchronous>, transform_indices = @transform_12, window_bounds = array<i64: 2, 32>}, {pipeline_mode = #tpu.pipeline_mode<synchronous>, transform_indices = @transform_13, window_bounds = array<i64: 1, 32>}, {pipeline_mode = #tpu.pipeline_mode<synchronous>, transform_indices = @transform_14, window_bounds = array<i64: 308, 16>}, {transform_indices = @transform_15, window_bounds = array<i64: 1>}, {transform_indices = @transform_16, window_bounds = array<i64: 1>}, {transform_indices = @transform_17, window_bounds = array<i64: 1, 32, 256>}]} {
    %c0 = arith.constant 0 : index
    %c0_0 = arith.constant 0 : index
    %c0_1 = arith.constant 0 : index
    %c0_2 = arith.constant 0 : index
    %0 = vector.load %arg1[%c0, %c0_0, %c0_1, %c0_2] : memref<1x3x64x64xf32, #tpu.memory_space<vmem>>, vector<1x1x64x64xf32>
    %1 = vector.shape_cast %0 : vector<1x1x64x64xf32> to vector<64x64xf32>
    %cst = arith.constant 2.989000e-01 : f32
    %2 = vector.broadcast %cst : f32 to vector<64x64xf32>
    %3 = arith.mulf %2, %1 : vector<64x64xf32>
    %c0_3 = arith.constant 0 : index
    %c1 = arith.constant 1 : index
    %c0_4 = arith.constant 0 : index
    %c0_5 = arith.constant 0 : index
    %4 = vector.load %arg1[%c0_3, %c1, %c0_4, %c0_5] : memref<1x3x64x64xf32, #tpu.memory_space<vmem>>, vector<1x1x64x64xf32>
    %5 = vector.shape_cast %4 : vector<1x1x64x64xf32> to vector<64x64xf32>
    %cst_6 = arith.constant 5.870000e-01 : f32
    %6 = vector.broadcast %cst_6 : f32 to vector<64x64xf32>
    %7 = arith.mulf %6, %5 : vector<64x64xf32>
    %8 = arith.addf %3, %7 : vector<64x64xf32>
    %c0_7 = arith.constant 0 : index
    %c2 = arith.constant 2 : index
    %c0_8 = arith.constant 0 : index
    %c0_9 = arith.constant 0 : index
    %9 = vector.load %arg1[%c0_7, %c2, %c0_8, %c0_9] : memref<1x3x64x64xf32, #tpu.memory_space<vmem>>, vector<1x1x64x64xf32>
    %10 = vector.shape_cast %9 : vector<1x1x64x64xf32> to vector<64x64xf32>
    %cst_10 = arith.constant 1.140000e-01 : f32
    %11 = vector.broadcast %cst_10 : f32 to vector<64x64xf32>
    %12 = arith.mulf %11, %10 : vector<64x64xf32>
    %13 = arith.addf %8, %12 : vector<64x64xf32>
    %c0_11 = arith.constant 0 : index
    %c0_12 = arith.constant 0 : index
    %14 = vector.load %arg4[%c0_11, %c0_12] : memref<32x64xf32, #tpu.memory_space<vmem>>, vector<32x64xf32>
    %cst_13 = arith.constant dense<0.000000e+00> : vector<32x64xf32>
    %15 = tpu.matmul %14, %13, %cst_13 {dimension_numbers = #tpu.dot_dimension_numbers<[1], [0], [0], [1], [0, 0, 1, 1], [], []>} : vector<32x64xf32>, vector<64x64xf32>, vector<32x64xf32> -> vector<32x64xf32>
    %16 = vector.extract_strided_slice %15 {offsets = [0, 0], sizes = [16, 64], strides = [1, 1]} : vector<32x64xf32> to vector<16x64xf32>
    %17 = vector.extract_strided_slice %15 {offsets = [16, 0], sizes = [16, 64], strides = [1, 1]} : vector<32x64xf32> to vector<16x64xf32>
    %18 = tpu.concatenate %16, %17 in 1 : vector<16x64xf32>, vector<16x64xf32> -> vector<16x128xf32>
    %c0_14 = arith.constant 0 : index
    %c0_15 = arith.constant 0 : index
    %19 = vector.load %arg5[%c0_14, %c0_15] : memref<128x16xf32, #tpu.memory_space<vmem>>, vector<128x16xf32>
    %cst_16 = arith.constant dense<0.000000e+00> : vector<16x16xf32>
    %20 = tpu.matmul %18, %19, %cst_16 {dimension_numbers = #tpu.dot_dimension_numbers<[1], [0], [0], [1], [0, 0, 1, 1], [], []>} : vector<16x128xf32>, vector<128x16xf32>, vector<16x16xf32> -> vector<16x16xf32>
    %c0_17 = arith.constant 0 : index
    %c0_18 = arith.constant 0 : index
    %c0_19 = arith.constant 0 : index
    %21 = vector.load %arg3[%c0_17, %c0_18, %c0_19] : memref<1x16x16xf32, #tpu.memory_space<vmem>>, vector<1x16x16xf32>
    %22 = vector.shape_cast %21 : vector<1x16x16xf32> to vector<16x16xf32>
    %23 = arith.negf %22 : vector<16x16xf32>
    %24 = math.exp %23 : vector<16x16xf32>
    %cst_20 = arith.constant 1.000000e+00 : f32
    %25 = vector.broadcast %cst_20 : f32 to vector<16x16xf32>
    %26 = arith.addf %25, %24 : vector<16x16xf32>
    %27 = arith.divf %25, %26 : vector<16x16xf32>
    %c0_21 = arith.constant 0 : index
    %c0_22 = arith.constant 0 : index
    %28 = vector.load %arg6[%c0_21, %c0_22] : memref<16x16xf32, #tpu.memory_space<vmem>>, vector<16x16xf32>
    %cst_23 = arith.constant dense<0.000000e+00> : vector<16x16xf32>
    %29 = tpu.matmul %28, %27, %cst_23 {dimension_numbers = #tpu.dot_dimension_numbers<[1], [0], [0], [1], [0, 0, 1, 1], [], []>} : vector<16x16xf32>, vector<16x16xf32>, vector<16x16xf32> -> vector<16x16xf32>
    %c0_24 = arith.constant 0 : index
    %c0_25 = arith.constant 0 : index
    %30 = vector.load %arg7[%c0_24, %c0_25] : memref<16x16xf32, #tpu.memory_space<vmem>>, vector<16x16xf32>
    %cst_26 = arith.constant dense<0.000000e+00> : vector<16x16xf32>
    %31 = tpu.matmul %29, %30, %cst_26 {dimension_numbers = #tpu.dot_dimension_numbers<[1], [0], [0], [1], [0, 0, 1, 1], [], []>} : vector<16x16xf32>, vector<16x16xf32>, vector<16x16xf32> -> vector<16x16xf32>
    %32 = arith.subf %27, %31 : vector<16x16xf32>
    %c0_27 = arith.constant 0 : index
    %c0_28 = arith.constant 0 : index
    %c0_29 = arith.constant 0 : index
    %33 = vector.load %arg2[%c0_27, %c0_28, %c0_29] : memref<1x32x256xf32, #tpu.memory_space<vmem>>, vector<1x32x256xf32>
    %34 = vector.shape_cast %33 : vector<1x32x256xf32> to vector<32x256xf32>
    %35 = tpu.transpose %34, [1, 0] : vector<32x256xf32> -> vector<256x32xf32>
    %36 = vector.shape_cast %35 : vector<256x32xf32> to vector<16x16x32xf32>
    %cst_30 = arith.constant 1.000000e+00 : f32
    %37 = vector.broadcast %cst_30 : f32 to vector<16x16xf32>
    %38 = arith.subf %37, %27 : vector<16x16xf32>
    %39 = vector.shape_cast %38 : vector<16x16xf32> to vector<16x16x1xf32>
    %40 = vector.broadcast %39 : vector<16x16x1xf32> to vector<16x16x32xf32>
    %41 = arith.mulf %36, %40 : vector<16x16x32xf32>
    %42 = vector.shape_cast %32 : vector<16x16xf32> to vector<16x16x1xf32>
    %43 = vector.broadcast %42 : vector<16x16x1xf32> to vector<16x16x32xf32>
    %44 = arith.mulf %36, %43 : vector<16x16x32xf32>
    %45 = vector.shape_cast %20 : vector<16x16xf32> to vector<16x16x1xf32>
    %46 = vector.broadcast %45 : vector<16x16x1xf32> to vector<16x16x32xf32>
    %47 = arith.mulf %36, %46 : vector<16x16x32xf32>
    %48 = tpu.concatenate %41, %44, %47 in 2 : vector<16x16x32xf32>, vector<16x16x32xf32>, vector<16x16x32xf32> -> vector<16x16x96xf32>
    %49 = arith.truncf %48 : vector<16x16x96xf32> to vector<16x16x96xbf16>
    %cst_31 = arith.constant 0.000000e+00 : bf16
    %50 = vector.broadcast %cst_31 : bf16 to vector<16x1x96xbf16>
    %51 = tpu.concatenate %50, %49, %50 in 1 : vector<16x1x96xbf16>, vector<16x16x96xbf16>, vector<16x1x96xbf16> -> vector<16x18x96xbf16>
    %cst_32 = arith.constant 0.000000e+00 : bf16
    %52 = vector.broadcast %cst_32 : bf16 to vector<1x18x96xbf16>
    %53 = tpu.concatenate %52, %51, %52 in 0 : vector<1x18x96xbf16>, vector<16x18x96xbf16>, vector<1x18x96xbf16> -> vector<18x18x96xbf16>
    %54 = vector.extract_strided_slice %53 {offsets = [0, 0, 0], sizes = [16, 16, 96], strides = [1, 1, 1]} : vector<18x18x96xbf16> to vector<16x16x96xbf16>
    %55 = vector.shape_cast %54 : vector<16x16x96xbf16> to vector<256x96xbf16>
    %56 = vector.extract_strided_slice %53 {offsets = [0, 1, 0], sizes = [16, 16, 96], strides = [1, 1, 1]} : vector<18x18x96xbf16> to vector<16x16x96xbf16>
    %57 = vector.shape_cast %56 : vector<16x16x96xbf16> to vector<256x96xbf16>
    %58 = vector.extract_strided_slice %53 {offsets = [0, 2, 0], sizes = [16, 16, 96], strides = [1, 1, 1]} : vector<18x18x96xbf16> to vector<16x16x96xbf16>
    %59 = vector.shape_cast %58 : vector<16x16x96xbf16> to vector<256x96xbf16>
    %60 = vector.extract_strided_slice %53 {offsets = [1, 0, 0], sizes = [16, 16, 96], strides = [1, 1, 1]} : vector<18x18x96xbf16> to vector<16x16x96xbf16>
    %61 = vector.shape_cast %60 : vector<16x16x96xbf16> to vector<256x96xbf16>
    %62 = vector.extract_strided_slice %53 {offsets = [1, 1, 0], sizes = [16, 16, 96], strides = [1, 1, 1]} : vector<18x18x96xbf16> to vector<16x16x96xbf16>
    %63 = vector.shape_cast %62 : vector<16x16x96xbf16> to vector<256x96xbf16>
    %64 = vector.extract_strided_slice %53 {offsets = [1, 2, 0], sizes = [16, 16, 96], strides = [1, 1, 1]} : vector<18x18x96xbf16> to vector<16x16x96xbf16>
    %65 = vector.shape_cast %64 : vector<16x16x96xbf16> to vector<256x96xbf16>
    %66 = vector.extract_strided_slice %53 {offsets = [2, 0, 0], sizes = [16, 16, 96], strides = [1, 1, 1]} : vector<18x18x96xbf16> to vector<16x16x96xbf16>
    %67 = vector.shape_cast %66 : vector<16x16x96xbf16> to vector<256x96xbf16>
    %68 = vector.extract_strided_slice %53 {offsets = [2, 1, 0], sizes = [16, 16, 96], strides = [1, 1, 1]} : vector<18x18x96xbf16> to vector<16x16x96xbf16>
    %69 = vector.shape_cast %68 : vector<16x16x96xbf16> to vector<256x96xbf16>
    %70 = vector.extract_strided_slice %53 {offsets = [2, 2, 0], sizes = [16, 16, 96], strides = [1, 1, 1]} : vector<18x18x96xbf16> to vector<16x16x96xbf16>
    %71 = vector.shape_cast %70 : vector<16x16x96xbf16> to vector<256x96xbf16>
    %72 = tpu.concatenate %55, %57, %59, %61, %63, %65, %67, %69, %71 in 1 : vector<256x96xbf16>, vector<256x96xbf16>, vector<256x96xbf16>, vector<256x96xbf16>, vector<256x96xbf16>, vector<256x96xbf16>, vector<256x96xbf16>, vector<256x96xbf16>, vector<256x96xbf16> -> vector<256x864xbf16>
    %c0_33 = arith.constant 0 : index
    %c0_34 = arith.constant 0 : index
    %73 = vector.load %arg8[%c0_33, %c0_34] : memref<864x32xbf16, #tpu.memory_space<vmem>>, vector<864x32xbf16>
    %cst_35 = arith.constant dense<0.000000e+00> : vector<256x32xf32>
    %74 = tpu.matmul %72, %73, %cst_35 {dimension_numbers = #tpu.dot_dimension_numbers<[1], [0], [0], [1], [0, 0, 1, 1], [], []>} : vector<256x864xbf16>, vector<864x32xbf16>, vector<256x32xf32> -> vector<256x32xf32>
    %c0_36 = arith.constant 0 : index
    %c0_37 = arith.constant 0 : index
    %75 = vector.load %arg9[%c0_36, %c0_37] : memref<2x32xf32, #tpu.memory_space<vmem>>, vector<1x32xf32>
    %76 = vector.shape_cast %75 : vector<1x32xf32> to vector<32xf32>
    %77 = vector.shape_cast %76 : vector<32xf32> to vector<1x32xf32>
    %78 = vector.broadcast %77 : vector<1x32xf32> to vector<256x32xf32>
    %79 = arith.mulf %74, %78 : vector<256x32xf32>
    %c1_38 = arith.constant 1 : index
    %c0_39 = arith.constant 0 : index
    %80 = vector.load %arg9[%c1_38, %c0_39] : memref<2x32xf32, #tpu.memory_space<vmem>>, vector<1x32xf32>
    %81 = vector.shape_cast %80 : vector<1x32xf32> to vector<32xf32>
    %82 = vector.shape_cast %81 : vector<32xf32> to vector<1x32xf32>
    %83 = vector.broadcast %82 : vector<1x32xf32> to vector<256x32xf32>
    %84 = arith.addf %79, %83 : vector<256x32xf32>
    %cst_40 = arith.constant 0.000000e+00 : f32
    %85 = vector.broadcast %cst_40 : f32 to vector<256x32xf32>
    %86 = arith.maximumf %84, %85 : vector<256x32xf32>
    %87 = vector.shape_cast %86 : vector<256x32xf32> to vector<16x16x32xf32>
    %88 = arith.truncf %86 : vector<256x32xf32> to vector<256x32xbf16>
    %89 = vector.shape_cast %88 : vector<256x32xbf16> to vector<16x16x32xbf16>
    %cst_41 = arith.constant 0.000000e+00 : bf16
    %90 = vector.broadcast %cst_41 : bf16 to vector<16x1x32xbf16>
    %91 = tpu.concatenate %90, %89, %90 in 1 : vector<16x1x32xbf16>, vector<16x16x32xbf16>, vector<16x1x32xbf16> -> vector<16x18x32xbf16>
    %cst_42 = arith.constant 0.000000e+00 : bf16
    %92 = vector.broadcast %cst_42 : bf16 to vector<1x18x32xbf16>
    %93 = tpu.concatenate %92, %91, %92 in 0 : vector<1x18x32xbf16>, vector<16x18x32xbf16>, vector<1x18x32xbf16> -> vector<18x18x32xbf16>
    %94 = vector.extract_strided_slice %93 {offsets = [0, 0, 0], sizes = [16, 16, 32], strides = [1, 1, 1]} : vector<18x18x32xbf16> to vector<16x16x32xbf16>
    %95 = vector.shape_cast %94 : vector<16x16x32xbf16> to vector<256x32xbf16>
    %96 = vector.extract_strided_slice %93 {offsets = [0, 1, 0], sizes = [16, 16, 32], strides = [1, 1, 1]} : vector<18x18x32xbf16> to vector<16x16x32xbf16>
    %97 = vector.shape_cast %96 : vector<16x16x32xbf16> to vector<256x32xbf16>
    %98 = vector.extract_strided_slice %93 {offsets = [0, 2, 0], sizes = [16, 16, 32], strides = [1, 1, 1]} : vector<18x18x32xbf16> to vector<16x16x32xbf16>
    %99 = vector.shape_cast %98 : vector<16x16x32xbf16> to vector<256x32xbf16>
    %100 = vector.extract_strided_slice %93 {offsets = [1, 0, 0], sizes = [16, 16, 32], strides = [1, 1, 1]} : vector<18x18x32xbf16> to vector<16x16x32xbf16>
    %101 = vector.shape_cast %100 : vector<16x16x32xbf16> to vector<256x32xbf16>
    %102 = vector.extract_strided_slice %93 {offsets = [1, 1, 0], sizes = [16, 16, 32], strides = [1, 1, 1]} : vector<18x18x32xbf16> to vector<16x16x32xbf16>
    %103 = vector.shape_cast %102 : vector<16x16x32xbf16> to vector<256x32xbf16>
    %104 = vector.extract_strided_slice %93 {offsets = [1, 2, 0], sizes = [16, 16, 32], strides = [1, 1, 1]} : vector<18x18x32xbf16> to vector<16x16x32xbf16>
    %105 = vector.shape_cast %104 : vector<16x16x32xbf16> to vector<256x32xbf16>
    %106 = vector.extract_strided_slice %93 {offsets = [2, 0, 0], sizes = [16, 16, 32], strides = [1, 1, 1]} : vector<18x18x32xbf16> to vector<16x16x32xbf16>
    %107 = vector.shape_cast %106 : vector<16x16x32xbf16> to vector<256x32xbf16>
    %108 = vector.extract_strided_slice %93 {offsets = [2, 1, 0], sizes = [16, 16, 32], strides = [1, 1, 1]} : vector<18x18x32xbf16> to vector<16x16x32xbf16>
    %109 = vector.shape_cast %108 : vector<16x16x32xbf16> to vector<256x32xbf16>
    %110 = vector.extract_strided_slice %93 {offsets = [2, 2, 0], sizes = [16, 16, 32], strides = [1, 1, 1]} : vector<18x18x32xbf16> to vector<16x16x32xbf16>
    %111 = vector.shape_cast %110 : vector<16x16x32xbf16> to vector<256x32xbf16>
    %112 = tpu.concatenate %95, %97, %99, %101, %103, %105, %107, %109, %111 in 1 : vector<256x32xbf16>, vector<256x32xbf16>, vector<256x32xbf16>, vector<256x32xbf16>, vector<256x32xbf16>, vector<256x32xbf16>, vector<256x32xbf16>, vector<256x32xbf16>, vector<256x32xbf16> -> vector<256x288xbf16>
    %c0_43 = arith.constant 0 : index
    %c0_44 = arith.constant 0 : index
    %113 = vector.load %arg10[%c0_43, %c0_44] : memref<288x1xbf16, #tpu.memory_space<vmem>>, vector<288x1xbf16>
    %cst_45 = arith.constant dense<0.000000e+00> : vector<256x1xf32>
    %114 = tpu.matmul %112, %113, %cst_45 {dimension_numbers = #tpu.dot_dimension_numbers<[1], [0], [0], [1], [0, 0, 1, 1], [], []>} : vector<256x288xbf16>, vector<288x1xbf16>, vector<256x1xf32> -> vector<256x1xf32>
    %c0_46 = arith.constant 0 : index
    %115 = memref.load %arg16[%c0_46] : memref<1xf32, #tpu.memory_space<smem>>
    %116 = vector.broadcast %115 : f32 to vector<256x1xf32>
    %117 = arith.addf %114, %116 : vector<256x1xf32>
    %118 = arith.negf %117 : vector<256x1xf32>
    %119 = math.exp %118 : vector<256x1xf32>
    %cst_47 = arith.constant 1.000000e+00 : f32
    %120 = vector.broadcast %cst_47 : f32 to vector<256x1xf32>
    %121 = arith.addf %120, %119 : vector<256x1xf32>
    %122 = arith.divf %120, %121 : vector<256x1xf32>
    %123 = vector.shape_cast %122 : vector<256x1xf32> to vector<16x16x1xf32>
    %124 = vector.broadcast %123 : vector<16x16x1xf32> to vector<16x16x32xf32>
    %125 = arith.mulf %87, %124 : vector<16x16x32xf32>
    %126 = arith.addf %125, %36 : vector<16x16x32xf32>
    %127 = vector.shape_cast %126 : vector<16x16x32xf32> to vector<256x32xf32>
    %cst_48 = arith.constant dense<0.000000e+00> : vector<32xf32>
    %128 = vector.multi_reduction <add>, %127, %cst_48 [0] : vector<256x32xf32> to vector<32xf32>
    %129 = vector.shape_cast %128 : vector<32xf32> to vector<1x32xf32>
    %cst_49 = arith.constant 2.560000e+02 : f32
    %130 = vector.broadcast %cst_49 : f32 to vector<1x32xf32>
    %131 = arith.divf %129, %130 : vector<1x32xf32>
    %cst_50 = arith.constant dense<0xFF800000> : vector<32xf32>
    %132 = vector.multi_reduction <maximumf>, %127, %cst_50 [0] : vector<256x32xf32> to vector<32xf32>
    %133 = vector.shape_cast %132 : vector<32xf32> to vector<1x32xf32>
    %134 = tpu.concatenate %131, %133 in 0 : vector<1x32xf32>, vector<1x32xf32> -> vector<2x32xf32>
    %c0_51 = arith.constant 0 : index
    %c0_52 = arith.constant 0 : index
    %135 = vector.load %arg11[%c0_51, %c0_52] : memref<32x2xf32, #tpu.memory_space<vmem>>, vector<32x2xf32>
    %cst_53 = arith.constant dense<0.000000e+00> : vector<2x2xf32>
    %136 = tpu.matmul %134, %135, %cst_53 {dimension_numbers = #tpu.dot_dimension_numbers<[1], [0], [0], [1], [0, 0, 1, 1], [], []>} : vector<2x32xf32>, vector<32x2xf32>, vector<2x2xf32> -> vector<2x2xf32>
    %c0_54 = arith.constant 0 : index
    %c0_55 = arith.constant 0 : index
    %137 = vector.load %arg12[%c0_54, %c0_55] : memref<1x2xf32, #tpu.memory_space<vmem>>, vector<1x2xf32>
    %138 = vector.broadcast %137 : vector<1x2xf32> to vector<2x2xf32>
    %139 = arith.addf %136, %138 : vector<2x2xf32>
    %cst_56 = arith.constant 0.000000e+00 : f32
    %140 = vector.broadcast %cst_56 : f32 to vector<2x2xf32>
    %141 = arith.maximumf %139, %140 : vector<2x2xf32>
    %c0_57 = arith.constant 0 : index
    %c0_58 = arith.constant 0 : index
    %142 = vector.load %arg13[%c0_57, %c0_58] : memref<2x32xf32, #tpu.memory_space<vmem>>, vector<2x32xf32>
    %cst_59 = arith.constant dense<0.000000e+00> : vector<2x32xf32>
    %143 = tpu.matmul %141, %142, %cst_59 {dimension_numbers = #tpu.dot_dimension_numbers<[1], [0], [0], [1], [0, 0, 1, 1], [], []>} : vector<2x2xf32>, vector<2x32xf32>, vector<2x32xf32> -> vector<2x32xf32>
    %c0_60 = arith.constant 0 : index
    %c0_61 = arith.constant 0 : index
    %144 = vector.load %arg14[%c0_60, %c0_61] : memref<1x32xf32, #tpu.memory_space<vmem>>, vector<1x32xf32>
    %145 = vector.broadcast %144 : vector<1x32xf32> to vector<2x32xf32>
    %146 = arith.addf %143, %145 : vector<2x32xf32>
    %147 = vector.extract_strided_slice %146 {offsets = [0, 0], sizes = [1, 32], strides = [1, 1]} : vector<2x32xf32> to vector<1x32xf32>
    %148 = vector.extract_strided_slice %146 {offsets = [1, 0], sizes = [1, 32], strides = [1, 1]} : vector<2x32xf32> to vector<1x32xf32>
    %149 = arith.addf %147, %148 : vector<1x32xf32>
    %150 = arith.negf %149 : vector<1x32xf32>
    %151 = math.exp %150 : vector<1x32xf32>
    %cst_62 = arith.constant 1.000000e+00 : f32
    %152 = vector.broadcast %cst_62 : f32 to vector<1x32xf32>
    %153 = arith.addf %152, %151 : vector<1x32xf32>
    %154 = arith.divf %152, %153 : vector<1x32xf32>
    %155 = vector.broadcast %154 : vector<1x32xf32> to vector<256x32xf32>
    %156 = arith.mulf %127, %155 : vector<256x32xf32>
    %157 = vector.shape_cast %156 : vector<256x32xf32> to vector<16x16x32xf32>
    %cst_63 = arith.constant 0.000000e+00 : f32
    %158 = vector.broadcast %cst_63 : f32 to vector<3x16xf32>
    %cst_64 = arith.constant 0.000000e+00 : f32
    %159 = vector.broadcast %cst_64 : f32 to vector<22x3xf32>
    %cst_65 = arith.constant dense<0xFF800000> : vector<16x16xf32>
    %160 = vector.multi_reduction <maximumf>, %157, %cst_65 [2] : vector<16x16x32xf32> to vector<16x16xf32>
    %161 = tpu.concatenate %158, %160, %158 in 0 : vector<3x16xf32>, vector<16x16xf32>, vector<3x16xf32> -> vector<22x16xf32>
    %162 = tpu.concatenate %159, %161, %159 in 1 : vector<22x3xf32>, vector<22x16xf32>, vector<22x3xf32> -> vector<22x22xf32>
    %cst_66 = arith.constant dense<0.000000e+00> : vector<16x16xf32>
    %163 = vector.multi_reduction <add>, %157, %cst_66 [2] : vector<16x16x32xf32> to vector<16x16xf32>
    %cst_67 = arith.constant 3.200000e+01 : f32
    %164 = vector.broadcast %cst_67 : f32 to vector<16x16xf32>
    %165 = arith.divf %163, %164 : vector<16x16xf32>
    %166 = tpu.concatenate %158, %165, %158 in 0 : vector<3x16xf32>, vector<16x16xf32>, vector<3x16xf32> -> vector<22x16xf32>
    %167 = tpu.concatenate %159, %166, %159 in 1 : vector<22x3xf32>, vector<22x16xf32>, vector<22x3xf32> -> vector<22x22xf32>
    %168 = tpu.concatenate %162, %167 in 1 : vector<22x22xf32>, vector<22x22xf32> -> vector<22x44xf32>
    %169 = vector.extract_strided_slice %168 {offsets = [0, 0], sizes = [16, 44], strides = [1, 1]} : vector<22x44xf32> to vector<16x44xf32>
    %170 = vector.extract_strided_slice %168 {offsets = [1, 0], sizes = [16, 44], strides = [1, 1]} : vector<22x44xf32> to vector<16x44xf32>
    %171 = vector.extract_strided_slice %168 {offsets = [2, 0], sizes = [16, 44], strides = [1, 1]} : vector<22x44xf32> to vector<16x44xf32>
    %172 = vector.extract_strided_slice %168 {offsets = [3, 0], sizes = [16, 44], strides = [1, 1]} : vector<22x44xf32> to vector<16x44xf32>
    %173 = vector.extract_strided_slice %168 {offsets = [4, 0], sizes = [16, 44], strides = [1, 1]} : vector<22x44xf32> to vector<16x44xf32>
    %174 = vector.extract_strided_slice %168 {offsets = [5, 0], sizes = [16, 44], strides = [1, 1]} : vector<22x44xf32> to vector<16x44xf32>
    %175 = vector.extract_strided_slice %168 {offsets = [6, 0], sizes = [16, 44], strides = [1, 1]} : vector<22x44xf32> to vector<16x44xf32>
    %176 = tpu.concatenate %169, %170, %171, %172, %173, %174, %175 in 1 : vector<16x44xf32>, vector<16x44xf32>, vector<16x44xf32>, vector<16x44xf32>, vector<16x44xf32>, vector<16x44xf32>, vector<16x44xf32> -> vector<16x308xf32>
    %c0_68 = arith.constant 0 : index
    %c0_69 = arith.constant 0 : index
    %177 = vector.load %arg15[%c0_68, %c0_69] : memref<308x16xf32, #tpu.memory_space<vmem>>, vector<308x16xf32>
    %cst_70 = arith.constant dense<0.000000e+00> : vector<16x16xf32>
    %178 = tpu.matmul %176, %177, %cst_70 {dimension_numbers = #tpu.dot_dimension_numbers<[1], [0], [0], [1], [0, 0, 1, 1], [], []>} : vector<16x308xf32>, vector<308x16xf32>, vector<16x16xf32> -> vector<16x16xf32>
    %c0_71 = arith.constant 0 : index
    %179 = memref.load %arg17[%c0_71] : memref<1xf32, #tpu.memory_space<smem>>
    %180 = vector.broadcast %179 : f32 to vector<16x16xf32>
    %181 = arith.addf %178, %180 : vector<16x16xf32>
    %182 = arith.negf %181 : vector<16x16xf32>
    %183 = math.exp %182 : vector<16x16xf32>
    %cst_72 = arith.constant 1.000000e+00 : f32
    %184 = vector.broadcast %cst_72 : f32 to vector<16x16xf32>
    %185 = arith.addf %184, %183 : vector<16x16xf32>
    %186 = arith.divf %184, %185 : vector<16x16xf32>
    %187 = vector.shape_cast %186 : vector<16x16xf32> to vector<16x16x1xf32>
    %188 = vector.broadcast %187 : vector<16x16x1xf32> to vector<16x16x32xf32>
    %189 = arith.mulf %157, %188 : vector<16x16x32xf32>
    %190 = vector.shape_cast %189 : vector<16x16x32xf32> to vector<256x32xf32>
    %cst_73 = arith.constant 0.000000e+00 : f32
    %191 = vector.broadcast %cst_73 : f32 to vector<256x96xf32>
    %192 = tpu.concatenate %190, %191 in 1 : vector<256x32xf32>, vector<256x96xf32> -> vector<256x128xf32>
    %193 = tpu.transpose %192, [1, 0] : vector<256x128xf32> -> vector<128x256xf32>
    %194 = vector.extract_strided_slice %193 {offsets = [0, 0], sizes = [32, 256], strides = [1, 1]} : vector<128x256xf32> to vector<32x256xf32>
    %c0_74 = arith.constant 0 : index
    %c0_75 = arith.constant 0 : index
    %c0_76 = arith.constant 0 : index
    %195 = vector.load %arg18[%c0_74, %c0_75, %c0_76] : memref<1x32x256xf32, #tpu.memory_space<vmem>>, vector<1x32x256xf32>
    %196 = vector.shape_cast %195 : vector<1x32x256xf32> to vector<32x256xf32>
    %197 = vector.shape_cast %194 : vector<32x256xf32> to vector<1x32x256xf32>
    tpu.vector_store %arg18[%c0_74, %c0_75, %c0_76], %197 {strides = array<i32>} : memref<1x32x256xf32, #tpu.memory_space<vmem>>, vector<1x32x256xf32>,
    return
  }
  func.func @transform_0(%arg0: i32) -> (i32, i32, i32, i32) {
    %c0_i32 = arith.constant 0 : i32
    %c0_i32_0 = arith.constant 0 : i32
    %c0_i32_1 = arith.constant 0 : i32
    %c0_i32_2 = arith.constant 0 : i32
    return %arg0, %c0_i32, %c0_i32_0, %c0_i32_1 : i32, i32, i32, i32
  }
  func.func @transform_1(%arg0: i32) -> (i32, i32, i32) {
    %c0_i32 = arith.constant 0 : i32
    %c0_i32_0 = arith.constant 0 : i32
    %c0_i32_1 = arith.constant 0 : i32
    return %arg0, %c0_i32, %c0_i32_0 : i32, i32, i32
  }
  func.func @transform_2(%arg0: i32) -> (i32, i32, i32) {
    %c0_i32 = arith.constant 0 : i32
    %c0_i32_0 = arith.constant 0 : i32
    %c0_i32_1 = arith.constant 0 : i32
    return %arg0, %c0_i32, %c0_i32_0 : i32, i32, i32
  }
  func.func @transform_3(%arg0: i32) -> (i32, i32) {
    %c0_i32 = arith.constant 0 : i32
    %c0_i32_0 = arith.constant 0 : i32
    %c0_i32_1 = arith.constant 0 : i32
    return %c0_i32, %c0_i32_0 : i32, i32
  }
  func.func @transform_4(%arg0: i32) -> (i32, i32) {
    %c0_i32 = arith.constant 0 : i32
    %c0_i32_0 = arith.constant 0 : i32
    %c0_i32_1 = arith.constant 0 : i32
    return %c0_i32, %c0_i32_0 : i32, i32
  }
  func.func @transform_5(%arg0: i32) -> (i32, i32) {
    %c0_i32 = arith.constant 0 : i32
    %c0_i32_0 = arith.constant 0 : i32
    %c0_i32_1 = arith.constant 0 : i32
    return %c0_i32, %c0_i32_0 : i32, i32
  }
  func.func @transform_6(%arg0: i32) -> (i32, i32) {
    %c0_i32 = arith.constant 0 : i32
    %c0_i32_0 = arith.constant 0 : i32
    %c0_i32_1 = arith.constant 0 : i32
    return %c0_i32, %c0_i32_0 : i32, i32
  }
  func.func @transform_7(%arg0: i32) -> (i32, i32) {
    %c0_i32 = arith.constant 0 : i32
    %c0_i32_0 = arith.constant 0 : i32
    %c0_i32_1 = arith.constant 0 : i32
    return %c0_i32, %c0_i32_0 : i32, i32
  }
  func.func @transform_8(%arg0: i32) -> (i32, i32) {
    %c0_i32 = arith.constant 0 : i32
    %c0_i32_0 = arith.constant 0 : i32
    %c0_i32_1 = arith.constant 0 : i32
    return %c0_i32, %c0_i32_0 : i32, i32
  }
  func.func @transform_9(%arg0: i32) -> (i32, i32) {
    %c0_i32 = arith.constant 0 : i32
    %c0_i32_0 = arith.constant 0 : i32
    %c0_i32_1 = arith.constant 0 : i32
    return %c0_i32, %c0_i32_0 : i32, i32
  }
  func.func @transform_10(%arg0: i32) -> (i32, i32) {
    %c0_i32 = arith.constant 0 : i32
    %c0_i32_0 = arith.constant 0 : i32
    %c0_i32_1 = arith.constant 0 : i32
    return %c0_i32, %c0_i32_0 : i32, i32
  }
  func.func @transform_11(%arg0: i32) -> (i32, i32) {
    %c0_i32 = arith.constant 0 : i32
    %c0_i32_0 = arith.constant 0 : i32
    %c0_i32_1 = arith.constant 0 : i32
    return %c0_i32, %c0_i32_0 : i32, i32
  }
  func.func @transform_12(%arg0: i32) -> (i32, i32) {
    %c0_i32 = arith.constant 0 : i32
    %c0_i32_0 = arith.constant 0 : i32
    %c0_i32_1 = arith.constant 0 : i32
    return %c0_i32, %c0_i32_0 : i32, i32
  }
  func.func @transform_13(%arg0: i32) -> (i32, i32) {
    %c0_i32 = arith.constant 0 : i32
    %c0_i32_0 = arith.constant 0 : i32
    %c0_i32_1 = arith.constant 0 : i32
    return %c0_i32, %c0_i32_0 : i32, i32
  }
  func.func @transform_14(%arg0: i32) -> (i32, i32) {
    %c0_i32 = arith.constant 0 : i32
    %c0_i32_0 = arith.constant 0 : i32
    %c0_i32_1 = arith.constant 0 : i32
    return %c0_i32, %c0_i32_0 : i32, i32
  }
  func.func @transform_15(%arg0: i32) -> i32 {
    %c0_i32 = arith.constant 0 : i32
    %c0_i32_0 = arith.constant 0 : i32
    return %c0_i32 : i32
  }
  func.func @transform_16(%arg0: i32) -> i32 {
    %c0_i32 = arith.constant 0 : i32
    %c0_i32_0 = arith.constant 0 : i32
    return %c0_i32 : i32
  }
  func.func @transform_17(%arg0: i32) -> (i32, i32, i32) {
    %c0_i32 = arith.constant 0 : i32
    %c0_i32_0 = arith.constant 0 : i32
    %c0_i32_1 = arith.constant 0 : i32
    return %arg0, %c0_i32, %c0_i32_0 : i32, i32, i32
  }
}

</mosaic_0001>

<bundles_post_ra>
// kernel: mega_forward.1
= control target key start
LH: loop header
LB: loop body
LE: loop exit
PB: predicated region body
PF: predicated region fallthrough
CT: control target
= control target key end

     0   :  { %s9013_s28 = smov 0   ;;  %s13203_s0 = inlined_call_operand.vmem [shape: f32[2,3,64,64], index: 0, kind: input, shape index: {}]   ;;  %s13204_s1 = inlined_call_operand.vmem [shape: f32[2,32,256], index: 1, kind: input, shape index: {}]   ;;  %s13205_s2 = inlined_call_operand.vmem [shape: f32[2,16,16], index: 2, kind: input, shape index: {}]   ;;  %s13206_s3 = inlined_call_operand.vmem [shape: f32[32,64], index: 3, kind: input, shape index: {}]   ;;  %s13207_s4 = inlined_call_operand.vmem [shape: f32[128,16], index: 4, kind: input, shape index: {}]   ;;  %s13208_s5 = inlined_call_operand.vmem [shape: f32[16,16], index: 5, kind: input, shape index: {}]   ;;  %s13209_s6 = inlined_call_operand.vmem [shape: f32[16,16], index: 6, kind: input, shape index: {}]   ;;  %s13210_s7 = inlined_call_operand.vmem [shape: bf16[864,32], index: 7, kind: input, shape index: {}]   ;;  %s13211_s8 = inlined_call_operand.vmem [shape: f32[2,32], index: 8, kind: input, shape index: {}]   ;;  %s13212_s9 = inlined_call_operand.vmem [shape: bf16[288,1], index: 9, kind: input, shape index: {}]   ;;  %s13213_s10 = inlined_call_operand.vmem [shape: f32[32,2], index: 10, kind: input, shape index: {}]   ;;  %s13214_s11 = inlined_call_operand.vmem [shape: f32[1,2], index: 11, kind: input, shape index: {}]   ;;  %s13215_s12 = inlined_call_operand.vmem [shape: f32[2,32], index: 12, kind: input, shape index: {}]   ;;  %s13216_s13 = inlined_call_operand.vmem [shape: f32[1,32], index: 13, kind: input, shape index: {}]   ;;  %s13217_s14 = inlined_call_operand.vmem [shape: f32[308,16], index: 14, kind: input, shape index: {}]   ;;  %s13218_s15 = inlined_call_operand.<no memory space> [shape: f32[1], index: 15, kind: input, shape index: {}]   ;;  %s13219_s16 = inlined_call_operand.<no memory space> [shape: f32[1], index: 16, kind: input, shape index: {}]   ;;  %s13220_s17 = inlined_call_operand.vmem [shape: f32[2,32,256], index: 17, kind: output, shape index: {}]  }
   0x1   :  { %13323 = sst [smem:[#allocation84_spill]] %s13203_s0 }
   0x2   :  { %13324 = sst [smem:[#allocation85_spill]] %s13204_s1 }
   0x3   :  { %22 = sst [smem:[#allocation2]] %s13218_s15 }
   0x4   :  { %23 = sst [smem:[#allocation3]] %s13219_s16 }
   0x5 LB: > { %s7951_s29 = sadd.s32 4294967295, %s8901_s28   ;;  %p7955_p0 = scmp.ge.s32.totalorder %s8901_s28, 1  ;;  %s8901_s28 = sphi %s9013_s28, %s29_s28  }
   0x6   : > { %p509_p1 = scmp.lt.s32.totalorder %s8901_s28, 3 }
   0x8   : > { %p510_p2 = pnand %p7955_p0, %p509_p1 }
   0xa   : > { %513 = sbr.rel (%p510_p2) target bundleno = 4011 (0xfab), region = 88 }
   0xf   : > { %p571_p3 = scmp.lt.s32.totalorder %s7951_s29, 1  ;;  %v13221_v0 = vlaneseq  ;;  %s13326_s20 = sld [smem:[#allocation84_spill]]  ;;  %vm662_vm0 = vcmask 523264   ;;  %vm795_vm9 = vcmask 130048   ;;  %vm2741_vm10 = vcmask 785408  }
  0x10   : > { %s8903_s22 = smov 64   ;;  %s8905_s1 = smov 96   ;;  %vm8205_vm11 = vmneg %vm2741_vm10  ;;  %vm1908_vm12 = vcmask 261120   ;;  %vm2229_vm13 = vcmask 1040384   ;;  %vm2230_vm14 = vsmask.f32 256 }
  0x11   : > { %s13615_s29 = smov (!%p571_p3, %s7951_s29), 1  ;;  %v9024_v1 = vshrl.u32 %v13221_v0, 7  ;;  %s8906_s27 = smov 32   ;;  %vm9533_vm15 = vmand %vm2229_vm13, %vm2230_vm14 }
  0x12   : > { %s8445_s15 = smul.u32 192, %s13615_s29  ;;  %s8355_s16 = sshll.u32 %s13615_s29, 4 }
  0x13   : > { %13325 = vst [vmem:[#allocation4_spill] sm:$0xff] %v9024_v1  ;;  %8474 = vset.pattern.permute.xlu2 %v9024_v1  ;;  %s9032_s18 = scalar_lea.vmem %s13205_s2, %s8355_s16  ;;  %s5265_s19 = sld [smem:[#allocation2]] }
  0x14   : > { %v753_v2 = vld [vmem:[%s9032_s18] sm:$0xff]  ;;  %s8911_s24 = smov 4   ;;  %s8913_s25 = smov 44  }
  0x15   : > { %s9037_s21 = scalar_lea.vmem %s13326_s20, %s8445_s15  ;;  %v7983_v6 = vmul.f32 -1.442695, %v753_v2  ;;  %s13328_s20 = sld [smem:[#allocation85_spill]] }
  0x16   : > { %v599_v3 = vld [vmem:[%s9037_s21 + $0x38] sm:$0xff]  ;;  %v598_v10 = vld [vmem:[%s9037_s21 + $0x30] sm:$0xff]  ;;  %v597_v17 = vld [vmem:[%s9037_s21 + $0x28] sm:$0xff]  ;;  %s8914_s26 = smov 8   ;;  %s8916_s15 = smov 48  }
  0x17   : > { %v7970_v4 = vld [vmem:[%s9037_s21 + $0x78] sm:$0xff]  ;;  %v607_v7 = vmul.f32 0.2989, %v599_v3  ;;  %v7969_v11 = vld [vmem:[%s9037_s21 + $0x70] sm:$0xff]  ;;  %8741 = vpow2.f32 %v7983_v6  ;;  %v606_v14 = vmul.f32 0.2989, %v598_v10 }
  0x18   : > { %v7978_v5 = vld [vmem:[%s9037_s21 + $0xb8] sm:$0xff]  ;;  %v624_v8 = vmul.f32 0.587, %v7970_v4  ;;  %v7977_v12 = vld [vmem:[%s9037_s21 + $0xb0] sm:$0xff]  ;;  %v623_v15 = vmul.f32 0.587, %v7969_v11 }
  0x19   : > { %v649_v9 = vmul.f32 0.114, %v7978_v5  ;;  %v648_v16 = vmul.f32 0.114, %v7977_v12  ;;  %v7968_v18 = vld [vmem:[%s9037_s21 + $0x68] sm:$0xff]  ;;  %v596_v24 = vld [vmem:[%s9037_s21 + $0x20] sm:$0xff] }
  0x1a   : > { %v632_v13 = vadd.f32 %v624_v8, %v607_v7  ;;  %v7976_v19 = vld [vmem:[%s9037_s21 + $0xa8] sm:$0xff]  ;;  %v631_v21 = vadd.f32 %v623_v15, %v606_v14  ;;  %v605_v22 = vmul.f32 0.2989, %v597_v17  ;;  %v622_v23 = vmul.f32 0.587, %v7968_v18  ;;  %v7967_v25 = vld [vmem:[%s9037_s21 + $0x60] sm:$0xff] }
  0x1b   : > { %v647_v26 = vmul.f32 0.114, %v7976_v19  ;;  %v604_v27 = vmul.f32 0.2989, %v596_v24  ;;  %v621_v28 = vmul.f32 0.587, %v7967_v25 }
  0x1c   : > { %v657_v20 = vadd.f32 %v649_v9, %v632_v13  ;;  %v656_v29 = vadd.f32 %v648_v16, %v631_v21  ;;  %v630_v30 = vadd.f32 %v622_v23, %v605_v22  ;;  %v7975_v31 = vld [vmem:[%s9037_s21 + $0xa0] sm:$0xff]  ;;  %v595_v32 = vld [vmem:[%s9037_s21 + $0x18] sm:$0xff]  ;;  %v594_v41 = vld [vmem:[%s9037_s21 + $0x10] sm:$0xff]  ;;  %v9082_v23 = vadd.s32 8, %v9024_v1 }
  0x1d   : > { %v7966_v33 = vld [vmem:[%s9037_s21 + $0x58] sm:$0xff]  ;;  %v8742_v34 = vpop.eup %8741  ;;  %v629_v35 = vadd.f32 %v621_v28, %v604_v27  ;;  %v646_v36 = vmul.f32 0.114, %v7975_v31  ;;  %v603_v37 = vmul.f32 0.2989, %v595_v32  ;;  %v7965_v42 = vld [vmem:[%s9037_s21 + $0x50] sm:$0xff] }
  0x1e   : > { %683 = vmatpush.msra.mxu0 %v657_v20  ;;  %v620_v38 = vmul.f32 0.587, %v7966_v33  ;;  %v655_v39 = vadd.f32 %v647_v26, %v630_v30  ;;  %v7974_v40 = vld [vmem:[%s9037_s21 + $0x98] sm:$0xff]  ;;  %v761_v43 = vadd.f32 1.0, %v8742_v34  ;;  %v602_v47 = vmul.f32 0.2989, %v594_v41 }
  0x1f   : > { %v654_v44 = vadd.f32 %v646_v36, %v629_v35  ;;  %v645_v46 = vmul.f32 0.114, %v7974_v40  ;;  %v7973_v48 = vld [vmem:[%s9037_s21 + $0x90] sm:$0xff]  ;;  %v593_v49 = vld [vmem:[%s9037_s21 + $0x8] sm:$0xff]  ;;  %v619_v50 = vmul.f32 0.587, %v7965_v42 }
  0x20   : > { %684 = vmatpush.msra.mxu0 %v656_v29  ;;  %v628_v45 = vadd.f32 %v620_v38, %v603_v37  ;;  %v644_v51 = vmul.f32 0.114, %v7973_v48  ;;  %v601_v52 = vmul.f32 0.2989, %v593_v49  ;;  %8743 = vrcp.f32 %v761_v43  ;;  %v7964_v54 = vld [vmem:[%s9037_s21 + $0x48] sm:$0xff]  ;;  %v592_v56 = vld [vmem:[%s9037_s21] sm:$0xff] }
  0x21   : > { %v7972_v55 = vld [vmem:[%s9037_s21 + $0x88] sm:$0xff]  ;;  %v627_v57 = vadd.f32 %v619_v50, %v602_v47  ;;  %v618_v58 = vmul.f32 0.587, %v7964_v54  ;;  %v600_v60 = vmul.f32 0.2989, %v592_v56  ;;  %v7963_v61 = vld [vmem:[%s9037_s21 + $0x40] sm:$0xff]  ;;  %vm768_vm1 = vweird.f32 %v761_v43 }
  0x22   : > { %685 = vmatpush.msra.mxu0 %v655_v39  ;;  %v653_v53 = vadd.f32 %v645_v46, %v628_v45  ;;  %v643_v59 = vmul.f32 0.114, %v7972_v55  ;;  %v7971_v62 = vld [vmem:[%s9037_s21 + $0x80] sm:$0xff]  ;;  %v617_v3 = vmul.f32 0.587, %v7963_v61  ;;  %v774_v11 = vand.u32 2147483648, %v761_v43 }
  0x23   : > { %v652_v63 = vadd.f32 %v644_v51, %v627_v57  ;;  %v626_v2 = vadd.f32 %v618_v58, %v601_v52  ;;  %v642_v4 = vmul.f32 0.114, %v7971_v62  ;;  %v658_v10 = vld [vmem:[%s13206_s3] sm:$0xff]  ;;  %v772_v13 = vand.u32 2147483647, %v761_v43  ;;  %v659_v18 = vld [vmem:[%s13206_s3 + $0x8] sm:$0xff] }
  0x24   : > { %686 = vmatpush.msra.mxu0 %v654_v44  ;;  %v625_v7 = vadd.f32 %v617_v3, %v600_v60  ;;  %v775_v15 = vor.u32 1.1754944e-38, %v774_v11  ;;  %v660_v22 = vld [vmem:[%s13206_s3 + $0x10] sm:$0xff]  ;;  %13327 = vst [vmem:[#allocation5_spill] sm:$0xff] %v9082_v23  ;;  %v661_v24 = vld [vmem:[%s13206_s3 + $0x18] sm:$0xff]  ;;  %v754_v25 = vld [vmem:[%s9032_s18 + $0x8] sm:$0xff]  ;;  %s8354_s18 = sshll.u32 %s13615_s29, 6 }
  0x25   : > { %v651_v6 = vadd.f32 %v643_v59, %v626_v2  ;;  %vm773_vm4 = vcmp.eq.f32.partialorder %v772_v13, 8.507059e+37  ;;  %v7984_v26 = vmul.f32 -1.442695, %v754_v25  ;;  %v793_v40 = vld [vmem:[%s13208_s5] sm:$0xff]  ;;  %s9114_s21 = scalar_lea.vmem %s13328_s20, %s8354_s18  ;;  %v826_v55 = vld [vmem:[%s13209_s6 + $0x8] sm:$0xff]  ;;  %v729_v62 = vld [vmem:[%s13207_s4 + $0x78] sm:$0xff] }
  0x26   : > { %687 = vmatpush.msra.mxu0 %v653_v53  ;;  %v8744_v5 = vpop.eup %8743  ;;  %v650_v9 = vadd.f32 %v642_v4, %v625_v7  ;;  %v861_v44 = vld [vmem:[%s9114_s21 + $0x18] sm:$0xff]  ;;  %v863_v45 = vld [vmem:[%s9114_s21 + $0x28] sm:$0xff]  ;;  %v825_v56 = vld [vmem:[%s13209_s6] sm:$0xff]  ;;  %847 = vmatpush.msra.mxu3 %v826_v55  ;;  %s8910_s20 = smov 22  }
  0x27   : > { %v764_v8 = vmul.f32 %v8744_v5, %v761_v43  ;;  %vm769_vm2 = vweird.f32 %v8744_v5  ;;  %8745 = vpow2.f32 %v7984_v26  ;;  %v859_v43 = vld [vmem:[%s9114_s21 + $0x8] sm:$0xff]  ;;  %v865_v47 = vld [vmem:[%s9114_s21 + $0x38] sm:$0xff]  ;;  %v858_v58 = vld [vmem:[%s9114_s21] sm:$0xff]  ;;  %730 = vmatpush.msra.mxu1 %v729_v62 }
  0x28   : > { %688 = vmatpush.msra.mxu0 %v652_v63  ;;  %vm770_vm3 = vmor %vm768_vm1, %vm769_vm2  ;;  %898 = vxpose.xlu1.b32.start [1/4] (short) %v859_v43, 128  ;;  %v860_v60 = vld [vmem:[%s9114_s21 + $0x10] sm:$0xff]  ;;  %v862_v61 = vld [vmem:[%s9114_s21 + $0x20] sm:$0xff]  ;;  %vm2484_vm1 = vcmask 1046528   ;;  %vm2264_vm2 = vsmask.f32 7424 }
  0x29   : > { %v765_v12 = vsub.f32 1.0, %v764_v8  ;;  %848 = vmatpush.msra.mxu3 %v825_v56  ;;  %v728_v63 = vld [vmem:[%s13207_s4 + $0x70] sm:$0xff]  ;;  %v727_v4 = vld [vmem:[%s13207_s4 + $0x68] sm:$0xff]  ;;  %v721_v11 = vld [vmem:[%s13207_s4 + $0x38] sm:$0xff] }
  0x2a   : > { %689 = vmatpush.msra.mxu0 %v651_v6  ;;  %731 = vmatpush.msra.mxu1 %v728_v63  ;;  %v864_v2 = vld [vmem:[%s9114_s21 + $0x30] sm:$0xff]  ;;  %v725_v6 = vld [vmem:[%s13207_s4 + $0x58] sm:$0xff]  ;;  %v719_v13 = vld [vmem:[%s13207_s4 + $0x28] sm:$0xff]  ;;  %s8912_s21 = smov 88  }
  0x2b   : > { %v766_v14 = vmul.f32 %v8744_v5, %v765_v12  ;;  %v724_v8 = vld [vmem:[%s13207_s4 + $0x50] sm:$0xff] }
  0x2c   : > { %690 = vmatpush.msra.mxu0 %v650_v9  ;;  %732 = vmatpush.msra.mxu1 %v727_v4  ;;  %v723_v9 = vld [vmem:[%s13207_s4 + $0x48] sm:$0xff]  ;;  %v720_v12 = vld [vmem:[%s13207_s4 + $0x30] sm:$0xff] }
  0x2d   : > { %7979 = vmatmul.msk.f32.vlgmr.msra.gmra.mxu0 %vm662_vm0, %v658_v10  ;;  %v767_v16 = vadd.f32 %v8744_v5, %v766_v14  ;;  %v8746_v27 = vpop.eup %8745  ;;  %v722_v10 = vld [vmem:[%s13207_s4 + $0x40] sm:$0xff] }
  0x2e   : > { %v762_v28 = vadd.f32 1.0, %v8746_v27  ;;  %v718_v14 = vld [vmem:[%s13207_s4 + $0x20] sm:$0xff] }
  0x2f   : > { %v771_v17 = vsel %vm770_vm3, %v8744_v5, %v767_v16  ;;  %v726_v5 = vld [vmem:[%s13207_s4 + $0x60] sm:$0xff]  ;;  %v716_v16 = vld [vmem:[%s13207_s4 + $0x10] sm:$0xff] }
  0x30   : > { %v9071_v19 = vsel %vm773_vm4, %v775_v15, %v771_v17  ;;  %8747 = vrcp.f32 %v762_v28  ;;  %v789_v34 = vand.u32 2147483648, %v762_v28  ;;  %vm783_vm5 = vweird.f32 %v762_v28  ;;  %899 = vxpose.xlu1.b32.cont [2/4] (short) %v861_v44, 128  ;;  %733 = vmatpush.msra.mxu1 %v726_v5  ;;  %v717_v15 = vld [vmem:[%s13207_s4 + $0x18] sm:$0xff]  ;;  %v715_v17 = vld [vmem:[%s13207_s4 + $0x8] sm:$0xff] }
  0x31   : > { %v9074_v20 = vsub.f32 1.0, %v9071_v19  ;;  %v787_v36 = vand.u32 2147483647, %v762_v28 }
  0x32   : > { %v790_v37 = vor.u32 1.1754944e-38, %v789_v34  ;;  %734 = vmatpush.msra.mxu1 %v725_v6 }
  0x33   : > { %v932_v21 = vperm.slane %v9074_v20, 0  ;;  %v945_v29 = vperm.slane %v9074_v20, 1  ;;  %vm788_vm8 = vcmp.eq.f32.partialorder %v787_v36, 8.507059e+37  ;;  %v958_v41 = vperm.slane %v9074_v20, 2 }
  0x34   : > { %v971_v42 = vperm.slane %v9074_v20, 3  ;;  %v984_v46 = vperm.slane %v9074_v20, 4  ;;  %v997_v50 = vperm.slane %v9074_v20, 5  ;;  %v1010_v54 = vperm.slane %v9074_v20, 6  ;;  %735 = vmatpush.msra.mxu1 %v724_v8 }
  0x35   : > { %7980 = vmatmul.msk.f32.gmra.mxu0 %vm662_vm0, %v659_v18  ;;  %937 = vperm.xlu2 %8474, %v932_v21   ;;  %v1023_v57 = vperm.slane %v9074_v20, 7  ;;  %v714_v18 = vld [vmem:[%s13207_s4] sm:$0xff]  ;;  %v13222_v36 = vmov 0  }
  0x36   : > { %v8748_v30 = vpop.eup %8747  ;;  %736 = vmatpush.msra.mxu1 %v723_v9 }
  0x37   : > { %v779_v31 = vmul.f32 %v8748_v30, %v762_v28  ;;  %vm784_vm6 = vweird.f32 %v8748_v30 }
  0x38   : > { %vm785_vm7 = vmor %vm783_vm5, %vm784_vm6  ;;  %900 = vxpose.xlu1.b32.cont [3/4] (short) %v863_v45, 128  ;;  %737 = vmatpush.msra.mxu1 %v722_v10 }
  0x39   : > { %v780_v32 = vsub.f32 1.0, %v779_v31 }
  0x3a   : > { %738 = vmatpush.msra.mxu1 %v721_v11 }
  0x3b   : > { %v781_v33 = vmul.f32 %v8748_v30, %v780_v32 }
  0x3c   : > { %739 = vmatpush.msra.mxu1 %v720_v12 }
  0x3d   : > { %7981 = vmatmul.msk.f32.gmra.mxu0 %vm662_vm0, %v660_v22  ;;  %8475 = vset.pattern.permute.xlu2 %v9082_v23  ;;  %v782_v35 = vadd.f32 %v8748_v30, %v781_v33 }
  0x3e   : > { %740 = vmatpush.msra.mxu1 %v719_v13 }
  0x3f   : > { %v786_v38 = vsel %vm785_vm7, %v8748_v30, %v782_v35 }
  0x40   : > { %v9094_v39 = vsel %vm788_vm8, %v790_v37, %v786_v38  ;;  %901 = vxpose.xlu1.b32.end [4/4] (short) %v865_v47, 128  ;;  %741 = vmatpush.msra.mxu1 %v718_v14  ;;  %v9231_v37 = vrot.slane %v13222_v36, 1 }
  0x41   : > { %816 = vmatpush.msra.mxu2 %v9094_v39  ;;  %v9156_v3 = vsub.f32 1.0, %v9094_v39 }
  0x42   : > { %742 = vmatpush.msra.mxu1 %v717_v15  ;;  %13332 = vst [vmem:[#allocation9_spill] sm:$0xff] %v9231_v37 }
  0x43   : > { %817 = vmatpush.msra.mxu2 %v9071_v19  ;;  %13329 = vst [vmem:[#allocation6_spill] sm:$0xff] %v9156_v3  ;;  %v1036_v7 = vperm.slane %v9156_v3, 0  ;;  %v1062_v28 = vperm.slane %v9156_v3, 2  ;;  %v1075_v33 = vperm.slane %v9156_v3, 3  ;;  %v13224_v13 = vperm.slane %v9156_v3, 6 }
  0x44   : > { %7985 = vmatmul.msk.f32.vlgmr.msra.gmra.mxu2 %vm795_vm9, %v793_v40  ;;  %743 = vmatpush.msra.mxu1 %v716_v16 }
  0x45   : > { %7982 = vmatmul.msk.f32.gmra.mxu0 %vm662_vm0, %v661_v24  ;;  %943 = vperm.xlu2 %8475, %v932_v21   ;;  %v1049_v21 = vperm.slane %v9156_v3, 1 }
  0x46   : > { %744 = vmatpush.msra.mxu1 %v715_v17 }
  0x48   : > { %745 = vmatpush.msra.mxu1 %v714_v18 }
  0x4d   : > { %8476 = vset.pattern.permute.xlu2 %v9024_v1 }
  0x55   : > { %950 = vperm.xlu2 %8476, %v945_v29  }
  0x5d   : > { %8477 = vset.pattern.permute.xlu2 %v9082_v23 }
  0x65   : > { %956 = vperm.xlu2 %8477, %v945_v29  }
  0x6d   : > { %969 = vperm.xlu2 %8477, %v958_v41  }
  0x75   : > { %8479 = vset.pattern.permute.xlu2 %v9024_v1 }
  0x7d   : > { %976 = vperm.xlu2 %8479, %v971_v42  }
  0x85   : > { %8480 = vset.pattern.permute.xlu2 %v9082_v23 }
  0x8d   : > { %982 = vperm.xlu2 %8480, %v971_v42  }
  0x8f   : > { %v9212_v29 = vpop.permute.xlu2 %937 }
  0x93   : > { %8478 = vset.pattern.permute.xlu1 %v9024_v1 }
  0x95   : > { %8481 = vset.pattern.permute.xlu2 %v9024_v1 }
  0x9d   : > { %989 = vperm.xlu2 %8481, %v984_v46  }
  0x9f   : > { %v9215_v30 = vpop.permute.xlu2 %943 }
  0xa5   : > { %8482 = vset.pattern.permute.xlu2 %v9082_v23 }
  0xaa   : > { %v9123_v48 = vpop.f32.mrf.mxu0 }
  0xad   : > { %995 = vperm.xlu2 %8482, %v984_v46  }
  0xaf   : > { %v9217_v31 = vpop.permute.xlu2 %950 }
  0xb2   : > { %v9125_v49 = vpop.f32.mrf.mxu0 }
  0xb5   : > { %1008 = vperm.xlu2 %8482, %v997_v50  }
  0xba   : > { %v698_v51 = vpop.f32.mrf.mxu0 }
  0xbd   : > { %8484 = vset.pattern.permute.xlu2 %v9024_v1 }
  0xbf   : > { %v9225_v34 = vpop.permute.xlu2 %956 }
  0xc2   : > { %v701_v52 = vpop.f32.mrf.mxu0 }
  0xc3   : > { %v8469_v53 = vpack.i.bf16 %v701_v52, %v698_v51 }
  0xc5   : > { %8470 = vrot.lane.b32.xlu0 %v8469_v53, %s8903_s22  ;;  %1015 = vperm.xlu2 %8484, %v1010_v54  }
  0xc7   : > { %v819_v59 = vpop.f32.mrf.mxu2  ;;  %v9242_v43 = vpop.permute.xlu2 %969 }
  0xc8   : > { %7987 = vmatmul.msk.f32.vlgmr.msra.gmra.mxu3 %vm795_vm9, %v819_v59 }
  0xcc   : > { %v9219_v32 = vpop.trf.xlu1 }
  0xcd   : > { %8485 = vset.pattern.permute.xlu2 %v9082_v23  ;;  %13330 = vst [vmem:[#allocation7_spill] sm:$0xff] %v9219_v32 }
  0xd4   : > { %v9227_v35 = vpop.trf.xlu1 }
  0xd5   : > { %1021 = vperm.xlu2 %8485, %v1010_v54   ;;  %13331 = vst [vmem:[#allocation8_spill] sm:$0xff] %v9227_v35 }
  0xd7   : > { %v9245_v44 = vpop.permute.xlu2 %976 }
  0xdd   : > { %8486 = vset.pattern.permute.xlu2 %v9024_v1 }
  0xe5   : > { %1028 = vperm.xlu2 %8486, %v1023_v57  }
  0xe7   : > { %866 = vxpose.xlu0.b32.start [1/4] (short) %v858_v58, 128  ;;  %v9250_v47 = vpop.permute.xlu2 %982 }
  0xed   : > { %8487 = vset.pattern.permute.xlu2 %v9082_v23 }
  0xef   : > { %867 = vxpose.xlu0.b32.cont [2/4] (short) %v860_v60, 128  ;;  %v1101_v60 = vperm.slane %v9156_v3, 5 }
  0xf5   : > { %1034 = vperm.xlu2 %8487, %v1023_v57  }
  0xf7   : > { %868 = vxpose.xlu0.b32.cont [3/4] (short) %v862_v61, 128 }
  0xfa   : > { %963 = vperm.xlu1 %8478, %v958_v41   ;;  %v9239_v41 = vpop.trf.xlu1 }
  0xfb   : > { %13333 = vst [vmem:[#allocation10_spill] sm:$0xff] %v9239_v41 }
  0xfd   : > { %8488 = vset.pattern.permute.xlu2 %v9024_v1 }
  0xff   : > { %869 = vxpose.xlu0.b32.end [4/4] (short) %v864_v2, 128 }
 0x102   : > { %8501 = vset.pattern.permute.xlu1 %v9082_v23  ;;  %v9247_v45 = vpop.trf.xlu1 }
 0x103   : > { %2549 = vrot.lane.b32.xlu1 %v9231_v37, %s8905_s1  ;;  %13334 = vst [vmem:[#allocation11_spill] sm:$0xff] %v9247_v45 }
 0x105   : > { %1041 = vperm.xlu2 %8488, %v1036_v7  }
 0x10d   : > { %8489 = vset.pattern.permute.xlu2 %v9082_v23 }
 0x115   : > { %1047 = vperm.xlu2 %8489, %v1036_v7  }
 0x11d   : > { %8490 = vset.pattern.permute.xlu2 %v9024_v1 }
 0x125   : > { %1054 = vperm.xlu2 %8490, %v1049_v21  }
 0x12d   : > { %8491 = vset.pattern.permute.xlu2 %v9082_v23 }
 0x135   : > { %1060 = vperm.xlu2 %8491, %v1049_v21  }
 0x137   : > { %v8471_v22 = vpop.permute.xlu0 %8470 }
 0x138   : > { %v8472_v24 = vunpack.i.l.bf16 %v8471_v22  ;;  %v8473_v26 = vunpack.i.h.bf16 %v8471_v22 }
 0x13a   : > { %v712_v25 = vsel %vm662_vm0, %v9123_v48, %v8472_v24  ;;  %v713_v27 = vsel %vm662_vm0, %v9125_v49, %v8473_v26  ;;  %v1088_v48 = vperm.slane %v9156_v3, 4  ;;  %v9256_v49 = vpop.permute.xlu2 %989 }
 0x13b   : > { %746 = vmatmul.f32.vlgmr.msra.gmra.mxu1 %v712_v25 }
 0x13d   : > { %8492 = vset.pattern.permute.xlu2 %v9024_v1 }
 0x142   : > { %v9261_v53 = vpop.permute.xlu2 %995 }
 0x143   : > { %749 = vmatmul.f32.gmra.mxu1 %v713_v27 }
 0x145   : > { %1067 = vperm.xlu2 %8492, %v1062_v28  }
 0x14a   : > { %v9269_v56 = vpop.permute.xlu2 %1008 }
 0x14b   : > { %v850_v38 = vpop.f32.mrf.mxu3 }
 0x14c   : > { %v9237_v40 = vsub.f32 %v9071_v19, %v850_v38  ;;  %v9253_v19 = vpop.trf.xlu1 }
 0x14d   : > { %8493 = vset.pattern.permute.xlu2 %v9082_v23  ;;  %13335 = vst [vmem:[#allocation12_spill] sm:$0xff] %v9253_v19 }
 0x14e   : > { %v1172_v42 = vperm.slane %v9237_v40, 0  ;;  %v1185_v46 = vperm.slane %v9237_v40, 1  ;;  %v1198_v51 = vperm.slane %v9237_v40, 2  ;;  %v1224_v54 = vperm.slane %v9237_v40, 4 }
 0x14f   : > { %v1211_v24 = vperm.slane %v9237_v40, 3 }
 0x150   : > { %1183 = vperm.xlu1 %8501, %v1172_v42  }
 0x152   : > { %v9274_v58 = vpop.permute.xlu2 %1015 }
 0x154   : > { %v9259_v52 = vpop.trf.xlu1 }
 0x155   : > { %1073 = vperm.xlu2 %8493, %v1062_v28   ;;  %13336 = vst [vmem:[#allocation13_spill] sm:$0xff] %v9259_v52 }
 0x158   : > { %1196 = vperm.xlu1 %8501, %v1185_v46  }
 0x15a   : > { %v9279_v61 = vpop.permute.xlu2 %1021 }
 0x15c   : > { %v9267_v55 = vpop.trf.xlu1 }
 0x15d   : > { %8494 = vset.pattern.permute.xlu2 %v9024_v1  ;;  %13337 = vst [vmem:[#allocation14_spill] sm:$0xff] %v9267_v55 }
 0x160   : > { %1209 = vperm.xlu1 %8501, %v1198_v51  }
 0x162   : > { %v9286_v2 = vpop.permute.xlu2 %1028 }
 0x164   : > { %v9272_v57 = vpop.trf.xlu1 }
 0x165   : > { %1080 = vperm.xlu2 %8494, %v1075_v33   ;;  %13338 = vst [vmem:[#allocation15_spill] sm:$0xff] %v9272_v57 }
 0x166   : > { %8483 = vset.pattern.permute.xlu0 %v9024_v1 }
 0x168   : > { %1235 = vperm.xlu1 %8501, %v1224_v54  }
 0x16a   : > { %v9294_v7 = vpop.permute.xlu2 %1034 }
 0x16c   : > { %v9281_v62 = vpop.trf.xlu1 }
 0x16d   : > { %8495 = vset.pattern.permute.xlu2 %v9082_v23  ;;  %13340 = vst [vmem:[#allocation17_spill] sm:$0xff] %v9281_v62 }
 0x172   : > { %v9304_v11 = vpop.permute.xlu2 %1041 }
 0x173   : > { %13346 = vst [vmem:[#allocation23_spill] sm:$0xff] %v9304_v11 }
 0x174   : > { %v9288_v4 = vpop.trf.xlu1 }
 0x175   : > { %1086 = vperm.xlu2 %8495, %v1075_v33   ;;  %13342 = vst [vmem:[#allocation19_spill] sm:$0xff] %v9288_v4 }
 0x17a   : > { %v9314_v15 = vpop.permute.xlu2 %1047 }
 0x17b   : > { %13348 = vst [vmem:[#allocation25_spill] sm:$0xff] %v9314_v15 }
 0x17c   : > { %v9299_v9 = vpop.trf.xlu1 }
 0x17d   : > { %8496 = vset.pattern.permute.xlu2 %v9024_v1  ;;  %13344 = vst [vmem:[#allocation21_spill] sm:$0xff] %v9299_v9 }
 0x182   : > { %v9323_v18 = vpop.permute.xlu2 %1054 }
 0x183   : > { %13350 = vst [vmem:[#allocation27_spill] sm:$0xff] %v9323_v18 }
 0x184   : > { %v9312_v14 = vpop.trf.xlu1 }
 0x185   : > { %1093 = vperm.xlu2 %8496, %v1088_v48   ;;  %13347 = vst [vmem:[#allocation24_spill] sm:$0xff] %v9312_v14 }
 0x18b   : > { %v9276_v59 = vpop.trf.xlu0 }
 0x18c   : > { %13339 = vst [vmem:[#allocation16_spill] sm:$0xff] %v9276_v59  ;;  %v9325_v21 = vpop.trf.xlu1 }
 0x18d   : > { %8497 = vset.pattern.permute.xlu2 %v9082_v23  ;;  %13351 = vst [vmem:[#allocation28_spill] sm:$0xff] %v9325_v21 }
 0x18f   : > { %v9331_v25 = vpop.permute.xlu2 %1060 }
 0x190   : > { %13353 = vst [vmem:[#allocation30_spill] sm:$0xff] %v9331_v25 }
 0x193   : > { %v9283_v63 = vpop.trf.xlu0 }
 0x194   : > { %13341 = vst [vmem:[#allocation18_spill] sm:$0xff] %v9283_v63  ;;  %v9334_v27 = vpop.trf.xlu1 }
 0x195   : > { %1099 = vperm.xlu2 %8497, %v1088_v48   ;;  %13354 = vst [vmem:[#allocation31_spill] sm:$0xff] %v9334_v27  ;;  %v794_v27 = vld [vmem:[%s13208_s5 + $0x8] sm:$0xff] }
 0x196   : > { %7986 = vmatmul.msk.f32.gmra.mxu2 %vm795_vm9, %v794_v27 }
 0x19b   : > { %v9290_v5 = vpop.trf.xlu0 }
 0x19c   : > { %13343 = vst [vmem:[#allocation20_spill] sm:$0xff] %v9290_v5  ;;  %v9341_v28 = vpop.trf.xlu1 }
 0x19d   : > { %8498 = vset.pattern.permute.xlu2 %v9024_v1  ;;  %13357 = vst [vmem:[#allocation34_spill] sm:$0xff] %v9341_v28  ;;  %v8358_v28 = vld [vmem:[%s13210_s7 + $0x8] sm:$0xff] }
 0x1a3   : > { %v9301_v10 = vpop.trf.xlu0 }
 0x1a4   : > { %13345 = vst [vmem:[#allocation22_spill] sm:$0xff] %v9301_v10 }
 0x1a5   : > { %1106 = vperm.xlu2 %8498, %v1101_v60  }
 0x1ab   : > { %v9316_v16 = vpop.trf.xlu0 }
 0x1ac   : > { %13349 = vst [vmem:[#allocation26_spill] sm:$0xff] %v9316_v16 }
 0x1ad   : > { %8499 = vset.pattern.permute.xlu2 %v9082_v23 }
 0x1b3   : > { %v9327_v22 = vpop.trf.xlu0 }
 0x1b4   : > { %13352 = vst [vmem:[#allocation29_spill] sm:$0xff] %v9327_v22 }
 0x1b5   : > { %1112 = vperm.xlu2 %8499, %v1101_v60  }
 0x1b8   : > { %v9292_v6 = vpop.f32.mrf.mxu1 }
 0x1b9   : > { %v13227_v8 = vperm.slane %v9292_v6, 0  ;;  %v13226_v12 = vperm.slane %v9292_v6, 1  ;;  %v13225_v17 = vperm.slane %v9292_v6, 2  ;;  %v1451_v26 = vperm.slane %v9292_v6, 3 }
 0x1ba   : > { %v1464_v60 = vperm.slane %v9292_v6, 4 }
 0x1bb   : > { %1423 = vperm.xlu1 %8501, %v13227_v8   ;;  %v9336_v20 = vpop.trf.xlu0  ;;  %v13230_v8 = vperm.slane %v9237_v40, 5 }
 0x1bc   : > { %13355 = vst [vmem:[#allocation32_spill] sm:$0xff] %v9336_v20 }
 0x1bd   : > { %8500 = vset.pattern.permute.xlu2 %v9024_v1 }
 0x1c3   : > { %1436 = vperm.xlu1 %8501, %v13226_v12   ;;  %v9343_v33 = vpop.trf.xlu0 }
 0x1c4   : > { %13358 = vst [vmem:[#allocation35_spill] sm:$0xff] %v9343_v33 }
 0x1c5   : > { %1119 = vperm.xlu2 %8500, %v13224_v13  }
 0x1cb   : > { %1449 = vperm.xlu1 %8501, %v13225_v17   ;;  %v9353_v48 = vpop.trf.xlu0  ;;  %v8360_v17 = vld [vmem:[%s13210_s7 + $0x18] sm:$0xff] }
 0x1cc   : > { %13362 = vst [vmem:[#allocation39_spill] sm:$0xff] %v9353_v48 }
 0x1cd   : > { %1002 = vperm.xlu0 %8483, %v997_v50   ;;  %1177 = vperm.xlu2 %8500, %v1172_v42   ;;  %v9339_v50 = vpop.permute.xlu2 %1067  ;;  %v9349_v42 = vpop.trf.xlu1 }
 0x1ce   : > { %13356 = vst [vmem:[#allocation33_spill] sm:$0xff] %v9339_v50 }
 0x1cf   : > { %13360 = vst [vmem:[#allocation37_spill] sm:$0xff] %v9349_v42 }
 0x1d3   : > { %8504 = vset.pattern.permute.xlu1 %v9024_v1  ;;  %v9370_v13 = vpop.trf.xlu0 }
 0x1d4   : > { %13364 = vst [vmem:[#allocation41_spill] sm:$0xff] %v9370_v13 }
 0x1d5   : > { %1216 = vperm.xlu0 %8483, %v1211_v24   ;;  %1190 = vperm.xlu2 %8500, %v1185_v46   ;;  %v9346_v38 = vpop.permute.xlu2 %1073  ;;  %v9368_v36 = vpop.permute.xlu1 %963 }
 0x1d6   : > { %13359 = vst [vmem:[#allocation36_spill] sm:$0xff] %v9346_v38 }
 0x1db   : > { %1456 = vperm.xlu1 %8504, %v1451_v26   ;;  %v9389_v42 = vpop.trf.xlu0 }
 0x1dc   : > { %13367 = vst [vmem:[#allocation44_spill] sm:$0xff] %v9389_v42 }
 0x1dd   : > { %8505 = vset.pattern.permute.xlu0 %v9082_v23  ;;  %1203 = vperm.xlu2 %8500, %v1198_v51   ;;  %v9351_v46 = vpop.permute.xlu2 %1080  ;;  %v8364_v51 = vld [vmem:[%s13210_s7 + $0x38] sm:$0xff]  ;;  %v9383_v12 = vpop.permute.xlu1 %2549 }
 0x1de   : > { %13361 = vst [vmem:[#allocation38_spill] sm:$0xff] %v9351_v46  ;;  %3526 = vmatpush.bf16.msrb.mxu1 %v8364_v51  ;;  %8429 = vmatpush.bf16.msrb.mxu2 %v8364_v51  ;;  %v8361_v51 = vld [vmem:[%s13210_s7 + $0x20] sm:$0xff] }
 0x1df   : > { %13366 = vst [vmem:[#allocation43_spill] sm:$0xff] %v9383_v12 }
 0x1e5   : > { %1462 = vperm.xlu0 %8505, %v1451_v26   ;;  %8502 = vset.pattern.permute.xlu2 %v9082_v23  ;;  %v8363_v26 = vld [vmem:[%s13210_s7 + $0x30] sm:$0xff]  ;;  %v9366_v0 = vpop.permute.xlu2 %1086 }
 0x1e6   : > { %3527 = vmatpush.bf16.msrb.mxu1 %v8363_v26  ;;  %8430 = vmatpush.bf16.msrb.mxu2 %v8363_v26  ;;  %13363 = vst [vmem:[#allocation40_spill] sm:$0xff] %v9366_v0 }
 0x1ed   : > { %8506 = vset.pattern.permute.xlu0 %v9024_v1  ;;  %1222 = vperm.xlu2 %8502, %v1211_v24   ;;  %v8362_v24 = vld [vmem:[%s13210_s7 + $0x28] sm:$0xff]  ;;  %v9378_v26 = vpop.permute.xlu2 %1093 }
 0x1ee   : > { %3528 = vmatpush.bf16.msrb.mxu1 %v8362_v24  ;;  %8431 = vmatpush.bf16.msrb.mxu2 %v8362_v24  ;;  %13365 = vst [vmem:[#allocation42_spill] sm:$0xff] %v9378_v26  ;;  %v8359_v24 = vld [vmem:[%s13210_s7 + $0x10] sm:$0xff]  ;;  %v1184_v26 = vpop.permute.xlu1 %1183 }
 0x1ef   : > { %v1381_v46 = vmul.f32 %v1184_v26, %v9283_v63 }
 0x1f2   : > { %3529 = vmatpush.bf16.msrb.mxu1 %v8361_v51  ;;  %8432 = vmatpush.bf16.msrb.mxu2 %v8361_v51 }
 0x1f5   : > { %1469 = vperm.xlu0 %8506, %v1464_v60   ;;  %8503 = vset.pattern.permute.xlu2 %v9024_v1  ;;  %v9395_v51 = vpop.permute.xlu2 %1099 }
 0x1f6   : > { %3530 = vmatpush.bf16.msrb.mxu1 %v8360_v17  ;;  %8433 = vmatpush.bf16.msrb.mxu2 %v8360_v17  ;;  %13369 = vst [vmem:[#allocation45_spill] sm:$0xff] %v9395_v51  ;;  %v8357_v17 = vld [vmem:[%s13210_s7] sm:$0xff]  ;;  %v13373_v51 = vperm.slane %v9292_v6, 2 }
 0x1fa   : > { %3531 = vmatpush.bf16.msrb.mxu1 %v8359_v24  ;;  %8434 = vmatpush.bf16.msrb.mxu2 %v8359_v24 }
 0x1fd   : > { %8543 = vset.pattern.permute.xlu0 %v9082_v23  ;;  %1229 = vperm.xlu2 %8503, %v1224_v54   ;;  %v13368_v54 = vperm.slane %v9292_v6, 0 }
 0x1fe   : > { %3532 = vmatpush.bf16.msrb.mxu1 %v8358_v28  ;;  %8435 = vmatpush.bf16.msrb.mxu2 %v8358_v28  ;;  %v1197_v28 = vpop.permute.xlu1 %1196 }
 0x1ff   : > { %v9408_v24 = vpop.permute.xlu2 %1106 }
 0x200   : > { %13372 = vst [vmem:[#allocation47_spill] sm:$0xff] %v9408_v24 }
 0x202   : > { %3533 = vmatpush.bf16.msrb.mxu1 %v8357_v17  ;;  %8436 = vmatpush.bf16.msrb.mxu2 %v8357_v17 }
 0x205   : > { %1248 = vperm.xlu0 %8543, %v13230_v8   ;;  %1417 = vperm.xlu2 %8503, %v13368_v54   ;;  %v9404_v8 = vpop.trf.xlu0  ;;  %v13371_v54 = vperm.slane %v9292_v6, 1 }
 0x206   : > { %13370 = vst [vmem:[#allocation46_spill] sm:$0xff] %v9404_v8  ;;  %8206 = vmatmul.msk.bf16.vlgmr.msrb.gmra.mxu1 %vm8205_vm11, %v9383_v12  ;;  %v1210_v24 = vpop.permute.xlu1 %1209 }
 0x20d   : > { %8561 = vset.pattern.permute.xlu0 %v9024_v1  ;;  %1430 = vperm.xlu2 %8503, %v13371_v54   ;;  %v9418_v54 = vpop.trf.xlu0 }
 0x20e   : > { %13374 = vst [vmem:[#allocation48_spill] sm:$0xff] %v9418_v54  ;;  %v1236_v0 = vpop.permute.xlu1 %1235 }
 0x20f   : > { %v9420_v17 = vpop.permute.xlu2 %1112 }
 0x210   : > { %13375 = vst [vmem:[#allocation49_spill] sm:$0xff] %v9420_v17 }
 0x215   : > { %1443 = vperm.xlu2 %8503, %v13373_v51   ;;  %v9425_v3 = vpop.trf.xlu0 }
 0x216   : > { %13377 = vst [vmem:[#allocation51_spill] sm:$0xff] %v9425_v3 }
 0x21d   : > { %8507 = vset.pattern.permute.xlu2 %v9082_v23  ;;  %v9429_v27 = vpop.trf.xlu0 }
 0x21e   : > { %13378 = vst [vmem:[#allocation52_spill] sm:$0xff] %v9429_v27 }
 0x21f   : > { %v9423_v21 = vpop.permute.xlu2 %1119 }
 0x220   : > { %13376 = vst [vmem:[#allocation50_spill] sm:$0xff] %v9423_v21  ;;  %v1383_v21 = vmul.f32 %v1197_v28, %v9301_v10 }
 0x225   : > { %1475 = vperm.xlu2 %8507, %v1464_v60   ;;  %v9435_v62 = vpop.trf.xlu0 }
 0x226   : > { %13379 = vst [vmem:[#allocation53_spill] sm:$0xff] %v9435_v62 }
 0x227   : > { %v1178_v51 = vpop.permute.xlu2 %1177 }
 0x228   : > { %v1380_v9 = vmul.f32 %v1178_v51, %v9276_v59 }
 0x22a   : > { %v8508_v14 = vpack.i.bf16 %v1381_v46, %v1380_v9  ;;  %v1385_v9 = vmul.f32 %v1210_v24, %v9327_v22 }
 0x22d   : > { %8509 = vrot.lane.b32.xlu2 %v8508_v14, %s8906_s27  ;;  %v1424_v17 = vpop.permute.xlu1 %1423 }
 0x22e   : > { %8544 = vset.pattern.permute.xlu2 %v9024_v1 }
 0x22f   : > { %v1191_v38 = vpop.permute.xlu2 %1190 }
 0x230   : > { %v1382_v50 = vmul.f32 %v1191_v38, %v9290_v5 }
 0x232   : > { %v8513_v60 = vpack.i.bf16 %v1383_v21, %v1382_v50 }
 0x235   : > { %8514 = vrot.lane.b32.xlu2 %v8513_v60, %s8906_s27  ;;  %v1437_v51 = vpop.permute.xlu1 %1436 }
 0x237   : > { %v1204_v26 = vpop.permute.xlu2 %1203 }
 0x238   : > { %v1384_v46 = vmul.f32 %v1204_v26, %v9316_v16  ;;  %v1477_v26 = vperm.slane %v9292_v6, 5 }
 0x23a   : > { %v8518_v14 = vpack.i.bf16 %v1385_v9, %v1384_v46 }
 0x23c   : > { %8519 = vrot.lane.b32.xlu1 %v8518_v14, %s8906_s27  ;;  %v1621_v14 = vmul.f32 %v1424_v17, %v9283_v63 }
 0x23d   : > { %v1450_v25 = vpop.permute.xlu1 %1449 }
 0x23e   : > { %v1625_v17 = vmul.f32 %v1450_v25, %v9327_v22  ;;  %v8371_v25 = vld [vmem:[%s13210_s7 + $0x70] sm:$0xff] }
 0x23f   : > { %v9441_v4 = vpop.permute.xlu0 %1002 }
 0x247   : > { %v1217_v28 = vpop.permute.xlu0 %1216  ;;  %v1223_v18 = vpop.permute.xlu2 %1222 }
 0x248   : > { %v1386_v21 = vmul.f32 %v1217_v28, %v9336_v20  ;;  %v1387_v50 = vmul.f32 %v1223_v18, %v9343_v33 }
 0x24a   : > { %v8523_v38 = vpack.i.bf16 %v1387_v50, %v1386_v21 }
 0x24c   : > { %8524 = vrot.lane.b32.xlu2 %v8523_v38, %s8906_s27 }
 0x24d   : > { %v1457_v60 = vpop.permute.xlu1 %1456 }
 0x24e   : > { %v1626_v57 = vmul.f32 %v1457_v60, %v9336_v20 }
 0x250   : > { %v8551_v24 = vpack.i.bf16 %v1626_v57, %v9231_v37  ;;  %v1389_v57 = vmul.f32 %v1236_v0, %v9370_v13  ;;  %v1623_v37 = vmul.f32 %v1437_v51, %v9301_v10  ;;  %v13380_v0 = vperm.slane %v9237_v40, 5 }
 0x252   : > { %8552 = vrot.lane.b32.xlu0 %v8551_v24, %s8903_s22 }
 0x254   : > { %1482 = vperm.xlu2 %8544, %v1477_v26  }
 0x257   : > { %v1230_v9 = vpop.permute.xlu2 %1229 }
 0x258   : > { %v1388_v21 = vmul.f32 %v1230_v9, %v9353_v48 }
 0x25a   : > { %v8533_v38 = vpack.i.bf16 %v1389_v57, %v1388_v21  ;;  %v1463_v21 = vpop.permute.xlu0 %1462  ;;  %v8370_v57 = vld [vmem:[%s13210_s7 + $0x68] sm:$0xff] }
 0x25c   : > { %8562 = vset.pattern.permute.xlu2 %v9082_v23 }
 0x25f   : > { %v1418_v46 = vpop.permute.xlu2 %1417 }
 0x260   : > { %v1620_v18 = vmul.f32 %v1418_v46, %v9276_v59 }
 0x262   : > { %v8528_v28 = vpack.i.bf16 %v1621_v14, %v1620_v18 }
 0x264   : > { %8529 = vrot.lane.b32.xlu1 %v8528_v28, %s8903_s22 }
 0x267   : > { %v1431_v50 = vpop.permute.xlu2 %1430  ;;  %v1470_v51 = vpop.permute.xlu0 %1469 }
 0x268   : > { %v1622_v60 = vmul.f32 %v1431_v50, %v9290_v5  ;;  %v1628_v50 = vmul.f32 %v1470_v51, %v9353_v48 }
 0x26a   : > { %v8538_v14 = vpack.i.bf16 %v1623_v37, %v1622_v60  ;;  %v8372_v37 = vld [vmem:[%s13210_s7 + $0x78] sm:$0xff]  ;;  %v8369_v60 = vld [vmem:[%s13210_s7 + $0x60] sm:$0xff] }
 0x26b   : > { %3615 = vmatpush.bf16.msrb.mxu0 %v8372_v37  ;;  %8437 = vmatpush.bf16.msrb.mxu3 %v8372_v37 }
 0x26c   : > { %8534 = vrot.lane.b32.xlu1 %v8533_v38, %s8906_s27  ;;  %v1627_v38 = vmul.f32 %v1463_v21, %v9343_v33 }
 0x26f   : > { %v1444_v24 = vpop.permute.xlu2 %1443  ;;  %3616 = vmatpush.bf16.msrb.mxu0 %v8371_v25  ;;  %8438 = vmatpush.bf16.msrb.mxu3 %v8371_v25 }
 0x270   : > { %v1624_v46 = vmul.f32 %v1444_v24, %v9316_v16  ;;  %v8556_v24 = vpack.i.bf16 %v1628_v50, %v1627_v38 }
 0x272   : > { %v8546_v18 = vpack.i.bf16 %v1625_v17, %v1624_v46  ;;  %v8367_v17 = vld [vmem:[%s13210_s7 + $0x50] sm:$0xff]  ;;  %v822_v46 = vpop.f32.mrf.mxu2 }
 0x273   : > { %3617 = vmatpush.bf16.msrb.mxu0 %v8370_v57  ;;  %8439 = vmatpush.bf16.msrb.mxu3 %v8370_v57 }
 0x274   : > { %8539 = vrot.lane.b32.xlu1 %v8538_v14, %s8903_s22  ;;  %8547 = vrot.lane.b32.xlu2 %v8546_v18, %s8903_s22  ;;  %v8366_v14 = vld [vmem:[%s13210_s7 + $0x48] sm:$0xff]  ;;  %v8365_v18 = vld [vmem:[%s13210_s7 + $0x40] sm:$0xff] }
 0x275   : > { %7988 = vmatmul.msk.f32.gmra.mxu3 %vm795_vm9, %v822_v46 }
 0x277   : > { %3618 = vmatpush.bf16.msrb.mxu0 %v8369_v60  ;;  %8440 = vmatpush.bf16.msrb.mxu3 %v8369_v60 }
 0x27c   : > { %1242 = vperm.xlu1 %8504, %v13380_v0  }
 0x27f   : > { %v1476_v9 = vpop.permute.xlu2 %1475 }
 0x280   : > { %v1629_v28 = vmul.f32 %v1476_v9, %v9370_v13 }
 0x282   : > { %1830 = vrot.lane.b32.xlu0 %v1629_v28, %s8903_s22  ;;  %v9499_v28 = vpop.permute.xlu0 %1248 }
 0x284   : > { %8545 = vset.pattern.permute.xlu1 %v9082_v23 }
 0x287   : > { %v8510_v0 = vpop.permute.xlu2 %8509 }
 0x288   : > { %v8512_v11 = vunpack.i.h.bf16 %v8510_v0  ;;  %v8511_v19 = vunpack.i.l.bf16 %v8510_v0 }
 0x28c   : > { %1488 = vperm.xlu1 %8545, %v1477_v26   ;;  %v8368_v26 = vld [vmem:[%s13210_s7 + $0x58] sm:$0xff] }
 0x28d   : > { %3619 = vmatpush.bf16.msrb.mxu0 %v8368_v26  ;;  %8441 = vmatpush.bf16.msrb.mxu3 %v8368_v26  ;;  %v1144_v26 = vmul.f32 %v9368_v36, %v9316_v16  ;;  %v1140_v36 = vmul.f32 %v9212_v29, %v9276_v59 }
 0x28f   : > { %v9497_v9 = vpop.permute.xlu2 %8514 }
 0x291   : > { %3620 = vmatpush.bf16.msrb.mxu0 %v8367_v17  ;;  %8442 = vmatpush.bf16.msrb.mxu3 %v8367_v17 }
 0x294   : > { %8557 = vrot.lane.b32.xlu1 %v8556_v24, %s8903_s22  ;;  %v1145_v24 = vmul.f32 %v9242_v43, %v9327_v22 }
 0x295   : > { %8563 = vset.pattern.permute.xlu1 %v9024_v1  ;;  %3621 = vmatpush.bf16.msrb.mxu0 %v8366_v14 }
 0x296   : > { %8443 = vmatpush.bf16.msrb.mxu3 %v8366_v14 }
 0x299   : > { %3622 = vmatpush.bf16.msrb.mxu0 %v8365_v18 }
 0x29a   : > { %8444 = vmatpush.bf16.msrb.mxu3 %v8365_v18 }
 0x2a6   : > { %v9501_v21 = vpop.permute.xlu2 %8524 }
 0x2ae   : > { %v9511_v50 = vpop.permute.xlu2 %1482  ;;  %v8520_v57 = vpop.permute.xlu1 %8519 }
 0x2af   : > { %v8522_v38 = vunpack.i.h.bf16 %v8520_v57  ;;  %v8521_v60 = vunpack.i.l.bf16 %v8520_v57 }
 0x2b1   : > { %v1914_v18 = vsel %vm1908_vm12, %v1145_v24, %v8522_v38 }
 0x2c4   : > { %v9503_v37 = vpop.permute.xlu0 %8552 }
 0x2c5   : > { %v9506_v25 = vunpack.i.l.bf16 %v9503_v37 }
 0x2c7   : > { %13381 = vst [vmem:[#allocation54_spill] sm:$0xff] %v9506_v25  ;;  %v2791_v51 = vsel %vm662_vm0, %v9383_v12, %v9506_v25  ;;  %v1913_v12 = vsel %vm1908_vm12, %v1144_v26, %v8521_v60  ;;  %v1909_v26 = vsel %vm1908_vm12, %v1140_v36, %v8511_v19 }
 0x2c8   : > { %3623 = vmatmul.bf16.vlgmr.msrb.gmra.mxu0 %v2791_v51 }
 0x2ce   : > { %v8548_v17 = vpop.permute.xlu2 %8547 }
 0x2cf   : > { %v8550_v46 = vunpack.i.h.bf16 %v8548_v17  ;;  %v8549_v14 = vunpack.i.l.bf16 %v8548_v17  ;;  %v1141_v17 = vmul.f32 %v9215_v30, %v9283_v63 }
 0x2d1   : > { %v1946_v55 = vsel %vm662_vm0, %v1914_v18, %v8550_v46  ;;  %v1945_v51 = vsel %vm662_vm0, %v1913_v12, %v8549_v14  ;;  %v1910_v60 = vsel %vm1908_vm12, %v1141_v17, %v8512_v11  ;;  %v8517_v11 = vunpack.i.h.bf16 %v9497_v9 }
 0x2d2   : > { %v1978_v15 = vpack.c.bf16 %v1946_v55, %v1946_v55  ;;  %v1977_v57 = vpack.c.bf16 %v1945_v51, %v1945_v51  ;;  %v1143_v17 = vmul.f32 %v9225_v34, %v9301_v10 }
 0x2d4   : > { %v2042_v43 = vunpack.c.l.b16 %v1978_v15  ;;  %v2041_v22 = vunpack.c.l.b16 %v1977_v57 }
 0x2d6   : > { %v8530_v16 = vpop.permute.xlu1 %8529  ;;  %v2071_v12 = vpack.c.b16 %v2042_v43, %v2041_v22 }
 0x2d7   : > { %v8532_v38 = vunpack.i.h.bf16 %v8530_v16  ;;  %v8531_v24 = vunpack.i.l.bf16 %v8530_v16 }
 0x2d8   : > { %v2100_v29 = vshrl.u32 %v2071_v12, 16  ;;  %v2103_v43 = vshll.u32 %v2071_v12, 16  ;;  %v1912_v12 = vsel %vm1908_vm12, %v1143_v17, %v8517_v11 }
 0x2d9   : > { %v1941_v55 = vsel %vm662_vm0, %v1909_v26, %v8531_v24  ;;  %v1942_v0 = vsel %vm662_vm0, %v1910_v60, %v8532_v38  ;;  %v8516_v38 = vunpack.i.l.bf16 %v9497_v9 }
 0x2da   : > { %v1973_v15 = vpack.c.bf16 %v1941_v55, %v1941_v55  ;;  %v1974_v46 = vpack.c.bf16 %v1942_v0, %v1942_v0  ;;  %v2102_v16 = vrot.slane %v2100_v29, 7  ;;  %v1142_v55 = vmul.f32 %v9217_v31, %v9290_v5 }
 0x2dc   : > { %v2037_v14 = vunpack.c.l.b16 %v1973_v15  ;;  %v2038_v18 = vunpack.c.l.b16 %v1974_v46  ;;  %v2105_v26 = vor.u32 %v2103_v43, %v2102_v16 }
 0x2de   : > { %v2069_v51 = vpack.c.b16 %v2038_v18, %v2037_v14  ;;  %v9529_v57 = vpop.permute.xlu1 %8534  ;;  %v1911_v18 = vsel %vm1908_vm12, %v1142_v55, %v8516_v38 }
 0x2e0   : > { %v2086_v30 = vshrl.u32 %v2069_v51, 16  ;;  %v2089_v19 = vshll.u32 %v2069_v51, 16 }
 0x2e2   : > { %v2088_v22 = vrot.slane %v2086_v30, 7 }
 0x2e4   : > { %v2091_v24 = vor.u32 %v2089_v19, %v2088_v22  ;;  %v2248_v60 = vsel %vm9533_vm15, %v2088_v22, 0  ;;  %v9559_v19 = vsel %vm9533_vm15, 0, %v2105_v26 }
 0x2e5   : > { %v2488_v9 = vrot.slane %v2248_v60, 1  ;;  %v2281_v51 = vshll.u32 %v2248_v60, 16  ;;  %v2493_v26 = vrot.slane %v9559_v19, 1 }
 0x2e6   : > { %v8540_v0 = vpop.permute.xlu1 %8539  ;;  %v9547_v15 = vsel %vm9533_vm15, 0, %v2091_v24  ;;  %v9566_v24 = vsel %vm9533_vm15, %v2102_v16, 0 }
 0x2e7   : > { %v8542_v46 = vunpack.i.h.bf16 %v8540_v0  ;;  %v8541_v14 = vunpack.i.l.bf16 %v8540_v0  ;;  %v2487_v34 = vrot.slane %v9547_v15, 1  ;;  %v2276_v29 = vshll.u32 %v9547_v15, 16 }
 0x2e8   : > { %v2274_v17 = vshrl.u32 %v9547_v15, 16  ;;  %v2283_v0 = vrot.slane %v2281_v51, 1 }
 0x2e9   : > { %v1943_v31 = vsel %vm662_vm0, %v1911_v18, %v8541_v14  ;;  %v1944_v30 = vsel %vm662_vm0, %v1912_v12, %v8542_v46  ;;  %v9555_v11 = vsel %vm2484_vm1, %v2487_v34, %v2488_v9  ;;  %v2278_v38 = vrot.slane %v2276_v29, 1 }
 0x2ea   : > { %v1975_v22 = vpack.c.bf16 %v1943_v31, %v1943_v31  ;;  %v1976_v43 = vpack.c.bf16 %v1944_v30, %v1944_v30  ;;  %2583 = vrot.lane.b32.xlu2 %v9555_v11, %s8903_s22  ;;  %v2494_v34 = vrot.slane %v9566_v24, 1  ;;  %v1250_v30 = vperm.slane %v9237_v40, 6 }
 0x2eb   : > { %v2279_v12 = vor.u32 %v2278_v38, %v2274_v17 }
 0x2ec   : > { %v2039_v60 = vunpack.c.l.b16 %v1975_v22  ;;  %v2040_v55 = vunpack.c.l.b16 %v1976_v43  ;;  %v9576_v16 = vsel %vm2484_vm1, %v2493_v26, %v2494_v34  ;;  %v1490_v26 = vperm.slane %v9292_v6, 6 }
 0x2ed   : > { %v9570_v14 = vsel %vm2264_vm2, %v2279_v12, %v2283_v0  ;;  %v8526_v12 = vunpack.i.l.bf16 %v9501_v21  ;;  %v8537_v0 = vunpack.i.h.bf16 %v9529_v57  ;;  %v1146_v34 = vmul.f32 %v9245_v44, %v9336_v20 }
 0x2ee   : > { %v2070_v46 = vpack.c.b16 %v2040_v55, %v2039_v60  ;;  %2551 = vrot.lane.b32.xlu0 %v9570_v14, %s8905_s1  ;;  %v9585_v22 = vpop.permute.xlu1 %1242  ;;  %v1147_v44 = vmul.f32 %v9250_v47, %v9343_v33 }
 0x2f0   : > { %v2093_v9 = vshrl.u32 %v2070_v46, 16  ;;  %v2096_v18 = vshll.u32 %v2070_v46, 16  ;;  %v8555_v46 = vunpack.i.h.bf16 %v9503_v37 }
 0x2f2   : > { %2587 = vrot.lane.b32.xlu2 %v9576_v16, %s8903_s22  ;;  %v2095_v29 = vrot.slane %v2093_v9, 7  ;;  %v1149_v9 = vmul.f32 %v9261_v53, %v9370_v13  ;;  %v1148_v53 = vmul.f32 %v9256_v49, %v9353_v48 }
 0x2f4   : > { %v2098_v51 = vor.u32 %v2096_v18, %v2095_v29  ;;  %v9582_v31 = vsel %vm9533_vm15, %v2095_v29, 0  ;;  %v1831_v18 = vpop.permute.xlu0 %1830  ;;  %v8527_v29 = vunpack.i.h.bf16 %v9501_v21 }
 0x2f5   : > { %v2491_v38 = vrot.slane %v9582_v31, 1 }
 0x2f6   : > { %v9589_v43 = vsel %vm9533_vm15, 0, %v2098_v51  ;;  %1255 = vperm.xlu0 %8561, %v1250_v30   ;;  %v1915_v51 = vsel %vm1908_vm12, %v1146_v34, %v8526_v12  ;;  %v1916_v21 = vsel %vm1908_vm12, %v1147_v44, %v8527_v29  ;;  %v1263_v29 = vperm.slane %v9237_v40, 7 }
 0x2f7   : > { %v2490_v17 = vrot.slane %v9589_v43, 1 }
 0x2f9   : > { %v9594_v60 = vsel %vm2484_vm1, %v2490_v17, %v2491_v38  ;;  %v1918_v17 = vsel %vm1908_vm12, %v1149_v9, %v8537_v0  ;;  %v1947_v38 = vsel %vm662_vm0, %v1915_v51, %v8555_v46 }
 0x2fa   : > { %2585 = vrot.lane.b32.xlu1 %v9594_v60, %s8903_s22  ;;  %1261 = vperm.xlu2 %8562, %v1250_v30   ;;  %v8536_v30 = vunpack.i.l.bf16 %v9529_v57  ;;  %v1950_v37 = vsel %vm662_vm0, %v1918_v17, %v1831_v18  ;;  %v1979_v12 = vpack.c.bf16 %v1947_v38, %v1947_v38 }
 0x2fb   : > { %v1982_v34 = vpack.c.bf16 %v1950_v37, %v1950_v37 }
 0x2fc   : > { %v1917_v57 = vsel %vm1908_vm12, %v1148_v53, %v8536_v30  ;;  %v2043_v47 = vunpack.c.l.b16 %v1979_v12 }
 0x2fd   : > { %v2046_v51 = vunpack.c.l.b16 %v1982_v34 }
 0x2fe   : > { %v9598_v55 = vpop.permute.xlu1 %1488 }
 0x302   : > { %1501 = vperm.xlu2 %8562, %v1490_v26  }
 0x306   : > { %v8558_v13 = vpop.permute.xlu1 %8557 }
 0x307   : > { %v8560_v20 = vunpack.i.h.bf16 %v8558_v13  ;;  %v8559_v10 = vunpack.i.l.bf16 %v8558_v13 }
 0x309   : > { %v1949_v0 = vsel %vm662_vm0, %v1917_v57, %v8560_v20  ;;  %v1948_v46 = vsel %vm662_vm0, %v1916_v21, %v8559_v10 }
 0x30a   : > { %v1981_v9 = vpack.c.bf16 %v1949_v0, %v1949_v0  ;;  %v1980_v18 = vpack.c.bf16 %v1948_v46, %v1948_v46  ;;  %8564 = vset.pattern.permute.xlu2 %v9024_v1 }
 0x30c   : > { %v2045_v49 = vunpack.c.l.b16 %v1981_v9  ;;  %v2044_v17 = vunpack.c.l.b16 %v1980_v18 }
 0x30e   : > { %v2072_v48 = vpack.c.b16 %v2044_v17, %v2043_v47  ;;  %v2073_v13 = vpack.c.b16 %v2046_v51, %v2045_v49  ;;  %v2288_v51 = vshll.u32 %v9589_v43, 16  ;;  %v2300_v49 = vshll.u32 %v9559_v19, 16 }
 0x30f   : > { %v1503_v17 = vperm.slane %v9292_v6, 7 }
 0x310   : > { %v2107_v38 = vshrl.u32 %v2072_v48, 16  ;;  %v2114_v44 = vshrl.u32 %v2073_v13, 16  ;;  %v2110_v30 = vshll.u32 %v2072_v48, 16  ;;  %v2117_v37 = vshll.u32 %v2073_v13, 16 }
 0x311   : > { %v2290_v13 = vrot.slane %v2288_v51, 1  ;;  %v1391_v51 = vmul.f32 %v9499_v28, %v9404_v8 }
 0x312   : > { %1268 = vperm.xlu2 %8564, %v1263_v29   ;;  %v2109_v20 = vrot.slane %v2107_v38, 7  ;;  %v2116_v53 = vrot.slane %v2114_v44, 7  ;;  %v2302_v38 = vrot.slane %v2300_v49, 1  ;;  %v2286_v44 = vshrl.u32 %v9589_v43, 16  ;;  %v853_v49 = vpop.f32.mrf.mxu3 }
 0x314   : > { %v2112_v10 = vor.u32 %v2110_v30, %v2109_v20  ;;  %v9626_v21 = vsel %vm9533_vm15, %v2109_v20, 0  ;;  %v2119_v12 = vor.u32 %v2117_v37, %v2116_v53  ;;  %v9630_v57 = vsel %vm9533_vm15, %v2116_v53, 0 }
 0x315   : > { %v2497_v0 = vrot.slane %v9626_v21, 1  ;;  %v2500_v9 = vrot.slane %v9630_v57, 1  ;;  %v2293_v30 = vshll.u32 %v9582_v31, 16  ;;  %v2298_v37 = vshrl.u32 %v9559_v19, 16 }
 0x316   : > { %v9634_v40 = vsel %vm9533_vm15, 0, %v2112_v10  ;;  %v9638_v48 = vsel %vm9533_vm15, 0, %v2119_v12  ;;  %v2305_v20 = vshll.u32 %v9566_v24, 16  ;;  %v2291_v53 = vor.u32 %v2290_v13, %v2286_v44 }
 0x317   : > { %v2496_v34 = vrot.slane %v9634_v40, 1  ;;  %v2499_v46 = vrot.slane %v9638_v48, 1  ;;  %v2303_v10 = vor.u32 %v2302_v38, %v2298_v37  ;;  %v2295_v12 = vrot.slane %v2293_v30, 1 }
 0x318   : > { %v1631_v24 = vmul.f32 %v9598_v55, %v9404_v8  ;;  %v1630_v31 = vmul.f32 %v9511_v50, %v9389_v42  ;;  %v9693_v50 = vsub.f32 %v9094_v39, %v853_v49 }
 0x319   : > { %v9645_v18 = vsel %vm2484_vm1, %v2496_v34, %v2497_v0  ;;  %v9648_v47 = vsel %vm2484_vm1, %v2499_v46, %v2500_v9  ;;  %v2307_v34 = vrot.slane %v2305_v20, 1  ;;  %v9663_v0 = vsel %vm2264_vm2, %v2291_v53, %v2295_v12  ;;  %v9681_v46 = vpop.f32.mrf.mxu1 }
 0x31a   : > { %2589 = vrot.lane.b32.xlu1 %v9645_v18, %s8903_s22  ;;  %8566 = vset.pattern.permute.xlu2 %v9082_v23  ;;  %v1390_v9 = vmul.f32 %v9585_v22, %v9389_v42  ;;  %v1516_v55 = vperm.slane %v9681_v46, 0  ;;  %v1276_v22 = vperm.slane %v9693_v50, 0  ;;  %v1302_v28 = vperm.slane %v9693_v50, 2 }
 0x31b   : > { %2591 = vrot.lane.b32.xlu0 %v9648_v47, %s8903_s22  ;;  %v9669_v6 = vsel %vm2264_vm2, %v2303_v10, %v2307_v34  ;;  %v1542_v20 = vperm.slane %v9681_v46, 2  ;;  %v2312_v10 = vshll.u32 %v9634_v40, 16 }
 0x322   : > { %1495 = vperm.xlu1 %8563, %v1490_v26   ;;  %1514 = vperm.xlu2 %8566, %v1503_v17   ;;  %v8572_v26 = vpack.i.bf16 %v1631_v24, %v1630_v31  ;;  %v13251_v24 = vperm.slane %v9693_v50, 3 }
 0x323   : > { %1508 = vperm.xlu0 %8561, %v1503_v17   ;;  %v8567_v17 = vpack.i.bf16 %v1391_v51, %v1390_v9  ;;  %v2317_v9 = vshll.u32 %v9626_v21, 16  ;;  %v2310_v51 = vshrl.u32 %v9634_v40, 16 }
 0x325   : > { %v2319_v49 = vrot.slane %v2317_v9, 1 }
 0x32a   : > { %8565 = vset.pattern.permute.xlu1 %v9082_v23  ;;  %2553 = vrot.lane.b32.xlu2 %v9663_v0, %s8905_s1 }
 0x32b   : > { %2555 = vrot.lane.b32.xlu0 %v9669_v6, %s8905_s1  ;;  %8578 = vset.pattern.permute.xlu2 %v9024_v1 }
 0x332   : > { %1274 = vperm.xlu1 %8565, %v1263_v29   ;;  %2613 = vrot.lane.b32.xlu2 %v9547_v15, %s8906_s27  ;;  %v1529_v29 = vperm.slane %v9681_v46, 1 }
 0x333   : > { %8573 = vrot.lane.b32.xlu0 %v8572_v26, %s8903_s22  ;;  %v2314_v26 = vrot.slane %v2312_v10, 1 }
 0x33a   : > { %8577 = vset.pattern.permute.xlu1 %v9024_v1  ;;  %1521 = vperm.xlu2 %8578, %v1516_v55  }
 0x33b   : > { %8568 = vrot.lane.b32.xlu1 %v8567_v17, %s8906_s27  ;;  %2615 = vrot.lane.b32.xlu0 %v9589_v43, %s8906_s27 }
 0x343   : > { %1281 = vperm.xlu1 %8577, %v1276_v22   ;;  %1534 = vperm.xlu0 %8561, %v1529_v29  }
 0x344   : > { %v9699_v13 = vpop.permute.xlu2 %2583 }
 0x34b   : > { %8579 = vset.pattern.permute.xlu1 %v9082_v23  ;;  %1307 = vperm.xlu0 %8561, %v1302_v28  }
 0x34c   : > { %v9702_v38 = vpop.permute.xlu2 %2587 }
 0x353   : > { %8601 = vset.pattern.permute.xlu0 %v9082_v23  ;;  %1527 = vperm.xlu1 %8579, %v1516_v55   ;;  %v2315_v55 = vor.u32 %v2314_v26, %v2310_v51 }
 0x354   : > { %v1262_v44 = vpop.permute.xlu2 %1261 }
 0x355   : > { %v1393_v12 = vmul.f32 %v1262_v44, %v9425_v3  ;;  %v1289_v44 = vperm.slane %v9693_v50, 1 }
 0x35b   : > { %1287 = vperm.xlu0 %8601, %v1276_v22   ;;  %v9721_v22 = vsel %vm2264_vm2, %v2315_v55, %v2319_v49 }
 0x35c   : > { %13384 = vst [vmem:[#allocation55_spill] sm:$0xff] %v9721_v22 }
 0x360   : > { %v2552_v39 = vpop.permute.xlu0 %2551 }
 0x361   : > { %v2746_v30 = vsel %vm2741_vm10, %v9547_v15, %v2552_v39  ;;  %v2794_v37 = vsel %vm662_vm0, %v2552_v39, %v9699_v13  ;;  %v1502_v15 = vpop.permute.xlu2 %1501 }
 0x362   : > { %3539 = vmatmul.bf16.gmra.mxu1 %v2746_v30  ;;  %3628 = vmatmul.bf16.gmra.mxu0 %v2794_v37 }
 0x363   : > { %1553 = vperm.xlu0 %8601, %v1542_v20  }
 0x368   : > { %v1256_v53 = vpop.permute.xlu0 %1255 }
 0x369   : > { %v1392_v34 = vmul.f32 %v1256_v53, %v9418_v54 }
 0x36b   : > { %v8580_v31 = vpack.i.bf16 %v1393_v12, %v1392_v34  ;;  %1326 = vperm.xlu0 %8601, %v13251_v24  }
 0x36c   : > { %v1269_v17 = vpop.permute.xlu2 %1268  ;;  %v9726_v30 = vpop.permute.xlu1 %2585 }
 0x36d   : > { %8581 = vrot.lane.b32.xlu2 %v8580_v31, %s8906_s27  ;;  %v1633_v31 = vmul.f32 %v1502_v15, %v9425_v3 }
 0x375   : > { %2557 = vrot.lane.b32.xlu2 %v9721_v22, %s8905_s1 }
 0x37c   : > { %v1515_v39 = vpop.permute.xlu2 %1514 }
 0x37d   : > { %1294 = vperm.xlu2 %8578, %v1289_v44   ;;  %v1635_v51 = vmul.f32 %v1515_v39, %v9435_v62 }
 0x384   : > { %v2554_v37 = vpop.permute.xlu2 %2553 }
 0x385   : > { %v2749_v21 = vsel %vm2741_vm10, %v9589_v43, %v2554_v37  ;;  %v2797_v53 = vsel %vm662_vm0, %v2554_v37, %v9726_v30  ;;  %8590 = vset.pattern.permute.xlu2 %v9082_v23 }
 0x386   : > { %3544 = vmatmul.bf16.gmra.mxu1 %v2749_v21  ;;  %3633 = vmatmul.bf16.gmra.mxu0 %v2797_v53  ;;  %v2324_v53 = vshll.u32 %v9638_v48, 16 }
 0x38c   : > { %v9733_v10 = vpop.permute.xlu1 %2589 }
 0x38d   : > { %v9735_v12 = vpop.permute.xlu0 %2591  ;;  %1540 = vperm.xlu2 %8590, %v1529_v29  }
 0x394   : > { %v1496_v34 = vpop.permute.xlu1 %1495 }
 0x395   : > { %v1632_v26 = vmul.f32 %v1496_v34, %v9418_v54  ;;  %v1509_v9 = vpop.permute.xlu0 %1508  ;;  %v1394_v34 = vmul.f32 %v1269_v17, %v9429_v27 }
 0x396   : > { %v1634_v55 = vmul.f32 %v1509_v9, %v9429_v27 }
 0x397   : > { %v8585_v49 = vpack.i.bf16 %v1633_v31, %v1632_v26 }
 0x398   : > { %v8596_v37 = vpack.i.bf16 %v1635_v51, %v1634_v55  ;;  %v2326_v51 = vrot.slane %v2324_v53, 1  ;;  %v2322_v55 = vshrl.u32 %v9638_v48, 16 }
 0x399   : > { %8586 = vrot.lane.b32.xlu1 %v8585_v49, %s8903_s22  ;;  %v2329_v49 = vshll.u32 %v9630_v57, 16 }
 0x39a   : > { %8597 = vrot.lane.b32.xlu2 %v8596_v37, %s8903_s22 }
 0x39d   : > { %v2556_v21 = vpop.permute.xlu0 %2555 }
 0x39e   : > { %v2752_v29 = vsel %vm2741_vm10, %v9559_v19, %v2556_v21  ;;  %v2800_v15 = vsel %vm662_vm0, %v2556_v21, %v9702_v38 }
 0x39f   : > { %3549 = vmatmul.bf16.gmra.mxu1 %v2752_v29  ;;  %3638 = vmatmul.bf16.gmra.mxu0 %v2800_v15  ;;  %v9762_v29 = vpop.permute.xlu2 %2613 }
 0x3a1   : > { %1300 = vperm.xlu1 %8579, %v1289_v44   ;;  %v2331_v44 = vrot.slane %v2329_v49, 1 }
 0x3a2   : > { %1313 = vperm.xlu2 %8590, %v1302_v28   ;;  %v2327_v28 = vor.u32 %v2326_v51, %v2322_v55 }
 0x3a4   : > { %v1275_v39 = vpop.permute.xlu1 %1274  ;;  %v9756_v37 = vsel %vm2264_vm2, %v2327_v28, %v2331_v44 }
 0x3a5   : > { %v1395_v31 = vmul.f32 %v1275_v39, %v9435_v62  ;;  %v8574_v9 = vpop.permute.xlu0 %8573  ;;  %13385 = vst [vmem:[#allocation56_spill] sm:$0xff] %v9756_v37 }
 0x3a6   : > { %v8576_v49 = vunpack.i.h.bf16 %v8574_v9  ;;  %v8575_v28 = vunpack.i.l.bf16 %v8574_v9  ;;  %v9783_v9 = vpop.f32.mrf.mxu1 }
 0x3a7   : > { %v8591_v26 = vpack.i.bf16 %v1395_v31, %v1394_v34  ;;  %v1522_v39 = vpop.permute.xlu2 %1521  ;;  %v1151_v31 = vmul.f32 %v9269_v56, %v9404_v8 }
 0x3a9   : > { %8592 = vrot.lane.b32.xlu1 %v8591_v26, %s8906_s27  ;;  %v1150_v26 = vmul.f32 %v9441_v4, %v9389_v42  ;;  %v1152_v42 = vmul.f32 %v9274_v58, %v9418_v54 }
 0x3aa   : > { %8602 = vset.pattern.permute.xlu1 %v9024_v1  ;;  %8613 = vset.pattern.permute.xlu2 %v9024_v1 }
 0x3ad   : > { %v9758_v17 = vpop.permute.xlu0 %2615  ;;  %v8569_v21 = vpop.permute.xlu1 %8568 }
 0x3ae   : > { %v8571_v53 = vunpack.i.h.bf16 %v8569_v21  ;;  %v8570_v34 = vunpack.i.l.bf16 %v8569_v21  ;;  %v1636_v21 = vmul.f32 %v1522_v39, %v9219_v32 }
 0x3b0   : > { %v1920_v51 = vsel %vm1908_vm12, %v1151_v31, %v8571_v53  ;;  %v1919_v55 = vsel %vm1908_vm12, %v1150_v26, %v8570_v34  ;;  %v9785_v31 = vpop.f32.mrf.mxu0 }
 0x3b1   : > { %2559 = vrot.lane.b32.xlu1 %v9756_v37, %s8905_s1  ;;  %v1952_v56 = vsel %vm662_vm0, %v1920_v51, %v8576_v49 }
 0x3b2   : > { %v1984_v53 = vpack.c.bf16 %v1952_v56, %v1952_v56 }
 0x3b4   : > { %v2048_v39 = vunpack.c.l.b16 %v1984_v53 }
 0x3b5   : > { %v1535_v57 = vpop.permute.xlu0 %1534  ;;  %v1282_v15 = vpop.permute.xlu1 %1281 }
 0x3b8   : > { %v9798_v56 = vpop.f32.mrf.mxu0 }
 0x3b9   : > { %2617 = vrot.lane.b32.xlu1 %v9559_v19, %s8906_s27  ;;  %13388 = vst [vmem:[#allocation58_spill] sm:$0xff] %v9798_v56 }
 0x3bd   : > { %v9774_v44 = vpop.permute.xlu0 %1307 }
 0x3c1   : > { %1547 = vperm.xlu1 %8602, %v1542_v20   ;;  %v1951_v20 = vsel %vm662_vm0, %v1919_v55, %v8575_v28 }
 0x3c2   : > { %v1983_v4 = vpack.c.bf16 %v1951_v20, %v1951_v20 }
 0x3c4   : > { %v2047_v26 = vunpack.c.l.b16 %v1983_v4 }
 0x3c5   : > { %v1528_v24 = vpop.permute.xlu1 %1527 }
 0x3c6   : > { %v1637_v33 = vmul.f32 %v1528_v24, %v9227_v35  ;;  %v1396_v24 = vmul.f32 %v1282_v15, %v9219_v32  ;;  %v9796_v15 = vpop.f32.mrf.mxu1 }
 0x3c7   : > { %v9780_v5 = vpop.permute.xlu2 %8581  ;;  %13387 = vst [vmem:[#allocation57_spill] sm:$0xff] %v9796_v15  ;;  %v13408_v15 = vld [vmem:[#allocation17_spill] sm:$0xff] }
 0x3c8   : > { %v8608_v8 = vpack.i.bf16 %v1637_v33, %v1636_v21  ;;  %v13386_v21 = vperm.slane %v9693_v50, 3 }
 0x3ca   : > { %8609 = vrot.lane.b32.xlu1 %v8608_v8, %s8903_s22  ;;  %v2074_v8 = vpack.c.b16 %v2048_v39, %v2047_v26 }
 0x3cc   : > { %v2121_v20 = vshrl.u32 %v2074_v8, 16  ;;  %v2124_v53 = vshll.u32 %v2074_v8, 16 }
 0x3cd   : > { %v1288_v34 = vpop.permute.xlu0 %1287 }
 0x3ce   : > { %v1397_v55 = vmul.f32 %v1288_v34, %v9227_v35  ;;  %v2123_v4 = vrot.slane %v2121_v20, 7 }
 0x3cf   : > { %v2558_v51 = vpop.permute.xlu2 %2557 }
 0x3d0   : > { %v8603_v28 = vpack.i.bf16 %v1397_v55, %v1396_v24  ;;  %v2755_v33 = vsel %vm2741_vm10, %v9634_v40, %v2558_v51  ;;  %v2803_v49 = vsel %vm662_vm0, %v2558_v51, %v9733_v10  ;;  %v2126_v34 = vor.u32 %v2124_v53, %v2123_v4 }
 0x3d1   : > { %3554 = vmatmul.bf16.gmra.mxu1 %v2755_v33  ;;  %3643 = vmatmul.bf16.gmra.mxu0 %v2803_v49  ;;  %v1555_v24 = vperm.slane %v9681_v46, 3  ;;  %v9812_v33 = vsel %vm9533_vm15, %v2123_v4, 0  ;;  %v1638_v53 = vmul.f32 %v1535_v57, %v9239_v41  ;;  %v13256_v4 = vperm.slane %v9693_v50, 4  ;;  %v8380_v57 = vld [vmem:[%s13210_s7 + $0xb8] sm:$0xff] }
 0x3d2   : > { %8604 = vrot.lane.b32.xlu2 %v8603_v28, %s8906_s27  ;;  %1320 = vperm.xlu1 %8602, %v13386_v21   ;;  %v9808_v51 = vsel %vm9533_vm15, 0, %v2126_v34  ;;  %v2503_v8 = vrot.slane %v9812_v33, 1 }
 0x3d3   : > { %v2502_v49 = vrot.slane %v9808_v51, 1  ;;  %3704 = vmatpush.bf16.msra.mxu0 %v8380_v57 }
 0x3d5   : > { %v9817_v20 = vsel %vm2484_vm1, %v2502_v49, %v2503_v8 }
 0x3d7   : > { %v1295_v55 = vpop.permute.xlu2 %1294 }
 0x3da   : > { %2619 = vrot.lane.b32.xlu2 %v9634_v40, %s8906_s27  ;;  %8614 = vset.pattern.permute.xlu1 %v9082_v23 }
 0x3df   : > { %v3540_v26 = vpop.f32.mrf.mxu1  ;;  %v3629_v39 = vpop.f32.mrf.mxu0 }
 0x3e0   : > { %v9804_v28 = vadd.f32 %v3629_v39, %v3540_v26  ;;  %v13255_v39 = vperm.slane %v9681_v46, 4 }
 0x3e2   : > { %1560 = vperm.xlu2 %8613, %v1555_v24   ;;  %1566 = vperm.xlu1 %8614, %v1555_v24   ;;  %v8379_v24 = vld [vmem:[%s13210_s7 + $0xb0] sm:$0xff] }
 0x3e3   : > { %3705 = vmatpush.bf16.msra.mxu0 %v8379_v24  ;;  %v8375_v24 = vld [vmem:[%s13210_s7 + $0x90] sm:$0xff] }
 0x3e7   : > { %v1541_v21 = vpop.permute.xlu2 %1540  ;;  %v9839_v49 = vpop.f32.mrf.mxu1 }
 0x3e8   : > { %v1639_v26 = vmul.f32 %v1541_v21, %v9247_v45  ;;  %13389 = vst [vmem:[#allocation59_spill] sm:$0xff] %v9839_v49  ;;  %v9841_v8 = vpop.f32.mrf.mxu0  ;;  %v8378_v21 = vld [vmem:[%s13210_s7 + $0xa8] sm:$0xff] }
 0x3e9   : > { %13390 = vst [vmem:[#allocation60_spill] sm:$0xff] %v9841_v8  ;;  %3706 = vmatpush.bf16.msra.mxu0 %v8378_v21  ;;  %v8584_v21 = vunpack.i.h.bf16 %v9780_v5 }
 0x3ea   : > { %2593 = vrot.lane.b32.xlu2 %v9817_v20, %s8903_s22  ;;  %8625 = vset.pattern.permute.xlu1 %v9024_v1  ;;  %v8620_v34 = vpack.i.bf16 %v1639_v26, %v1638_v53  ;;  %v8377_v53 = vld [vmem:[%s13210_s7 + $0xa0] sm:$0xff] }
 0x3ec   : > { %8621 = vrot.lane.b32.xlu0 %v8620_v34, %s8903_s22 }
 0x3ed   : > { %3707 = vmatpush.bf16.msra.mxu0 %v8377_v53  ;;  %v1153_v53 = vmul.f32 %v9279_v61, %v9425_v3  ;;  %v8373_v61 = vld [vmem:[%s13210_s7 + $0x80] sm:$0xff] }
 0x3f2   : > { %2621 = vrot.lane.b32.xlu2 %v9638_v48, %s8906_s27 }
 0x3f4   : > { %1339 = vperm.xlu0 %8601, %v13256_v4   ;;  %v8583_v4 = vunpack.i.l.bf16 %v9780_v5  ;;  %v8374_v5 = vld [vmem:[%s13210_s7 + $0x88] sm:$0xff] }
 0x3f6   : > { %v1921_v63 = vsel %vm1908_vm12, %v1152_v42, %v8583_v4  ;;  %v1398_v42 = vmul.f32 %v1295_v55, %v9239_v41  ;;  %v1154_v55 = vmul.f32 %v9286_v2, %v9429_v27 }
 0x3fa   : > { %1573 = vperm.xlu2 %8613, %v13255_v39   ;;  %v8376_v39 = vld [vmem:[%s13210_s7 + $0x98] sm:$0xff] }
 0x3fb   : > { %3708 = vmatpush.bf16.msra.mxu0 %v8376_v39  ;;  %v1922_v39 = vsel %vm1908_vm12, %v1153_v53, %v8584_v21 }
 0x3ff   : > { %3709 = vmatpush.bf16.msra.mxu0 %v8375_v24 }
 0x403   : > { %v3545_v26 = vpop.f32.mrf.mxu1  ;;  %v3634_v34 = vpop.f32.mrf.mxu0  ;;  %3710 = vmatpush.bf16.msra.mxu0 %v8374_v5 }
 0x404   : > { %v9849_v57 = vadd.f32 %v3634_v34, %v3545_v26 }
 0x407   : > { %3711 = vmatpush.bf16.msra.mxu0 %v8373_v61 }
 0x40b   : > { %v8587_v26 = vpop.permute.xlu1 %8586 }
 0x40c   : > { %v8589_v34 = vunpack.i.h.bf16 %v8587_v26  ;;  %v8588_v59 = vunpack.i.l.bf16 %v8587_v26 }
 0x40e   : > { %v1953_v8 = vsel %vm662_vm0, %v1921_v63, %v8588_v59  ;;  %v1954_v49 = vsel %vm662_vm0, %v1922_v39, %v8589_v34  ;;  %v9874_v59 = vpop.f32.mrf.mxu1  ;;  %v9876_v63 = vpop.f32.mrf.mxu0 }
 0x40f   : > { %v1985_v58 = vpack.c.bf16 %v1953_v8, %v1953_v8  ;;  %v1986_v54 = vpack.c.bf16 %v1954_v49, %v1954_v49  ;;  %13391 = vst [vmem:[#allocation61_spill] sm:$0xff] %v9874_v59 }
 0x410   : > { %13392 = vst [vmem:[#allocation62_spill] sm:$0xff] %v9876_v63 }
 0x411   : > { %v2049_v24 = vunpack.c.l.b16 %v1985_v58  ;;  %v2050_v26 = vunpack.c.l.b16 %v1986_v54  ;;  %v8598_v58 = vpop.permute.xlu2 %8597 }
 0x413   : > { %v2075_v21 = vpack.c.b16 %v2050_v26, %v2049_v24  ;;  %v1301_v53 = vpop.permute.xlu1 %1300  ;;  %v1155_v24 = vmul.f32 %v9294_v7, %v9435_v62 }
 0x414   : > { %v1399_v4 = vmul.f32 %v1301_v53, %v9247_v45 }
 0x415   : > { %v2128_v8 = vshrl.u32 %v2075_v21, 16  ;;  %v2131_v34 = vshll.u32 %v2075_v21, 16 }
 0x416   : > { %v8615_v49 = vpack.i.bf16 %v1399_v4, %v1398_v42 }
 0x417   : > { %v2130_v39 = vrot.slane %v2128_v8, 7 }
 0x418   : > { %8616 = vrot.lane.b32.xlu1 %v8615_v49, %s8906_s27 }
 0x419   : > { %v2133_v5 = vor.u32 %v2131_v34, %v2130_v39  ;;  %v9882_v54 = vsel %vm9533_vm15, %v2130_v39, 0  ;;  %v8600_v34 = vunpack.i.h.bf16 %v8598_v58  ;;  %v8599_v39 = vunpack.i.l.bf16 %v8598_v58 }
 0x41a   : > { %v2506_v49 = vrot.slane %v9882_v54, 1  ;;  %v13393_v58 = vperm.slane %v9693_v50, 4 }
 0x41b   : > { %v8593_v26 = vpop.permute.xlu1 %8592  ;;  %v9890_v61 = vsel %vm9533_vm15, 0, %v2133_v5 }
 0x41c   : > { %v3550_v21 = vpop.f32.mrf.mxu1  ;;  %v3639_v53 = vpop.f32.mrf.mxu0  ;;  %v8595_v42 = vunpack.i.h.bf16 %v8593_v26  ;;  %v8594_v4 = vunpack.i.l.bf16 %v8593_v26  ;;  %v2505_v8 = vrot.slane %v9890_v61, 1 }
 0x41d   : > { %v9894_v3 = vadd.f32 %v3639_v53, %v3550_v21 }
 0x41e   : > { %v1924_v2 = vsel %vm1908_vm12, %v1155_v24, %v8595_v42  ;;  %v1923_v7 = vsel %vm1908_vm12, %v1154_v55, %v8594_v4  ;;  %v9899_v62 = vsel %vm2484_vm1, %v2505_v8, %v2506_v49 }
 0x41f   : > { %v1955_v5 = vsel %vm662_vm0, %v1923_v7, %v8599_v39  ;;  %v1956_v27 = vsel %vm662_vm0, %v1924_v2, %v8600_v34  ;;  %2595 = vrot.lane.b32.xlu2 %v9899_v62, %s8903_s22  ;;  %v1581_v39 = vperm.slane %v9681_v46, 5  ;;  %v1314_v2 = vpop.permute.xlu2 %1313 }
 0x420   : > { %v1987_v26 = vpack.c.bf16 %v1955_v5, %v1955_v5  ;;  %v1988_v63 = vpack.c.bf16 %v1956_v27, %v1956_v27  ;;  %1333 = vperm.xlu1 %8625, %v13393_v58   ;;  %v13394_v5 = vperm.slane %v9681_v46, 4 }
 0x422   : > { %v2051_v21 = vunpack.c.l.b16 %v1987_v26  ;;  %v2052_v53 = vunpack.c.l.b16 %v1988_v63  ;;  %v1554_v26 = vpop.permute.xlu0 %1553 }
 0x423   : > { %v2560_v24 = vpop.permute.xlu1 %2559 }
 0x424   : > { %v2076_v42 = vpack.c.b16 %v2052_v53, %v2051_v21  ;;  %v2758_v55 = vsel %vm2741_vm10, %v9638_v48, %v2560_v24  ;;  %v2806_v4 = vsel %vm662_vm0, %v2560_v24, %v9735_v12  ;;  %v1401_v53 = vmul.f32 %v1314_v2, %v9259_v52 }
 0x425   : > { %3559 = vmatmul.bf16.gmra.mxu1 %v2758_v55  ;;  %3648 = vmatmul.bf16.gmra.mxu0 %v2806_v4  ;;  %v1641_v55 = vmul.f32 %v1554_v26, %v9259_v52  ;;  %v13395_v4 = vld [vmem:[#allocation12_spill] sm:$0xff] }
 0x426   : > { %v2135_v8 = vshrl.u32 %v2076_v42, 16  ;;  %v2138_v49 = vshll.u32 %v2076_v42, 16  ;;  %v2839_v42 = vsel %vm1908_vm12, %v9506_v25, %v9762_v29  ;;  %v1341_v25 = vperm.slane %v9693_v50, 5 }
 0x427   : > { %2623 = vrot.lane.b32.xlu2 %v9808_v51, %s8906_s27 }
 0x428   : > { %8626 = vset.pattern.permute.xlu1 %v9082_v23  ;;  %v2137_v27 = vrot.slane %v2135_v8, 7 }
 0x42a   : > { %v2140_v63 = vor.u32 %v2138_v49, %v2137_v27  ;;  %v9925_v58 = vsel %vm9533_vm15, %v2137_v27, 0 }
 0x42b   : > { %v9914_v34 = vpop.permute.xlu1 %2617  ;;  %v2509_v49 = vrot.slane %v9925_v58, 1 }
 0x42c   : > { %v9919_v7 = vsel %vm9533_vm15, 0, %v2140_v63  ;;  %v1400_v63 = vmul.f32 %v9774_v44, %v13395_v4  ;;  %v8605_v59 = vpop.permute.xlu2 %8604  ;;  %v13396_v44 = vld [vmem:[#allocation23_spill] sm:$0xff] }
 0x42d   : > { %v2508_v21 = vrot.slane %v9919_v7, 1  ;;  %v8607_v29 = vunpack.i.h.bf16 %v8605_v59  ;;  %v8606_v26 = vunpack.i.l.bf16 %v8605_v59 }
 0x42e   : > { %v8627_v2 = vpack.i.bf16 %v1401_v53, %v1400_v63 }
 0x42f   : > { %1586 = vperm.xlu2 %8613, %v1581_v39  }
 0x430   : > { %1579 = vperm.xlu1 %8626, %v13394_v5   ;;  %v9938_v5 = vsel %vm2484_vm1, %v2508_v21, %v2509_v49 }
 0x433   : > { %v1548_v24 = vpop.permute.xlu1 %1547 }
 0x434   : > { %v1640_v8 = vmul.f32 %v1548_v24, %v13395_v4  ;;  %v1156_v24 = vmul.f32 %v13396_v44, %v9219_v32 }
 0x435   : > { %3712 = vmatmul.bf16.vlgmr.msra.gmra.mxu0 %v2839_v42  ;;  %v13397_v42 = vld [vmem:[#allocation25_spill] sm:$0xff] }
 0x436   : > { %v8632_v27 = vpack.i.bf16 %v1641_v55, %v1640_v8  ;;  %v1157_v21 = vmul.f32 %v13397_v42, %v9227_v35  ;;  %v1925_v63 = vsel %vm1908_vm12, %v1156_v24, %v8606_v26  ;;  %v1594_v26 = vperm.slane %v9681_v46, 6 }
 0x437   : > { %2597 = vrot.lane.b32.xlu2 %v9938_v5, %s8903_s22 }
 0x438   : > { %8637 = vset.pattern.permute.xlu1 %v9024_v1  ;;  %8633 = vrot.lane.b32.xlu0 %v8632_v27, %s8903_s22  ;;  %v1926_v49 = vsel %vm1908_vm12, %v1157_v21, %v8607_v29  ;;  %v2842_v29 = vsel %vm1908_vm12, %v9699_v13, %v9758_v17  ;;  %v9960_v21 = vpop.f32.mrf.mxu1 }
 0x439   : > { %8628 = vrot.lane.b32.xlu1 %v8627_v2, %s8906_s27  ;;  %13398 = vst [vmem:[#allocation23_spill] sm:$0xff] %v9960_v21 }
 0x43c   : > { %v8610_v55 = vpop.permute.xlu1 %8609 }
 0x43d   : > { %v8612_v53 = vunpack.i.h.bf16 %v8610_v55  ;;  %v8611_v8 = vunpack.i.l.bf16 %v8610_v55 }
 0x43f   : > { %v1957_v27 = vsel %vm662_vm0, %v1925_v63, %v8611_v8  ;;  %v1958_v2 = vsel %vm662_vm0, %v1926_v49, %v8612_v53  ;;  %2625 = vrot.lane.b32.xlu2 %v9890_v61, %s8906_s27  ;;  %v9962_v53 = vpop.f32.mrf.mxu0  ;;  %v2620_v8 = vpop.permute.xlu2 %2619 }
 0x440   : > { %v1989_v59 = vpack.c.bf16 %v1957_v27, %v1957_v27  ;;  %v1990_v44 = vpack.c.bf16 %v1958_v2, %v1958_v2  ;;  %1352 = vperm.xlu0 %8601, %v1341_v25   ;;  %13399 = vst [vmem:[#allocation25_spill] sm:$0xff] %v9962_v53 }
 0x441   : > { %1346 = vperm.xlu1 %8637, %v1341_v25  }
 0x442   : > { %v2053_v42 = vunpack.c.l.b16 %v1989_v59  ;;  %v2054_v35 = vunpack.c.l.b16 %v1990_v44 }
 0x444   : > { %v2077_v55 = vpack.c.b16 %v2054_v35, %v2053_v42  ;;  %v1321_v35 = vpop.permute.xlu1 %1320 }
 0x445   : > { %3717 = vmatmul.bf16.gmra.mxu0 %v2842_v29  ;;  %v13400_v29 = vld [vmem:[#allocation14_spill] sm:$0xff] }
 0x446   : > { %v2142_v24 = vshrl.u32 %v2077_v55, 16  ;;  %v2145_v63 = vshll.u32 %v2077_v55, 16  ;;  %v1327_v55 = vpop.permute.xlu0 %1326 }
 0x447   : > { %1599 = vperm.xlu2 %8613, %v1594_v26   ;;  %v1561_v44 = vpop.permute.xlu2 %1560 }
 0x448   : > { %v2144_v49 = vrot.slane %v2142_v24, 7  ;;  %v1402_v24 = vmul.f32 %v1321_v35, %v13400_v29 }
 0x449   : > { %8638 = vset.pattern.permute.xlu1 %v9082_v23 }
 0x44a   : > { %v2147_v25 = vor.u32 %v2145_v63, %v2144_v49  ;;  %v9975_v59 = vsel %vm9533_vm15, %v2144_v49, 0 }
 0x44b   : > { %v2512_v32 = vrot.slane %v9975_v59, 1 }
 0x44c   : > { %v9969_v13 = vsel %vm9533_vm15, 0, %v2147_v25  ;;  %v2845_v25 = vsel %vm1908_vm12, %v9726_v30, %v9914_v34  ;;  %v2334_v34 = vshrl.u32 %v9808_v51, 16 }
 0x44d   : > { %v2511_v42 = vrot.slane %v9969_v13, 1 }
 0x44e   : > { %v3555_v17 = vpop.f32.mrf.mxu1  ;;  %v3644_v27 = vpop.f32.mrf.mxu0 }
 0x44f   : > { %2627 = vrot.lane.b32.xlu2 %v9919_v7, %s8906_s27  ;;  %v9971_v2 = vadd.f32 %v3644_v27, %v3555_v17  ;;  %v2336_v17 = vshll.u32 %v9808_v51, 16  ;;  %v13401_v27 = vld [vmem:[#allocation15_spill] sm:$0xff]  ;;  %v9988_v21 = vsel %vm2484_vm1, %v2511_v42, %v2512_v32  ;;  %v2348_v32 = vshll.u32 %v9890_v61, 16  ;;  %v9998_v42 = vpop.permute.xlu2 %2593 }
 0x450   : > { %v1403_v53 = vmul.f32 %v1327_v55, %v13401_v27 }
 0x451   : > { %1592 = vperm.xlu1 %8638, %v1581_v39   ;;  %v1642_v39 = vmul.f32 %v1561_v44, %v13400_v29  ;;  %v2338_v30 = vrot.slane %v2336_v17, 1  ;;  %v2341_v44 = vshll.u32 %v9812_v33, 16  ;;  %v2353_v33 = vshll.u32 %v9882_v54, 16 }
 0x452   : > { %v8639_v56 = vpack.i.bf16 %v1403_v53, %v1402_v24  ;;  %v2350_v24 = vrot.slane %v2348_v32, 1  ;;  %v2848_v17 = vsel %vm1908_vm12, %v9702_v38, %v2620_v8  ;;  %v2358_v38 = vshrl.u32 %v9919_v7, 16 }
 0x453   : > { %v2339_v55 = vor.u32 %v2338_v30, %v2334_v34  ;;  %v2360_v34 = vshll.u32 %v9919_v7, 16  ;;  %v2365_v54 = vshll.u32 %v9925_v58, 16 }
 0x454   : > { %v1567_v63 = vpop.permute.xlu1 %1566 }
 0x455   : > { %v1643_v49 = vmul.f32 %v1567_v63, %v13401_v27  ;;  %3722 = vmatmul.bf16.gmra.mxu0 %v2845_v25  ;;  %v2343_v63 = vrot.slane %v2341_v44, 1  ;;  %v1354_v25 = vperm.slane %v9693_v50, 6  ;;  %v2362_v44 = vrot.slane %v2360_v34, 1  ;;  %v13406_v34 = vld [vmem:[#allocation30_spill] sm:$0xff] }
 0x457   : > { %v8644_v35 = vpack.i.bf16 %v1643_v49, %v1642_v39  ;;  %2599 = vrot.lane.b32.xlu2 %v9988_v21, %s8903_s22  ;;  %v10002_v53 = vsel %vm2264_vm2, %v2339_v55, %v2343_v63  ;;  %v2355_v49 = vrot.slane %v2353_v33, 1  ;;  %v2363_v32 = vor.u32 %v2362_v44, %v2358_v38 }
 0x458   : > { %13402 = vst [vmem:[#allocation63_spill] sm:$0xff] %v10002_v53  ;;  %v2367_v63 = vrot.slane %v2365_v54, 1  ;;  %v1159_v44 = vmul.f32 %v13406_v34, %v9247_v45 }
 0x459   : > { %8649 = vset.pattern.permute.xlu1 %v9024_v1  ;;  %8645 = vrot.lane.b32.xlu0 %v8644_v35, %s8903_s22  ;;  %v2622_v35 = vpop.permute.xlu2 %2621 }
 0x45a   : > { %8640 = vrot.lane.b32.xlu1 %v8639_v56, %s8906_s27  ;;  %v2346_v56 = vshrl.u32 %v9890_v61, 16  ;;  %v2851_v8 = vsel %vm1908_vm12, %v9733_v10, %v2622_v35 }
 0x45c   : > { %v2351_v39 = vor.u32 %v2350_v24, %v2346_v56  ;;  %v10022_v24 = vsel %vm2264_vm2, %v2363_v32, %v2367_v63 }
 0x45d   : > { %13404 = vst [vmem:[#allocation65_spill] sm:$0xff] %v10022_v24 }
 0x45e   : > { %v10011_v30 = vsel %vm2264_vm2, %v2351_v39, %v2355_v49  ;;  %v13405_v49 = vld [vmem:[#allocation27_spill] sm:$0xff] }
 0x45f   : > { %13403 = vst [vmem:[#allocation64_spill] sm:$0xff] %v10011_v30  ;;  %v1158_v35 = vmul.f32 %v13405_v49, %v9239_v41 }
 0x461   : > { %2561 = vrot.lane.b32.xlu0 %v10002_v53, %s8905_s1  ;;  %v1574_v55 = vpop.permute.xlu2 %1573 }
 0x462   : > { %1359 = vperm.xlu1 %8649, %v1354_v25  }
 0x465   : > { %3727 = vmatmul.bf16.gmra.mxu0 %v2848_v17 }
 0x469   : > { %2563 = vrot.lane.b32.xlu0 %v10011_v30, %s8905_s1 }
 0x46a   : > { %8650 = vset.pattern.permute.xlu1 %v9082_v23 }
 0x471   : > { %1365 = vperm.xlu0 %8601, %v1354_v25   ;;  %v8622_v25 = vpop.permute.xlu0 %8621 }
 0x472   : > { %1605 = vperm.xlu1 %8650, %v1594_v26   ;;  %v8623_v63 = vunpack.i.l.bf16 %v8622_v25 }
 0x475   : > { %3732 = vmatmul.bf16.gmra.mxu0 %v2851_v8 }
 0x479   : > { %2565 = vrot.lane.b32.xlu0 %v10022_v24, %s8905_s1  ;;  %v10026_v56 = vpop.permute.xlu2 %2595  ;;  %v1340_v38 = vpop.permute.xlu0 %1339 }
 0x47a   : > { %8681 = vset.pattern.permute.xlu0 %v9024_v1 }
 0x481   : > { %v2624_v26 = vpop.permute.xlu2 %2623 }
 0x482   : > { %v2854_v58 = vsel %vm1908_vm12, %v9735_v12, %v2624_v26  ;;  %v8624_v12 = vunpack.i.h.bf16 %v8622_v25 }
 0x485   : > { %3737 = vmatmul.bf16.gmra.mxu0 %v2854_v58  ;;  %v13407_v58 = vld [vmem:[#allocation19_spill] sm:$0xff] }
 0x486   : > { %v1405_v1 = vmul.f32 %v1340_v38, %v13407_v58 }
 0x489   : > { %v10031_v10 = vpop.permute.xlu2 %1586 }
 0x48a   : > { %v8617_v33 = vpop.permute.xlu1 %8616 }
 0x48b   : > { %v8619_v17 = vunpack.i.h.bf16 %v8617_v33  ;;  %v8618_v39 = vunpack.i.l.bf16 %v8617_v33 }
 0x48d   : > { %v1928_v54 = vsel %vm1908_vm12, %v1159_v44, %v8619_v17  ;;  %v1927_v8 = vsel %vm1908_vm12, %v1158_v35, %v8618_v39  ;;  %v10046_v39 = vpop.f32.mrf.mxu1  ;;  %v10048_v35 = vpop.f32.mrf.mxu0 }
 0x48e   : > { %v1959_v24 = vsel %vm662_vm0, %v1927_v8, %v8623_v63  ;;  %v1960_v49 = vsel %vm662_vm0, %v1928_v54, %v8624_v12  ;;  %13409 = vst [vmem:[#allocation27_spill] sm:$0xff] %v10046_v39 }
 0x48f   : > { %v1991_v34 = vpack.c.bf16 %v1959_v24, %v1959_v24  ;;  %v1992_v45 = vpack.c.bf16 %v1960_v49, %v1960_v49  ;;  %13410 = vst [vmem:[#allocation30_spill] sm:$0xff] %v10048_v35 }
 0x491   : > { %v10039_v32 = vpop.permute.xlu2 %2597  ;;  %v2055_v44 = vunpack.c.l.b16 %v1991_v34  ;;  %v2056_v38 = vunpack.c.l.b16 %v1992_v45 }
 0x492   : > { %v1334_v26 = vpop.permute.xlu1 %1333 }
 0x493   : > { %v1404_v33 = vmul.f32 %v1334_v26, %v13408_v15  ;;  %v2078_v26 = vpack.c.b16 %v2056_v38, %v2055_v44  ;;  %v2377_v44 = vshll.u32 %v9975_v59, 16 }
 0x495   : > { %v8651_v41 = vpack.i.bf16 %v1405_v1, %v1404_v33  ;;  %v2149_v63 = vshrl.u32 %v2078_v26, 16  ;;  %v1644_v33 = vmul.f32 %v1574_v55, %v13408_v15  ;;  %v2152_v38 = vshll.u32 %v2078_v26, 16  ;;  %v13412_v55 = vld [vmem:[#allocation33_spill] sm:$0xff] }
 0x496   : > { %v1160_v39 = vmul.f32 %v13412_v55, %v13395_v4  ;;  %v2379_v37 = vrot.slane %v2377_v44, 1 }
 0x497   : > { %8652 = vrot.lane.b32.xlu1 %v8651_v41, %s8906_s27  ;;  %v2372_v41 = vshll.u32 %v9969_v13, 16  ;;  %v2151_v34 = vrot.slane %v2149_v63, 7 }
 0x499   : > { %v2626_v17 = vpop.permute.xlu2 %2625 }
 0x49a   : > { %v2857_v25 = vsel %vm1908_vm12, %v9998_v42, %v2626_v17  ;;  %v2374_v17 = vrot.slane %v2372_v41, 1 }
 0x49b   : > { %3742 = vmatmul.bf16.gmra.mxu0 %v2857_v25  ;;  %v2370_v25 = vshrl.u32 %v9969_v13, 16 }
 0x4a1   : > { %v10052_v8 = vpop.permute.xlu2 %1599 }
 0x4a2   : > { %v3560_v54 = vpop.f32.mrf.mxu1  ;;  %v3649_v1 = vpop.f32.mrf.mxu0 }
 0x4a3   : > { %v10054_v24 = vadd.f32 %v3649_v1, %v3560_v54  ;;  %v1580_v12 = vpop.permute.xlu1 %1579 }
 0x4a4   : > { %v1645_v49 = vmul.f32 %v1580_v12, %v13407_v58  ;;  %v13413_v12 = vld [vmem:[#allocation36_spill] sm:$0xff] }
 0x4a5   : > { %v1161_v41 = vmul.f32 %v13413_v12, %v9259_v52 }
 0x4a6   : > { %v8656_v35 = vpack.i.bf16 %v1645_v49, %v1644_v33  ;;  %v2154_v49 = vor.u32 %v2152_v38, %v2151_v34 }
 0x4a8   : > { %8657 = vrot.lane.b32.xlu0 %v8656_v35, %s8903_s22  ;;  %v2375_v35 = vor.u32 %v2374_v17, %v2370_v25  ;;  %v10081_v17 = vsel %vm9533_vm15, 0, %v2154_v49  ;;  %v3625_v25 = vadd.f32 %v9785_v31, %v9783_v9 }
 0x4a9   : > { %v2628_v45 = vpop.permute.xlu2 %2627 }
 0x4aa   : > { %v10062_v54 = vpop.f32.mrf.mxu0  ;;  %v2860_v1 = vsel %vm1908_vm12, %v10026_v56, %v2628_v45  ;;  %v8634_v63 = vpop.permute.xlu0 %8633  ;;  %v10075_v12 = vsel %vm2264_vm2, %v2375_v35, %v2379_v37  ;;  %v13416_v35 = vld [vmem:[#allocation21_spill] sm:$0xff] }
 0x4ab   : > { %13411 = vst [vmem:[#allocation66_spill] sm:$0xff] %v10062_v54  ;;  %v8629_v33 = vpop.permute.xlu1 %8628  ;;  %3747 = vmatmul.bf16.gmra.mxu0 %v2860_v1  ;;  %v8636_v30 = vunpack.i.h.bf16 %v8634_v63  ;;  %v8635_v53 = vunpack.i.l.bf16 %v8634_v63  ;;  %v13415_v63 = vld [vmem:[#allocation24_spill] sm:$0xff] }
 0x4ac   : > { %v8631_v59 = vunpack.i.h.bf16 %v8629_v33  ;;  %v8630_v26 = vunpack.i.l.bf16 %v8629_v33 }
 0x4ae   : > { %v1930_v54 = vsel %vm1908_vm12, %v1161_v41, %v8631_v59  ;;  %v1929_v45 = vsel %vm1908_vm12, %v1160_v39, %v8630_v26 }
 0x4af   : > { %v1962_v22 = vsel %vm662_vm0, %v1930_v54, %v8636_v30  ;;  %v1961_v55 = vsel %vm662_vm0, %v1929_v45, %v8635_v53  ;;  %v2257_v53 = vsel %vm9533_vm15, %v2151_v34, 0  ;;  %v2514_v54 = vrot.slane %v10081_v17, 1 }
 0x4b0   : > { %v1994_v52 = vpack.c.bf16 %v1962_v22, %v1962_v22  ;;  %v1993_v1 = vpack.c.bf16 %v1961_v55, %v1961_v55  ;;  %2567 = vrot.lane.b32.xlu0 %v10075_v12, %s8905_s1  ;;  %v2515_v59 = vrot.slane %v2257_v53, 1 }
 0x4b2   : > { %v2058_v39 = vunpack.c.l.b16 %v1994_v52  ;;  %v2057_v44 = vunpack.c.l.b16 %v1993_v1  ;;  %v3713_v30 = vpop.f32.mrf.mxu0  ;;  %v1353_v22 = vpop.permute.xlu0 %1352  ;;  %v10093_v52 = vsel %vm2484_vm1, %v2514_v54, %v2515_v59  ;;  %v1646_v54 = vmul.f32 %v10031_v10, %v13416_v35 }
 0x4b3   : > { %v10087_v37 = vadd.f32 %v3713_v30, %v3625_v25  ;;  %v1347_v38 = vpop.permute.xlu1 %1346  ;;  %v1407_v33 = vmul.f32 %v1353_v22, %v13415_v63 }
 0x4b4   : > { %v2079_v41 = vpack.c.b16 %v2058_v39, %v2057_v44  ;;  %v1406_v49 = vmul.f32 %v1347_v38, %v13416_v35  ;;  %v2384_v38 = vshll.u32 %v10081_v17, 16 }
 0x4b5   : > { %13414 = vst [vmem:[#allocation33_spill] sm:$0xff] %v10087_v37 }
 0x4b6   : > { %v8661_v26 = vpack.i.bf16 %v1407_v33, %v1406_v49  ;;  %v2156_v9 = vshrl.u32 %v2079_v41, 16  ;;  %v2159_v45 = vshll.u32 %v2079_v41, 16 }
 0x4b8   : > { %8662 = vrot.lane.b32.xlu2 %v8661_v26, %s8906_s27  ;;  %2601 = vrot.lane.b32.xlu0 %v10093_v52, %s8903_s22  ;;  %v2158_v31 = vrot.slane %v2156_v9, 7  ;;  %v2386_v26 = vrot.slane %v2384_v38, 1  ;;  %v2382_v9 = vshrl.u32 %v10081_v17, 16  ;;  %v13421_v38 = vld [vmem:[#allocation40_spill] sm:$0xff] }
 0x4ba   : > { %v10098_v34 = vpop.f32.mrf.mxu0  ;;  %v2161_v55 = vor.u32 %v2159_v45, %v2158_v31  ;;  %v10108_v39 = vsel %vm9533_vm15, %v2158_v31, 0  ;;  %v2387_v45 = vor.u32 %v2386_v26, %v2382_v9 }
 0x4bb   : > { %13417 = vst [vmem:[#allocation36_spill] sm:$0xff] %v10098_v34  ;;  %v2518_v33 = vrot.slane %v10108_v39, 1 }
 0x4bc   : > { %v10104_v1 = vsel %vm9533_vm15, 0, %v2161_v55  ;;  %v13420_v55 = vld [vmem:[#allocation38_spill] sm:$0xff] }
 0x4bd   : > { %v2517_v22 = vrot.slane %v10104_v1, 1 }
 0x4bf   : > { %v10120_v59 = vsel %vm2484_vm1, %v2517_v22, %v2518_v33 }
 0x4c0   : > { %2629 = vrot.lane.b32.xlu0 %v9969_v13, %s8906_s27 }
 0x4c2   : > { %v3718_v25 = vpop.f32.mrf.mxu0 }
 0x4c3   : > { %v10111_v44 = vadd.f32 %v3718_v25, %v9804_v28  ;;  %v1593_v30 = vpop.permute.xlu1 %1592  ;;  %v2389_v28 = vshll.u32 %v2257_v53, 16  ;;  %v1162_v25 = vmul.f32 %v13420_v55, %v13400_v29 }
 0x4c4   : > { %v1647_v41 = vmul.f32 %v1593_v30, %v13415_v63 }
 0x4c5   : > { %13418 = vst [vmem:[#allocation67_spill] sm:$0xff] %v10111_v44  ;;  %v2391_v4 = vrot.slane %v2389_v28, 1  ;;  %v13441_v44 = vld [vmem:[#allocation37_spill] sm:$0xff] }
 0x4c6   : > { %v8666_v49 = vpack.i.bf16 %v1647_v41, %v1646_v54  ;;  %v1163_v41 = vmul.f32 %v13421_v38, %v13401_v27  ;;  %v13423_v38 = vld [vmem:[#allocation6_spill] sm:$0xff] }
 0x4c8   : > { %8667 = vrot.lane.b32.xlu1 %v8666_v49, %s8903_s22  ;;  %2603 = vrot.lane.b32.xlu0 %v10120_v59, %s8903_s22 }
 0x4ca   : > { %v10126_v31 = vpop.f32.mrf.mxu0 }
 0x4cb   : > { %13419 = vst [vmem:[#allocation68_spill] sm:$0xff] %v10126_v31  ;;  %v8646_v10 = vpop.permute.xlu0 %8645  ;;  %v10135_v31 = vsel %vm2264_vm2, %v2387_v45, %v2391_v4 }
 0x4cc   : > { %v8641_v30 = vpop.permute.xlu1 %8640  ;;  %v8648_v54 = vunpack.i.h.bf16 %v8646_v10  ;;  %v8647_v22 = vunpack.i.l.bf16 %v8646_v10 }
 0x4cd   : > { %v8643_v33 = vunpack.i.h.bf16 %v8641_v30  ;;  %v8642_v49 = vunpack.i.l.bf16 %v8641_v30 }
 0x4cf   : > { %v1932_v53 = vsel %vm1908_vm12, %v1163_v41, %v8643_v33  ;;  %v1931_v34 = vsel %vm1908_vm12, %v1162_v25, %v8642_v49  ;;  %v13424_v41 = vperm.slane %v13423_v38, 6 }
 0x4d0   : > { %v1964_v26 = vsel %vm662_vm0, %v1932_v53, %v8648_v54  ;;  %v1963_v9 = vsel %vm662_vm0, %v1931_v34, %v8647_v22  ;;  %2569 = vrot.lane.b32.xlu1 %v10135_v31, %s8905_s1  ;;  %2631 = vrot.lane.b32.xlu0 %v10081_v17, %s8906_s27  ;;  %v1607_v22 = vperm.slane %v9681_v46, 7 }
 0x4d1   : > { %v1996_v10 = vpack.c.bf16 %v1964_v26, %v1964_v26  ;;  %v1995_v55 = vpack.c.bf16 %v1963_v9, %v1963_v9 }
 0x4d2   : > { %v3723_v28 = vpop.f32.mrf.mxu0 }
 0x4d3   : > { %v10144_v30 = vadd.f32 %v3723_v28, %v9849_v57  ;;  %v2562_v25 = vpop.permute.xlu0 %2561  ;;  %v2060_v34 = vunpack.c.l.b16 %v1996_v10  ;;  %v2059_v54 = vunpack.c.l.b16 %v1995_v55  ;;  %v13427_v55 = vld [vmem:[#allocation28_spill] sm:$0xff] }
 0x4d4   : > { %v2761_v4 = vsel %vm2741_vm10, %v9808_v51, %v2562_v25  ;;  %v2809_v45 = vsel %vm662_vm0, %v2562_v25, %v9998_v42  ;;  %v1360_v53 = vpop.permute.xlu1 %1359 }
 0x4d5   : > { %13422 = vst [vmem:[#allocation38_spill] sm:$0xff] %v10144_v30  ;;  %3564 = vmatmul.bf16.vlgmr.msrb.gmra.mxu2 %v2761_v4  ;;  %3653 = vmatmul.bf16.vlgmr.msrb.gmra.mxu3 %v2809_v45  ;;  %v2080_v33 = vpack.c.b16 %v2060_v34, %v2059_v54  ;;  %v1408_v25 = vmul.f32 %v1360_v53, %v13427_v55  ;;  %v13428_v4 = vld [vmem:[#allocation31_spill] sm:$0xff] }
 0x4d7   : > { %v2163_v26 = vshrl.u32 %v2080_v33, 16  ;;  %v2166_v27 = vshll.u32 %v2080_v33, 16 }
 0x4d8   : > { %1125 = vperm.xlu1 %8650, %v13424_v41   ;;  %1612 = vperm.xlu0 %8681, %v1607_v22   ;;  %v1648_v41 = vmul.f32 %v10052_v8, %v13427_v55  ;;  %v2396_v8 = vshll.u32 %v10104_v1, 16 }
 0x4d9   : > { %v2165_v9 = vrot.slane %v2163_v26, 7 }
 0x4da   : > { %v10153_v57 = vpop.f32.mrf.mxu0 }
 0x4db   : > { %13425 = vst [vmem:[#allocation40_spill] sm:$0xff] %v10153_v57  ;;  %v2564_v49 = vpop.permute.xlu0 %2563 }
 0x4dc   : > { %v2764_v34 = vsel %vm2741_vm10, %v9890_v61, %v2564_v49  ;;  %v2812_v54 = vsel %vm662_vm0, %v2564_v49, %v10026_v56  ;;  %v1367_v49 = vperm.slane %v9693_v50, 7 }
 0x4e2   : > { %v3728_v28 = vpop.f32.mrf.mxu0 }
 0x4e3   : > { %v10156_v42 = vadd.f32 %v3728_v28, %v9894_v3  ;;  %v1366_v10 = vpop.permute.xlu0 %1365  ;;  %v2168_v3 = vor.u32 %v2166_v27, %v2165_v9  ;;  %v2259_v27 = vsel %vm9533_vm15, %v2165_v9, 0 }
 0x4e4   : > { %v1606_v46 = vpop.permute.xlu1 %1605  ;;  %v1409_v45 = vmul.f32 %v1366_v10, %v13428_v4 }
 0x4e5   : > { %13426 = vst [vmem:[#allocation6_spill] sm:$0xff] %v10156_v42  ;;  %v1649_v33 = vmul.f32 %v1606_v46, %v13428_v4  ;;  %3569 = vmatmul.bf16.gmra.mxu2 %v2764_v34  ;;  %3658 = vmatmul.bf16.gmra.mxu3 %v2812_v54  ;;  %v10171_v53 = vsel %vm9533_vm15, 0, %v2168_v3  ;;  %v2398_v46 = vrot.slane %v2396_v8, 1  ;;  %v2401_v3 = vshll.u32 %v10108_v39, 16 }
 0x4e6   : > { %v8671_v26 = vpack.i.bf16 %v1409_v45, %v1408_v25  ;;  %v2408_v56 = vshll.u32 %v10171_v53, 16  ;;  %v2406_v54 = vshrl.u32 %v10171_v53, 16 }
 0x4e7   : > { %v8676_v28 = vpack.i.bf16 %v1649_v33, %v1648_v41  ;;  %v2413_v41 = vshll.u32 %v2259_v27, 16  ;;  %v2394_v33 = vshrl.u32 %v10104_v1, 16 }
 0x4e8   : > { %8672 = vrot.lane.b32.xlu2 %v8671_v26, %s8906_s27  ;;  %v2410_v25 = vrot.slane %v2408_v56, 1 }
 0x4e9   : > { %8677 = vrot.lane.b32.xlu1 %v8676_v28, %s8903_s22  ;;  %v2399_v56 = vor.u32 %v2398_v46, %v2394_v33  ;;  %v2415_v8 = vrot.slane %v2413_v41, 1 }
 0x4ea   : > { %v10173_v10 = vpop.f32.mrf.mxu0  ;;  %v2411_v28 = vor.u32 %v2410_v25, %v2406_v54  ;;  %v13432_v25 = vmov 0   ;;  %v2521_v54 = vrot.slane %v2259_v27, 1 }
 0x4eb   : > { %13429 = vst [vmem:[#allocation69_spill] sm:$0xff] %v10173_v10  ;;  %v2566_v45 = vpop.permute.xlu0 %2565 }
 0x4ec   : > { %v2767_v50 = vsel %vm2741_vm10, %v9919_v7, %v2566_v45  ;;  %v2815_v9 = vsel %vm662_vm0, %v2566_v45, %v10039_v32  ;;  %v10191_v29 = vsel %vm2264_vm2, %v2411_v28, %v2415_v8 }
 0x4f0   : > { %1372 = vperm.xlu2 %8613, %v1367_v49  }
 0x4f1   : > { %1378 = vperm.xlu1 %8650, %v1367_v49   ;;  %v2403_v49 = vrot.slane %v2401_v3, 1 }
 0x4f2   : > { %v3733_v34 = vpop.f32.mrf.mxu0 }
 0x4f3   : > { %v10184_v26 = vadd.f32 %v3733_v34, %v9971_v2  ;;  %v10195_v2 = vsel %vm2264_vm2, %v2399_v56, %v2403_v49  ;;  %v2520_v34 = vrot.slane %v10171_v53, 1 }
 0x4f5   : > { %13430 = vst [vmem:[#allocation70_spill] sm:$0xff] %v10184_v26  ;;  %3574 = vmatmul.bf16.gmra.mxu2 %v2767_v50  ;;  %3663 = vmatmul.bf16.gmra.mxu3 %v2815_v9  ;;  %v10211_v41 = vsel %vm2484_vm1, %v2520_v34, %v2521_v54  ;;  %v2600_v26 = vpop.permute.xlu2 %2599 }
 0x4f8   : > { %8682 = vset.pattern.permute.xlu2 %v9082_v23 }
 0x4f9   : > { %2573 = vrot.lane.b32.xlu1 %v10191_v29, %s8905_s1  ;;  %2571 = vrot.lane.b32.xlu2 %v10195_v2, %s8905_s1 }
 0x4fa   : > { %v10201_v39 = vpop.f32.mrf.mxu0  ;;  %8693 = vset.pattern.permute.xlu1 %v13432_v25 }
 0x4fb   : > { %13431 = vst [vmem:[#allocation71_spill] sm:$0xff] %v10201_v39 }
 0x501   : > { %2633 = vrot.lane.b32.xlu1 %v10104_v1, %s8906_s27  ;;  %1618 = vperm.xlu2 %8682, %v1607_v22   ;;  %v13434_v22 = vld [vmem:[#allocation42_spill] sm:$0xff] }
 0x502   : > { %v3738_v46 = vpop.f32.mrf.mxu0  ;;  %v1164_v9 = vmul.f32 %v13434_v22, %v13408_v15 }
 0x503   : > { %v10207_v45 = vadd.f32 %v3738_v46, %v10054_v24  ;;  %v13435_v24 = vld [vmem:[#allocation45_spill] sm:$0xff] }
 0x504   : > { %v1165_v28 = vmul.f32 %v13435_v24, %v13407_v58 }
 0x505   : > { %13433 = vst [vmem:[#allocation72_spill] sm:$0xff] %v10207_v45 }
 0x509   : > { %2635 = vrot.lane.b32.xlu1 %v10171_v53, %s8906_s27  ;;  %2605 = vrot.lane.b32.xlu2 %v10211_v41, %s8903_s22  ;;  %v8653_v33 = vpop.permute.xlu1 %8652 }
 0x50a   : > { %v8655_v3 = vunpack.i.h.bf16 %v8653_v33  ;;  %v8654_v50 = vunpack.i.l.bf16 %v8653_v33 }
 0x50c   : > { %v1934_v49 = vsel %vm1908_vm12, %v1165_v28, %v8655_v3  ;;  %v1933_v46 = vsel %vm1908_vm12, %v1164_v9, %v8654_v50 }
 0x51a   : > { %v8658_v56 = vpop.permute.xlu0 %8657 }
 0x51b   : > { %v8660_v27 = vunpack.i.h.bf16 %v8658_v56  ;;  %v8659_v8 = vunpack.i.l.bf16 %v8658_v56 }
 0x51d   : > { %v1966_v34 = vsel %vm662_vm0, %v1934_v49, %v8660_v27  ;;  %v1965_v54 = vsel %vm662_vm0, %v1933_v46, %v8659_v8 }
 0x51e   : > { %v1998_v23 = vpack.c.bf16 %v1966_v34, %v1966_v34  ;;  %v1997_v45 = vpack.c.bf16 %v1965_v54, %v1965_v54 }
 0x520   : > { %v2062_v33 = vunpack.c.l.b16 %v1998_v23  ;;  %v2061_v39 = vunpack.c.l.b16 %v1997_v45 }
 0x522   : > { %v2081_v22 = vpack.c.b16 %v2062_v33, %v2061_v39  ;;  %v2568_v15 = vpop.permute.xlu0 %2567 }
 0x523   : > { %v2770_v24 = vsel %vm2741_vm10, %v9969_v13, %v2568_v15  ;;  %v2818_v56 = vsel %vm662_vm0, %v2568_v15, %v2600_v26 }
 0x524   : > { %3579 = vmatmul.bf16.gmra.mxu2 %v2770_v24  ;;  %3668 = vmatmul.bf16.gmra.mxu3 %v2818_v56  ;;  %v2170_v3 = vshrl.u32 %v2081_v22, 16  ;;  %v2173_v50 = vshll.u32 %v2081_v22, 16 }
 0x526   : > { %v2172_v9 = vrot.slane %v2170_v3, 7  ;;  %v1127_v3 = vperm.slane %v13423_v38, 7 }
 0x528   : > { %v2175_v28 = vor.u32 %v2173_v50, %v2172_v9  ;;  %v2260_v27 = vsel %vm9533_vm15, %v2172_v9, 0  ;;  %v8663_v9 = vpop.permute.xlu2 %8662 }
 0x529   : > { %v2524_v45 = vrot.slane %v2260_v27, 1  ;;  %v2425_v49 = vshll.u32 %v2260_v27, 16  ;;  %v8664_v27 = vunpack.i.l.bf16 %v8663_v9 }
 0x52a   : > { %v10230_v8 = vpop.permute.xlu0 %2601  ;;  %v10234_v23 = vsel %vm9533_vm15, 0, %v2175_v28  ;;  %v8665_v28 = vunpack.i.h.bf16 %v8663_v9 }
 0x52b   : > { %v2523_v39 = vrot.slane %v10234_v23, 1  ;;  %v2420_v15 = vshll.u32 %v10234_v23, 16  ;;  %v2418_v34 = vshrl.u32 %v10234_v23, 16  ;;  %v2427_v22 = vrot.slane %v2425_v49, 1 }
 0x52d   : > { %v10239_v46 = vsel %vm2484_vm1, %v2523_v39, %v2524_v45  ;;  %v2422_v54 = vrot.slane %v2420_v15, 1  ;;  %v13436_v39 = vld [vmem:[#allocation47_spill] sm:$0xff]  ;;  %v13437_v15 = vld [vmem:[#allocation49_spill] sm:$0xff] }
 0x52e   : > { %2607 = vrot.lane.b32.xlu2 %v10239_v46, %s8903_s22  ;;  %v1166_v45 = vmul.f32 %v13436_v39, %v13416_v35  ;;  %v1167_v49 = vmul.f32 %v13437_v15, %v13415_v63 }
 0x52f   : > { %v2423_v33 = vor.u32 %v2422_v54, %v2418_v34 }
 0x531   : > { %v10245_v24 = vsel %vm2264_vm2, %v2423_v33, %v2427_v22  ;;  %v1936_v22 = vsel %vm1908_vm12, %v1167_v49, %v8665_v28 }
 0x532   : > { %v2630_v56 = vpop.permute.xlu0 %2629  ;;  %2575 = vrot.lane.b32.xlu0 %v10245_v24, %s8905_s1 }
 0x533   : > { %v2863_v50 = vsel %vm1908_vm12, %v10039_v32, %v2630_v56  ;;  %v1935_v32 = vsel %vm1908_vm12, %v1166_v45, %v8664_v27 }
 0x534   : > { %3752 = vmatmul.bf16.gmra.mxu0 %v2863_v50 }
 0x536   : > { %1138 = vperm.xlu2 %8682, %v1127_v3  }
 0x53a   : > { %v8668_v34 = vpop.permute.xlu1 %8667  ;;  %v10256_v54 = vpop.permute.xlu0 %2603  ;;  %1132 = vperm.xlu0 %8681, %v1127_v3  }
 0x53b   : > { %v8670_v33 = vunpack.i.h.bf16 %v8668_v34  ;;  %v8669_v38 = vunpack.i.l.bf16 %v8668_v34 }
 0x53d   : > { %v1967_v56 = vsel %vm662_vm0, %v1935_v32, %v8669_v38  ;;  %v1968_v50 = vsel %vm662_vm0, %v1936_v22, %v8670_v33 }
 0x53e   : > { %v1999_v9 = vpack.c.bf16 %v1967_v56, %v1967_v56  ;;  %v2000_v58 = vpack.c.bf16 %v1968_v50, %v1968_v50  ;;  %8695 = vset.pattern.permute.xlu2 %v13432_v25  ;;  %v10279_v50 = vpop.f32.mrf.mxu0 }
 0x53f   : > { %13438 = vst [vmem:[#allocation42_spill] sm:$0xff] %v10279_v50 }
 0x540   : > { %v2063_v39 = vunpack.c.l.b16 %v1999_v9  ;;  %v2064_v15 = vunpack.c.l.b16 %v2000_v58  ;;  %v8410_v9 = vld [vmem:[%s13210_s7 + $0x1a8] sm:$0xff] }
 0x541   : > { %4062 = vmatpush.bf16.msrb.mxu0 %v8410_v9  ;;  %v13439_v9 = vld [vmem:[#allocation50_spill] sm:$0xff] }
 0x542   : > { %v2082_v63 = vpack.c.b16 %v2064_v15, %v2063_v39  ;;  %v2570_v35 = vpop.permute.xlu1 %2569  ;;  %v8673_v10 = vpop.permute.xlu2 %8672  ;;  %8694 = vset.pattern.permute.xlu0 %v13432_v25 }
 0x543   : > { %v2632_v3 = vpop.permute.xlu0 %2631  ;;  %v2773_v28 = vsel %vm2741_vm10, %v10081_v17, %v2570_v35  ;;  %v2821_v27 = vsel %vm662_vm0, %v2570_v35, %v10230_v8 }
 0x544   : > { %3584 = vmatmul.bf16.gmra.mxu2 %v2773_v28  ;;  %3673 = vmatmul.bf16.gmra.mxu3 %v2821_v27  ;;  %v2866_v45 = vsel %vm1908_vm12, %v2600_v26, %v2632_v3  ;;  %v2177_v49 = vshrl.u32 %v2082_v63, 16  ;;  %v2180_v34 = vshll.u32 %v2082_v63, 16 }
 0x545   : > { %3757 = vmatmul.bf16.gmra.mxu0 %v2866_v45 }
 0x546   : > { %v2179_v58 = vrot.slane %v2177_v49, 7 }
 0x548   : > { %v2182_v33 = vor.u32 %v2180_v34, %v2179_v58  ;;  %v10271_v38 = vsel %vm9533_vm15, %v2179_v58, 0  ;;  %v3743_v34 = vpop.f32.mrf.mxu0 }
 0x549   : > { %v2437_v56 = vshll.u32 %v10271_v38, 16 }
 0x54a   : > { %v1373_v22 = vpop.permute.xlu2 %1372  ;;  %v10275_v32 = vsel %vm9533_vm15, 0, %v2182_v33  ;;  %v1126_v28 = vpop.permute.xlu1 %1125 }
 0x54b   : > { %v2432_v35 = vshll.u32 %v10275_v32, 16  ;;  %v2430_v26 = vshrl.u32 %v10275_v32, 16  ;;  %v2439_v15 = vrot.slane %v2437_v56, 1  ;;  %v1169_v56 = vmul.f32 %v1126_v28, %v13428_v4 }
 0x54d   : > { %v2434_v63 = vrot.slane %v2432_v35, 1  ;;  %v8674_v35 = vunpack.i.l.bf16 %v8673_v10 }
 0x54f   : > { %v2435_v39 = vor.u32 %v2434_v63, %v2430_v26  ;;  %v1613_v26 = vpop.permute.xlu0 %1612 }
 0x551   : > { %v10286_v3 = vsel %vm2264_vm2, %v2435_v39, %v2439_v15  ;;  %v1168_v39 = vmul.f32 %v13439_v9, %v13427_v55  ;;  %v8675_v15 = vunpack.i.h.bf16 %v8673_v10  ;;  %v10307_v10 = vpop.f32.mrf.mxu0 }
 0x552   : > { %2577 = vrot.lane.b32.xlu0 %v10286_v3, %s8905_s1 }
 0x553   : > { %v2572_v27 = vpop.permute.xlu2 %2571  ;;  %v1937_v28 = vsel %vm1908_vm12, %v1168_v39, %v8674_v35 }
 0x554   : > { %v2776_v45 = vsel %vm2741_vm10, %v10104_v1, %v2572_v27  ;;  %v2824_v49 = vsel %vm662_vm0, %v2572_v27, %v10256_v54 }
 0x555   : > { %3589 = vmatmul.bf16.gmra.mxu2 %v2776_v45  ;;  %3678 = vmatmul.bf16.gmra.mxu3 %v2824_v49  ;;  %v13440_v45 = vld [vmem:[#allocation34_spill] sm:$0xff] }
 0x556   : > { %v1650_v49 = vmul.f32 %v1613_v26, %v13440_v45 }
 0x558   : > { %v3565_v58 = vpop.f32.mrf.mxu2  ;;  %v3654_v33 = vpop.f32.mrf.mxu3 }
 0x559   : > { %v3655_v63 = vadd.f32 %v3654_v33, %v3565_v58  ;;  %v1938_v58 = vsel %vm1908_vm12, %v1169_v56, %v8675_v15 }
 0x55a   : > { %2637 = vrot.lane.b32.xlu0 %v10234_v23, %s8906_s27 }
 0x55b   : > { %v8678_v50 = vpop.permute.xlu1 %8677  ;;  %v1619_v57 = vpop.permute.xlu2 %1618  ;;  %v10299_v27 = vadd.f32 %v3743_v34, %v3655_v63 }
 0x55c   : > { %v8680_v42 = vunpack.i.h.bf16 %v8678_v50  ;;  %v8679_v30 = vunpack.i.l.bf16 %v8678_v50  ;;  %v1651_v37 = vmul.f32 %v1619_v57, %v13441_v44 }
 0x55e   : > { %v1969_v33 = vsel %vm662_vm0, %v1937_v28, %v8679_v30  ;;  %v1970_v4 = vsel %vm662_vm0, %v1938_v58, %v8680_v42  ;;  %v8688_v9 = vpack.i.bf16 %v1651_v37, %v1650_v49  ;;  %v1410_v42 = vmul.f32 %v1373_v22, %v13440_v45 }
 0x55f   : > { %v2001_v55 = vpack.c.bf16 %v1969_v33, %v1969_v33  ;;  %v2002_v34 = vpack.c.bf16 %v1970_v4, %v1970_v4 }
 0x560   : > { %8689 = vrot.lane.b32.xlu2 %v8688_v9, %s8903_s22  ;;  %v10310_v26 = vpop.f32.mrf.mxu2  ;;  %v10312_v50 = vpop.f32.mrf.mxu3 }
 0x561   : > { %v2065_v57 = vunpack.c.l.b16 %v2001_v55  ;;  %v2066_v63 = vunpack.c.l.b16 %v2002_v34  ;;  %v3748_v9 = vpop.f32.mrf.mxu0 }
 0x562   : > { %2639 = vrot.lane.b32.xlu0 %v10275_v32, %s8906_s27 }
 0x563   : > { %v2083_v35 = vpack.c.b16 %v2066_v63, %v2065_v57  ;;  %v1379_v30 = vpop.permute.xlu1 %1378  ;;  %v10323_v22 = vpop.permute.xlu2 %2605  ;;  %v2526_v57 = vrot.slane %v10275_v32, 1 }
 0x564   : > { %v1411_v37 = vmul.f32 %v1379_v30, %v13441_v44 }
 0x565   : > { %v2184_v56 = vshrl.u32 %v2083_v35, 16  ;;  %v2187_v4 = vshll.u32 %v2083_v35, 16 }
 0x566   : > { %v8683_v39 = vpack.i.bf16 %v1411_v37, %v1410_v42 }
 0x567   : > { %v2186_v15 = vrot.slane %v2184_v56, 7 }
 0x568   : > { %8684 = vrot.lane.b32.xlu1 %v8683_v39, %s8906_s27  ;;  %v3570_v49 = vpop.f32.mrf.mxu2  ;;  %v3659_v28 = vpop.f32.mrf.mxu3  ;;  %v2527_v39 = vrot.slane %v10271_v38, 1 }
 0x569   : > { %v3660_v58 = vadd.f32 %v3659_v28, %v3570_v49  ;;  %v2189_v55 = vor.u32 %v2187_v4, %v2186_v15  ;;  %v2262_v33 = vsel %vm9533_vm15, %v2186_v15, 0 }
 0x56a   : > { %2709 = vrot.lane.b32.xlu0 %v9663_v0, %s8906_s27  ;;  %v2449_v56 = vshll.u32 %v2262_v33, 16  ;;  %v10340_v49 = vsel %vm2484_vm1, %v2526_v57, %v2527_v39 }
 0x56b   : > { %v2574_v34 = vpop.permute.xlu1 %2573  ;;  %v10328_v63 = vsel %vm9533_vm15, 0, %v2189_v55  ;;  %v10330_v35 = vadd.f32 %v3748_v9, %v3660_v58 }
 0x56c   : > { %v2779_v30 = vsel %vm2741_vm10, %v10171_v53, %v2574_v34  ;;  %v2827_v42 = vsel %vm662_vm0, %v2574_v34, %v10323_v22  ;;  %v2444_v37 = vshll.u32 %v10328_v63, 16  ;;  %v2442_v4 = vshrl.u32 %v10328_v63, 16 }
 0x56d   : > { %3594 = vmatmul.bf16.gmra.mxu2 %v2779_v30  ;;  %3683 = vmatmul.bf16.gmra.mxu3 %v2827_v42  ;;  %v2451_v9 = vrot.slane %v2449_v56, 1  ;;  %v2529_v57 = vrot.slane %v10328_v63, 1  ;;  %v8409_v30 = vld [vmem:[%s13210_s7 + $0x1a0] sm:$0xff] }
 0x56e   : > { %v2446_v15 = vrot.slane %v2444_v37, 1  ;;  %v2530_v37 = vrot.slane %v2262_v33, 1  ;;  %4063 = vmatpush.bf16.msrb.mxu0 %v8409_v30 }
 0x570   : > { %2609 = vrot.lane.b32.xlu1 %v10340_v49, %s8903_s22  ;;  %v10344_v28 = vpop.f32.mrf.mxu2  ;;  %v10346_v58 = vpop.f32.mrf.mxu3  ;;  %v2447_v55 = vor.u32 %v2446_v15, %v2442_v4  ;;  %v10362_v56 = vsel %vm2484_vm1, %v2529_v57, %v2530_v37  ;;  %v8408_v57 = vld [vmem:[%s13210_s7 + $0x198] sm:$0xff] }
 0x572   : > { %v10349_v34 = vsel %vm2264_vm2, %v2447_v55, %v2451_v9  ;;  %2679 = vrot.lane.b32.xlu0 %v9559_v19, %s8903_s22  ;;  %4064 = vmatpush.bf16.msrb.mxu0 %v8408_v57 }
 0x573   : > { %v2634_v38 = vpop.permute.xlu1 %2633  ;;  %2579 = vrot.lane.b32.xlu2 %v10349_v34, %s8905_s1 }
 0x574   : > { %v2869_v42 = vsel %vm1908_vm12, %v10230_v8, %v2634_v38  ;;  %v8396_v38 = vld [vmem:[%s13210_s7 + $0x138] sm:$0xff] }
 0x575   : > { %3762 = vmatmul.bf16.gmra.mxu0 %v2869_v42  ;;  %3882 = vmatpush.bf16.msra.mxu2 %v8396_v38 }
 0x578   : > { %2611 = vrot.lane.b32.xlu1 %v10362_v56, %s8903_s22  ;;  %v3575_v19 = vpop.f32.mrf.mxu2  ;;  %v3664_v39 = vpop.f32.mrf.mxu3 }
 0x579   : > { %v3665_v4 = vadd.f32 %v3664_v39, %v3575_v19  ;;  %v8384_v19 = vld [vmem:[%s13210_s7 + $0xd8] sm:$0xff] }
 0x57a   : > { %2649 = vrot.lane.b32.xlu0 %v9576_v16, %s8905_s1 }
 0x57b   : > { %2645 = vrot.lane.b32.xlu2 %v9555_v11, %s8905_s1  ;;  %v2636_v8 = vpop.permute.xlu1 %2635  ;;  %v8388_v11 = vld [vmem:[%s13210_s7 + $0xf8] sm:$0xff] }
 0x57c   : > { %v2872_v33 = vsel %vm1908_vm12, %v10256_v54, %v2636_v8  ;;  %3793 = vmatpush.bf16.msra.mxu1 %v8388_v11  ;;  %v8404_v8 = vld [vmem:[%s13210_s7 + $0x178] sm:$0xff]  ;;  %v8383_v11 = vld [vmem:[%s13210_s7 + $0xd0] sm:$0xff] }
 0x57d   : > { %3971 = vmatpush.bf16.msra.mxu3 %v8404_v8 }
 0x580   : > { %2677 = vrot.lane.b32.xlu1 %v9589_v43, %s8903_s22  ;;  %v8387_v43 = vld [vmem:[%s13210_s7 + $0xf0] sm:$0xff]  ;;  %v10401_v54 = vpop.f32.mrf.mxu2  ;;  %v10403_v15 = vpop.f32.mrf.mxu3 }
 0x581   : > { %3794 = vmatpush.bf16.msra.mxu1 %v8387_v43  ;;  %v8382_v43 = vld [vmem:[%s13210_s7 + $0xc8] sm:$0xff] }
 0x582   : > { %2651 = vrot.lane.b32.xlu0 %v9645_v18, %s8905_s1 }
 0x583   : > { %2641 = vrot.lane.b32.xlu2 %v10328_v63, %s8906_s27 }
 0x585   : > { %3767 = vmatmul.bf16.gmra.mxu0 %v2872_v33  ;;  %v10430_v33 = vpop.f32.mrf.mxu0 }
 0x588   : > { %2647 = vrot.lane.b32.xlu1 %v9594_v60, %s8905_s1  ;;  %v10412_v55 = vpop.permute.xlu2 %2607 }
 0x58a   : > { %2653 = vrot.lane.b32.xlu0 %v9648_v47, %s8905_s1 }
 0x58b   : > { %2711 = vrot.lane.b32.xlu2 %v9669_v6, %s8906_s27 }
 0x590   : > { %v1139_v57 = vpop.permute.xlu2 %1138 }
 0x592   : > { %2655 = vrot.lane.b32.xlu0 %v9817_v20, %s8905_s1 }
 0x593   : > { %2681 = vrot.lane.b32.xlu2 %v9634_v40, %s8903_s22  ;;  %v8386_v40 = vld [vmem:[%s13210_s7 + $0xe8] sm:$0xff] }
 0x594   : > { %3795 = vmatpush.bf16.msra.mxu1 %v8386_v40 }
 0x59a   : > { %2657 = vrot.lane.b32.xlu0 %v9899_v62, %s8905_s1 }
 0x59b   : > { %2683 = vrot.lane.b32.xlu2 %v9638_v48, %s8903_s22  ;;  %v8385_v48 = vld [vmem:[%s13210_s7 + $0xe0] sm:$0xff] }
 0x59c   : > { %3796 = vmatpush.bf16.msra.mxu1 %v8385_v48 }
 0x5a0   : > { %3797 = vmatpush.bf16.msra.mxu1 %v8384_v19 }
 0x5a2   : > { %2659 = vrot.lane.b32.xlu0 %v9938_v5, %s8905_s1 }
 0x5a3   : > { %2685 = vrot.lane.b32.xlu2 %v9808_v51, %s8903_s22 }
 0x5a4   : > { %v2576_v9 = vpop.permute.xlu0 %2575  ;;  %3798 = vmatpush.bf16.msra.mxu1 %v8383_v11  ;;  %v8392_v11 = vld [vmem:[%s13210_s7 + $0x118] sm:$0xff] }
 0x5a5   : > { %v2782_v30 = vsel %vm2741_vm10, %v10234_v23, %v2576_v9  ;;  %v2830_v51 = vsel %vm662_vm0, %v2576_v9, %v10412_v55  ;;  %v8395_v9 = vld [vmem:[%s13210_s7 + $0x130] sm:$0xff] }
 0x5a6   : > { %3599 = vmatmul.bf16.gmra.mxu2 %v2782_v30  ;;  %3688 = vmatmul.bf16.gmra.mxu3 %v2830_v51 }
 0x5a7   : > { %v3580_v42 = vpop.f32.mrf.mxu2  ;;  %v3669_v37 = vpop.f32.mrf.mxu3  ;;  %3883 = vmatpush.bf16.msra.mxu2 %v8395_v9 }
 0x5a8   : > { %v3670_v39 = vadd.f32 %v3669_v37, %v3580_v42  ;;  %3799 = vmatpush.bf16.msra.mxu1 %v8382_v43  ;;  %v8393_v42 = vld [vmem:[%s13210_s7 + $0x120] sm:$0xff]  ;;  %v8403_v37 = vld [vmem:[%s13210_s7 + $0x170] sm:$0xff] }
 0x5a9   : > { %3972 = vmatpush.bf16.msra.mxu3 %v8403_v37  ;;  %v8402_v37 = vld [vmem:[%s13210_s7 + $0x168] sm:$0xff] }
 0x5aa   : > { %2661 = vrot.lane.b32.xlu0 %v9988_v21, %s8905_s1 }
 0x5ab   : > { %2687 = vrot.lane.b32.xlu2 %v9890_v61, %s8903_s22  ;;  %v8381_v61 = vld [vmem:[%s13210_s7 + $0xc0] sm:$0xff] }
 0x5ac   : > { %3800 = vmatpush.bf16.msra.mxu1 %v8381_v61 }
 0x5ad   : > { %3973 = vmatpush.bf16.msra.mxu3 %v8402_v37 }
 0x5af   : > { %v10463_v30 = vpop.f32.mrf.mxu2  ;;  %v10465_v51 = vpop.f32.mrf.mxu3 }
 0x5b0   : > { %13442 = vst [vmem:[#allocation45_spill] sm:$0xff] %v10463_v30 }
 0x5b1   : > { %v3753_v40 = vpop.f32.mrf.mxu0  ;;  %13443 = vst [vmem:[#allocation47_spill] sm:$0xff] %v10465_v51 }
 0x5b2   : > { %v10442_v48 = vadd.f32 %v3753_v40, %v3665_v4  ;;  %2663 = vrot.lane.b32.xlu0 %v10093_v52, %s8905_s1  ;;  %v1133_v4 = vpop.permute.xlu0 %1132 }
 0x5b3   : > { %2689 = vrot.lane.b32.xlu2 %v9919_v7, %s8903_s22  ;;  %v8394_v7 = vld [vmem:[%s13210_s7 + $0x128] sm:$0xff] }
 0x5b4   : > { %3884 = vmatpush.bf16.msra.mxu2 %v8394_v7 }
 0x5b8   : > { %3885 = vmatpush.bf16.msra.mxu2 %v8393_v42  ;;  %v8390_v42 = vld [vmem:[%s13210_s7 + $0x108] sm:$0xff] }
 0x5b9   : > { %v10454_v38 = vpop.f32.mrf.mxu0 }
 0x5ba   : > { %2665 = vrot.lane.b32.xlu0 %v10120_v59, %s8905_s1  ;;  %v8690_v43 = vpop.permute.xlu2 %8689 }
 0x5bb   : > { %2691 = vrot.lane.b32.xlu2 %v9969_v13, %s8903_s22  ;;  %v8691_v51 = vunpack.i.l.bf16 %v8690_v43 }
 0x5bc   : > { %3886 = vmatpush.bf16.msra.mxu2 %v8392_v11 }
 0x5c2   : > { %v3758_v13 = vpop.f32.mrf.mxu0  ;;  %2667 = vrot.lane.b32.xlu0 %v10211_v41, %s8905_s1 }
 0x5c3   : > { %v10475_v19 = vadd.f32 %v3758_v13, %v3670_v39  ;;  %2693 = vrot.lane.b32.xlu2 %v10081_v17, %s8903_s22  ;;  %v8391_v17 = vld [vmem:[%s13210_s7 + $0x110] sm:$0xff] }
 0x5c4   : > { %v10479_v8 = vpop.permute.xlu0 %2577  ;;  %3887 = vmatpush.bf16.msra.mxu2 %v8391_v17  ;;  %v8407_v17 = vld [vmem:[%s13210_s7 + $0x190] sm:$0xff] }
 0x5c5   : > { %v2785_v40 = vsel %vm2741_vm10, %v10275_v32, %v10479_v8  ;;  %4065 = vmatpush.bf16.msrb.mxu0 %v8407_v17 }
 0x5c6   : > { %3604 = vmatmul.bf16.gmra.mxu2 %v2785_v40 }
 0x5c7   : > { %v3585_v61 = vpop.f32.mrf.mxu2  ;;  %v3674_v9 = vpop.f32.mrf.mxu3 }
 0x5c8   : > { %v10490_v39 = vadd.f32 %v3674_v9, %v3585_v61  ;;  %3888 = vmatpush.bf16.msra.mxu2 %v8390_v42  ;;  %v8389_v61 = vld [vmem:[%s13210_s7 + $0x100] sm:$0xff] }
 0x5c9   : > { %v8401_v9 = vld [vmem:[%s13210_s7 + $0x160] sm:$0xff] }
 0x5ca   : > { %2669 = vrot.lane.b32.xlu0 %v10239_v46, %s8905_s1  ;;  %3974 = vmatpush.bf16.msra.mxu3 %v8401_v9 }
 0x5cb   : > { %2695 = vrot.lane.b32.xlu2 %v10104_v1, %s8903_s22 }
 0x5cc   : > { %v2638_v7 = vpop.permute.xlu0 %2637  ;;  %3889 = vmatpush.bf16.msra.mxu2 %v8389_v61  ;;  %v8399_v61 = vld [vmem:[%s13210_s7 + $0x150] sm:$0xff] }
 0x5cd   : > { %v10502_v13 = vpop.permute.xlu2 %2579  ;;  %v2875_v11 = vsel %vm1908_vm12, %v10323_v22, %v2638_v7  ;;  %v8400_v22 = vld [vmem:[%s13210_s7 + $0x158] sm:$0xff] }
 0x5ce   : > { %3772 = vmatmul.bf16.gmra.mxu0 %v2875_v11  ;;  %v2788_v42 = vsel %vm2741_vm10, %v10328_v63, %v10502_v13  ;;  %3975 = vmatpush.bf16.msra.mxu3 %v8400_v22 }
 0x5cf   : > { %v10506_v40 = vpop.f32.mrf.mxu2  ;;  %v10508_v1 = vpop.f32.mrf.mxu3 }
 0x5d0   : > { %13444 = vst [vmem:[#allocation49_spill] sm:$0xff] %v10506_v40  ;;  %v8692_v40 = vunpack.i.h.bf16 %v8690_v43 }
 0x5d1   : > { %13445 = vst [vmem:[#allocation50_spill] sm:$0xff] %v10508_v1 }
 0x5d2   : > { %2671 = vrot.lane.b32.xlu0 %v10340_v49, %s8905_s1  ;;  %3976 = vmatpush.bf16.msra.mxu3 %v8399_v61 }
 0x5d3   : > { %2697 = vrot.lane.b32.xlu2 %v10171_v53, %s8903_s22 }
 0x5d4   : > { %v2640_v17 = vpop.permute.xlu0 %2639 }
 0x5d5   : > { %v10526_v7 = vpop.permute.xlu2 %2645 }
 0x5d6   : > { %3609 = vmatmul.bf16.gmra.mxu2 %v2788_v42  ;;  %v2888_v37 = vsel %vm2741_vm10, %v9570_v14, %v10526_v7  ;;  %v1171_v42 = vmul.f32 %v1139_v57, %v13441_v44  ;;  %v1170_v14 = vmul.f32 %v1133_v4, %v13440_v45  ;;  %v2878_v57 = vsel %vm1908_vm12, %v10412_v55, %v2640_v17 }
 0x5d7   : > { %3801 = vmatmul.bf16.vlgmr.msra.gmra.mxu1 %v2888_v37 }
 0x5d8   : > { %v3590_v53 = vpop.f32.mrf.mxu2  ;;  %v3679_v11 = vpop.f32.mrf.mxu3 }
 0x5d9   : > { %v10537_v9 = vadd.f32 %v3679_v11, %v3590_v53  ;;  %v8398_v53 = vld [vmem:[%s13210_s7 + $0x148] sm:$0xff] }
 0x5da   : > { %v8685_v1 = vpop.permute.xlu1 %8684  ;;  %2673 = vrot.lane.b32.xlu0 %v10362_v56, %s8905_s1  ;;  %3977 = vmatpush.bf16.msra.mxu3 %v8398_v53 }
 0x5db   : > { %v8687_v22 = vunpack.i.h.bf16 %v8685_v1  ;;  %v8686_v37 = vunpack.i.l.bf16 %v8685_v1  ;;  %2699 = vrot.lane.b32.xlu2 %v10234_v23, %s8903_s22  ;;  %v8397_v23 = vld [vmem:[%s13210_s7 + $0x140] sm:$0xff] }
 0x5dd   : > { %v1939_v11 = vsel %vm1908_vm12, %v1170_v14, %v8686_v37  ;;  %v1940_v30 = vsel %vm1908_vm12, %v1171_v42, %v8687_v22 }
 0x5de   : > { %v1971_v4 = vsel %vm662_vm0, %v1939_v11, %v8691_v51  ;;  %v1972_v1 = vsel %vm662_vm0, %v1940_v30, %v8692_v40  ;;  %3777 = vmatmul.bf16.gmra.mxu0 %v2878_v57  ;;  %3978 = vmatpush.bf16.msra.mxu3 %v8397_v23  ;;  %v10567_v11 = vpop.f32.mrf.mxu0 }
 0x5df   : > { %v2003_v43 = vpack.c.bf16 %v1971_v4, %v1971_v4  ;;  %v2004_v61 = vpack.c.bf16 %v1972_v1, %v1972_v1  ;;  %13448 = vst [vmem:[#allocation75_spill] sm:$0xff] %v10567_v11 }
 0x5e0   : > { %v10561_v42 = vpop.f32.mrf.mxu2  ;;  %v10563_v22 = vpop.f32.mrf.mxu3 }
 0x5e1   : > { %v2067_v45 = vunpack.c.l.b16 %v2003_v43  ;;  %v2068_v44 = vunpack.c.l.b16 %v2004_v61  ;;  %13446 = vst [vmem:[#allocation73_spill] sm:$0xff] %v10561_v42 }
 0x5e2   : > { %v2610_v14 = vpop.permute.xlu1 %2609  ;;  %13447 = vst [vmem:[#allocation74_spill] sm:$0xff] %v10563_v22 }
 0x5e3   : > { %2701 = vrot.lane.b32.xlu2 %v10275_v32, %s8903_s22  ;;  %v2833_v55 = vsel %vm662_vm0, %v10479_v8, %v2610_v14  ;;  %v2084_v51 = vpack.c.b16 %v2068_v44, %v2067_v45  ;;  %v2642_v32 = vpop.permute.xlu2 %2641 }
 0x5e4   : > { %3693 = vmatmul.bf16.gmra.mxu3 %v2833_v55  ;;  %v2881_v23 = vsel %vm1908_vm12, %v2610_v14, %v2642_v32 }
 0x5e5   : > { %v2191_v30 = vshrl.u32 %v2084_v51, 16  ;;  %v2194_v17 = vshll.u32 %v2084_v51, 16 }
 0x5e7   : > { %v2193_v40 = vrot.slane %v2191_v30, 7 }
 0x5e9   : > { %v2196_v37 = vor.u32 %v2194_v17, %v2193_v40  ;;  %v2263_v53 = vsel %vm9533_vm15, %v2193_v40, 0 }
 0x5ea   : > { %v10569_v57 = vpop.permute.xlu1 %2611  ;;  %v2547_v8 = vrot.slane %v2263_v53, 1  ;;  %v2540_v1 = vshll.u32 %v2263_v53, 16 }
 0x5eb   : > { %2703 = vrot.lane.b32.xlu2 %v10328_v63, %s8903_s22  ;;  %v2247_v44 = vsel %vm9533_vm15, 0, %v2196_v37  ;;  %v2836_v32 = vsel %vm662_vm0, %v10502_v13, %v10569_v57 }
 0x5ec   : > { %2643 = vrot.lane.b32.xlu1 %v2247_v44, %s8906_s27  ;;  %v2546_v45 = vrot.slane %v2247_v44, 1  ;;  %v2535_v4 = vshll.u32 %v2247_v44, 16  ;;  %v2533_v61 = vshrl.u32 %v2247_v44, 16  ;;  %v2542_v40 = vrot.slane %v2540_v1, 1 }
 0x5ee   : > { %v10578_v43 = vsel %vm2484_vm1, %v2546_v45, %v2547_v8  ;;  %3782 = vmatmul.bf16.gmra.mxu0 %v2881_v23  ;;  %v2537_v55 = vrot.slane %v2535_v4, 1  ;;  %v2710_v8 = vpop.permute.xlu0 %2709  ;;  %v13450_v4 = vld [vmem:[#allocation55_spill] sm:$0xff] }
 0x5ef   : > { %2675 = vrot.lane.b32.xlu0 %v10578_v43, %s8905_s1 }
 0x5f0   : > { %v3595_v63 = vpop.f32.mrf.mxu2  ;;  %v3684_v51 = vpop.f32.mrf.mxu3  ;;  %v2538_v30 = vor.u32 %v2537_v55, %v2533_v61 }
 0x5f1   : > { %v10582_v17 = vadd.f32 %v3684_v51, %v3595_v63  ;;  %v13454_v63 = vld [vmem:[#allocation63_spill] sm:$0xff] }
 0x5f2   : > { %v2678_v37 = vpop.permute.xlu1 %2677  ;;  %v3763_v22 = vpop.f32.mrf.mxu0  ;;  %v10585_v53 = vsel %vm2264_vm2, %v2538_v30, %v2542_v40  ;;  %v13455_v40 = vld [vmem:[#allocation64_spill] sm:$0xff] }
 0x5f3   : > { %v10588_v14 = vadd.f32 %v3763_v22, %v10490_v39  ;;  %2705 = vrot.lane.b32.xlu2 %v2247_v44, %s8903_s22  ;;  %v2951_v45 = vsel %vm662_vm0, %v10526_v7, %v2678_v37  ;;  %v8406_v39 = vld [vmem:[%s13210_s7 + $0x188] sm:$0xff]  ;;  %v13452_v7 = vld [vmem:[#allocation56_spill] sm:$0xff]  ;;  %v2999_v55 = vsel %vm1908_vm12, %v2678_v37, %v2710_v8 }
 0x5f4   : > { %2713 = vrot.lane.b32.xlu1 %v13450_v4, %s8906_s27  ;;  %3698 = vmatmul.bf16.gmra.mxu3 %v2836_v32  ;;  %v13456_v32 = vld [vmem:[#allocation65_spill] sm:$0xff] }
 0x5f5   : > { %13449 = vst [vmem:[#allocation76_spill] sm:$0xff] %v10588_v14  ;;  %3890 = vmatmul.bf16.vlgmr.msra.gmra.mxu2 %v2951_v45  ;;  %4066 = vmatpush.bf16.msrb.mxu0 %v8406_v39 }
 0x5f6   : > { %v2680_v1 = vpop.permute.xlu0 %2679 }
 0x5fa   : > { %v2648_v22 = vpop.permute.xlu1 %2647  ;;  %v10601_v44 = vpop.f32.mrf.mxu0 }
 0x5fb   : > { %13451 = vst [vmem:[#allocation55_spill] sm:$0xff] %v10601_v44  ;;  %v2892_v13 = vsel %vm2741_vm10, %v9663_v0, %v2648_v22  ;;  %2707 = vrot.lane.b32.xlu2 %v13432_v25, %s8903_s22  ;;  %v2954_v51 = vsel %vm662_vm0, %v2648_v22, %v2680_v1  ;;  %v2712_v0 = vpop.permute.xlu2 %2711  ;;  %v10633_v22 = vpop.f32.mrf.mxu2 }
 0x5fc   : > { %3806 = vmatmul.bf16.gmra.mxu1 %v2892_v13  ;;  %2715 = vrot.lane.b32.xlu1 %v13452_v7, %s8906_s27  ;;  %v3002_v37 = vsel %vm1908_vm12, %v2680_v1, %v2712_v0  ;;  %13457 = vst [vmem:[#allocation63_spill] sm:$0xff] %v10633_v22  ;;  %v10635_v13 = vpop.f32.mrf.mxu3 }
 0x5fd   : > { %13458 = vst [vmem:[#allocation64_spill] sm:$0xff] %v10635_v13 }
 0x5fe   : > { %v2650_v25 = vpop.permute.xlu0 %2649 }
 0x5ff   : > { %v2896_v30 = vsel %vm2741_vm10, %v9669_v6, %v2650_v25 }
 0x602   : > { %v3768_v23 = vpop.f32.mrf.mxu0 }
 0x603   : > { %v10610_v61 = vadd.f32 %v3768_v23, %v10537_v9  ;;  %v10620_v9 = vpop.permute.xlu2 %2681 }
 0x604   : > { %2717 = vrot.lane.b32.xlu1 %v13454_v63, %s8906_s27  ;;  %3979 = vmatmul.bf16.vlgmr.msra.gmra.mxu3 %v2999_v55  ;;  %v2957_v45 = vsel %vm662_vm0, %v2650_v25, %v10620_v9 }
 0x605   : > { %13453 = vst [vmem:[#allocation56_spill] sm:$0xff] %v10610_v61  ;;  %3895 = vmatmul.bf16.gmra.mxu2 %v2954_v51 }
 0x606   : > { %v2652_v8 = vpop.permute.xlu0 %2651 }
 0x607   : > { %v2900_v6 = vsel %vm2741_vm10, %v13450_v4, %v2652_v8  ;;  %v8405_v4 = vld [vmem:[%s13210_s7 + $0x180] sm:$0xff] }
 0x608   : > { %4067 = vmatpush.bf16.msrb.mxu0 %v8405_v4 }
 0x60b   : > { %v10631_v39 = vpop.permute.xlu2 %2683 }
 0x60c   : > { %2719 = vrot.lane.b32.xlu1 %v13455_v40, %s8906_s27  ;;  %3811 = vmatmul.bf16.gmra.mxu1 %v2896_v30  ;;  %v2960_v1 = vsel %vm662_vm0, %v2652_v8, %v10631_v39 }
 0x60e   : > { %v2654_v23 = vpop.permute.xlu0 %2653 }
 0x60f   : > { %v2904_v25 = vsel %vm2741_vm10, %v13452_v7, %v2654_v23 }
 0x613   : > { %v10648_v30 = vpop.permute.xlu2 %2685 }
 0x614   : > { %2721 = vrot.lane.b32.xlu1 %v13456_v32, %s8906_s27  ;;  %3984 = vmatmul.bf16.gmra.mxu3 %v3002_v37  ;;  %v2963_v37 = vsel %vm662_vm0, %v2654_v23, %v10648_v30 }
 0x615   : > { %3900 = vmatmul.bf16.gmra.mxu2 %v2957_v45 }
 0x616   : > { %v2656_v45 = vpop.permute.xlu0 %2655 }
 0x617   : > { %v2908_v8 = vsel %vm2741_vm10, %v13454_v63, %v2656_v45 }
 0x61b   : > { %v10658_v7 = vpop.permute.xlu2 %2687 }
 0x61c   : > { %2723 = vrot.lane.b32.xlu1 %v10075_v12, %s8906_s27  ;;  %3816 = vmatmul.bf16.gmra.mxu1 %v2900_v6  ;;  %v10660_v6 = vpop.f32.mrf.mxu0 }
 0x61d   : > { %13459 = vst [vmem:[#allocation65_spill] sm:$0xff] %v10660_v6 }
 0x61e   : > { %v2658_v4 = vpop.permute.xlu0 %2657 }
 0x61f   : > { %v2912_v63 = vsel %vm2741_vm10, %v13455_v40, %v2658_v4 }
 0x624   : > { %2725 = vrot.lane.b32.xlu1 %v10135_v31, %s8906_s27 }
 0x625   : > { %3905 = vmatmul.bf16.gmra.mxu2 %v2960_v1  ;;  %v2966_v1 = vsel %vm662_vm0, %v2656_v45, %v10658_v7 }
 0x626   : > { %v2660_v22 = vpop.permute.xlu0 %2659 }
 0x629   : > { %v3600_v55 = vpop.f32.mrf.mxu2  ;;  %v3689_v51 = vpop.f32.mrf.mxu3 }
 0x62a   : > { %v3690_v0 = vadd.f32 %v3689_v51, %v3600_v55  ;;  %v10670_v51 = vpop.f32.mrf.mxu1 }
 0x62c   : > { %2727 = vrot.lane.b32.xlu1 %v10195_v2, %s8906_s27  ;;  %3821 = vmatmul.bf16.gmra.mxu1 %v2904_v25 }
 0x631   : > { %v10666_v23 = vpop.f32.mrf.mxu2  ;;  %v10694_v42 = vpop.f32.mrf.mxu3 }
 0x632   : > { %13460 = vst [vmem:[#allocation77_spill] sm:$0xff] %v10666_v23  ;;  %v13463_v23 = vld [vmem:[#allocation33_spill] sm:$0xff] }
 0x633   : > { %13467 = vst [vmem:[#allocation80_spill] sm:$0xff] %v10694_v42 }
 0x634   : > { %2729 = vrot.lane.b32.xlu1 %v10191_v29, %s8906_s27 }
 0x635   : > { %3910 = vmatmul.bf16.gmra.mxu2 %v2963_v37  ;;  %v10677_v37 = vpop.permute.xlu2 %2689 }
 0x636   : > { %v2969_v40 = vsel %vm662_vm0, %v2658_v4, %v10677_v37 }
 0x63c   : > { %2731 = vrot.lane.b32.xlu1 %v10245_v24, %s8906_s27  ;;  %3826 = vmatmul.bf16.gmra.mxu1 %v2908_v8 }
 0x644   : > { %2733 = vrot.lane.b32.xlu1 %v10286_v3, %s8906_s27 }
 0x645   : > { %3915 = vmatmul.bf16.gmra.mxu2 %v2966_v1 }
 0x649   : > { %v3605_v45 = vpop.f32.mrf.mxu2 }
 0x64b   : > { %v3773_v55 = vpop.f32.mrf.mxu0 }
 0x64c   : > { %2735 = vrot.lane.b32.xlu1 %v10349_v34, %s8906_s27  ;;  %v10675_v25 = vadd.f32 %v3773_v55, %v10582_v17  ;;  %3831 = vmatmul.bf16.gmra.mxu1 %v2912_v63  ;;  %v2916_v17 = vsel %vm2741_vm10, %v13456_v32, %v2660_v22  ;;  %v13465_v63 = vld [vmem:[#allocation9_spill] sm:$0xff] }
 0x64e   : > { %13461 = vst [vmem:[#allocation78_spill] sm:$0xff] %v10675_v25 }
 0x651   : > { %v10688_v55 = vpop.f32.mrf.mxu2 }
 0x652   : > { %13464 = vst [vmem:[#allocation33_spill] sm:$0xff] %v10688_v55 }
 0x653   : > { %v10679_v8 = vpop.f32.mrf.mxu0 }
 0x654   : > { %13462 = vst [vmem:[#allocation79_spill] sm:$0xff] %v10679_v8  ;;  %v3802_v1 = vpop.f32.mrf.mxu1  ;;  %2737 = vrot.lane.b32.xlu1 %v10585_v53, %s8906_s27 }
 0x655   : > { %v3803_v13 = vadd.f32 %v3802_v1, %v13463_v23  ;;  %3920 = vmatmul.bf16.gmra.mxu2 %v2969_v40  ;;  %v10698_v23 = vpop.permute.xlu2 %2691 }
 0x656   : > { %v2972_v32 = vsel %vm662_vm0, %v2660_v22, %v10698_v23 }
 0x659   : > { %v3610_v40 = vpop.f32.mrf.mxu2 }
 0x65b   : > { %v3778_v6 = vpop.f32.mrf.mxu0 }
 0x65c   : > { %2739 = vrot.lane.b32.xlu1 %v13465_v63, %s8906_s27  ;;  %v10692_v8 = vadd.f32 %v3778_v6, %v3690_v0  ;;  %3836 = vmatmul.bf16.gmra.mxu1 %v2916_v17  ;;  %v2662_v17 = vpop.permute.xlu0 %2661 }
 0x65e   : > { %13466 = vst [vmem:[#allocation9_spill] sm:$0xff] %v10692_v8  ;;  %v2644_v25 = vpop.permute.xlu1 %2643 }
 0x65f   : > { %v2884_v4 = vsel %vm1908_vm12, %v10569_v57, %v2644_v25  ;;  %v2920_v57 = vsel %vm2741_vm10, %v10075_v12, %v2662_v17 }
 0x660   : > { %3787 = vmatmul.bf16.gmra.mxu0 %v2884_v4 }
 0x661   : > { %v10712_v22 = vpop.f32.mrf.mxu2 }
 0x663   : > { %v10700_v1 = vpop.f32.mrf.mxu0 }
 0x664   : > { %13468 = vst [vmem:[#allocation81_spill] sm:$0xff] %v10700_v1  ;;  %v8426_v1 = vld [vmem:[%s13212_s9 + $0x78] sm:$0xff] }
 0x665   : > { %3925 = vmatmul.bf16.gmra.mxu2 %v2972_v32  ;;  %v10716_v32 = vpop.permute.xlu2 %2693 }
 0x666   : > { %v2714_v55 = vpop.permute.xlu1 %2713  ;;  %5511 = vmatpush.bf16.msrb.mxu2 %v8426_v1 }
 0x667   : > { %v3694_v0 = vpop.f32.mrf.mxu3  ;;  %v3005_v6 = vsel %vm1908_vm12, %v10620_v9, %v2714_v55  ;;  %v10718_v9 = vpop.f32.mrf.mxu1  ;;  %v2975_v55 = vsel %vm662_vm0, %v2662_v17, %v10716_v32 }
 0x668   : > { %v3695_v42 = vadd.f32 %v3694_v0, %v3605_v45  ;;  %3989 = vmatmul.bf16.gmra.mxu3 %v3005_v6 }
 0x66b   : > { %v3783_v8 = vpop.f32.mrf.mxu0 }
 0x66c   : > { %v10708_v25 = vadd.f32 %v3783_v8, %v3695_v42  ;;  %3841 = vmatmul.bf16.gmra.mxu1 %v2920_v57  ;;  %v2664_v8 = vpop.permute.xlu0 %2663 }
 0x66d   : > { %v2924_v17 = vsel %vm2741_vm10, %v10135_v31, %v2664_v8 }
 0x66e   : > { %13469 = vst [vmem:[#allocation82_spill] sm:$0xff] %v10708_v25  ;;  %v2716_v45 = vpop.permute.xlu1 %2715 }
 0x66f   : > { %v10710_v4 = vpop.f32.mrf.mxu3  ;;  %v3008_v42 = vsel %vm1908_vm12, %v10631_v39, %v2716_v45  ;;  %v8428_v39 = vld [vmem:[%s13212_s9 + $0x88] sm:$0xff] }
 0x670   : > { %13470 = vst [vmem:[#allocation83_spill] sm:$0xff] %v10710_v4  ;;  %8207 = vmatmul.msk.bf16.vlgmr.msrb.gmra.mxu0 %vm2741_vm10, %v9594_v60  ;;  %v13471_v4 = vld [vmem:[#allocation67_spill] sm:$0xff]  ;;  %5606 = vmatpush.bf16.msrb.mxu3 %v8428_v39 }
 0x675   : > { %3930 = vmatmul.bf16.gmra.mxu2 %v2975_v55 }
 0x676   : > { %v2718_v1 = vpop.permute.xlu1 %2717 }
 0x677   : > { %v3699_v12 = vpop.f32.mrf.mxu3  ;;  %v3011_v55 = vsel %vm1908_vm12, %v10648_v30, %v2718_v1 }
 0x678   : > { %v10724_v0 = vadd.f32 %v3699_v12, %v3610_v40  ;;  %v3891_v6 = vpop.f32.mrf.mxu2  ;;  %3994 = vmatmul.bf16.gmra.mxu3 %v3008_v42  ;;  %v2666_v12 = vpop.permute.xlu0 %2665 }
 0x679   : > { %v10726_v57 = vadd.f32 %v3891_v6, %v3803_v13  ;;  %v3807_v60 = vpop.f32.mrf.mxu1  ;;  %v8418_v13 = vld [vmem:[%s13212_s9 + $0x38] sm:$0xff]  ;;  %v2928_v39 = vsel %vm2741_vm10, %v10195_v2, %v2666_v12 }
 0x67a   : > { %v3808_v25 = vadd.f32 %v3807_v60, %v13471_v4  ;;  %5422 = vmatpush.bf16.msrb.mxu1 %v8418_v13  ;;  %v10744_v4 = vpop.permute.xlu2 %2695 }
 0x67b   : > { %v2978_v45 = vsel %vm662_vm0, %v2664_v8, %v10744_v4 }
 0x67c   : > { %3846 = vmatmul.bf16.gmra.mxu1 %v2924_v17  ;;  %v13472_v17 = vld [vmem:[#allocation38_spill] sm:$0xff] }
 0x67e   : > { %v2720_v1 = vpop.permute.xlu1 %2719 }
 0x680   : > { %v10740_v40 = vpop.f32.mrf.mxu2  ;;  %8208 = vmatmul.msk.bf16.gmra.mxu0 %vm2741_vm10, %v9576_v16 }
 0x681   : > { %v10746_v31 = vpop.f32.mrf.mxu1 }
 0x682   : > { %v10761_v8 = vpop.permute.xlu2 %2697 }
 0x685   : > { %3935 = vmatmul.bf16.gmra.mxu2 %v2978_v45  ;;  %v3014_v45 = vsel %vm1908_vm12, %v10658_v7, %v2720_v1  ;;  %v8417_v7 = vld [vmem:[%s13212_s9 + $0x30] sm:$0xff] }
 0x686   : > { %5423 = vmatpush.bf16.msrb.mxu1 %v8417_v7  ;;  %v2722_v1 = vpop.permute.xlu1 %2721  ;;  %v8416_v7 = vld [vmem:[%s13212_s9 + $0x28] sm:$0xff] }
 0x688   : > { %v3896_v42 = vpop.f32.mrf.mxu2  ;;  %3999 = vmatmul.bf16.gmra.mxu3 %v3011_v55  ;;  %v2668_v55 = vpop.permute.xlu0 %2667 }
 0x689   : > { %v10752_v6 = vadd.f32 %v3896_v42, %v3808_v25  ;;  %v3812_v60 = vpop.f32.mrf.mxu1  ;;  %v2981_v25 = vsel %vm662_vm0, %v2666_v12, %v10761_v8  ;;  %v2932_v61 = vsel %vm2741_vm10, %v10191_v29, %v2668_v55  ;;  %v3017_v29 = vsel %vm1908_vm12, %v10677_v37, %v2722_v1 }
 0x68a   : > { %v3813_v16 = vadd.f32 %v3812_v60, %v13472_v17  ;;  %v13473_v17 = vld [vmem:[#allocation6_spill] sm:$0xff]  ;;  %5424 = vmatpush.bf16.msrb.mxu1 %v8416_v7 }
 0x68c   : > { %3851 = vmatmul.bf16.gmra.mxu1 %v2928_v39  ;;  %v8425_v39 = vld [vmem:[%s13212_s9 + $0x70] sm:$0xff] }
 0x68d   : > { %5512 = vmatpush.bf16.msrb.mxu2 %v8425_v39 }
 0x690   : > { %v10757_v13 = vpop.f32.mrf.mxu2  ;;  %8209 = vmatmul.msk.bf16.gmra.mxu0 %vm2741_vm10, %v9645_v18 }
 0x691   : > { %v10763_v30 = vpop.f32.mrf.mxu1 }
 0x695   : > { %3940 = vmatmul.bf16.gmra.mxu2 %v2981_v25 }
 0x698   : > { %v3901_v2 = vpop.f32.mrf.mxu2  ;;  %4004 = vmatmul.bf16.gmra.mxu3 %v3014_v45 }
 0x699   : > { %v10769_v42 = vadd.f32 %v3901_v2, %v3813_v16  ;;  %v3817_v60 = vpop.f32.mrf.mxu1  ;;  %v10784_v16 = vpop.permute.xlu2 %2699 }
 0x69a   : > { %v3818_v18 = vadd.f32 %v3817_v60, %v13473_v17  ;;  %v2984_v25 = vsel %vm662_vm0, %v2668_v55, %v10784_v16  ;;  %v2724_v17 = vpop.permute.xlu1 %2723 }
 0x69b   : > { %v3020_v37 = vsel %vm1908_vm12, %v10698_v23, %v2724_v17 }
 0x69c   : > { %3856 = vmatmul.bf16.gmra.mxu1 %v2932_v61  ;;  %v2670_v61 = vpop.permute.xlu0 %2669 }
 0x69d   : > { %v2936_v60 = vsel %vm2741_vm10, %v10245_v24, %v2670_v61  ;;  %v8424_v24 = vld [vmem:[%s13212_s9 + $0x68] sm:$0xff] }
 0x69e   : > { %5513 = vmatpush.bf16.msrb.mxu2 %v8424_v24 }
 0x6a0   : > { %v10780_v12 = vpop.f32.mrf.mxu2  ;;  %8210 = vmatmul.msk.bf16.gmra.mxu0 %vm2741_vm10, %v9648_v47 }
 0x6a1   : > { %v10796_v47 = vpop.permute.xlu2 %2701 }
 0x6a2   : > { %v2987_v55 = vsel %vm662_vm0, %v2670_v61, %v10796_v47  ;;  %v2726_v1 = vpop.permute.xlu1 %2725 }
 0x6a4   : > { %v2672_v39 = vpop.permute.xlu0 %2671 }
 0x6a5   : > { %3945 = vmatmul.bf16.gmra.mxu2 %v2984_v25 }
 0x6a8   : > { %v3906_v45 = vpop.f32.mrf.mxu2  ;;  %4009 = vmatmul.bf16.gmra.mxu3 %v3017_v29 }
 0x6a9   : > { %v10790_v2 = vadd.f32 %v3906_v45, %v3818_v18  ;;  %v3701_v18 = vpop.f32.mrf.mxu3  ;;  %v10812_v23 = vpop.permute.xlu2 %2703 }
 0x6aa   : > { %v2990_v25 = vsel %vm662_vm0, %v2672_v39, %v10812_v23  ;;  %v2728_v17 = vpop.permute.xlu1 %2727 }
 0x6ac   : > { %3861 = vmatmul.bf16.gmra.mxu1 %v2936_v60  ;;  %v2674_v61 = vpop.permute.xlu0 %2673 }
 0x6ad   : > { %v2944_v45 = vsel %vm2741_vm10, %v10349_v34, %v2674_v61 }
 0x6b0   : > { %8211 = vmatmul.msk.bf16.gmra.mxu0 %vm2741_vm10, %v9817_v20  ;;  %v2940_v20 = vsel %vm2741_vm10, %v10286_v3, %v2672_v39  ;;  %v3023_v3 = vsel %vm1908_vm12, %v10716_v32, %v2726_v1  ;;  %v3026_v32 = vsel %vm1908_vm12, %v10744_v4, %v2728_v17  ;;  %v3702_v4 = vadd.f32 %v3701_v18, %v10712_v22  ;;  %v8415_v22 = vld [vmem:[%s13212_s9 + $0x20] sm:$0xff] }
 0x6b1   : > { %v3980_v29 = vpop.f32.mrf.mxu3  ;;  %5425 = vmatpush.bf16.msrb.mxu1 %v8415_v22 }
 0x6b4   : > { %v2676_v39 = vpop.permute.xlu0 %2675 }
 0x6b5   : > { %3950 = vmatmul.bf16.gmra.mxu2 %v2987_v55  ;;  %v2948_v24 = vsel %vm2741_vm10, %v10585_v53, %v2676_v39  ;;  %v8423_v53 = vld [vmem:[%s13212_s9 + $0x60] sm:$0xff] }
 0x6b6   : > { %5514 = vmatpush.bf16.msrb.mxu2 %v8423_v53 }
 0x6b8   : > { %4014 = vmatmul.bf16.gmra.mxu3 %v3020_v37  ;;  %v10826_v37 = vpop.f32.mrf.mxu0 }
 0x6b9   : > { %v3982_v60 = vpop.f32.mrf.mxu3  ;;  %13474 = vst [vmem:[#allocation67_spill] sm:$0xff] %v10826_v37 }
 0x6bc   : > { %3866 = vmatmul.bf16.gmra.mxu1 %v2940_v20  ;;  %v10832_v20 = vpop.f32.mrf.mxu1 }
 0x6c0   : > { %8212 = vmatmul.msk.bf16.gmra.mxu0 %vm2741_vm10, %v9899_v62  ;;  %v10822_v62 = vpop.permute.xlu2 %2705 }
 0x6c1   : > { %v2993_v55 = vsel %vm662_vm0, %v2674_v61, %v10822_v62  ;;  %v3985_v34 = vpop.f32.mrf.mxu3 }
 0x6c5   : > { %3955 = vmatmul.bf16.gmra.mxu2 %v2990_v25 }
 0x6c8   : > { %4019 = vmatmul.bf16.gmra.mxu3 %v3023_v3  ;;  %v10839_v1 = vpop.permute.xlu2 %2707  ;;  %v2730_v3 = vpop.permute.xlu1 %2729 }
 0x6c9   : > { %v3987_v25 = vpop.f32.mrf.mxu3  ;;  %v2996_v61 = vsel %vm662_vm0, %v2676_v39, %v10839_v1 }
 0x6cc   : > { %3871 = vmatmul.bf16.gmra.mxu1 %v2944_v45  ;;  %v10847_v45 = vpop.f32.mrf.mxu2 }
 0x6d0   : > { %8213 = vmatmul.msk.bf16.gmra.mxu0 %vm2741_vm10, %v9938_v5 }
 0x6d5   : > { %3960 = vmatmul.bf16.gmra.mxu2 %v2993_v55  ;;  %v13477_v55 = vld [vmem:[#allocation57_spill] sm:$0xff] }
 0x6d8   : > { %4024 = vmatmul.bf16.gmra.mxu3 %v3026_v32  ;;  %v13478_v32 = vld [vmem:[#allocation58_spill] sm:$0xff] }
 0x6d9   : > { %v3627_v39 = vadd.f32 %v13478_v32, %v13477_v55  ;;  %v2732_v55 = vpop.permute.xlu1 %2731 }
 0x6dc   : > { %3876 = vmatmul.bf16.gmra.mxu1 %v2948_v24  ;;  %v3981_v24 = vadd.f32 %v3980_v29, %v10726_v57 }
 0x6dd   : > { %v3788_v5 = vpop.f32.mrf.mxu0 }
 0x6de   : > { %v10835_v7 = vadd.f32 %v3788_v5, %v10724_v0  ;;  %v10864_v5 = vld [vmem:[%s13211_s8] ss:$0 sm:$0xff] }
 0x6e0   : > { %13475 = vst [vmem:[#allocation38_spill] sm:$0xff] %v10835_v7  ;;  %8214 = vmatmul.msk.bf16.gmra.mxu0 %vm2741_vm10, %v9988_v21  ;;  %v3029_v21 = vsel %vm1908_vm12, %v10761_v8, %v2730_v3  ;;  %v13479_v8 = vld [vmem:[#allocation36_spill] sm:$0xff] }
 0x6e1   : > { %v3716_v3 = vadd.f32 %v13479_v8, %v3627_v39  ;;  %v10884_v8 = vpop.f32.mrf.mxu2 }
 0x6e3   : > { %v3805_v53 = vadd.f32 %v10718_v9, %v3716_v3  ;;  %v10880_v9 = vpop.f32.mrf.mxu1 }
 0x6e5   : > { %3965 = vmatmul.bf16.gmra.mxu2 %v2996_v61  ;;  %v3790_v0 = vpop.f32.mrf.mxu0  ;;  %v3894_v57 = vadd.f32 %v10740_v40, %v3805_v53  ;;  %v13482_v53 = vld [vmem:[#allocation60_spill] sm:$0xff] }
 0x6e6   : > { %v10849_v17 = vadd.f32 %v3790_v0, %v3702_v4 }
 0x6e7   : > { %v3983_v22 = vadd.f32 %v3982_v60, %v3894_v57  ;;  %v3986_v57 = vadd.f32 %v3985_v34, %v10752_v6 }
 0x6e8   : > { %13476 = vst [vmem:[#allocation6_spill] sm:$0xff] %v10849_v17  ;;  %4029 = vmatmul.bf16.gmra.mxu3 %v3029_v21  ;;  %v10872_v21 = vld [vmem:[%s13211_s8 + $0x1] ss:$0 sm:$0xff] }
 0x6eb   : > { %v10856_v18 = vpop.f32.mrf.mxu3  ;;  %v10903_v17 = vpop.f32.mrf.mxu1 }
 0x6ed   : > { %v4069_v4 = vpop.f32.mrf.mxu0 }
 0x6ee   : > { %v4070_v61 = vadd.f32 %v4069_v4, %v3981_v24  ;;  %v3032_v4 = vsel %vm1908_vm12, %v10784_v16, %v2732_v55 }
 0x6f0   : > { %v4151_v0 = vmul.f32 %v10864_v5, %v4070_v61  ;;  %8215 = vmatmul.msk.bf16.gmra.mxu0 %vm2741_vm10, %v10093_v52  ;;  %v13481_v61 = vld [vmem:[#allocation59_spill] sm:$0xff] }
 0x6f2   : > { %v4185_v32 = vadd.f32 %v10872_v21, %v4151_v0  ;;  %v3632_v0 = vadd.f32 %v13482_v53, %v13481_v61 }
 0x6f3   : > { %v10877_v29 = vpop.f32.mrf.mxu3 }
 0x6f4   : > { %v10886_v3 = vmax.f32 %v4185_v32, 0.0  ;;  %v13484_v32 = vld [vmem:[#allocation68_spill] sm:$0xff] }
 0x6f5   : > { %v4071_v39 = vpop.f32.mrf.mxu0 }
 0x6f6   : > { %v4072_v24 = vadd.f32 %v4071_v39, %v3983_v22  ;;  %13480 = vst [vmem:[#allocation57_spill] sm:$0xff] %v10886_v3  ;;  %v4249_v22 = vpack.c.bf16 %v10886_v3, %v10886_v3  ;;  %v3721_v39 = vadd.f32 %v13484_v32, %v3632_v0 }
 0x6f8   : > { %v4152_v52 = vmul.f32 %v10864_v5, %v4072_v24  ;;  %4034 = vmatmul.bf16.gmra.mxu3 %v3032_v4  ;;  %v4313_v7 = vunpack.c.l.b16 %v4249_v22  ;;  %v8422_v22 = vld [vmem:[%s13212_s9 + $0x58] sm:$0xff] }
 0x6f9   : > { %5515 = vmatpush.bf16.msrb.mxu2 %v8422_v22  ;;  %v13486_v22 = vld [vmem:[#allocation61_spill] sm:$0xff] }
 0x6fa   : > { %v4186_v40 = vadd.f32 %v10872_v21, %v4152_v52  ;;  %v3810_v52 = vadd.f32 %v10746_v31, %v3721_v39 }
 0x6fb   : > { %v10890_v60 = vpop.f32.mrf.mxu3 }
 0x6fc   : > { %v10897_v16 = vmax.f32 %v4186_v40, 0.0  ;;  %v3899_v34 = vadd.f32 %v10757_v13, %v3810_v52  ;;  %v10909_v40 = vpop.f32.mrf.mxu2 }
 0x6fd   : > { %v4074_v55 = vpop.f32.mrf.mxu0 }
 0x6fe   : > { %13483 = vst [vmem:[#allocation58_spill] sm:$0xff] %v10897_v16  ;;  %v4250_v24 = vpack.c.bf16 %v10897_v16, %v10897_v16  ;;  %v4075_v4 = vadd.f32 %v4074_v55, %v3986_v57  ;;  %v3988_v32 = vadd.f32 %v3987_v25, %v3899_v34  ;;  %v2734_v57 = vpop.permute.xlu1 %2733  ;;  %v8414_v34 = vld [vmem:[%s13212_s9 + $0x18] sm:$0xff] }
 0x6ff   : > { %5426 = vmatpush.bf16.msrb.mxu1 %v8414_v34  ;;  %v13489_v34 = vld [vmem:[#allocation40_spill] sm:$0xff] }
 0x700   : > { %v4314_v61 = vunpack.c.l.b16 %v4250_v24  ;;  %v4153_v6 = vmul.f32 %v10864_v5, %v4075_v4  ;;  %8216 = vmatmul.msk.bf16.gmra.mxu0 %vm2741_vm10, %v10120_v59  ;;  %v8427_v59 = vld [vmem:[%s13212_s9 + $0x80] sm:$0xff] }
 0x701   : > { %5607 = vmatpush.bf16.msrb.mxu3 %v8427_v59  ;;  %v13487_v59 = vld [vmem:[#allocation62_spill] sm:$0xff] }
 0x702   : > { %v4345_v53 = vpack.c.b16 %v4314_v61, %v4313_v7  ;;  %v4187_v31 = vadd.f32 %v10872_v21, %v4153_v6  ;;  %v3035_v7 = vsel %vm1908_vm12, %v10796_v47, %v2734_v57 }
 0x703   : > { %v10911_v0 = vpop.f32.mrf.mxu3 }
 0x704   : > { %v4362_v55 = vshrl.u32 %v4345_v53, 16  ;;  %v4365_v13 = vshll.u32 %v4345_v53, 16  ;;  %v10922_v25 = vmax.f32 %v4187_v31, 0.0  ;;  %v10932_v53 = vpop.f32.mrf.mxu1 }
 0x705   : > { %v4076_v39 = vpop.f32.mrf.mxu0 }
 0x706   : > { %v4077_v24 = vadd.f32 %v4076_v39, %v3988_v32  ;;  %v4364_v4 = vrot.slane %v4362_v55, 7  ;;  %13485 = vst [vmem:[#allocation36_spill] sm:$0xff] %v10922_v25  ;;  %v3637_v39 = vadd.f32 %v13487_v59, %v13486_v22 }
 0x708   : > { %v4154_v52 = vmul.f32 %v10864_v5, %v4077_v24  ;;  %4039 = vmatmul.bf16.gmra.mxu3 %v3035_v7  ;;  %v4367_v61 = vor.u32 %v4365_v13, %v4364_v4  ;;  %v10927_v6 = vsel %vm9533_vm15, %v4364_v4, 0  ;;  %v10945_v13 = vpop.f32.mrf.mxu2  ;;  %v3991_v24 = vadd.f32 %v10856_v18, %v10769_v42 }
 0x709   : > { %v4748_v55 = vrot.slane %v10927_v6, 1  ;;  %v4251_v4 = vpack.c.bf16 %v10922_v25, %v10922_v25  ;;  %v3726_v3 = vadd.f32 %v13489_v34, %v3637_v39  ;;  %v2736_v34 = vpop.permute.xlu1 %2735 }
 0x70a   : > { %v4188_v32 = vadd.f32 %v10872_v21, %v4154_v52  ;;  %v10937_v47 = vsel %vm9533_vm15, 0, %v4367_v61 }
 0x70b   : > { %v10939_v57 = vpop.f32.mrf.mxu3  ;;  %v4747_v31 = vrot.slane %v10937_v47, 1  ;;  %v3815_v42 = vadd.f32 %v10763_v30, %v3726_v3  ;;  %v4315_v18 = vunpack.c.l.b16 %v4251_v4 }
 0x70c   : > { %v10951_v7 = vmax.f32 %v4188_v32, 0.0 }
 0x70d   : > { %v4079_v52 = vpop.f32.mrf.mxu0  ;;  %v10954_v61 = vsel %vm2484_vm1, %v4747_v31, %v4748_v55  ;;  %v3904_v31 = vadd.f32 %v10780_v12, %v3815_v42 }
 0x70e   : > { %13488 = vst [vmem:[#allocation59_spill] sm:$0xff] %v10951_v7  ;;  %v4252_v16 = vpack.c.bf16 %v10951_v7, %v10951_v7  ;;  %v4080_v22 = vadd.f32 %v4079_v52, %v3991_v24  ;;  %4901 = vrot.lane.b32.xlu0 %v10954_v61, %s8906_s27  ;;  %v10968_v7 = vpop.f32.mrf.mxu1 }
 0x70f   : > { %v3993_v24 = vadd.f32 %v10877_v29, %v3904_v31 }
 0x710   : > { %v4316_v59 = vunpack.c.l.b16 %v4252_v16  ;;  %v4155_v32 = vmul.f32 %v10864_v5, %v4080_v22  ;;  %8217 = vmatmul.msk.bf16.gmra.mxu0 %vm2741_vm10, %v10211_v41  ;;  %v10972_v16 = vpop.f32.mrf.mxu2  ;;  %v3038_v22 = vsel %vm1908_vm12, %v10812_v23, %v2736_v34 }
 0x712   : > { %v4346_v55 = vpack.c.b16 %v4316_v59, %v4315_v18  ;;  %v4189_v30 = vadd.f32 %v10872_v21, %v4155_v32 }
 0x713   : > { %v10966_v39 = vpop.f32.mrf.mxu3 }
 0x714   : > { %v4369_v52 = vshrl.u32 %v4346_v55, 16  ;;  %v4372_v12 = vshll.u32 %v4346_v55, 16  ;;  %v10978_v42 = vmax.f32 %v4189_v30, 0.0  ;;  %v13492_v55 = vld [vmem:[#allocation25_spill] sm:$0xff]  ;;  %v3996_v30 = vadd.f32 %v10890_v60, %v10790_v2 }
 0x715   : > { %v4081_v3 = vpop.f32.mrf.mxu0  ;;  %v4540_v2 = vshll.u32 %v10937_v47, 16 }
 0x716   : > { %v4082_v4 = vadd.f32 %v4081_v3, %v3993_v24  ;;  %4869 = vrot.lane.b32.xlu0 %v10937_v47, %s8905_s1  ;;  %v4371_v41 = vrot.slane %v4369_v52, 7  ;;  %13490 = vst [vmem:[#allocation60_spill] sm:$0xff] %v10978_v42  ;;  %v13491_v24 = vld [vmem:[#allocation23_spill] sm:$0xff] }
 0x717   : > { %v3642_v52 = vadd.f32 %v13492_v55, %v13491_v24  ;;  %v11003_v55 = vpop.f32.mrf.mxu1 }
 0x718   : > { %v4156_v18 = vmul.f32 %v10864_v5, %v4082_v4  ;;  %4044 = vmatmul.bf16.gmra.mxu3 %v3038_v22  ;;  %v4374_v29 = vor.u32 %v4372_v12, %v4371_v41  ;;  %v4522_v59 = vsel %vm9533_vm15, %v4371_v41, 0  ;;  %v4253_v4 = vpack.c.bf16 %v10978_v42, %v10978_v42  ;;  %v13494_v12 = vld [vmem:[#allocation69_spill] sm:$0xff]  ;;  %v11010_v14 = vpop.f32.mrf.mxu2 }
 0x719   : > { %v4557_v34 = vshll.u32 %v4522_v59, 16  ;;  %v3731_v22 = vadd.f32 %v13494_v12, %v3642_v52  ;;  %v4751_v11 = vrot.slane %v4522_v59, 1 }
 0x71a   : > { %v4190_v32 = vadd.f32 %v10872_v21, %v4156_v18  ;;  %v10986_v31 = vsel %vm9533_vm15, 0, %v4374_v29  ;;  %v4317_v52 = vunpack.c.l.b16 %v4253_v4  ;;  %v4538_v4 = vshrl.u32 %v10937_v47, 16 }
 0x71b   : > { %v10990_v3 = vpop.f32.mrf.mxu3  ;;  %4933 = vrot.lane.b32.xlu2 %v10986_v31, %s8903_s22  ;;  %v4552_v23 = vshll.u32 %v10986_v31, 16  ;;  %v4550_v29 = vshrl.u32 %v10986_v31, 16  ;;  %v4750_v44 = vrot.slane %v10986_v31, 1  ;;  %v3820_v60 = vadd.f32 %v10832_v20, %v3731_v22 }
 0x71c   : > { %v10999_v41 = vmax.f32 %v4190_v32, 0.0  ;;  %v4559_v42 = vrot.slane %v4557_v34, 1  ;;  %v4542_v34 = vrot.slane %v4540_v2, 1 }
 0x71d   : > { %v4084_v18 = vpop.f32.mrf.mxu0  ;;  %v4554_v24 = vrot.slane %v4552_v23, 1  ;;  %v11022_v20 = vsel %vm2484_vm1, %v4750_v44, %v4751_v11  ;;  %v8421_v11 = vld [vmem:[%s13212_s9 + $0x50] sm:$0xff] }
 0x71e   : > { %13493 = vst [vmem:[#allocation68_spill] sm:$0xff] %v10999_v41  ;;  %v4254_v25 = vpack.c.bf16 %v10999_v41, %v10999_v41  ;;  %v4085_v37 = vadd.f32 %v4084_v18, %v3996_v30  ;;  %v3909_v18 = vadd.f32 %v10847_v45, %v3820_v60  ;;  %5516 = vmatpush.bf16.msrb.mxu2 %v8421_v11  ;;  %v13495_v60 = vld [vmem:[#allocation70_spill] sm:$0xff] }
 0x71f   : > { %v4555_v32 = vor.u32 %v4554_v24, %v4550_v29  ;;  %v4543_v29 = vor.u32 %v4542_v34, %v4538_v4 }
 0x720   : > { %v4318_v12 = vunpack.c.l.b16 %v4254_v25  ;;  %v4157_v23 = vmul.f32 %v10864_v5, %v4085_v37  ;;  %8218 = vmatmul.msk.bf16.gmra.mxu0 %vm2741_vm10, %v10239_v46  ;;  %v4545_v46 = vshll.u32 %v10927_v6, 16  ;;  %v2738_v37 = vpop.permute.xlu1 %2737  ;;  %v3823_v6 = vadd.f32 %v10880_v9, %v13495_v60 }
 0x721   : > { %v11016_v30 = vsel %vm2264_vm2, %v4555_v32, %v4559_v42  ;;  %v3998_v42 = vadd.f32 %v10911_v0, %v3909_v18  ;;  %v3041_v0 = vsel %vm1908_vm12, %v10822_v62, %v2738_v37 }
 0x722   : > { %v4347_v41 = vpack.c.b16 %v4318_v12, %v4317_v52  ;;  %4963 = vrot.lane.b32.xlu1 %v11016_v30, %s8905_s1  ;;  %v4191_v45 = vadd.f32 %v10872_v21, %v4157_v23  ;;  %v4547_v32 = vrot.slane %v4545_v46, 1  ;;  %v11039_v52 = vpop.f32.mrf.mxu1  ;;  %v3912_v9 = vadd.f32 %v10884_v8, %v3823_v6 }
 0x723   : > { %v11024_v25 = vpop.f32.mrf.mxu3  ;;  %4903 = vrot.lane.b32.xlu2 %v11022_v20, %s8906_s27 }
 0x724   : > { %v4376_v59 = vshrl.u32 %v4347_v41, 16  ;;  %v4379_v2 = vshll.u32 %v4347_v41, 16  ;;  %v11041_v12 = vmax.f32 %v4191_v45, 0.0  ;;  %v8413_v41 = vld [vmem:[%s13212_s9 + $0x10] sm:$0xff]  ;;  %v11054_v46 = vsel %vm2264_vm2, %v4543_v29, %v4547_v32 }
 0x725   : > { %v4086_v44 = vpop.f32.mrf.mxu0  ;;  %5427 = vmatpush.bf16.msrb.mxu1 %v8413_v41  ;;  %v13498_v45 = vld [vmem:[#allocation30_spill] sm:$0xff] }
 0x726   : > { %v4087_v22 = vadd.f32 %v4086_v44, %v3998_v42  ;;  %v4378_v24 = vrot.slane %v4376_v59, 7  ;;  %13496 = vst [vmem:[#allocation61_spill] sm:$0xff] %v11041_v12  ;;  %v11050_v42 = vpop.f32.mrf.mxu2  ;;  %v13497_v59 = vld [vmem:[#allocation27_spill] sm:$0xff]  ;;  %v4255_v29 = vpack.c.bf16 %v11041_v12, %v11041_v12 }
 0x727   : > { %v3647_v4 = vadd.f32 %v13498_v45, %v13497_v59 }
 0x728   : > { %v4158_v23 = vmul.f32 %v10864_v5, %v4087_v22  ;;  %4049 = vmatmul.bf16.gmra.mxu3 %v3041_v0  ;;  %v4381_v18 = vor.u32 %v4379_v2, %v4378_v24  ;;  %v4523_v34 = vsel %vm9533_vm15, %v4378_v24, 0  ;;  %v4001_v22 = vadd.f32 %v10939_v57, %v3912_v9  ;;  %v13500_v2 = vld [vmem:[#allocation71_spill] sm:$0xff] }
 0x729   : > { %v4569_v44 = vshll.u32 %v4523_v34, 16  ;;  %v3736_v60 = vadd.f32 %v13500_v2, %v3647_v4  ;;  %v4319_v45 = vunpack.c.l.b16 %v4255_v29  ;;  %v4754_v4 = vrot.slane %v4523_v34, 1 }
 0x72a   : > { %v4192_v62 = vadd.f32 %v10872_v21, %v4158_v23  ;;  %v11058_v37 = vsel %vm9533_vm15, 0, %v4381_v18 }
 0x72b   : > { %v11062_v11 = vpop.f32.mrf.mxu3  ;;  %4809 = vrot.lane.b32.xlu2 %v11054_v46, %s8906_s27  ;;  %4935 = vrot.lane.b32.xlu1 %v11058_v37, %s8903_s22  ;;  %v4564_v8 = vshll.u32 %v11058_v37, 16  ;;  %v4562_v0 = vshrl.u32 %v11058_v37, 16  ;;  %v4753_v41 = vrot.slane %v11058_v37, 1  ;;  %v3825_v59 = vadd.f32 %v10903_v17, %v3736_v60 }
 0x72c   : > { %v11072_v24 = vmax.f32 %v4192_v62, 0.0  ;;  %v4571_v9 = vrot.slane %v4569_v44, 1 }
 0x72d   : > { %v4089_v6 = vpop.f32.mrf.mxu0  ;;  %v4566_v32 = vrot.slane %v4564_v8, 1  ;;  %v3914_v2 = vadd.f32 %v10909_v40, %v3825_v59  ;;  %v11092_v17 = vsel %vm2484_vm1, %v4753_v41, %v4754_v4 }
 0x72e   : > { %13499 = vst [vmem:[#allocation62_spill] sm:$0xff] %v11072_v24  ;;  %v4256_v23 = vpack.c.bf16 %v11072_v24, %v11072_v24  ;;  %v4090_v18 = vadd.f32 %v4089_v6, %v4001_v22  ;;  %v11087_v22 = vpop.f32.mrf.mxu1  ;;  %v11102_v40 = vpop.f32.mrf.mxu2 }
 0x72f   : > { %v4567_v57 = vor.u32 %v4566_v32, %v4562_v0 }
 0x730   : > { %v4320_v12 = vunpack.c.l.b16 %v4256_v23  ;;  %v4159_v62 = vmul.f32 %v10864_v5, %v4090_v18  ;;  %8219 = vmatmul.msk.bf16.gmra.mxu0 %vm2741_vm10, %v10340_v49  ;;  %v11100_v49 = vpop.permute.xlu1 %2739  ;;  %v13501_v18 = vld [vmem:[#allocation72_spill] sm:$0xff] }
 0x731   : > { %v11084_v8 = vsel %vm2264_vm2, %v4567_v57, %v4571_v9  ;;  %v3044_v0 = vsel %vm1908_vm12, %v10839_v1, %v11100_v49  ;;  %v3828_v41 = vadd.f32 %v10932_v53, %v13501_v18  ;;  %v13503_v53 = vld [vmem:[#allocation66_spill] sm:$0xff] }
 0x732   : > { %v4348_v6 = vpack.c.b16 %v4320_v12, %v4319_v45  ;;  %4965 = vrot.lane.b32.xlu0 %v11084_v8, %s8905_s1  ;;  %v4003_v12 = vadd.f32 %v10966_v39, %v3914_v2  ;;  %v4193_v29 = vadd.f32 %v10872_v21, %v4159_v62  ;;  %v3652_v2 = vadd.f32 %v13503_v53, %v10670_v51  ;;  %v13505_v51 = vld [vmem:[#allocation42_spill] sm:$0xff] }
 0x733   : > { %v11094_v44 = vpop.f32.mrf.mxu3  ;;  %4839 = vrot.lane.b32.xlu1 %v10954_v61, %s8903_s22  ;;  %4905 = vrot.lane.b32.xlu2 %v11092_v17, %s8906_s27  ;;  %v3917_v45 = vadd.f32 %v10945_v13, %v3828_v41 }
 0x734   : > { %v4383_v34 = vshrl.u32 %v4348_v6, 16  ;;  %v4386_v61 = vshll.u32 %v4348_v6, 16  ;;  %v11111_v59 = vmax.f32 %v4193_v29, 0.0 }
 0x735   : > { %v4091_v60 = vpop.f32.mrf.mxu0  ;;  %v4006_v29 = vadd.f32 %v10990_v3, %v3917_v45 }
 0x736   : > { %v4092_v32 = vadd.f32 %v4091_v60, %v4003_v12  ;;  %v4385_v23 = vrot.slane %v4383_v34, 7  ;;  %13502 = vst [vmem:[#allocation40_spill] sm:$0xff] %v11111_v59  ;;  %v11133_v34 = vpop.f32.mrf.mxu1  ;;  %v4257_v60 = vpack.c.bf16 %v11111_v59, %v11111_v59  ;;  %v11142_v41 = vpop.f32.mrf.mxu2 }
 0x738   : > { %v4160_v57 = vmul.f32 %v10864_v5, %v4092_v32  ;;  %4054 = vmatmul.bf16.gmra.mxu3 %v3044_v0  ;;  %v4388_v39 = vor.u32 %v4386_v61, %v4385_v23  ;;  %v4524_v9 = vsel %vm9533_vm15, %v4385_v23, 0  ;;  %v3741_v32 = vadd.f32 %v13505_v51, %v3652_v2 }
 0x739   : > { %v4581_v12 = vshll.u32 %v4524_v9, 16 }
 0x73a   : > { %v4194_v62 = vadd.f32 %v10872_v21, %v4160_v57  ;;  %4871 = vrot.lane.b32.xlu0 %v10986_v31, %s8905_s1  ;;  %v11122_v4 = vsel %vm9533_vm15, 0, %v4388_v39  ;;  %v3830_v3 = vadd.f32 %v10968_v7, %v3741_v32 }
 0x73b   : > { %v11126_v6 = vpop.f32.mrf.mxu3  ;;  %4811 = vrot.lane.b32.xlu2 %v11016_v30, %s8906_s27  ;;  %4937 = vrot.lane.b32.xlu1 %v11122_v4, %s8903_s22  ;;  %v4576_v13 = vshll.u32 %v11122_v4, 16  ;;  %v4574_v61 = vshrl.u32 %v11122_v4, 16  ;;  %v4756_v53 = vrot.slane %v11122_v4, 1  ;;  %v4583_v59 = vrot.slane %v4581_v12, 1 }
 0x73c   : > { %v11138_v0 = vmax.f32 %v4194_v62, 0.0  ;;  %v4321_v62 = vunpack.c.l.b16 %v4257_v60 }
 0x73d   : > { %v4094_v23 = vpop.f32.mrf.mxu0  ;;  %v4578_v18 = vrot.slane %v4576_v13, 1  ;;  %v4757_v13 = vrot.slane %v4524_v9, 1 }
 0x73e   : > { %13504 = vst [vmem:[#allocation23_spill] sm:$0xff] %v11138_v0  ;;  %v4258_v57 = vpack.c.bf16 %v11138_v0, %v11138_v0  ;;  %v4095_v39 = vadd.f32 %v4094_v23, %v4006_v29  ;;  %v3919_v0 = vadd.f32 %v10972_v16, %v3830_v3  ;;  %v11168_v9 = vpop.f32.mrf.mxu1  ;;  %v8412_v3 = vld [vmem:[%s13212_s9 + $0x8] sm:$0xff] }
 0x73f   : > { %v4579_v45 = vor.u32 %v4578_v18, %v4574_v61  ;;  %v11158_v7 = vsel %vm2484_vm1, %v4756_v53, %v4757_v13  ;;  %v8420_v61 = vld [vmem:[%s13212_s9 + $0x48] sm:$0xff]  ;;  %v3833_v18 = vadd.f32 %v11003_v55, %v10299_v27  ;;  %v3657_v27 = vadd.f32 %v10312_v50, %v10310_v26  ;;  %5428 = vmatpush.bf16.msrb.mxu1 %v8412_v3 }
 0x740   : > { %v4322_v24 = vunpack.c.l.b16 %v4258_v57  ;;  %v4161_v2 = vmul.f32 %v10864_v5, %v4095_v39  ;;  %8220 = vmatmul.msk.bf16.gmra.mxu0 %vm2741_vm10, %v10362_v56  ;;  %v4008_v56 = vadd.f32 %v11024_v25, %v3919_v0  ;;  %v11175_v57 = vpop.f32.mrf.mxu2  ;;  %5517 = vmatpush.bf16.msrb.mxu2 %v8420_v61 }
 0x741   : > { %v11152_v51 = vsel %vm2264_vm2, %v4579_v45, %v4583_v59  ;;  %v3922_v55 = vadd.f32 %v11010_v14, %v3833_v18 }
 0x742   : > { %v4349_v29 = vpack.c.b16 %v4322_v24, %v4321_v62  ;;  %4967 = vrot.lane.b32.xlu0 %v11152_v51, %s8905_s1  ;;  %v4195_v16 = vadd.f32 %v10872_v21, %v4161_v2 }
 0x743   : > { %v11160_v12 = vpop.f32.mrf.mxu3  ;;  %4841 = vrot.lane.b32.xlu1 %v11022_v20, %s8903_s22  ;;  %4907 = vrot.lane.b32.xlu2 %v11158_v7, %s8906_s27  ;;  %v4011_v14 = vadd.f32 %v11062_v11, %v3922_v55 }
 0x744   : > { %v4390_v59 = vshrl.u32 %v4349_v29, 16  ;;  %v4393_v23 = vshll.u32 %v4349_v29, 16  ;;  %v11177_v39 = vmax.f32 %v4195_v16, 0.0  ;;  %v3746_v29 = vadd.f32 %v10307_v10, %v3657_v27 }
 0x745   : > { %v4096_v24 = vpop.f32.mrf.mxu0 }
 0x746   : > { %v4097_v60 = vadd.f32 %v4096_v24, %v4008_v56  ;;  %v4392_v32 = vrot.slane %v4390_v59, 7  ;;  %v4259_v2 = vpack.c.bf16 %v11177_v39, %v11177_v39  ;;  %v11215_v18 = vpop.f32.mrf.mxu1 }
 0x748   : > { %v4162_v25 = vmul.f32 %v10864_v5, %v4097_v60  ;;  %8295 = vmatmul.msk.bf16.vlgmr.msrb.gmra.mxu3 %vm1908_vm12, %v11022_v20  ;;  %v4395_v0 = vor.u32 %v4393_v23, %v4392_v32  ;;  %v4525_v53 = vsel %vm9533_vm15, %v4392_v32, 0  ;;  %v3835_v23 = vadd.f32 %v11039_v52, %v3746_v29 }
 0x749   : > { %v4593_v50 = vshll.u32 %v4525_v53, 16  ;;  %v4760_v3 = vrot.slane %v4525_v53, 1 }
 0x74a   : > { %v4196_v45 = vadd.f32 %v10872_v21, %v4162_v25  ;;  %4873 = vrot.lane.b32.xlu0 %v11058_v37, %s8905_s1  ;;  %v11195_v20 = vsel %vm9533_vm15, 0, %v4395_v0  ;;  %v4323_v25 = vunpack.c.l.b16 %v4259_v2  ;;  %v3924_v55 = vadd.f32 %v11050_v42, %v3835_v23 }
 0x74b   : > { %v11197_v62 = vpop.f32.mrf.mxu3  ;;  %4813 = vrot.lane.b32.xlu2 %v11084_v8, %s8906_s27  ;;  %4939 = vrot.lane.b32.xlu1 %v11195_v20, %s8903_s22  ;;  %v4588_v26 = vshll.u32 %v11195_v20, 16  ;;  %v4586_v59 = vshrl.u32 %v11195_v20, 16  ;;  %v4759_v32 = vrot.slane %v11195_v20, 1  ;;  %v4595_v61 = vrot.slane %v4593_v50, 1 }
 0x74c   : > { %v11207_v13 = vmax.f32 %v4196_v45, 0.0  ;;  %v11224_v45 = vpop.f32.mrf.mxu2 }
 0x74d   : > { %v4099_v56 = vpop.f32.mrf.mxu0  ;;  %v4590_v16 = vrot.slane %v4588_v26, 1  ;;  %v11229_v26 = vsel %vm2484_vm1, %v4759_v32, %v4760_v3  ;;  %v3662_v32 = vadd.f32 %v10346_v58, %v10344_v28 }
 0x74e   : > { %v4260_v24 = vpack.c.bf16 %v11207_v13, %v11207_v13  ;;  %v4100_v60 = vadd.f32 %v4099_v56, %v4011_v14 }
 0x74f   : > { %v4591_v11 = vor.u32 %v4590_v16, %v4586_v59  ;;  %v3838_v59 = vadd.f32 %v11087_v22, %v10330_v35 }
 0x750   : > { %v4324_v0 = vunpack.c.l.b16 %v4260_v24  ;;  %v4163_v10 = vmul.f32 %v10864_v5, %v4100_v60  ;;  %8221 = vmatmul.msk.bf16.gmra.mxu0 %vm2741_vm10, %v10578_v43  ;;  %v4013_v43 = vadd.f32 %v11094_v44, %v3924_v55 }
 0x751   : > { %v11221_v27 = vsel %vm2264_vm2, %v4591_v11, %v4595_v61  ;;  %v3927_v23 = vadd.f32 %v11102_v40, %v3838_v59  ;;  %v11251_v11 = vpop.f32.mrf.mxu1 }
 0x752   : > { %v4350_v52 = vpack.c.b16 %v4324_v0, %v4323_v25  ;;  %4969 = vrot.lane.b32.xlu0 %v11221_v27, %s8905_s1  ;;  %v4197_v53 = vadd.f32 %v10872_v21, %v4163_v10  ;;  %v3751_v10 = vadd.f32 %v10430_v33, %v3662_v32 }
 0x753   : > { %v11231_v50 = vpop.f32.mrf.mxu3  ;;  %4843 = vrot.lane.b32.xlu1 %v11092_v17, %s8903_s22  ;;  %4909 = vrot.lane.b32.xlu2 %v11229_v26, %s8906_s27  ;;  %v4016_v61 = vadd.f32 %v11126_v6, %v3927_v23 }
 0x754   : > { %v4397_v42 = vshrl.u32 %v4350_v52, 16  ;;  %v4400_v56 = vshll.u32 %v4350_v52, 16  ;;  %v11241_v16 = vmax.f32 %v4197_v53, 0.0  ;;  %v11267_v40 = vpop.f32.mrf.mxu2 }
 0x755   : > { %v4101_v14 = vpop.f32.mrf.mxu0 }
 0x756   : > { %v4102_v2 = vadd.f32 %v4101_v14, %v4013_v43  ;;  %v4399_v29 = vrot.slane %v4397_v42, 7  ;;  %v4261_v25 = vpack.c.bf16 %v11241_v16, %v11241_v16  ;;  %v3840_v14 = vadd.f32 %v11133_v34, %v3751_v10 }
 0x758   : > { %v4164_v24 = vmul.f32 %v10864_v5, %v4102_v2  ;;  %8296 = vmatmul.msk.bf16.gmra.mxu3 %vm1908_vm12, %v11092_v17  ;;  %v4402_v60 = vor.u32 %v4400_v56, %v4399_v29  ;;  %v4526_v44 = vsel %vm9533_vm15, %v4399_v29, 0  ;;  %v4325_v29 = vunpack.c.l.b16 %v4261_v25 }
 0x759   : > { %v4605_v58 = vshll.u32 %v4526_v44, 16  ;;  %v4763_v33 = vrot.slane %v4526_v44, 1  ;;  %v11298_v44 = vpop.f32.mrf.mxu1 }
 0x75a   : > { %v4198_v35 = vadd.f32 %v10872_v21, %v4164_v24  ;;  %4875 = vrot.lane.b32.xlu0 %v11122_v4, %s8905_s1  ;;  %v11258_v22 = vsel %vm9533_vm15, 0, %v4402_v60  ;;  %v3929_v60 = vadd.f32 %v11142_v41, %v3840_v14 }
 0x75b   : > { %v11260_v17 = vpop.f32.mrf.mxu3  ;;  %4815 = vrot.lane.b32.xlu2 %v11152_v51, %s8906_s27  ;;  %4941 = vrot.lane.b32.xlu1 %v11258_v22, %s8903_s22  ;;  %v4600_v28 = vshll.u32 %v11258_v22, 16  ;;  %v4598_v55 = vshrl.u32 %v11258_v22, 16  ;;  %v4762_v53 = vrot.slane %v11258_v22, 1  ;;  %v4607_v2 = vrot.slane %v4605_v58, 1 }
 0x75c   : > { %v11272_v0 = vmax.f32 %v4198_v35, 0.0  ;;  %v4018_v35 = vadd.f32 %v11160_v12, %v3929_v60  ;;  %v3843_v12 = vadd.f32 %v11168_v9, %v10442_v48 }
 0x75d   : > { %v4104_v3 = vpop.f32.mrf.mxu0  ;;  %v4602_v52 = vrot.slane %v4600_v28, 1  ;;  %v11290_v34 = vsel %vm2484_vm1, %v4762_v53, %v4763_v33 }
 0x75e   : > { %v4262_v43 = vpack.c.bf16 %v11272_v0, %v11272_v0  ;;  %v4105_v42 = vadd.f32 %v4104_v3, %v4016_v61  ;;  %v11302_v61 = vpop.f32.mrf.mxu2 }
 0x75f   : > { %v4603_v6 = vor.u32 %v4602_v52, %v4598_v55  ;;  %v8419_v55 = vld [vmem:[%s13212_s9 + $0x40] sm:$0xff] }
 0x760   : > { %v4326_v56 = vunpack.c.l.b16 %v4262_v43  ;;  %v4165_v59 = vmul.f32 %v10864_v5, %v4105_v42  ;;  %8222 = vmatmul.msk.bf16.gmra.mxu0 %vm2741_vm10, %v13465_v63  ;;  %v8411_v52 = vld [vmem:[%s13212_s9] sm:$0xff]  ;;  %5518 = vmatpush.bf16.msrb.mxu2 %v8419_v55 }
 0x761   : > { %v11284_v24 = vsel %vm2264_vm2, %v4603_v6, %v4607_v2  ;;  %5429 = vmatpush.bf16.msrb.mxu1 %v8411_v52  ;;  %v3932_v6 = vadd.f32 %v11175_v57, %v3843_v12 }
 0x762   : > { %v4351_v32 = vpack.c.b16 %v4326_v56, %v4325_v29  ;;  %4971 = vrot.lane.b32.xlu0 %v11284_v24, %s8905_s1  ;;  %v4199_v28 = vadd.f32 %v10872_v21, %v4165_v59 }
 0x763   : > { %v11292_v23 = vpop.f32.mrf.mxu3  ;;  %4845 = vrot.lane.b32.xlu1 %v11158_v7, %s8903_s22  ;;  %4911 = vrot.lane.b32.xlu2 %v11290_v34, %s8906_s27  ;;  %v4021_v56 = vadd.f32 %v11197_v62, %v3932_v6 }
 0x764   : > { %v4404_v41 = vshrl.u32 %v4351_v32, 16  ;;  %v4407_v10 = vshll.u32 %v4351_v32, 16  ;;  %v11312_v43 = vmax.f32 %v4199_v28, 0.0 }
 0x765   : > { %v4106_v58 = vpop.f32.mrf.mxu0 }
 0x766   : > { %v4406_v25 = vrot.slane %v4404_v41, 7  ;;  %v4107_v3 = vadd.f32 %v4106_v58, %v4018_v35  ;;  %v4263_v59 = vpack.c.bf16 %v11312_v43, %v11312_v43  ;;  %v11343_v35 = vpop.f32.mrf.mxu1 }
 0x768   : > { %v4166_v42 = vmul.f32 %v10864_v5, %v4107_v3  ;;  %8297 = vmatmul.msk.bf16.gmra.mxu3 %vm1908_vm12, %v11158_v7  ;;  %v4409_v53 = vor.u32 %v4407_v10, %v4406_v25  ;;  %v4527_v14 = vsel %vm9533_vm15, %v4406_v25, 0  ;;  %v3667_v7 = vadd.f32 %v10403_v15, %v10401_v54  ;;  %v11349_v3 = vpop.f32.mrf.mxu2 }
 0x769   : > { %v4617_v29 = vshll.u32 %v4527_v14, 16  ;;  %v4327_v55 = vunpack.c.l.b16 %v4263_v59  ;;  %v4766_v12 = vrot.slane %v4527_v14, 1 }
 0x76a   : > { %v4200_v2 = vadd.f32 %v10872_v21, %v4166_v42  ;;  %4877 = vrot.lane.b32.xlu0 %v11195_v20, %s8905_s1  ;;  %v11325_v48 = vsel %vm9533_vm15, 0, %v4409_v53  ;;  %v3756_v54 = vadd.f32 %v10454_v38, %v3667_v7 }
 0x76b   : > { %v11329_v9 = vpop.f32.mrf.mxu3  ;;  %4817 = vrot.lane.b32.xlu2 %v11221_v27, %s8906_s27  ;;  %4943 = vrot.lane.b32.xlu1 %v11325_v48, %s8903_s22  ;;  %v4612_v57 = vshll.u32 %v11325_v48, 16  ;;  %v4610_v60 = vshrl.u32 %v11325_v48, 16  ;;  %v4765_v58 = vrot.slane %v11325_v48, 1  ;;  %v4619_v10 = vrot.slane %v4617_v29, 1 }
 0x76c   : > { %v11339_v33 = vmax.f32 %v4200_v2, 0.0  ;;  %v3845_v62 = vadd.f32 %v11215_v18, %v3756_v54 }
 0x76d   : > { %v4109_v15 = vpop.f32.mrf.mxu0  ;;  %v4614_v32 = vrot.slane %v4612_v57, 1  ;;  %v11359_v18 = vsel %vm2484_vm1, %v4765_v58, %v4766_v12 }
 0x76e   : > { %13506 = vst [vmem:[#allocation25_spill] sm:$0xff] %v11339_v33  ;;  %v4264_v41 = vpack.c.bf16 %v11339_v33, %v11339_v33  ;;  %v4110_v28 = vadd.f32 %v4109_v15, %v4021_v56  ;;  %v3934_v53 = vadd.f32 %v11224_v45, %v3845_v62  ;;  %v3848_v15 = vadd.f32 %v11251_v11, %v10475_v19  ;;  %v13508_v11 = vld [vmem:[#allocation45_spill] sm:$0xff] }
 0x76f   : > { %v4615_v25 = vor.u32 %v4614_v32, %v4610_v60  ;;  %v11373_v60 = vpop.f32.mrf.mxu1 }
 0x770   : > { %v4328_v38 = vunpack.c.l.b16 %v4264_v41  ;;  %v4167_v52 = vmul.f32 %v10864_v5, %v4110_v28  ;;  %v4023_v14 = vadd.f32 %v11231_v50, %v3934_v53  ;;  %v3937_v58 = vadd.f32 %v11267_v40, %v3848_v15  ;;  %v11383_v62 = vpop.f32.mrf.mxu2  ;;  %v13511_v53 = vld [vmem:[#allocation75_spill] sm:$0xff] }
 0x771   : > { %v11353_v42 = vsel %vm2264_vm2, %v4615_v25, %v4619_v10  ;;  %v13509_v10 = vld [vmem:[#allocation47_spill] sm:$0xff] }
 0x772   : > { %v4352_v6 = vpack.c.b16 %v4328_v38, %v4327_v55  ;;  %4973 = vrot.lane.b32.xlu0 %v11353_v42, %s8905_s1  ;;  %v4201_v7 = vadd.f32 %v10872_v21, %v4167_v52  ;;  %v4026_v38 = vadd.f32 %v11260_v17, %v3937_v58 }
 0x773   : > { %4847 = vrot.lane.b32.xlu1 %v11229_v26, %s8903_s22  ;;  %4913 = vrot.lane.b32.xlu2 %v11359_v18, %s8906_s27  ;;  %v11367_v57 = vpop.f32.mrf.mxu3 }
 0x774   : > { %v4411_v2 = vshrl.u32 %v4352_v6, 16  ;;  %v4414_v59 = vshll.u32 %v4352_v6, 16  ;;  %v11375_v32 = vmax.f32 %v4201_v7, 0.0 }
 0x775   : > { %v4111_v45 = vpop.f32.mrf.mxu0  ;;  %v11369_v29 = vpop.permute.xlu2 %4933 }
 0x776   : > { %v4413_v56 = vrot.slane %v4411_v2, 7  ;;  %v4112_v54 = vadd.f32 %v4111_v45, %v4023_v14  ;;  %13507 = vst [vmem:[#allocation69_spill] sm:$0xff] %v11375_v32  ;;  %v4265_v52 = vpack.c.bf16 %v11375_v32, %v11375_v32 }
 0x778   : > { %v4168_v50 = vmul.f32 %v10864_v5, %v4112_v54  ;;  %8298 = vmatmul.msk.bf16.gmra.mxu3 %vm1908_vm12, %v11229_v26  ;;  %v4416_v41 = vor.u32 %v4414_v59, %v4413_v56  ;;  %v4528_v28 = vsel %vm9533_vm15, %v4413_v56, 0  ;;  %v3672_v26 = vadd.f32 %v13509_v10, %v13508_v11 }
 0x779   : > { %v4629_v55 = vshll.u32 %v4528_v28, 16  ;;  %v4329_v58 = vunpack.c.l.b16 %v4265_v52 }
 0x77a   : > { %v4202_v25 = vadd.f32 %v10872_v21, %v4168_v50  ;;  %4879 = vrot.lane.b32.xlu0 %v11258_v22, %s8905_s1  ;;  %v11390_v19 = vsel %vm9533_vm15, 0, %v4416_v41  ;;  %v3761_v6 = vadd.f32 %v13511_v53, %v3672_v26  ;;  %v4769_v26 = vrot.slane %v4528_v28, 1 }
 0x77b   : > { %4819 = vrot.lane.b32.xlu2 %v11284_v24, %s8906_s27  ;;  %4945 = vrot.lane.b32.xlu1 %v11390_v19, %s8903_s22  ;;  %v4624_v40 = vshll.u32 %v11390_v19, 16  ;;  %v4622_v7 = vshrl.u32 %v11390_v19, 16  ;;  %v11410_v59 = vpop.f32.mrf.mxu3  ;;  %v4768_v17 = vrot.slane %v11390_v19, 1  ;;  %v4631_v41 = vrot.slane %v4629_v55, 1  ;;  %v11432_v55 = vpop.f32.mrf.mxu2 }
 0x77c   : > { %v11402_v12 = vmax.f32 %v4202_v25, 0.0  ;;  %v3850_v15 = vadd.f32 %v11298_v44, %v3761_v6  ;;  %v4993_v28 = vsel %vm1908_vm12, 0, %v11100_v49 }
 0x77d   : > { %v4114_v14 = vpop.f32.mrf.mxu0  ;;  %v11405_v2 = vpop.permute.xlu2 %4903  ;;  %v4626_v45 = vrot.slane %v4624_v40, 1  ;;  %v11424_v44 = vsel %vm2484_vm1, %v4768_v17, %v4769_v26  ;;  %v13512_v17 = vld [vmem:[#allocation76_spill] sm:$0xff] }
 0x77e   : > { %13510 = vst [vmem:[#allocation70_spill] sm:$0xff] %v11402_v12  ;;  %v4266_v56 = vpack.c.bf16 %v11402_v12, %v11402_v12  ;;  %v4115_v54 = vadd.f32 %v4114_v14, %v4026_v38  ;;  %v3939_v53 = vadd.f32 %v11302_v61, %v3850_v15  ;;  %v11419_v12 = vpop.f32.mrf.mxu1  ;;  %v3853_v15 = vadd.f32 %v11343_v35, %v13512_v17 }
 0x77f   : > { %v4627_v50 = vor.u32 %v4626_v45, %v4622_v7 }
 0x780   : > { %v4330_v25 = vunpack.c.l.b16 %v4266_v56  ;;  %v4169_v11 = vmul.f32 %v10864_v5, %v4115_v54  ;;  %v4902_v10 = vpop.permute.xlu0 %4901  ;;  %v4028_v61 = vadd.f32 %v11292_v23, %v3939_v53  ;;  %v3942_v35 = vadd.f32 %v11349_v3, %v3853_v15 }
 0x781   : > { %v11416_v40 = vsel %vm2264_vm2, %v4627_v50, %v4631_v41  ;;  %v13513_v50 = vld [vmem:[#allocation54_spill] sm:$0xff] }
 0x782   : > { %v4353_v38 = vpack.c.b16 %v4330_v25, %v4329_v58  ;;  %4975 = vrot.lane.b32.xlu0 %v11416_v40, %s8905_s1  ;;  %v4203_v6 = vadd.f32 %v10872_v21, %v4169_v11  ;;  %v5024_v41 = vsel %vm662_vm0, %v4993_v28, %v13513_v50  ;;  %v13516_v28 = vld [vmem:[#allocation50_spill] sm:$0xff] }
 0x783   : > { %4849 = vrot.lane.b32.xlu1 %v11290_v34, %s8903_s22  ;;  %4915 = vrot.lane.b32.xlu2 %v11424_v44, %s8906_s27  ;;  %v11444_v58 = vpop.f32.mrf.mxu3 }
 0x784   : > { %v4418_v52 = vshrl.u32 %v4353_v38, 16  ;;  %v4421_v56 = vshll.u32 %v4353_v38, 16  ;;  %v11442_v49 = vmax.f32 %v4203_v6, 0.0  ;;  %v4031_v6 = vadd.f32 %v11329_v9, %v3942_v35 }
 0x785   : > { %v4116_v14 = vpop.f32.mrf.mxu0  ;;  %v11436_v7 = vpop.permute.xlu2 %4809 }
 0x786   : > { %v4420_v45 = vrot.slane %v4418_v52, 7  ;;  %v4117_v54 = vadd.f32 %v4116_v14, %v4028_v61  ;;  %13514 = vst [vmem:[#allocation27_spill] sm:$0xff] %v11442_v49  ;;  %v11467_v52 = vpop.f32.mrf.mxu1  ;;  %v4267_v14 = vpack.c.bf16 %v11442_v49, %v11442_v49 }
 0x788   : > { %v4170_v23 = vmul.f32 %v10864_v5, %v4117_v54  ;;  %8299 = vmatmul.msk.bf16.gmra.mxu3 %vm1908_vm12, %v11290_v34  ;;  %v4870_v25 = vpop.permute.xlu0 %4869  ;;  %v4423_v11 = vor.u32 %v4421_v56, %v4420_v45  ;;  %v4529_v26 = vsel %vm9533_vm15, %v4420_v45, 0  ;;  %v13515_v34 = vld [vmem:[#allocation49_spill] sm:$0xff]  ;;  %v13518_v56 = vld [vmem:[#allocation55_spill] sm:$0xff] }
 0x789   : > { %v5056_v53 = vsel %vm2741_vm10, %v5024_v41, %v4870_v25  ;;  %v3677_v61 = vadd.f32 %v13516_v28, %v13515_v34  ;;  %v4331_v34 = vunpack.c.l.b16 %v4267_v14 }
 0x78a   : > { %v4204_v38 = vadd.f32 %v10872_v21, %v4170_v23  ;;  %4881 = vrot.lane.b32.xlu0 %v11325_v48, %s8905_s1  ;;  %5430 = vmatmul.bf16.vlgmr.msrb.gmra.mxu1 %v5056_v53  ;;  %v11458_v5 = vsel %vm9533_vm15, 0, %v4423_v11  ;;  %v4641_v21 = vshll.u32 %v4529_v26, 16  ;;  %v11478_v23 = vpop.f32.mrf.mxu2 }
 0x78b   : > { %4821 = vrot.lane.b32.xlu2 %v11353_v42, %s8906_s27  ;;  %4947 = vrot.lane.b32.xlu1 %v11458_v5, %s8903_s22  ;;  %v4636_v3 = vshll.u32 %v11458_v5, 16  ;;  %v3766_v54 = vadd.f32 %v13518_v56, %v3677_v61  ;;  %v4634_v50 = vshrl.u32 %v11458_v5, 16  ;;  %v4771_v9 = vrot.slane %v11458_v5, 1  ;;  %v11487_v61 = vld [vmem:[%s13211_s8] ss:$0 sm:$0xff] }
 0x78c   : > { %v11472_v45 = vmax.f32 %v4204_v38, 0.0  ;;  %v4643_v38 = vrot.slane %v4641_v21, 1  ;;  %v4772_v56 = vrot.slane %v4529_v26, 1  ;;  %v11496_v21 = vpop.f32.mrf.mxu3 }
 0x78d   : > { %v4119_v17 = vpop.f32.mrf.mxu0  ;;  %v11475_v15 = vpop.permute.xlu2 %4905  ;;  %v4638_v41 = vrot.slane %v4636_v3, 1  ;;  %v3855_v53 = vadd.f32 %v11373_v60, %v3766_v54 }
 0x78e   : > { %13517 = vst [vmem:[#allocation30_spill] sm:$0xff] %v11472_v45  ;;  %v4268_v25 = vpack.c.bf16 %v11472_v45, %v11472_v45  ;;  %v4120_v11 = vadd.f32 %v4119_v17, %v4031_v6  ;;  %v5105_v45 = vsel %vm1908_vm12, %v11054_v46, %v4902_v10  ;;  %v11501_v14 = vsel %vm2484_vm1, %v4771_v9, %v4772_v56  ;;  %v11519_v9 = vpop.f32.mrf.mxu1 }
 0x78f   : > { %v4639_v35 = vor.u32 %v4638_v41, %v4634_v50  ;;  %v3944_v60 = vadd.f32 %v11383_v62, %v3855_v53  ;;  %v11511_v62 = vld [vmem:[%s13211_s8 + $0x1] ss:$0 sm:$0xff]  ;;  %v5152_v50 = vsel %vm662_vm0, %v5105_v45, %v11369_v29 }
 0x790   : > { %v4332_v28 = vunpack.c.l.b16 %v4268_v25  ;;  %v4171_v3 = vmul.f32 %v11487_v61, %v4120_v11 }
 0x791   : > { %v11493_v6 = vsel %vm2264_vm2, %v4639_v35, %v4643_v38  ;;  %v4033_v46 = vadd.f32 %v11367_v57, %v3944_v60  ;;  %v13519_v38 = vld [vmem:[#allocation56_spill] sm:$0xff] }
 0x792   : > { %v4354_v54 = vpack.c.b16 %v4332_v28, %v4331_v34  ;;  %4977 = vrot.lane.b32.xlu0 %v11493_v6, %s8905_s1  ;;  %v4205_v26 = vadd.f32 %v11511_v62, %v4171_v3  ;;  %v3858_v34 = vadd.f32 %v11419_v12, %v13519_v38  ;;  %v11523_v28 = vpop.f32.mrf.mxu2 }
 0x793   : > { %4851 = vrot.lane.b32.xlu1 %v11359_v18, %s8903_s22  ;;  %4917 = vrot.lane.b32.xlu2 %v11501_v14, %s8906_s27 }
 0x794   : > { %v4425_v10 = vshrl.u32 %v4354_v54, 16  ;;  %v4964_v17 = vpop.permute.xlu1 %4963  ;;  %v4428_v53 = vshll.u32 %v4354_v54, 16  ;;  %v11525_v3 = vmax.f32 %v4205_v26, 0.0  ;;  %v3947_v60 = vadd.f32 %v11432_v55, %v3858_v34 }
 0x795   : > { %v5183_v41 = vsel %vm2741_vm10, %v5152_v50, %v4964_v17  ;;  %v4121_v25 = vpop.f32.mrf.mxu0  ;;  %v11517_v11 = vpop.permute.xlu2 %4811 }
 0x796   : > { %v4427_v57 = vrot.slane %v4425_v10, 7  ;;  %v4122_v35 = vadd.f32 %v4121_v25, %v4033_v46  ;;  %5519 = vmatmul.bf16.vlgmr.msrb.gmra.mxu2 %v5183_v41  ;;  %13520 = vst [vmem:[#allocation71_spill] sm:$0xff] %v11525_v3  ;;  %v13521_v46 = vld [vmem:[#allocation73_spill] sm:$0xff]  ;;  %v13522_v10 = vld [vmem:[#allocation74_spill] sm:$0xff]  ;;  %v4036_v17 = vadd.f32 %v11410_v59, %v3947_v60  ;;  %v4269_v50 = vpack.c.bf16 %v11525_v3, %v11525_v3  ;;  %v11550_v41 = vpop.f32.mrf.mxu3  ;;  %v3864_v49 = vpop.f32.mrf.mxu1 }
 0x797   : > { %v3682_v26 = vadd.f32 %v13522_v10, %v13521_v46 }
 0x798   : > { %v4172_v29 = vmul.f32 %v11487_v61, %v4122_v35  ;;  %8300 = vmatmul.msk.bf16.gmra.mxu3 %vm1908_vm12, %v11359_v18  ;;  %v4430_v45 = vor.u32 %v4428_v53, %v4427_v57  ;;  %v4530_v56 = vsel %vm9533_vm15, %v4427_v57, 0  ;;  %v13524_v57 = vld [vmem:[#allocation65_spill] sm:$0xff]  ;;  %v4333_v32 = vunpack.c.l.b16 %v4269_v50 }
 0x799   : > { %v4653_v55 = vshll.u32 %v4530_v56, 16  ;;  %v3771_v53 = vadd.f32 %v13524_v57, %v3682_v26  ;;  %v4775_v33 = vrot.slane %v4530_v56, 1 }
 0x79a   : > { %v4206_v54 = vadd.f32 %v11511_v62, %v4172_v29  ;;  %4883 = vrot.lane.b32.xlu0 %v11390_v19, %s8905_s1  ;;  %v11538_v12 = vsel %vm9533_vm15, 0, %v4430_v45 }
 0x79b   : > { %4823 = vrot.lane.b32.xlu2 %v11416_v40, %s8906_s27  ;;  %4949 = vrot.lane.b32.xlu1 %v11538_v12, %s8903_s22  ;;  %v4648_v18 = vshll.u32 %v11538_v12, 16  ;;  %v4646_v34 = vshrl.u32 %v11538_v12, 16  ;;  %v4774_v59 = vrot.slane %v11538_v12, 1  ;;  %v3860_v60 = vadd.f32 %v11467_v52, %v3771_v53 }
 0x79c   : > { %v11552_v25 = vmax.f32 %v4206_v54, 0.0  ;;  %v4655_v54 = vrot.slane %v4653_v55, 1  ;;  %v5108_v55 = vsel %vm1908_vm12, %v11016_v30, %v11405_v2 }
 0x79d   : > { %v4124_v35 = vpop.f32.mrf.mxu0  ;;  %v4936_v38 = vpop.permute.xlu1 %4935  ;;  %v4650_v29 = vrot.slane %v4648_v18, 1  ;;  %v11572_v52 = vsel %vm2484_vm1, %v4774_v59, %v4775_v33  ;;  %v13525_v59 = vld [vmem:[#allocation78_spill] sm:$0xff] }
 0x79e   : > { %13523 = vst [vmem:[#allocation72_spill] sm:$0xff] %v11552_v25  ;;  %v4270_v45 = vpack.c.bf16 %v11552_v25, %v11552_v25  ;;  %v4125_v46 = vadd.f32 %v4124_v35, %v4036_v17  ;;  %v11558_v10 = vpop.permute.xlu2 %4907  ;;  %v3949_v25 = vadd.f32 %v11478_v23, %v3860_v60  ;;  %v11567_v17 = vpop.f32.mrf.mxu2  ;;  %v5154_v56 = vsel %vm662_vm0, %v5108_v55, %v4936_v38  ;;  %v13527_v55 = vld [vmem:[#allocation63_spill] sm:$0xff] }
 0x79f   : > { %v4651_v3 = vor.u32 %v4650_v29, %v4646_v34  ;;  %v11585_v2 = vpop.f32.mrf.mxu3 }
 0x7a0   : > { %v4334_v26 = vunpack.c.l.b16 %v4270_v45  ;;  %v4173_v57 = vmul.f32 %v11487_v61, %v4125_v46  ;;  %v4038_v23 = vadd.f32 %v11444_v58, %v3949_v25  ;;  %v3863_v58 = vadd.f32 %v11519_v9, %v13525_v59 }
 0x7a1   : > { %v11564_v18 = vsel %vm2264_vm2, %v4651_v3, %v4655_v54 }
 0x7a2   : > { %v4355_v35 = vpack.c.b16 %v4334_v26, %v4333_v32  ;;  %4979 = vrot.lane.b32.xlu0 %v11564_v18, %s8905_s1  ;;  %v4207_v32 = vadd.f32 %v11511_v62, %v4173_v57  ;;  %v3952_v26 = vadd.f32 %v11523_v28, %v3863_v58  ;;  %v3867_v57 = vpop.f32.mrf.mxu1 }
 0x7a3   : > { %4853 = vrot.lane.b32.xlu1 %v11424_v44, %s8903_s22  ;;  %4919 = vrot.lane.b32.xlu2 %v11572_v52, %s8906_s27 }
 0x7a4   : > { %v4432_v3 = vshrl.u32 %v4355_v35, 16  ;;  %v4966_v50 = vpop.permute.xlu0 %4965  ;;  %v4435_v30 = vshll.u32 %v4355_v35, 16  ;;  %v11591_v25 = vmax.f32 %v4207_v32, 0.0 }
 0x7a5   : > { %v4126_v33 = vpop.f32.mrf.mxu0  ;;  %v4840_v53 = vpop.permute.xlu1 %4839  ;;  %v5186_v34 = vsel %vm2741_vm10, %v5154_v56, %v4966_v50  ;;  %v4041_v50 = vadd.f32 %v11496_v21, %v3952_v26 }
 0x7a6   : > { %v4434_v29 = vrot.slane %v4432_v3, 7  ;;  %v4127_v45 = vadd.f32 %v4126_v33, %v4038_v23  ;;  %v11587_v46 = vpop.permute.xlu2 %4813  ;;  %5524 = vmatmul.bf16.gmra.mxu2 %v5186_v34  ;;  %13526 = vst [vmem:[#allocation66_spill] sm:$0xff] %v11591_v25  ;;  %v13528_v23 = vld [vmem:[#allocation64_spill] sm:$0xff]  ;;  %v3956_v56 = vpop.f32.mrf.mxu2  ;;  %v4271_v33 = vpack.c.bf16 %v11591_v25, %v11591_v25 }
 0x7a7   : > { %v3687_v3 = vadd.f32 %v13528_v23, %v13527_v55 }
 0x7a8   : > { %v4174_v38 = vmul.f32 %v11487_v61, %v4127_v45  ;;  %8301 = vmatmul.msk.bf16.gmra.mxu3 %vm1908_vm12, %v11424_v44  ;;  %v4437_v60 = vor.u32 %v4435_v30, %v4434_v29  ;;  %v4531_v54 = vsel %vm9533_vm15, %v4434_v29, 0  ;;  %v4995_v44 = vsel %vm1908_vm12, %v10937_v47, %v11436_v7  ;;  %v13530_v7 = vld [vmem:[#allocation79_spill] sm:$0xff] }
 0x7a9   : > { %v4665_v32 = vshll.u32 %v4531_v54, 16  ;;  %v5026_v29 = vsel %vm662_vm0, %v4995_v44, %v4840_v53  ;;  %v3776_v30 = vadd.f32 %v13530_v7, %v3687_v3  ;;  %v4335_v3 = vunpack.c.l.b16 %v4271_v33  ;;  %v11630_v7 = vpop.f32.mrf.mxu3 }
 0x7aa   : > { %v4208_v35 = vadd.f32 %v11511_v62, %v4174_v38  ;;  %4885 = vrot.lane.b32.xlu0 %v11458_v5, %s8905_s1  ;;  %v11604_v9 = vsel %vm9533_vm15, 0, %v4437_v60 }
 0x7ab   : > { %4825 = vrot.lane.b32.xlu2 %v11493_v6, %s8906_s27  ;;  %4951 = vrot.lane.b32.xlu1 %v11604_v9, %s8903_s22  ;;  %v4660_v28 = vshll.u32 %v11604_v9, 16  ;;  %v4658_v38 = vshrl.u32 %v11604_v9, 16  ;;  %v3865_v53 = vadd.f32 %v3864_v49, %v3776_v30  ;;  %v4667_v44 = vrot.slane %v4665_v32, 1 }
 0x7ac   : > { %v11619_v34 = vmax.f32 %v4208_v35, 0.0  ;;  %v4872_v47 = vpop.permute.xlu0 %4871  ;;  %v4777_v35 = vrot.slane %v11604_v9, 1  ;;  %v5111_v32 = vsel %vm1908_vm12, %v11084_v8, %v11475_v15 }
 0x7ad   : > { %v4129_v45 = vpop.f32.mrf.mxu0  ;;  %v4938_v59 = vpop.permute.xlu1 %4937  ;;  %v5059_v58 = vsel %vm2741_vm10, %v5026_v29, %v4872_v47  ;;  %v4662_v60 = vrot.slane %v4660_v28, 1  ;;  %v4778_v47 = vrot.slane %v4531_v54, 1 }
 0x7ae   : > { %13529 = vst [vmem:[#allocation42_spill] sm:$0xff] %v11619_v34  ;;  %v4272_v21 = vpack.c.bf16 %v11619_v34, %v11619_v34  ;;  %v4130_v26 = vadd.f32 %v4129_v45, %v4041_v50  ;;  %v11627_v55 = vpop.permute.xlu2 %4909  ;;  %5435 = vmatmul.bf16.gmra.mxu1 %v5059_v58  ;;  %v3954_v50 = vadd.f32 %v11567_v17, %v3865_v53  ;;  %v3869_v54 = vpop.f32.mrf.mxu1 }
 0x7af   : > { %v4663_v23 = vor.u32 %v4662_v60, %v4658_v38  ;;  %v11640_v49 = vsel %vm2484_vm1, %v4777_v35, %v4778_v47  ;;  %v5156_v30 = vsel %vm662_vm0, %v5111_v32, %v4938_v59  ;;  %v3958_v8 = vpop.f32.mrf.mxu2  ;;  %v13533_v32 = vld [vmem:[#allocation77_spill] sm:$0xff] }
 0x7b0   : > { %v4336_v25 = vunpack.c.l.b16 %v4272_v21  ;;  %v4175_v29 = vmul.f32 %v11487_v61, %v4130_v26  ;;  %v4043_v17 = vadd.f32 %v11550_v41, %v3954_v50 }
 0x7b1   : > { %v11634_v28 = vsel %vm2264_vm2, %v4663_v23, %v4667_v44  ;;  %v13531_v23 = vld [vmem:[#allocation9_spill] sm:$0xff]  ;;  %v11663_v50 = vpop.f32.mrf.mxu3 }
 0x7b2   : > { %v4356_v45 = vpack.c.b16 %v4336_v25, %v4335_v3  ;;  %4981 = vrot.lane.b32.xlu0 %v11634_v28, %s8905_s1  ;;  %v4209_v33 = vadd.f32 %v11511_v62, %v4175_v29  ;;  %v3868_v44 = vadd.f32 %v3867_v57, %v13531_v23 }
 0x7b3   : > { %4855 = vrot.lane.b32.xlu1 %v11501_v14, %s8903_s22  ;;  %4921 = vrot.lane.b32.xlu2 %v11640_v49, %s8906_s27 }
 0x7b4   : > { %v4439_v25 = vshrl.u32 %v4356_v45, 16  ;;  %v4968_v58 = vpop.permute.xlu0 %4967  ;;  %v4442_v26 = vshll.u32 %v4356_v45, 16  ;;  %v11656_v41 = vmax.f32 %v4209_v33, 0.0  ;;  %v3957_v47 = vadd.f32 %v3956_v56, %v3868_v44 }
 0x7b5   : > { %v4131_v38 = vpop.f32.mrf.mxu0  ;;  %v4842_v60 = vpop.permute.xlu1 %4841  ;;  %v5189_v21 = vsel %vm2741_vm10, %v5156_v30, %v4968_v58 }
 0x7b6   : > { %v4441_v15 = vrot.slane %v4439_v25, 7  ;;  %v4132_v35 = vadd.f32 %v4131_v38, %v4043_v17  ;;  %v11653_v53 = vpop.permute.xlu2 %4815  ;;  %5529 = vmatmul.bf16.gmra.mxu2 %v5189_v21  ;;  %13532 = vst [vmem:[#allocation45_spill] sm:$0xff] %v11656_v41  ;;  %v13534_v17 = vld [vmem:[#allocation80_spill] sm:$0xff]  ;;  %v4046_v30 = vadd.f32 %v11585_v2, %v3957_v47  ;;  %v4273_v58 = vpack.c.bf16 %v11656_v41, %v11656_v41 }
 0x7b7   : > { %v3692_v25 = vadd.f32 %v13534_v17, %v13533_v32 }
 0x7b8   : > { %v4176_v3 = vmul.f32 %v11487_v61, %v4132_v35  ;;  %8302 = vmatmul.msk.bf16.gmra.mxu3 %vm1908_vm12, %v11501_v14  ;;  %v4444_v59 = vor.u32 %v4442_v26, %v4441_v15  ;;  %v4532_v29 = vsel %vm9533_vm15, %v4441_v15, 0  ;;  %v4997_v14 = vsel %vm1908_vm12, %v10986_v31, %v11517_v11  ;;  %v13536_v31 = vld [vmem:[#allocation81_spill] sm:$0xff] }
 0x7b9   : > { %v4677_v33 = vshll.u32 %v4532_v29, 16  ;;  %v5028_v21 = vsel %vm662_vm0, %v4997_v14, %v4842_v60  ;;  %v3781_v11 = vadd.f32 %v13536_v31, %v3692_v25  ;;  %v3961_v14 = vpop.f32.mrf.mxu2  ;;  %v4337_v31 = vunpack.c.l.b16 %v4273_v58 }
 0x7ba   : > { %v4210_v45 = vadd.f32 %v11511_v62, %v4176_v3  ;;  %4887 = vrot.lane.b32.xlu0 %v11538_v12, %s8905_s1  ;;  %v11670_v57 = vsel %vm9533_vm15, 0, %v4444_v59  ;;  %v3872_v59 = vpop.f32.mrf.mxu1 }
 0x7bb   : > { %4827 = vrot.lane.b32.xlu2 %v11564_v18, %s8906_s27  ;;  %4953 = vrot.lane.b32.xlu1 %v11670_v57, %s8903_s22  ;;  %v4672_v56 = vshll.u32 %v11670_v57, 16  ;;  %v4670_v44 = vshrl.u32 %v11670_v57, 16  ;;  %v4780_v60 = vrot.slane %v11670_v57, 1  ;;  %v4679_v25 = vrot.slane %v4677_v33, 1 }
 0x7bc   : > { %v11685_v38 = vmax.f32 %v4210_v45, 0.0  ;;  %v4874_v15 = vpop.permute.xlu0 %4873  ;;  %v3870_v45 = vadd.f32 %v3869_v54, %v3781_v11  ;;  %v5114_v54 = vsel %vm1908_vm12, %v11152_v51, %v11558_v10 }
 0x7bd   : > { %v4134_v26 = vpop.f32.mrf.mxu0  ;;  %v4940_v35 = vpop.permute.xlu1 %4939  ;;  %v5062_v23 = vsel %vm2741_vm10, %v5028_v21, %v4874_v15  ;;  %v4674_v3 = vrot.slane %v4672_v56, 1  ;;  %v4781_v15 = vrot.slane %v4532_v29, 1 }
 0x7be   : > { %13535 = vst [vmem:[#allocation47_spill] sm:$0xff] %v11685_v38  ;;  %v4274_v2 = vpack.c.bf16 %v11685_v38, %v11685_v38  ;;  %v4135_v47 = vadd.f32 %v4134_v26, %v4046_v30  ;;  %v11693_v32 = vpop.permute.xlu2 %4911  ;;  %5440 = vmatmul.bf16.gmra.mxu1 %v5062_v23  ;;  %v3959_v34 = vadd.f32 %v3958_v8, %v3870_v45  ;;  %v11713_v8 = vpop.f32.mrf.mxu3 }
 0x7bf   : > { %v4675_v17 = vor.u32 %v4674_v3, %v4670_v44  ;;  %v11703_v30 = vsel %vm2484_vm1, %v4780_v60, %v4781_v15  ;;  %v5158_v58 = vsel %vm662_vm0, %v5114_v54, %v4940_v35  ;;  %v13539_v15 = vld [vmem:[#allocation83_spill] sm:$0xff] }
 0x7c0   : > { %v4338_v41 = vunpack.c.l.b16 %v4274_v2  ;;  %v4177_v21 = vmul.f32 %v11487_v61, %v4135_v47  ;;  %v4048_v29 = vadd.f32 %v11630_v7, %v3959_v34  ;;  %v13537_v47 = vld [vmem:[#allocation82_spill] sm:$0xff] }
 0x7c1   : > { %v11698_v56 = vsel %vm2264_vm2, %v4675_v17, %v4679_v25  ;;  %v3873_v34 = vadd.f32 %v3872_v59, %v13537_v47 }
 0x7c2   : > { %v4357_v38 = vpack.c.b16 %v4338_v41, %v4337_v31  ;;  %4983 = vrot.lane.b32.xlu0 %v11698_v56, %s8905_s1  ;;  %v4211_v33 = vadd.f32 %v11511_v62, %v4177_v21  ;;  %v3874_v7 = vpop.f32.mrf.mxu1  ;;  %v13538_v21 = vld [vmem:[#allocation33_spill] sm:$0xff] }
 0x7c3   : > { %4857 = vrot.lane.b32.xlu1 %v11572_v52, %s8903_s22  ;;  %4923 = vrot.lane.b32.xlu2 %v11703_v30, %s8906_s27  ;;  %v3962_v25 = vadd.f32 %v3961_v14, %v3873_v34  ;;  %v3697_v54 = vadd.f32 %v13539_v15, %v13538_v21 }
 0x7c4   : > { %v4446_v41 = vshrl.u32 %v4357_v38, 16  ;;  %v4970_v11 = vpop.permute.xlu0 %4969  ;;  %v4449_v44 = vshll.u32 %v4357_v38, 16  ;;  %v11721_v60 = vmax.f32 %v4211_v33, 0.0  ;;  %v3963_v38 = vpop.f32.mrf.mxu2 }
 0x7c5   : > { %v4136_v26 = vpop.f32.mrf.mxu0  ;;  %v4844_v23 = vpop.permute.xlu1 %4843  ;;  %v5192_v51 = vsel %vm2741_vm10, %v5158_v58, %v4970_v11 }
 0x7c6   : > { %v4448_v10 = vrot.slane %v4446_v41, 7  ;;  %v4137_v3 = vadd.f32 %v4136_v26, %v4048_v29  ;;  %v11718_v2 = vpop.permute.xlu2 %4817  ;;  %5534 = vmatmul.bf16.gmra.mxu2 %v5192_v51  ;;  %v4051_v41 = vadd.f32 %v11663_v50, %v3962_v25  ;;  %v4275_v33 = vpack.c.bf16 %v11721_v60, %v11721_v60  ;;  %v4055_v25 = vpop.f32.mrf.mxu3 }
 0x7c8   : > { %v4178_v45 = vmul.f32 %v11487_v61, %v4137_v3  ;;  %8303 = vmatmul.msk.bf16.gmra.mxu3 %vm1908_vm12, %v11572_v52  ;;  %v4451_v35 = vor.u32 %v4449_v44, %v4448_v10  ;;  %v4533_v17 = vsel %vm9533_vm15, %v4448_v10, 0  ;;  %v4999_v52 = vsel %vm1908_vm12, %v11058_v37, %v11587_v46  ;;  %v13540_v37 = vld [vmem:[#allocation67_spill] sm:$0xff] }
 0x7c9   : > { %v4689_v29 = vshll.u32 %v4533_v17, 16  ;;  %v5030_v11 = vsel %vm662_vm0, %v4999_v52, %v4844_v23  ;;  %v3786_v46 = vadd.f32 %v13540_v37, %v3697_v54  ;;  %v4339_v15 = vunpack.c.l.b16 %v4275_v33 }
 0x7ca   : > { %v4212_v31 = vadd.f32 %v11511_v62, %v4178_v45  ;;  %4889 = vrot.lane.b32.xlu0 %v11604_v9, %s8905_s1  ;;  %v11733_v59 = vsel %vm9533_vm15, 0, %v4451_v35 }
 0x7cb   : > { %4829 = vrot.lane.b32.xlu2 %v11634_v28, %s8906_s27  ;;  %4955 = vrot.lane.b32.xlu1 %v11733_v59, %s8903_s22  ;;  %v4684_v14 = vshll.u32 %v11733_v59, 16  ;;  %v4682_v3 = vshrl.u32 %v11733_v59, 16  ;;  %v4783_v35 = vrot.slane %v11733_v59, 1  ;;  %v3875_v23 = vadd.f32 %v3874_v7, %v3786_v46 }
 0x7cc   : > { %v11748_v58 = vmax.f32 %v4212_v31, 0.0  ;;  %v4876_v26 = vpop.permute.xlu0 %4875  ;;  %v4691_v21 = vrot.slane %v4689_v29, 1  ;;  %v5117_v7 = vsel %vm1908_vm12, %v11221_v27, %v11627_v55 }
 0x7cd   : > { %v4139_v51 = vpop.f32.mrf.mxu0  ;;  %v4942_v10 = vpop.permute.xlu1 %4941  ;;  %v5065_v44 = vsel %vm2741_vm10, %v5030_v11, %v4876_v26  ;;  %v4686_v47 = vrot.slane %v4684_v14, 1  ;;  %v4784_v11 = vrot.slane %v4533_v17, 1  ;;  %v3964_v37 = vadd.f32 %v3963_v38, %v3875_v23  ;;  %v13541_v23 = vld [vmem:[#allocation38_spill] sm:$0xff] }
 0x7ce   : > { %v4276_v50 = vpack.c.bf16 %v11748_v58, %v11748_v58  ;;  %v4140_v34 = vadd.f32 %v4139_v51, %v4051_v41  ;;  %v11756_v45 = vpop.permute.xlu2 %4913  ;;  %5445 = vmatmul.bf16.gmra.mxu1 %v5065_v44  ;;  %v3877_v26 = vpop.f32.mrf.mxu1  ;;  %v5160_v46 = vsel %vm662_vm0, %v5117_v7, %v4942_v10 }
 0x7cf   : > { %v4687_v31 = vor.u32 %v4686_v47, %v4682_v3  ;;  %v11766_v51 = vsel %vm2484_vm1, %v4783_v35, %v4784_v11  ;;  %v3966_v17 = vpop.f32.mrf.mxu2  ;;  %v4053_v38 = vadd.f32 %v11713_v8, %v3964_v37  ;;  %v5001_v37 = vsel %vm1908_vm12, %v11122_v4, %v11653_v53 }
 0x7d0   : > { %v4340_v54 = vunpack.c.l.b16 %v4276_v50  ;;  %v4179_v52 = vmul.f32 %v11487_v61, %v4140_v34 }
 0x7d1   : > { %v11761_v14 = vsel %vm2264_vm2, %v4687_v31, %v4691_v21  ;;  %v3878_v31 = vadd.f32 %v3877_v26, %v13541_v23  ;;  %v13542_v23 = vld [vmem:[#allocation6_spill] sm:$0xff] }
 0x7d2   : > { %v4358_v41 = vpack.c.b16 %v4340_v54, %v4339_v15  ;;  %4985 = vrot.lane.b32.xlu0 %v11761_v14, %s8905_s1  ;;  %v4213_v33 = vadd.f32 %v11511_v62, %v4179_v52  ;;  %v4057_v54 = vpop.f32.mrf.mxu3 }
 0x7d3   : > { %4859 = vrot.lane.b32.xlu1 %v11640_v49, %s8903_s22  ;;  %4925 = vrot.lane.b32.xlu2 %v11766_v51, %s8906_s27  ;;  %v3967_v52 = vadd.f32 %v3966_v17, %v3878_v31 }
 0x7d4   : > { %v4453_v29 = vshrl.u32 %v4358_v41, 16  ;;  %v4972_v44 = vpop.permute.xlu0 %4971  ;;  %v4456_v55 = vshll.u32 %v4358_v41, 16  ;;  %v11782_v21 = vmax.f32 %v4213_v33, 0.0 }
 0x7d5   : > { %v4141_v3 = vpop.f32.mrf.mxu0  ;;  %v4846_v47 = vpop.permute.xlu1 %4845  ;;  %v5195_v50 = vsel %vm2741_vm10, %v5160_v46, %v4972_v44  ;;  %v4056_v17 = vadd.f32 %v4055_v25, %v3967_v52 }
 0x7d6   : > { %v4455_v27 = vrot.slane %v4453_v29, 7  ;;  %v4142_v34 = vadd.f32 %v4141_v3, %v4053_v38  ;;  %v11779_v35 = vpop.permute.xlu2 %4819  ;;  %5539 = vmatmul.bf16.gmra.mxu2 %v5195_v50  ;;  %v3879_v7 = vpop.f32.mrf.mxu1  ;;  %v4277_v38 = vpack.c.bf16 %v11782_v21, %v11782_v21  ;;  %v5032_v33 = vsel %vm662_vm0, %v5001_v37, %v4846_v47 }
 0x7d7   : > { %v3880_v31 = vadd.f32 %v3879_v7, %v13542_v23  ;;  %v3968_v47 = vpop.f32.mrf.mxu2 }
 0x7d8   : > { %v4180_v8 = vmul.f32 %v11487_v61, %v4142_v34  ;;  %8304 = vmatmul.msk.bf16.gmra.mxu3 %vm1908_vm12, %v11640_v49  ;;  %v4458_v10 = vor.u32 %v4456_v55, %v4455_v27  ;;  %v4534_v15 = vsel %vm9533_vm15, %v4455_v27, 0  ;;  %v4341_v52 = vunpack.c.l.b16 %v4277_v38 }
 0x7d9   : > { %v4701_v41 = vshll.u32 %v4534_v15, 16 }
 0x7da   : > { %v4214_v11 = vadd.f32 %v11511_v62, %v4180_v8  ;;  %4891 = vrot.lane.b32.xlu0 %v11670_v57, %s8905_s1  ;;  %v11794_v26 = vsel %vm9533_vm15, 0, %v4458_v10  ;;  %v11829_v7 = vpop.f32.mrf.mxu3 }
 0x7db   : > { %4831 = vrot.lane.b32.xlu2 %v11698_v56, %s8906_s27  ;;  %4957 = vrot.lane.b32.xlu1 %v11794_v26, %s8903_s22  ;;  %v4696_v49 = vshll.u32 %v11794_v26, 16  ;;  %v4694_v3 = vshrl.u32 %v11794_v26, 16  ;;  %v4786_v34 = vrot.slane %v11794_v26, 1  ;;  %v4703_v10 = vrot.slane %v4701_v41, 1 }
 0x7dc   : > { %v11806_v29 = vmax.f32 %v4214_v11, 0.0  ;;  %v4878_v46 = vpop.permute.xlu0 %4877  ;;  %v5120_v41 = vsel %vm1908_vm12, %v11284_v24, %v11693_v32 }
 0x7dd   : > { %v4144_v4 = vpop.f32.mrf.mxu0  ;;  %v4944_v53 = vpop.permute.xlu1 %4943  ;;  %v5068_v44 = vsel %vm2741_vm10, %v5032_v33, %v4878_v46  ;;  %v4698_v50 = vrot.slane %v4696_v49, 1  ;;  %v4787_v33 = vrot.slane %v4534_v15, 1  ;;  %v3969_v46 = vadd.f32 %v3968_v47, %v3880_v31 }
 0x7de   : > { %v4278_v27 = vpack.c.bf16 %v11806_v29, %v11806_v29  ;;  %v4145_v55 = vadd.f32 %v4144_v4, %v4056_v17  ;;  %v11813_v25 = vpop.permute.xlu2 %4915  ;;  %5450 = vmatmul.bf16.gmra.mxu1 %v5068_v44 }
 0x7df   : > { %v4699_v8 = vor.u32 %v4698_v50, %v4694_v3  ;;  %v11824_v4 = vsel %vm2484_vm1, %v4786_v34, %v4787_v33  ;;  %v4058_v15 = vadd.f32 %v4057_v54, %v3969_v46  ;;  %v5162_v3 = vsel %vm662_vm0, %v5120_v41, %v4944_v53 }
 0x7e0   : > { %v4342_v11 = vunpack.c.l.b16 %v4278_v27  ;;  %v4181_v37 = vmul.f32 %v11487_v61, %v4145_v55 }
 0x7e1   : > { %v11819_v49 = vsel %vm2264_vm2, %v4699_v8, %v4703_v10 }
 0x7e2   : > { %v4359_v17 = vpack.c.b16 %v4342_v11, %v4341_v52  ;;  %4987 = vrot.lane.b32.xlu0 %v11819_v49, %s8905_s1  ;;  %v4215_v44 = vadd.f32 %v11511_v62, %v4181_v37 }
 0x7e3   : > { %4861 = vrot.lane.b32.xlu1 %v11703_v30, %s8903_s22  ;;  %4927 = vrot.lane.b32.xlu2 %v11824_v4, %s8906_s27 }
 0x7e4   : > { %v4460_v38 = vshrl.u32 %v4359_v17, 16  ;;  %v4974_v50 = vpop.permute.xlu0 %4973  ;;  %v4463_v32 = vshll.u32 %v4359_v17, 16  ;;  %v11840_v47 = vmax.f32 %v4215_v44, 0.0  ;;  %v11867_v17 = vpop.f32.mrf.mxu3 }
 0x7e5   : > { %v4146_v27 = vpop.f32.mrf.mxu0  ;;  %v4848_v55 = vpop.permute.xlu1 %4847  ;;  %v5198_v34 = vsel %vm2741_vm10, %v5162_v3, %v4974_v50 }
 0x7e6   : > { %v4462_v24 = vrot.slane %v4460_v38, 7  ;;  %v4147_v23 = vadd.f32 %v4146_v27, %v4058_v15  ;;  %v11838_v31 = vpop.permute.xlu2 %4821  ;;  %5544 = vmatmul.bf16.gmra.mxu2 %v5198_v34  ;;  %v4279_v11 = vpack.c.bf16 %v11840_v47, %v11840_v47 }
 0x7e8   : > { %v4182_v54 = vmul.f32 %v11487_v61, %v4147_v23  ;;  %8305 = vmatmul.msk.bf16.gmra.mxu3 %vm1908_vm12, %v11703_v30  ;;  %v4465_v8 = vor.u32 %v4463_v32, %v4462_v24  ;;  %v4535_v53 = vsel %vm9533_vm15, %v4462_v24, 0  ;;  %v5003_v61 = vsel %vm1908_vm12, %v11195_v20, %v11718_v2 }
 0x7e9   : > { %v5034_v33 = vsel %vm662_vm0, %v5003_v61, %v4848_v55  ;;  %v4343_v27 = vunpack.c.l.b16 %v4279_v11  ;;  %v4790_v24 = vrot.slane %v4535_v53, 1 }
 0x7ea   : > { %v4216_v10 = vadd.f32 %v11511_v62, %v4182_v54  ;;  %4893 = vrot.lane.b32.xlu0 %v11733_v59, %s8905_s1  ;;  %v11852_v52 = vsel %vm9533_vm15, 0, %v4465_v8  ;;  %v4713_v62 = vshll.u32 %v4535_v53, 16  ;;  %v5123_v8 = vsel %vm1908_vm12, %v11353_v42, %v11756_v45 }
 0x7eb   : > { %4833 = vrot.lane.b32.xlu2 %v11761_v14, %s8906_s27  ;;  %4959 = vrot.lane.b32.xlu1 %v11852_v52, %s8903_s22  ;;  %v4708_v30 = vshll.u32 %v11852_v52, 16  ;;  %v4706_v41 = vshrl.u32 %v11852_v52, 16  ;;  %v4789_v44 = vrot.slane %v11852_v52, 1 }
 0x7ec   : > { %v11864_v37 = vmax.f32 %v4216_v10, 0.0  ;;  %v4880_v46 = vpop.permute.xlu0 %4879  ;;  %v4715_v50 = vrot.slane %v4713_v62, 1 }
 0x7ed   : > { %v4946_v20 = vpop.permute.xlu1 %4945  ;;  %v5071_v2 = vsel %vm2741_vm10, %v5034_v33, %v4880_v46  ;;  %v4710_v15 = vrot.slane %v4708_v30, 1  ;;  %v11882_v54 = vsel %vm2484_vm1, %v4789_v44, %v4790_v24  ;;  %v11893_v46 = vpop.f32.mrf.mxu3 }
 0x7ee   : > { %v4280_v38 = vpack.c.bf16 %v11864_v37, %v11864_v37  ;;  %5455 = vmatmul.bf16.gmra.mxu1 %v5071_v2  ;;  %v11874_v55 = vpop.permute.xlu2 %4917  ;;  %v5164_v53 = vsel %vm662_vm0, %v5123_v8, %v4946_v20 }
 0x7ef   : > { %v4711_v3 = vor.u32 %v4710_v15, %v4706_v41  ;;  %v5005_v41 = vsel %vm1908_vm12, %v11258_v22, %v11779_v35 }
 0x7f0   : > { %v4344_v34 = vunpack.c.l.b16 %v4280_v38 }
 0x7f1   : > { %v11877_v32 = vsel %vm2264_vm2, %v4711_v3, %v4715_v50 }
 0x7f2   : > { %v4360_v23 = vpack.c.b16 %v4344_v34, %v4343_v27  ;;  %4989 = vrot.lane.b32.xlu0 %v11877_v32, %s8905_s1 }
 0x7f3   : > { %4863 = vrot.lane.b32.xlu1 %v11766_v51, %s8903_s22  ;;  %4929 = vrot.lane.b32.xlu2 %v11882_v54, %s8906_s27 }
 0x7f4   : > { %v4976_v10 = vpop.permute.xlu0 %4975  ;;  %v4467_v61 = vshrl.u32 %v4360_v23, 16  ;;  %v4470_v33 = vshll.u32 %v4360_v23, 16 }
 0x7f5   : > { %v4850_v30 = vpop.permute.xlu1 %4849  ;;  %v5201_v62 = vsel %vm2741_vm10, %v5164_v53, %v4976_v10  ;;  %v11911_v35 = vpop.f32.mrf.mxu3  ;;  %v5126_v10 = vsel %vm1908_vm12, %v11416_v40, %v11813_v25  ;;  %v5007_v40 = vsel %vm1908_vm12, %v11325_v48, %v11838_v31  ;;  %v5129_v48 = vsel %vm1908_vm12, %v11493_v6, %v11874_v55 }
 0x7f6   : > { %5549 = vmatmul.bf16.gmra.mxu2 %v5201_v62  ;;  %v4469_v11 = vrot.slane %v4467_v61, 7  ;;  %v4824_v2 = vpop.permute.xlu2 %4823  ;;  %v5036_v38 = vsel %vm662_vm0, %v5005_v41, %v4850_v30 }
 0x7f7   : > { %v5009_v55 = vsel %vm1908_vm12, %v11390_v19, %v4824_v2 }
 0x7f8   : > { %8306 = vmatmul.msk.bf16.gmra.mxu3 %vm1908_vm12, %v11766_v51  ;;  %v4472_v42 = vor.u32 %v4470_v33, %v4469_v11  ;;  %v4536_v45 = vsel %vm9533_vm15, %v4469_v11, 0 }
 0x7f9   : > { %v4800_v15 = vshll.u32 %v4536_v45, 16  ;;  %v4807_v22 = vrot.slane %v4536_v45, 1 }
 0x7fa   : > { %4895 = vrot.lane.b32.xlu0 %v11794_v26, %s8905_s1  ;;  %v4520_v20 = vsel %vm9533_vm15, 0, %v4472_v42 }
 0x7fb   : > { %4835 = vrot.lane.b32.xlu2 %v11819_v49, %s8906_s27  ;;  %4961 = vrot.lane.b32.xlu1 %v4520_v20, %s8903_s22  ;;  %v4795_v51 = vshll.u32 %v4520_v20, 16  ;;  %v4793_v27 = vshrl.u32 %v4520_v20, 16  ;;  %v4806_v34 = vrot.slane %v4520_v20, 1  ;;  %v4802_v23 = vrot.slane %v4800_v15, 1 }
 0x7fc   : > { %v4882_v44 = vpop.permute.xlu0 %4881 }
 0x7fd   : > { %v4948_v3 = vpop.permute.xlu1 %4947  ;;  %v5074_v50 = vsel %vm2741_vm10, %v5036_v38, %v4882_v44  ;;  %v4797_v36 = vrot.slane %v4795_v51, 1  ;;  %v11919_v53 = vsel %vm2484_vm1, %v4806_v34, %v4807_v22  ;;  %v11937_v25 = vpop.f32.mrf.mxu3  ;;  %v11952_v44 = vstv %s5265_s19 }
 0x7fe   : > { %5460 = vmatmul.bf16.gmra.mxu1 %v5074_v50  ;;  %v5166_v61 = vsel %vm662_vm0, %v5126_v10, %v4948_v3  ;;  %v4920_v30 = vpop.permute.xlu2 %4919 }
 0x7ff   : > { %v4798_v24 = vor.u32 %v4797_v36, %v4793_v27  ;;  %v5132_v2 = vsel %vm1908_vm12, %v11564_v18, %v4920_v30 }
 0x801   : > { %v11914_v8 = vsel %vm2264_vm2, %v4798_v24, %v4802_v23 }
 0x802   : > { %4991 = vrot.lane.b32.xlu0 %v11914_v8, %s8905_s1 }
 0x803   : > { %4865 = vrot.lane.b32.xlu1 %v11824_v4, %s8903_s22  ;;  %4931 = vrot.lane.b32.xlu2 %v11919_v53, %s8906_s27 }
 0x804   : > { %v4978_v62 = vpop.permute.xlu0 %4977 }
 0x805   : > { %v4852_v11 = vpop.permute.xlu1 %4851  ;;  %v5204_v33 = vsel %vm2741_vm10, %v5166_v61, %v4978_v62  ;;  %v11950_v38 = vpop.f32.mrf.mxu3 }
 0x806   : > { %5554 = vmatmul.bf16.gmra.mxu2 %v5204_v33  ;;  %v5038_v42 = vsel %vm662_vm0, %v5007_v40, %v4852_v11  ;;  %v4826_v51 = vpop.permute.xlu2 %4825 }
 0x807   : > { %v5431_v31 = vpop.f32.mrf.mxu1  ;;  %v5011_v30 = vsel %vm1908_vm12, %v11458_v5, %v4826_v51 }
 0x808   : > { %8307 = vmatmul.msk.bf16.gmra.mxu3 %vm1908_vm12, %v11824_v4  ;;  %v5432_v27 = vadd.f32 %v5431_v31, %v11952_v44 }
 0x80a   : > { %4897 = vrot.lane.b32.xlu0 %v11852_v52, %s8905_s1 }
 0x80b   : > { %4837 = vrot.lane.b32.xlu1 %v11877_v32, %s8906_s27  ;;  %4899 = vrot.lane.b32.xlu2 %v4520_v20, %s8905_s1  ;;  %s7409_s27 = sld [smem:[#allocation3]] }
 0x80c   : > { %v4884_v45 = vpop.permute.xlu0 %4883 }
 0x80d   : > { %v4950_v41 = vpop.permute.xlu1 %4949  ;;  %v5077_v4 = vsel %vm2741_vm10, %v5038_v42, %v4884_v45  ;;  %v11963_v33 = vpop.f32.mrf.mxu3 }
 0x80e   : > { %5465 = vmatmul.bf16.gmra.mxu1 %v5077_v4  ;;  %v5168_v15 = vsel %vm662_vm0, %v5129_v48, %v4950_v41  ;;  %v4922_v36 = vpop.permute.xlu2 %4921 }
 0x80f   : > { %v5433_v10 = vpop.f32.mrf.mxu1 }
 0x812   : > { %4867 = vrot.lane.b32.xlu0 %v11882_v54, %s8903_s22  ;;  %s8908_s22 = smov 3  }
 0x814   : > { %v4980_v20 = vpop.permute.xlu0 %4979 }
 0x815   : > { %v4854_v3 = vpop.permute.xlu1 %4853  ;;  %v5207_v50 = vsel %vm2741_vm10, %v5168_v15, %v4980_v20 }
 0x816   : > { %5559 = vmatmul.bf16.gmra.mxu2 %v5207_v50  ;;  %v5040_v24 = vsel %vm662_vm0, %v5009_v55, %v4854_v3  ;;  %v11966_v42 = vpop.permute.xlu2 %4827  ;;  %v11975_v3 = vpop.f32.mrf.mxu3 }
 0x818   : > { %8308 = vmatmul.msk.bf16.gmra.mxu3 %vm1908_vm12, %v11882_v54  ;;  %v5434_v54 = vadd.f32 %v5433_v10, %v11952_v44 }
 0x819   : > { %v5520_v34 = vpop.f32.mrf.mxu2 }
 0x81a   : > { %v5521_v6 = vadd.f32 %v5520_v34, %v5432_v27 }
 0x81c   : > { %v5610_v23 = vadd.f32 %v11829_v7, %v5521_v6  ;;  %v4886_v22 = vpop.permute.xlu0 %4885 }
 0x81d   : > { %v4952_v61 = vpop.permute.xlu1 %4951  ;;  %v5080_v62 = vsel %vm2741_vm10, %v5040_v24, %v4886_v22 }
 0x81e   : > { %v8311_v11 = vmul.f32 -1.442695, %v5610_v23  ;;  %5470 = vmatmul.bf16.gmra.mxu1 %v5080_v62  ;;  %v5170_v7 = vsel %vm662_vm0, %v5132_v2, %v4952_v61  ;;  %v11979_v50 = vpop.permute.xlu2 %4923  ;;  %v5135_v62 = vsel %vm1908_vm12, %v11634_v28, %v4922_v36 }
 0x820   : > { %8749 = vpow2.f32 %v8311_v11 }
 0x821   : > { %v5522_v40 = vpop.f32.mrf.mxu2 }
 0x822   : > { %v5523_v19 = vadd.f32 %v5522_v40, %v5434_v54  ;;  %v11990_v40 = vpop.f32.mrf.mxu3 }
 0x824   : > { %v5612_v45 = vadd.f32 %v11867_v17, %v5523_v19  ;;  %v4982_v41 = vpop.permute.xlu0 %4981 }
 0x825   : > { %v4856_v4 = vpop.permute.xlu1 %4855  ;;  %v5210_v48 = vsel %vm2741_vm10, %v5170_v7, %v4982_v41 }
 0x826   : > { %v8750_v31 = vpop.eup %8749  ;;  %v8312_v15 = vmul.f32 -1.442695, %v5612_v45  ;;  %5564 = vmatmul.bf16.gmra.mxu2 %v5210_v48  ;;  %v5042_v27 = vsel %vm662_vm0, %v5011_v30, %v4856_v4 }
 0x827   : > { %v5785_v20 = vadd.f32 1.0, %v8750_v31 }
 0x828   : > { %8751 = vpow2.f32 %v8312_v15  ;;  %8309 = vmatmul.msk.bf16.gmra.mxu3 %vm1908_vm12, %v11919_v53  ;;  %v11995_v15 = vpop.permute.xlu2 %4829 }
 0x829   : > { %8753 = vrcp.f32 %v5785_v20  ;;  %v5525_v18 = vpop.f32.mrf.mxu2  ;;  %v5826_v7 = vand.u32 2147483647, %v5785_v20  ;;  %v5828_v45 = vand.u32 2147483648, %v5785_v20  ;;  %vm5822_vm4 = vweird.f32 %v5785_v20 }
 0x82b   : > { %v5436_v17 = vpop.f32.mrf.mxu1  ;;  %v5829_v30 = vor.u32 1.1754944e-38, %v5828_v45  ;;  %vm5827_vm6 = vcmp.eq.f32.partialorder %v5826_v7, 8.507059e+37 }
 0x82c   : > { %v5437_v34 = vadd.f32 %v5436_v17, %v11952_v44  ;;  %v4888_v6 = vpop.permute.xlu0 %4887 }
 0x82d   : > { %v4954_v55 = vpop.permute.xlu1 %4953  ;;  %v5083_v24 = vsel %vm2741_vm10, %v5042_v27, %v4888_v6 }
 0x82e   : > { %v8752_v23 = vpop.eup %8751  ;;  %v5526_v53 = vadd.f32 %v5525_v18, %v5437_v34  ;;  %5475 = vmatmul.bf16.gmra.mxu1 %v5083_v24  ;;  %v5172_v19 = vsel %vm662_vm0, %v5135_v62, %v4954_v55 }
 0x82f   : > { %v8754_v22 = vpop.eup %8753  ;;  %v11984_v10 = vadd.f32 1.0, %v8752_v23  ;;  %v5013_v23 = vsel %vm1908_vm12, %v11538_v12, %v11966_v42 }
 0x830   : > { %v5615_v61 = vadd.f32 %v11893_v46, %v5526_v53  ;;  %v5818_v5 = vmul.f32 %v8754_v22, %v5785_v20  ;;  %vm5823_vm3 = vweird.f32 %v8754_v22  ;;  %v12015_v45 = vpop.permute.xlu2 %4925 }
 0x831   : > { %8755 = vrcp.f32 %v11984_v10  ;;  %v5527_v51 = vpop.f32.mrf.mxu2  ;;  %vm5824_vm5 = vmor %vm5822_vm4, %vm5823_vm3  ;;  %vm5837_vm8 = vweird.f32 %v11984_v10 }
 0x832   : > { %v8313_v11 = vmul.f32 -1.442695, %v5615_v61  ;;  %v5819_v54 = vsub.f32 1.0, %v5818_v5  ;;  %v5841_v5 = vand.u32 2147483647, %v11984_v10 }
 0x833   : > { %v5438_v2 = vpop.f32.mrf.mxu1 }
 0x834   : > { %8757 = vpow2.f32 %v8313_v11  ;;  %v5439_v41 = vadd.f32 %v5438_v2, %v11952_v44  ;;  %v4984_v46 = vpop.permute.xlu0 %4983  ;;  %v5820_v4 = vmul.f32 %v8754_v22, %v5819_v54  ;;  %v12010_v54 = vpop.f32.mrf.mxu3  ;;  %vm5842_vm11 = vcmp.eq.f32.partialorder %v5841_v5, 8.507059e+37 }
 0x835   : > { %v4858_v48 = vpop.permute.xlu1 %4857  ;;  %v5213_v31 = vsel %vm2741_vm10, %v5172_v19, %v4984_v46 }
 0x836   : > { %v5528_v28 = vadd.f32 %v5527_v51, %v5439_v41  ;;  %5569 = vmatmul.bf16.gmra.mxu2 %v5213_v31  ;;  %v5821_v36 = vadd.f32 %v8754_v22, %v5820_v4  ;;  %v5843_v51 = vand.u32 2147483648, %v11984_v10 }
 0x837   : > { %v8756_v18 = vpop.eup %8755 }
 0x838   : > { %v5617_v17 = vadd.f32 %v11911_v35, %v5528_v28  ;;  %v5825_v27 = vsel %vm5824_vm5, %v8754_v22, %v5821_v36  ;;  %v5833_v34 = vmul.f32 %v8756_v18, %v11984_v10  ;;  %8310 = vmatmul.msk.bf16.gmra.mxu3 %vm1908_vm12, %v13465_v63  ;;  %v5044_v35 = vsel %vm662_vm0, %v5013_v23, %v4858_v48 }
 0x839   : > { %v5530_v6 = vpop.f32.mrf.mxu2  ;;  %v5830_v55 = vsel %vm5827_vm6, %v5829_v30, %v5825_v27  ;;  %vm5838_vm7 = vweird.f32 %v8756_v18  ;;  %v5844_v7 = vor.u32 1.1754944e-38, %v5843_v51  ;;  %v5138_v30 = vsel %vm1908_vm12, %v11698_v56, %v11979_v50 }
 0x83a   : > { %v8758_v24 = vpop.eup %8757  ;;  %v8314_v20 = vmul.f32 -1.442695, %v5617_v17  ;;  %6299 = vperm.xlu1 %8693, %v5830_v55   ;;  %v5834_v53 = vsub.f32 1.0, %v5833_v34  ;;  %vm5839_vm9 = vmor %vm5837_vm8, %vm5838_vm7  ;;  %v5015_v51 = vsel %vm1908_vm12, %v11604_v9, %v11995_v15 }
 0x83b   : > { %v12004_v61 = vadd.f32 1.0, %v8758_v24  ;;  %v5441_v22 = vpop.f32.mrf.mxu1 }
 0x83c   : > { %8759 = vpow2.f32 %v8314_v20  ;;  %v5442_v63 = vadd.f32 %v5441_v22, %v11952_v44  ;;  %v4890_v62 = vpop.permute.xlu0 %4889  ;;  %v5835_v11 = vmul.f32 %v8756_v18, %v5834_v53  ;;  %v12028_v56 = vpop.f32.mrf.mxu3 }
 0x83d   : > { %8761 = vrcp.f32 %v12004_v61  ;;  %v4956_v12 = vpop.permute.xlu1 %4955  ;;  %v5086_v42 = vsel %vm2741_vm10, %v5044_v35, %v4890_v62  ;;  %v5856_v50 = vand.u32 2147483647, %v12004_v61  ;;  %v5858_v20 = vand.u32 2147483648, %v12004_v61 }
 0x83e   : > { %v5531_v19 = vadd.f32 %v5530_v6, %v5442_v63  ;;  %5480 = vmatmul.bf16.gmra.mxu1 %v5086_v42  ;;  %v5836_v2 = vadd.f32 %v8756_v18, %v5835_v11  ;;  %v5174_v27 = vsel %vm662_vm0, %v5138_v30, %v4956_v12  ;;  %v12036_v63 = vpop.permute.xlu2 %4831  ;;  %vm5852_vm15 = vweird.f32 %v12004_v61 }
 0x83f   : > { %vm5857_vm3 = vcmp.eq.f32.partialorder %v5856_v50, 8.507059e+37 }
 0x840   : > { %v5620_v41 = vadd.f32 %v11937_v25, %v5531_v19  ;;  %v5840_v46 = vsel %vm5839_vm9, %v8756_v18, %v5836_v2  ;;  %v5859_v2 = vor.u32 1.1754944e-38, %v5858_v20 }
 0x841   : > { %v5532_v4 = vpop.f32.mrf.mxu2  ;;  %v5845_v48 = vsel %vm5842_vm11, %v5844_v7, %v5840_v46 }
 0x842   : > { %v8760_v31 = vpop.eup %8759  ;;  %v8315_v28 = vmul.f32 -1.442695, %v5620_v41  ;;  %6304 = vperm.xlu0 %8694, %v5845_v48  }
 0x843   : > { %v8762_v36 = vpop.eup %8761  ;;  %v12021_v17 = vadd.f32 1.0, %v8760_v31  ;;  %v5443_v10 = vpop.f32.mrf.mxu1 }
 0x844   : > { %8763 = vpow2.f32 %v8315_v28  ;;  %v5444_v25 = vadd.f32 %v5443_v10, %v11952_v44  ;;  %v4986_v18 = vpop.permute.xlu0 %4985  ;;  %v5848_v34 = vmul.f32 %v8762_v36, %v12004_v61  ;;  %vm5853_vm14 = vweird.f32 %v8762_v36 }
 0x845   : > { %8765 = vrcp.f32 %v12021_v17  ;;  %v4860_v6 = vpop.permute.xlu1 %4859  ;;  %v5216_v55 = vsel %vm2741_vm10, %v5174_v27, %v4986_v18  ;;  %vm5854_vm2 = vmor %vm5852_vm15, %vm5853_vm14  ;;  %v5871_v28 = vand.u32 2147483647, %v12021_v17  ;;  %v5873_v30 = vand.u32 2147483648, %v12021_v17 }
 0x846   : > { %v5533_v24 = vadd.f32 %v5532_v4, %v5444_v25  ;;  %5574 = vmatmul.bf16.gmra.mxu2 %v5216_v55  ;;  %v5849_v23 = vsub.f32 1.0, %v5848_v34  ;;  %v5046_v19 = vsel %vm662_vm0, %v5015_v51, %v4860_v6  ;;  %v5141_v34 = vsel %vm1908_vm12, %v11761_v14, %v12015_v45 }
 0x847   : > { %vm5867_vm5 = vweird.f32 %v12021_v17  ;;  %vm5872_vm7 = vcmp.eq.f32.partialorder %v5871_v28, 8.507059e+37  ;;  %v5874_v20 = vor.u32 1.1754944e-38, %v5873_v30 }
 0x848   : > { %v5622_v53 = vadd.f32 %v11950_v38, %v5533_v24  ;;  %v5850_v35 = vmul.f32 %v8762_v36, %v5849_v23 }
 0x849   : > { %v5535_v22 = vpop.f32.mrf.mxu2 }
 0x84a   : > { %v8764_v5 = vpop.eup %8763  ;;  %v8316_v62 = vmul.f32 -1.442695, %v5622_v53  ;;  %v5851_v11 = vadd.f32 %v8762_v36, %v5850_v35  ;;  %v4928_v53 = vpop.permute.xlu2 %4927 }
 0x84b   : > { %v8766_v12 = vpop.eup %8765  ;;  %v12039_v42 = vadd.f32 1.0, %v8764_v5  ;;  %v5446_v38 = vpop.f32.mrf.mxu1 }
 0x84c   : > { %8767 = vpow2.f32 %v8316_v62  ;;  %v5447_v7 = vadd.f32 %v5446_v38, %v11952_v44  ;;  %v4892_v41 = vpop.permute.xlu0 %4891  ;;  %v5855_v9 = vsel %vm5854_vm2, %v8762_v36, %v5851_v11  ;;  %v5863_v15 = vmul.f32 %v8766_v12, %v12021_v17  ;;  %v12049_v36 = vpop.f32.mrf.mxu3 }
 0x84d   : > { %8769 = vrcp.f32 %v12039_v42  ;;  %v4958_v46 = vpop.permute.xlu1 %4957  ;;  %v5860_v61 = vsel %vm5857_vm3, %v5859_v2, %v5855_v9  ;;  %v5089_v4 = vsel %vm2741_vm10, %v5046_v19, %v4892_v41  ;;  %vm5868_vm4 = vweird.f32 %v8766_v12 }
 0x84e   : > { %v5536_v48 = vadd.f32 %v5535_v22, %v5447_v7  ;;  %6309 = vperm.xlu2 %8695, %v5860_v61   ;;  %5485 = vmatmul.bf16.gmra.mxu1 %v5089_v4  ;;  %v5864_v31 = vsub.f32 1.0, %v5863_v15  ;;  %v5176_v50 = vsel %vm662_vm0, %v5141_v34, %v4958_v46  ;;  %vm5869_vm6 = vmor %vm5867_vm5, %vm5868_vm4  ;;  %v5886_v19 = vand.u32 2147483647, %v12039_v42 }
 0x84f   : > { %v5888_v38 = vand.u32 2147483648, %v12039_v42  ;;  %v5017_v9 = vsel %vm1908_vm12, %v11670_v57, %v12036_v63  ;;  %vm5882_vm9 = vweird.f32 %v12039_v42 }
 0x850   : > { %v5625_v10 = vadd.f32 %v11963_v33, %v5536_v48  ;;  %v5865_v27 = vmul.f32 %v8766_v12, %v5864_v31  ;;  %vm5887_vm14 = vcmp.eq.f32.partialorder %v5886_v19, 8.507059e+37 }
 0x851   : > { %v5537_v25 = vpop.f32.mrf.mxu2  ;;  %v5889_v28 = vor.u32 1.1754944e-38, %v5888_v38 }
 0x852   : > { %v8768_v18 = vpop.eup %8767  ;;  %v8317_v6 = vmul.f32 -1.442695, %v5625_v10  ;;  %v5866_v55 = vadd.f32 %v8766_v12, %v5865_v27 }
 0x853   : > { %v8770_v24 = vpop.eup %8769  ;;  %v12055_v23 = vadd.f32 1.0, %v8768_v18  ;;  %v5448_v33 = vpop.f32.mrf.mxu1 }
 0x854   : > { %8771 = vpow2.f32 %v8317_v6  ;;  %v5449_v35 = vadd.f32 %v5448_v33, %v11952_v44  ;;  %v4988_v22 = vpop.permute.xlu0 %4987  ;;  %v5870_v5 = vsel %vm5869_vm6, %v8766_v12, %v5866_v55  ;;  %v5878_v14 = vmul.f32 %v8770_v24, %v12039_v42  ;;  %v12069_v4 = vpop.f32.mrf.mxu3 }
 0x855   : > { %8773 = vrcp.f32 %v12055_v23  ;;  %v4862_v45 = vpop.permute.xlu1 %4861  ;;  %v5875_v17 = vsel %vm5872_vm7, %v5874_v20, %v5870_v5  ;;  %v5219_v51 = vsel %vm2741_vm10, %v5176_v50, %v4988_v22  ;;  %vm5883_vm8 = vweird.f32 %v8770_v24  ;;  %v4834_v18 = vpop.permute.xlu2 %4833 }
 0x856   : > { %v5538_v62 = vadd.f32 %v5537_v25, %v5449_v35  ;;  %6314 = vperm.xlu1 %8693, %v5875_v17   ;;  %5579 = vmatmul.bf16.gmra.mxu2 %v5219_v51  ;;  %v5879_v11 = vsub.f32 1.0, %v5878_v14  ;;  %v5048_v31 = vsel %vm662_vm0, %v5017_v9, %v4862_v45  ;;  %vm5884_vm11 = vmor %vm5882_vm9, %vm5883_vm8  ;;  %v5901_v55 = vand.u32 2147483647, %v12055_v23 }
 0x857   : > { %v5903_v50 = vand.u32 2147483648, %v12055_v23  ;;  %v5144_v22 = vsel %vm1908_vm12, %v11819_v49, %v4928_v53  ;;  %vm5897_vm2 = vweird.f32 %v12055_v23 }
 0x858   : > { %v5627_v2 = vadd.f32 %v11975_v3, %v5538_v62  ;;  %v5880_v7 = vmul.f32 %v8770_v24, %v5879_v11  ;;  %vm5902_vm4 = vcmp.eq.f32.partialorder %v5901_v55, 8.507059e+37 }
 0x859   : > { %v5540_v12 = vpop.f32.mrf.mxu2 }
 0x85a   : > { %v8772_v41 = vpop.eup %8771  ;;  %v8318_v15 = vmul.f32 -1.442695, %v5627_v2  ;;  %v5881_v46 = vadd.f32 %v8770_v24, %v5880_v7 }
 0x85b   : > { %v8774_v61 = vpop.eup %8773  ;;  %v12071_v48 = vadd.f32 1.0, %v8772_v41  ;;  %v5451_v3 = vpop.f32.mrf.mxu1 }
 0x85c   : > { %8775 = vpow2.f32 %v8318_v15  ;;  %v5452_v30 = vadd.f32 %v5451_v3, %v11952_v44  ;;  %v4894_v10 = vpop.permute.xlu0 %4893  ;;  %v5885_v57 = vsel %vm5884_vm11, %v8770_v24, %v5881_v46  ;;  %v5893_v63 = vmul.f32 %v8774_v61, %v12055_v23  ;;  %v12089_v53 = vpop.f32.mrf.mxu3 }
 0x85d   : > { %8777 = vrcp.f32 %v12071_v48  ;;  %v4960_v42 = vpop.permute.xlu1 %4959  ;;  %v5890_v27 = vsel %vm5887_vm14, %v5889_v28, %v5885_v57  ;;  %v5092_v25 = vsel %vm2741_vm10, %v5048_v31, %v4894_v10  ;;  %vm5898_vm15 = vweird.f32 %v8774_v61  ;;  %v4930_v46 = vpop.permute.xlu2 %4929 }
 0x85e   : > { %v5541_v34 = vadd.f32 %v5540_v12, %v5452_v30  ;;  %6319 = vperm.xlu2 %8695, %v5890_v27   ;;  %5490 = vmatmul.bf16.gmra.mxu1 %v5092_v25  ;;  %v5894_v6 = vsub.f32 1.0, %v5893_v63  ;;  %v5178_v51 = vsel %vm662_vm0, %v5144_v22, %v4960_v42  ;;  %vm5899_vm3 = vmor %vm5897_vm2, %vm5898_vm15  ;;  %v5916_v9 = vand.u32 2147483647, %v12071_v48 }
 0x85f   : > { %v5918_v15 = vand.u32 2147483648, %v12071_v48  ;;  %v5019_v30 = vsel %vm1908_vm12, %v11733_v59, %v4834_v18  ;;  %vm5912_vm6 = vweird.f32 %v12071_v48 }
 0x860   : > { %v5630_v33 = vadd.f32 %v11990_v40, %v5541_v34  ;;  %v5895_v24 = vmul.f32 %v8774_v61, %v5894_v6  ;;  %v5904_v40 = vor.u32 1.1754944e-38, %v5903_v50  ;;  %vm5917_vm8 = vcmp.eq.f32.partialorder %v5916_v9, 8.507059e+37 }
 0x861   : > { %v5542_v20 = vpop.f32.mrf.mxu2 }
 0x862   : > { %v8776_v35 = vpop.eup %8775  ;;  %v8319_v5 = vmul.f32 -1.442695, %v5630_v33  ;;  %v5896_v14 = vadd.f32 %v8774_v61, %v5895_v24 }
 0x863   : > { %v8778_v45 = vpop.eup %8777  ;;  %v12084_v17 = vadd.f32 1.0, %v8776_v35  ;;  %v5453_v62 = vpop.f32.mrf.mxu1 }
 0x864   : > { %8779 = vpow2.f32 %v8319_v5  ;;  %v5454_v11 = vadd.f32 %v5453_v62, %v11952_v44  ;;  %v4990_v19 = vpop.permute.xlu0 %4989  ;;  %v5900_v38 = vsel %vm5899_vm3, %v8774_v61, %v5896_v14  ;;  %v5908_v49 = vmul.f32 %v8778_v45, %v12071_v48 }
 0x865   : > { %8781 = vrcp.f32 %v12084_v17  ;;  %v4864_v23 = vpop.permute.xlu1 %4863  ;;  %v5905_v2 = vsel %vm5902_vm4, %v5904_v40, %v5900_v38  ;;  %v5222_v7 = vsel %vm2741_vm10, %v5178_v51, %v4990_v19  ;;  %vm5913_vm5 = vweird.f32 %v8778_v45  ;;  %v4836_v40 = vpop.permute.xlu2 %4835 }
 0x866   : > { %v5543_v12 = vadd.f32 %v5542_v20, %v5454_v11  ;;  %6324 = vperm.xlu1 %8693, %v5905_v2   ;;  %5584 = vmatmul.bf16.gmra.mxu2 %v5222_v7  ;;  %v5909_v41 = vsub.f32 1.0, %v5908_v49  ;;  %v5050_v27 = vsel %vm662_vm0, %v5019_v30, %v4864_v23  ;;  %vm5914_vm7 = vmor %vm5912_vm6, %vm5913_vm5  ;;  %v12106_v20 = vpop.f32.mrf.mxu3  ;;  %v5931_v35 = vand.u32 2147483647, %v12084_v17 }
 0x867   : > { %v5933_v22 = vand.u32 2147483648, %v12084_v17  ;;  %v5147_v62 = vsel %vm1908_vm12, %v11877_v32, %v4930_v46  ;;  %vm5927_vm11 = vweird.f32 %v12084_v17 }
 0x868   : > { %v5632_v61 = vadd.f32 %v12010_v54, %v5543_v12  ;;  %v5910_v31 = vmul.f32 %v8778_v45, %v5909_v41  ;;  %v5919_v54 = vor.u32 1.1754944e-38, %v5918_v15  ;;  %vm5932_vm15 = vcmp.eq.f32.partialorder %v5931_v35, 8.507059e+37 }
 0x869   : > { %v5545_v3 = vpop.f32.mrf.mxu2 }
 0x86a   : > { %v8780_v28 = vpop.eup %8779  ;;  %v8320_v10 = vmul.f32 -1.442695, %v5632_v61  ;;  %v5911_v57 = vadd.f32 %v8778_v45, %v5910_v31 }
 0x86b   : > { %v8782_v63 = vpop.eup %8781  ;;  %v12099_v42 = vadd.f32 1.0, %v8780_v28  ;;  %v5456_v25 = vpop.f32.mrf.mxu1 }
 0x86c   : > { %8783 = vpow2.f32 %v8320_v10  ;;  %v5457_v34 = vadd.f32 %v5456_v25, %v11952_v44  ;;  %v4896_v6 = vpop.permute.xlu0 %4895  ;;  %v5915_v55 = vsel %vm5914_vm7, %v8778_v45, %v5911_v57  ;;  %v5923_v59 = vmul.f32 %v8782_v63, %v12084_v17 }
 0x86d   : > { %8785 = vrcp.f32 %v12099_v42  ;;  %v5920_v18 = vsel %vm5917_vm8, %v5919_v54, %v5915_v55  ;;  %v5095_v48 = vsel %vm2741_vm10, %v5050_v27, %v4896_v6  ;;  %v4962_v33 = vpop.permute.xlu1 %4961  ;;  %vm5928_vm9 = vweird.f32 %v8782_v63 }
 0x86e   : > { %v5546_v50 = vadd.f32 %v5545_v3, %v5457_v34  ;;  %6329 = vperm.xlu0 %8694, %v5920_v18   ;;  %5495 = vmatmul.bf16.gmra.mxu1 %v5095_v48  ;;  %v5924_v24 = vsub.f32 1.0, %v5923_v59  ;;  %v5180_v23 = vsel %vm662_vm0, %v5147_v62, %v4962_v33  ;;  %vm5929_vm14 = vmor %vm5927_vm11, %vm5928_vm9  ;;  %v5946_v61 = vand.u32 2147483647, %v12099_v42  ;;  %v12124_v10 = vpop.f32.mrf.mxu3  ;;  %v4932_v18 = vpop.permute.xlu2 %4931 }
 0x86f   : > { %v5948_v31 = vand.u32 2147483648, %v12099_v42  ;;  %v5021_v27 = vsel %vm1908_vm12, %v11794_v26, %v4836_v40  ;;  %vm5942_vm3 = vweird.f32 %v12099_v42 }
 0x870   : > { %v5635_v5 = vadd.f32 %v12028_v56, %v5546_v50  ;;  %v5925_v14 = vmul.f32 %v8782_v63, %v5924_v24  ;;  %v5934_v56 = vor.u32 1.1754944e-38, %v5933_v22  ;;  %vm5947_vm5 = vcmp.eq.f32.partialorder %v5946_v61, 8.507059e+37 }
 0x871   : > { %v5547_v45 = vpop.f32.mrf.mxu2  ;;  %v5949_v59 = vor.u32 1.1754944e-38, %v5948_v31 }
 0x872   : > { %v8784_v51 = vpop.eup %8783  ;;  %v8321_v11 = vmul.f32 -1.442695, %v5635_v5  ;;  %v5926_v19 = vadd.f32 %v8782_v63, %v5925_v14  ;;  %v5150_v5 = vsel %vm1908_vm12, %v11914_v8, %v4932_v18 }
 0x873   : > { %v8786_v38 = vpop.eup %8785  ;;  %v12114_v49 = vadd.f32 1.0, %v8784_v51  ;;  %v5458_v2 = vpop.f32.mrf.mxu1 }
 0x874   : > { %8787 = vpow2.f32 %v8321_v11  ;;  %v5459_v7 = vadd.f32 %v5458_v2, %v11952_v44  ;;  %v4992_v12 = vpop.permute.xlu0 %4991  ;;  %v5930_v41 = vsel %vm5929_vm14, %v8782_v63, %v5926_v19  ;;  %v5938_v32 = vmul.f32 %v8786_v38, %v12099_v42 }
 0x875   : > { %8789 = vrcp.f32 %v12114_v49  ;;  %v5935_v9 = vsel %vm5932_vm15, %v5934_v56, %v5930_v41  ;;  %v5225_v17 = vsel %vm2741_vm10, %v5180_v23, %v4992_v12  ;;  %v4866_v28 = vpop.permute.xlu1 %4865  ;;  %vm5943_vm2 = vweird.f32 %v8786_v38 }
 0x876   : > { %v5548_v15 = vadd.f32 %v5547_v45, %v5459_v7  ;;  %6334 = vperm.xlu2 %8695, %v5935_v9   ;;  %5589 = vmatmul.bf16.gmra.mxu2 %v5225_v17  ;;  %v5939_v46 = vsub.f32 1.0, %v5938_v32  ;;  %v5052_v55 = vsel %vm662_vm0, %v5021_v27, %v4866_v28  ;;  %vm5944_vm4 = vmor %vm5942_vm3, %vm5943_vm2  ;;  %v5961_v14 = vand.u32 2147483647, %v12114_v49  ;;  %v12144_v56 = vpop.f32.mrf.mxu3  ;;  %v13543_v9 = vld [vmem:[#allocation43_spill] sm:$0xff] }
 0x877   : > { %v5963_v45 = vand.u32 2147483648, %v12114_v49  ;;  %vm5957_vm7 = vweird.f32 %v12114_v49  ;;  %v5181_v23 = vsel %vm662_vm0, %v5150_v5, %v10839_v1 }
 0x878   : > { %v5637_v3 = vadd.f32 %v12049_v36, %v5548_v15  ;;  %v5940_v30 = vmul.f32 %v8786_v38, %v5939_v46  ;;  %vm5962_vm9 = vcmp.eq.f32.partialorder %v5961_v14, 8.507059e+37  ;;  %v5227_v1 = vsel %vm2741_vm10, %v5181_v23, %v13543_v9 }
 0x879   : > { %v5550_v57 = vpop.f32.mrf.mxu2 }
 0x87a   : > { %v8788_v63 = vpop.eup %8787  ;;  %v8322_v25 = vmul.f32 -1.442695, %v5637_v3  ;;  %v5941_v54 = vadd.f32 %v8786_v38, %v5940_v30 }
 0x87b   : > { %v8790_v34 = vpop.eup %8789  ;;  %v12129_v6 = vadd.f32 1.0, %v8788_v63  ;;  %v5461_v36 = vpop.f32.mrf.mxu1 }
 0x87c   : > { %8791 = vpow2.f32 %v8322_v25  ;;  %v5462_v48 = vadd.f32 %v5461_v36, %v11952_v44  ;;  %v4898_v50 = vpop.permute.xlu0 %4897  ;;  %v5945_v33 = vsel %vm5944_vm4, %v8786_v38, %v5941_v54  ;;  %v5953_v26 = vmul.f32 %v8790_v34, %v12114_v49 }
 0x87d   : > { %8793 = vrcp.f32 %v12129_v6  ;;  %v5950_v42 = vsel %vm5947_vm5, %v5949_v59, %v5945_v33  ;;  %v5098_v24 = vsel %vm2741_vm10, %v5052_v55, %v4898_v50  ;;  %vm5958_vm6 = vweird.f32 %v8790_v34  ;;  %v4838_v17 = vpop.permute.xlu1 %4837 }
 0x87e   : > { %v5551_v35 = vadd.f32 %v5550_v57, %v5462_v48  ;;  %6339 = vperm.xlu1 %8693, %v5950_v42   ;;  %5500 = vmatmul.bf16.gmra.mxu1 %v5098_v24  ;;  %v5954_v22 = vsub.f32 1.0, %v5953_v26  ;;  %vm5959_vm8 = vmor %vm5957_vm7, %vm5958_vm6  ;;  %v5976_v31 = vand.u32 2147483647, %v12129_v6  ;;  %v5978_v3 = vand.u32 2147483648, %v12129_v6  ;;  %v12162_v33 = vpop.f32.mrf.mxu3 }
 0x87f   : > { %v5023_v57 = vsel %vm1908_vm12, %v11852_v52, %v4838_v17  ;;  %vm5972_vm14 = vweird.f32 %v12129_v6 }
 0x880   : > { %v5640_v51 = vadd.f32 %v12069_v4, %v5551_v35  ;;  %v5955_v62 = vmul.f32 %v8790_v34, %v5954_v22  ;;  %v5964_v4 = vor.u32 1.1754944e-38, %v5963_v45  ;;  %vm5977_vm2 = vcmp.eq.f32.partialorder %v5976_v31, 8.507059e+37 }
 0x881   : > { %v5552_v40 = vpop.f32.mrf.mxu2  ;;  %v5979_v18 = vor.u32 1.1754944e-38, %v5978_v3 }
 0x882   : > { %v8792_v11 = vpop.eup %8791  ;;  %v8323_v19 = vmul.f32 -1.442695, %v5640_v51  ;;  %v5956_v38 = vadd.f32 %v8790_v34, %v5955_v62 }
 0x883   : > { %v8794_v2 = vpop.eup %8793  ;;  %v12146_v8 = vadd.f32 1.0, %v8792_v11  ;;  %v5463_v7 = vpop.f32.mrf.mxu1 }
 0x884   : > { %8795 = vpow2.f32 %v8323_v19  ;;  %v5464_v12 = vadd.f32 %v5463_v7, %v11952_v44  ;;  %v5960_v41 = vsel %vm5959_vm8, %v8790_v34, %v5956_v38  ;;  %v5968_v32 = vmul.f32 %v8794_v2, %v12129_v6  ;;  %v4868_v61 = vpop.permute.xlu0 %4867 }
 0x885   : > { %8797 = vrcp.f32 %v12146_v8  ;;  %v5965_v49 = vsel %vm5962_vm9, %v5964_v4, %v5960_v41  ;;  %vm5973_vm11 = vweird.f32 %v8794_v2  ;;  %v5054_v54 = vsel %vm662_vm0, %v5023_v57, %v4868_v61 }
 0x886   : > { %v5553_v15 = vadd.f32 %v5552_v40, %v5464_v12  ;;  %6344 = vperm.xlu0 %8694, %v5965_v49   ;;  %5594 = vmatmul.bf16.gmra.mxu2 %v5227_v1  ;;  %v5969_v46 = vsub.f32 1.0, %v5968_v32  ;;  %vm5974_vm15 = vmor %vm5972_vm14, %vm5973_vm11  ;;  %v5991_v35 = vand.u32 2147483647, %v12146_v8  ;;  %v5993_v22 = vand.u32 2147483648, %v12146_v8  ;;  %v12170_v32 = vpop.f32.mrf.mxu3 }
 0x887   : > { %vm5987_vm3 = vweird.f32 %v12146_v8 }
 0x888   : > { %v5642_v28 = vadd.f32 %v12089_v53, %v5553_v15  ;;  %v5970_v30 = vmul.f32 %v8794_v2, %v5969_v46  ;;  %v4900_v53 = vpop.permute.xlu2 %4899  ;;  %vm5992_vm4 = vcmp.eq.f32.partialorder %v5991_v35, 8.507059e+37  ;;  %v5994_v23 = vor.u32 1.1754944e-38, %v5993_v22 }
 0x889   : > { %v5555_v63 = vpop.f32.mrf.mxu2  ;;  %v5101_v42 = vsel %vm2741_vm10, %v5054_v54, %v4900_v53 }
 0x88a   : > { %v8796_v27 = vpop.eup %8795  ;;  %v8324_v25 = vmul.f32 -1.442695, %v5642_v28  ;;  %v5971_v34 = vadd.f32 %v8794_v2, %v5970_v30 }
 0x88b   : > { %v8798_v55 = vpop.eup %8797  ;;  %v5797_v36 = vadd.f32 1.0, %v8796_v27  ;;  %v5466_v59 = vpop.f32.mrf.mxu1 }
 0x88c   : > { %8799 = vpow2.f32 %v8324_v25  ;;  %v5467_v48 = vadd.f32 %v5466_v59, %v11952_v44  ;;  %v5975_v50 = vsel %vm5974_vm15, %v8794_v2, %v5971_v34  ;;  %v5983_v52 = vmul.f32 %v8798_v55, %v12146_v8 }
 0x88d   : > { %8801 = vrcp.f32 %v5797_v36  ;;  %v5980_v26 = vsel %vm5977_vm2, %v5979_v18, %v5975_v50  ;;  %vm5988_vm0 = vweird.f32 %v8798_v55  ;;  %v6006_v49 = vand.u32 2147483647, %v5797_v36 }
 0x88e   : > { %v5556_v6 = vadd.f32 %v5555_v63, %v5467_v48  ;;  %6349 = vperm.xlu2 %8695, %v5980_v26   ;;  %5505 = vmatmul.bf16.gmra.mxu1 %v5101_v42  ;;  %v5984_v24 = vsub.f32 1.0, %v5983_v52  ;;  %vm5989_vm10 = vmor %vm5987_vm3, %vm5988_vm0  ;;  %v6008_v8 = vand.u32 2147483648, %v5797_v36  ;;  %vm6002_vm6 = vweird.f32 %v5797_v36  ;;  %v12178_v18 = vpop.f32.mrf.mxu3 }
 0x88f   : > { %vm6007_vm8 = vcmp.eq.f32.partialorder %v6006_v49, 8.507059e+37 }
 0x890   : > { %v5645_v5 = vadd.f32 %v12106_v20, %v5556_v6  ;;  %v5985_v14 = vmul.f32 %v8798_v55, %v5984_v24  ;;  %v6009_v30 = vor.u32 1.1754944e-38, %v6008_v8 }
 0x891   : > { %v5557_v45 = vpop.f32.mrf.mxu2 }
 0x892   : > { %v8800_v51 = vpop.eup %8799  ;;  %v8325_v62 = vmul.f32 -1.442695, %v5645_v5  ;;  %v5986_v40 = vadd.f32 %v8798_v55, %v5985_v14  ;;  %v6672_v14 = vld [vmem:[%s13213_s10 + $0x18] sm:$0xff] }
 0x893   : > { %v8802_v11 = vpop.eup %8801  ;;  %v5798_v19 = vadd.f32 1.0, %v8800_v51  ;;  %v5468_v38 = vpop.f32.mrf.mxu1  ;;  %6692 = vmatpush.msra.mxu0 %v6672_v14 }
 0x894   : > { %8803 = vpow2.f32 %v8325_v62  ;;  %v5469_v2 = vadd.f32 %v5468_v38, %v11952_v44  ;;  %v5990_v7 = vsel %vm5989_vm10, %v8798_v55, %v5986_v40  ;;  %v5998_v4 = vmul.f32 %v8802_v11, %v5797_v36 }
 0x895   : > { %8805 = vrcp.f32 %v5798_v19  ;;  %v5995_v20 = vsel %vm5992_vm4, %v5994_v23, %v5990_v7  ;;  %vm6003_vm5 = vweird.f32 %v8802_v11  ;;  %v6021_v34 = vand.u32 2147483647, %v5798_v19 }
 0x896   : > { %v5558_v12 = vadd.f32 %v5557_v45, %v5469_v2  ;;  %6354 = vperm.xlu1 %8693, %v5995_v20   ;;  %v5999_v41 = vsub.f32 1.0, %v5998_v4  ;;  %vm6004_vm7 = vmor %vm6002_vm6, %vm6003_vm5  ;;  %v6023_v55 = vand.u32 2147483648, %v5798_v19  ;;  %vm6017_vm11 = vweird.f32 %v5798_v19  ;;  %v12189_v20 = vpop.f32.mrf.mxu3 }
 0x897   : > { %vm6022_vm15 = vcmp.eq.f32.partialorder %v6021_v34, 8.507059e+37 }
 0x898   : > { %v5647_v9 = vadd.f32 %v12124_v10, %v5558_v12  ;;  %v6000_v1 = vmul.f32 %v8802_v11, %v5999_v41  ;;  %v6024_v24 = vor.u32 1.1754944e-38, %v6023_v55 }
 0x899   : > { %v5560_v17 = vpop.f32.mrf.mxu2 }
 0x89a   : > { %v8804_v15 = vpop.eup %8803  ;;  %v8326_v46 = vmul.f32 -1.442695, %v5647_v9  ;;  %v6001_v61 = vadd.f32 %v8802_v11, %v6000_v1 }
 0x89b   : > { %v8806_v31 = vpop.eup %8805  ;;  %v12173_v3 = vadd.f32 1.0, %v8804_v15  ;;  %v5471_v28 = vpop.f32.mrf.mxu1 }
 0x89c   : > { %8807 = vpow2.f32 %v8326_v46  ;;  %v5472_v57 = vadd.f32 %v5471_v28, %v11952_v44  ;;  %v6005_v63 = vsel %vm6004_vm7, %v8802_v11, %v6001_v61  ;;  %v6013_v27 = vmul.f32 %v8806_v31, %v5798_v19 }
 0x89d   : > { %8809 = vrcp.f32 %v12173_v3  ;;  %v6010_v10 = vsel %vm6007_vm8, %v6009_v30, %v6005_v63  ;;  %vm6018_vm9 = vweird.f32 %v8806_v31  ;;  %v6038_v62 = vand.u32 2147483648, %v12173_v3 }
 0x89e   : > { %v5561_v25 = vadd.f32 %v5560_v17, %v5472_v57  ;;  %6359 = vperm.xlu0 %8694, %v6010_v10   ;;  %v6014_v54 = vsub.f32 1.0, %v6013_v27  ;;  %vm6019_vm14 = vmor %vm6017_vm11, %vm6018_vm9  ;;  %v6036_v38 = vand.u32 2147483647, %v12173_v3  ;;  %vm6032_vm0 = vweird.f32 %v12173_v3 }
 0x89f   : > { %v6039_v49 = vor.u32 1.1754944e-38, %v6038_v62 }
 0x8a0   : > { %v5650_v36 = vadd.f32 %v12144_v56, %v5561_v25  ;;  %v6015_v59 = vmul.f32 %v8806_v31, %v6014_v54  ;;  %vm6037_vm10 = vcmp.eq.f32.partialorder %v6036_v38, 8.507059e+37 }
 0x8a1   : > { %v5562_v53 = vpop.f32.mrf.mxu2 }
 0x8a2   : > { %v8808_v48 = vpop.eup %8807  ;;  %v8327_v50 = vmul.f32 -1.442695, %v5650_v36  ;;  %v6016_v52 = vadd.f32 %v8806_v31, %v6015_v59 }
 0x8a3   : > { %v8810_v26 = vpop.eup %8809  ;;  %v5800_v42 = vadd.f32 1.0, %v8808_v48  ;;  %v5473_v6 = vpop.f32.mrf.mxu1 }
 0x8a4   : > { %8811 = vpow2.f32 %v8327_v50  ;;  %v5474_v35 = vadd.f32 %v5473_v6, %v11952_v44  ;;  %v6020_v22 = vsel %vm6019_vm14, %v8806_v31, %v6016_v52  ;;  %v6028_v56 = vmul.f32 %v8810_v26, %v12173_v3 }
 0x8a5   : > { %8813 = vrcp.f32 %v5800_v42  ;;  %v6025_v5 = vsel %vm6022_vm15, %v6024_v24, %v6020_v22  ;;  %vm6033_vm2 = vweird.f32 %v8810_v26  ;;  %v6051_v46 = vand.u32 2147483647, %v5800_v42 }
 0x8a6   : > { %v5563_v45 = vadd.f32 %v5562_v53, %v5474_v35  ;;  %6364 = vperm.xlu2 %8695, %v6025_v5   ;;  %v6029_v51 = vsub.f32 1.0, %v6028_v56  ;;  %vm6034_vm3 = vmor %vm6032_vm0, %vm6033_vm2  ;;  %v6053_v61 = vand.u32 2147483648, %v5800_v42  ;;  %vm6047_vm5 = vweird.f32 %v5800_v42 }
 0x8a7   : > { %vm6052_vm7 = vcmp.eq.f32.partialorder %v6051_v46, 8.507059e+37 }
 0x8a8   : > { %v5652_v40 = vadd.f32 %v12162_v33, %v5563_v45  ;;  %v6030_v11 = vmul.f32 %v8810_v26, %v6029_v51  ;;  %v6054_v54 = vor.u32 1.1754944e-38, %v6053_v61 }
 0x8a9   : > { %v5565_v19 = vpop.f32.mrf.mxu2 }
 0x8aa   : > { %v8812_v23 = vpop.eup %8811  ;;  %v8328_v2 = vmul.f32 -1.442695, %v5652_v40  ;;  %v6031_v7 = vadd.f32 %v8810_v26, %v6030_v11 }
 0x8ab   : > { %v8814_v4 = vpop.eup %8813  ;;  %v5801_v12 = vadd.f32 1.0, %v8812_v23  ;;  %v5476_v41 = vpop.f32.mrf.mxu1 }
 0x8ac   : > { %8815 = vpow2.f32 %v8328_v2  ;;  %v5477_v33 = vadd.f32 %v5476_v41, %v11952_v44  ;;  %v6035_v8 = vsel %vm6034_vm3, %v8810_v26, %v6031_v7  ;;  %v6043_v9 = vmul.f32 %v8814_v4, %v5800_v42 }
 0x8ad   : > { %8817 = vrcp.f32 %v5801_v12  ;;  %v6040_v17 = vsel %vm6037_vm10, %v6039_v49, %v6035_v8  ;;  %vm6048_vm4 = vweird.f32 %v8814_v4  ;;  %v6068_v50 = vand.u32 2147483648, %v5801_v12 }
 0x8ae   : > { %v5566_v1 = vadd.f32 %v5565_v19, %v5477_v33  ;;  %v6044_v15 = vsub.f32 1.0, %v6043_v9  ;;  %6369 = vperm.xlu1 %8693, %v6040_v17   ;;  %vm6049_vm6 = vmor %vm6047_vm5, %vm6048_vm4  ;;  %v6066_v42 = vand.u32 2147483647, %v5801_v12  ;;  %vm6062_vm9 = vweird.f32 %v5801_v12 }
 0x8af   : > { %v6069_v45 = vor.u32 1.1754944e-38, %v6068_v50 }
 0x8b0   : > { %v5655_v31 = vadd.f32 %v12170_v32, %v5566_v1  ;;  %v6045_v3 = vmul.f32 %v8814_v4, %v6044_v15  ;;  %v5661_v32 = vpop.f32.mrf.mxu3  ;;  %vm6067_vm14 = vcmp.eq.f32.partialorder %v6066_v42, 8.507059e+37 }
 0x8b1   : > { %v5567_v28 = vpop.f32.mrf.mxu2 }
 0x8b2   : > { %v8816_v30 = vpop.eup %8815  ;;  %v8329_v57 = vmul.f32 -1.442695, %v5655_v31  ;;  %v6046_v63 = vadd.f32 %v8814_v4, %v6045_v3 }
 0x8b3   : > { %v8818_v27 = vpop.eup %8817  ;;  %v12193_v10 = vadd.f32 1.0, %v8816_v30  ;;  %v5478_v25 = vpop.f32.mrf.mxu1 }
 0x8b4   : > { %8819 = vpow2.f32 %v8329_v57  ;;  %v5479_v34 = vadd.f32 %v5478_v25, %v11952_v44  ;;  %v6050_v55 = vsel %vm6049_vm6, %v8814_v4, %v6046_v63  ;;  %v6058_v36 = vmul.f32 %v8818_v27, %v5801_v12 }
 0x8b5   : > { %8821 = vrcp.f32 %v12193_v10  ;;  %v6055_v59 = vsel %vm6052_vm7, %v6054_v54, %v6050_v55  ;;  %vm6063_vm8 = vweird.f32 %v8818_v27  ;;  %v6083_v7 = vand.u32 2147483648, %v12193_v10 }
 0x8b6   : > { %v5568_v53 = vadd.f32 %v5567_v28, %v5479_v34  ;;  %6374 = vperm.xlu0 %8694, %v6055_v59   ;;  %v6059_v48 = vsub.f32 1.0, %v6058_v36  ;;  %vm6064_vm11 = vmor %vm6062_vm9, %vm6063_vm8  ;;  %v6081_v49 = vand.u32 2147483647, %v12193_v10  ;;  %vm6077_vm2 = vweird.f32 %v12193_v10 }
 0x8b7   : > { %v6084_v15 = vor.u32 1.1754944e-38, %v6083_v7 }
 0x8b8   : > { %v5657_v52 = vadd.f32 %v12178_v18, %v5568_v53  ;;  %v6060_v26 = vmul.f32 %v8818_v27, %v6059_v48  ;;  %v5664_v19 = vpop.f32.mrf.mxu3  ;;  %vm6082_vm3 = vcmp.eq.f32.partialorder %v6081_v49, 8.507059e+37 }
 0x8b9   : > { %v5570_v6 = vpop.f32.mrf.mxu2 }
 0x8ba   : > { %v8820_v24 = vpop.eup %8819  ;;  %v8330_v35 = vmul.f32 -1.442695, %v5657_v52  ;;  %v6061_v22 = vadd.f32 %v8818_v27, %v6060_v26 }
 0x8bb   : > { %v8822_v56 = vpop.eup %8821  ;;  %v5803_v5 = vadd.f32 1.0, %v8820_v24  ;;  %v5481_v14 = vpop.f32.mrf.mxu1 }
 0x8bc   : > { %8823 = vpow2.f32 %v8330_v35  ;;  %v5482_v51 = vadd.f32 %v5481_v14, %v11952_v44  ;;  %v6065_v62 = vsel %vm6064_vm11, %v8818_v27, %v6061_v22  ;;  %v6073_v11 = vmul.f32 %v8822_v56, %v12193_v10 }
 0x8bd   : > { %8825 = vrcp.f32 %v5803_v5  ;;  %v6070_v18 = vsel %vm6067_vm14, %v6069_v45, %v6065_v62  ;;  %vm6078_vm15 = vweird.f32 %v8822_v56  ;;  %v6096_v28 = vand.u32 2147483647, %v5803_v5 }
 0x8be   : > { %v5571_v40 = vadd.f32 %v5570_v6, %v5482_v51  ;;  %6379 = vperm.xlu2 %8695, %v6070_v18   ;;  %v6074_v23 = vsub.f32 1.0, %v6073_v11  ;;  %vm6079_vm0 = vmor %vm6077_vm2, %vm6078_vm15  ;;  %v6098_v30 = vand.u32 2147483648, %v5803_v5  ;;  %vm6092_vm4 = vweird.f32 %v5803_v5 }
 0x8bf   : > { %vm6097_vm6 = vcmp.eq.f32.partialorder %v6096_v28, 8.507059e+37 }
 0x8c0   : > { %v5660_v38 = vadd.f32 %v12189_v20, %v5571_v40  ;;  %v6075_v41 = vmul.f32 %v8822_v56, %v6074_v23  ;;  %v5666_v27 = vpop.f32.mrf.mxu3  ;;  %v6099_v53 = vor.u32 1.1754944e-38, %v6098_v30 }
 0x8c1   : > { %v5572_v2 = vpop.f32.mrf.mxu2 }
 0x8c2   : > { %v8824_v4 = vpop.eup %8823  ;;  %v8331_v12 = vmul.f32 -1.442695, %v5660_v38  ;;  %v6076_v17 = vadd.f32 %v8822_v56, %v6075_v41 }
 0x8c3   : > { %v8826_v33 = vpop.eup %8825  ;;  %v5804_v8 = vadd.f32 1.0, %v8824_v4  ;;  %v5483_v9 = vpop.f32.mrf.mxu1 }
 0x8c4   : > { %8827 = vpow2.f32 %v8331_v12  ;;  %v5484_v1 = vadd.f32 %v5483_v9, %v11952_v44  ;;  %v6088_v20 = vmul.f32 %v8826_v33, %v5803_v5  ;;  %v6080_v61 = vsel %vm6079_vm0, %v8822_v56, %v6076_v17 }
 0x8c5   : > { %8829 = vrcp.f32 %v5804_v8  ;;  %v6085_v3 = vsel %vm6082_vm3, %v6084_v15, %v6080_v61  ;;  %vm6093_vm10 = vweird.f32 %v8826_v33  ;;  %v6111_v6 = vand.u32 2147483647, %v5804_v8 }
 0x8c6   : > { %v5573_v46 = vadd.f32 %v5572_v2, %v5484_v1  ;;  %v6089_v31 = vsub.f32 1.0, %v6088_v20  ;;  %6384 = vperm.xlu1 %8693, %v6085_v3   ;;  %vm6094_vm5 = vmor %vm6092_vm4, %vm6093_vm10  ;;  %v6113_v24 = vand.u32 2147483648, %v5804_v8  ;;  %vm6107_vm8 = vweird.f32 %v5804_v8 }
 0x8c7   : > { %vm6112_vm11 = vcmp.eq.f32.partialorder %v6111_v6, 8.507059e+37 }
 0x8c8   : > { %v5662_v57 = vadd.f32 %v5661_v32, %v5573_v46  ;;  %v6090_v63 = vmul.f32 %v8826_v33, %v6089_v31  ;;  %v5669_v62 = vpop.f32.mrf.mxu3  ;;  %v6114_v11 = vor.u32 1.1754944e-38, %v6113_v24 }
 0x8c9   : > { %v5575_v10 = vpop.f32.mrf.mxu2 }
 0x8ca   : > { %v8828_v25 = vpop.eup %8827  ;;  %v8332_v54 = vmul.f32 -1.442695, %v5662_v57  ;;  %v6091_v34 = vadd.f32 %v8826_v33, %v6090_v63 }
 0x8cb   : > { %v8830_v55 = vpop.eup %8829  ;;  %v5805_v36 = vadd.f32 1.0, %v8828_v25  ;;  %v5486_v59 = vpop.f32.mrf.mxu1 }
 0x8cc   : > { %8831 = vpow2.f32 %v8332_v54  ;;  %v5487_v48 = vadd.f32 %v5486_v59, %v11952_v44  ;;  %v6095_v50 = vsel %vm6094_vm5, %v8826_v33, %v6091_v34  ;;  %v6103_v32 = vmul.f32 %v8830_v55, %v5804_v8 }
 0x8cd   : > { %8833 = vrcp.f32 %v5805_v36  ;;  %v6100_v52 = vsel %vm6097_vm6, %v6099_v53, %v6095_v50  ;;  %vm6108_vm7 = vweird.f32 %v8830_v55  ;;  %v6126_v12 = vand.u32 2147483647, %v5805_v36 }
 0x8ce   : > { %v5576_v26 = vadd.f32 %v5575_v10, %v5487_v48  ;;  %6389 = vperm.xlu0 %8694, %v6100_v52   ;;  %v6104_v42 = vsub.f32 1.0, %v6103_v32  ;;  %vm6109_vm9 = vmor %vm6107_vm8, %vm6108_vm7  ;;  %v6128_v41 = vand.u32 2147483648, %v5805_v36  ;;  %vm6122_vm15 = vweird.f32 %v5805_v36 }
 0x8cf   : > { %vm6127_vm0 = vcmp.eq.f32.partialorder %v6126_v12, 8.507059e+37 }
 0x8d0   : > { %v5665_v35 = vadd.f32 %v5664_v19, %v5576_v26  ;;  %v6105_v22 = vmul.f32 %v8830_v55, %v6104_v42  ;;  %v6129_v61 = vor.u32 1.1754944e-38, %v6128_v41  ;;  %v5671_v30 = vpop.f32.mrf.mxu3 }
 0x8d1   : > { %v5577_v56 = vpop.f32.mrf.mxu2 }
 0x8d2   : > { %v8832_v5 = vpop.eup %8831  ;;  %v8333_v14 = vmul.f32 -1.442695, %v5665_v35  ;;  %v6106_v45 = vadd.f32 %v8830_v55, %v6105_v22  ;;  %v6671_v35 = vld [vmem:[%s13213_s10 + $0x10] sm:$0xff] }
 0x8d3   : > { %v8834_v51 = vpop.eup %8833  ;;  %v5806_v18 = vadd.f32 1.0, %v8832_v5  ;;  %v5488_v40 = vpop.f32.mrf.mxu1  ;;  %6693 = vmatpush.msra.mxu0 %v6671_v35 }
 0x8d4   : > { %8835 = vpow2.f32 %v8333_v14  ;;  %v5489_v38 = vadd.f32 %v5488_v40, %v11952_v44  ;;  %v6110_v23 = vsel %vm6109_vm9, %v8830_v55, %v6106_v45  ;;  %v6118_v2 = vmul.f32 %v8834_v51, %v5805_v36 }
 0x8d5   : > { %8837 = vrcp.f32 %v5806_v18  ;;  %v6115_v19 = vsel %vm6112_vm11, %v6114_v11, %v6110_v23  ;;  %vm6123_vm14 = vweird.f32 %v8834_v51  ;;  %v6141_v10 = vand.u32 2147483647, %v5806_v18 }
 0x8d6   : > { %v5578_v7 = vadd.f32 %v5577_v56, %v5489_v38  ;;  %6394 = vperm.xlu2 %8695, %v6115_v19   ;;  %v6119_v4 = vsub.f32 1.0, %v6118_v2  ;;  %vm6124_vm2 = vmor %vm6122_vm15, %vm6123_vm14  ;;  %v6143_v25 = vand.u32 2147483648, %v5806_v18  ;;  %vm6137_vm10 = vweird.f32 %v5806_v18 }
 0x8d7   : > { %vm6142_vm5 = vcmp.eq.f32.partialorder %v6141_v10, 8.507059e+37 }
 0x8d8   : > { %v5667_v49 = vadd.f32 %v5666_v27, %v5578_v7  ;;  %v6120_v33 = vmul.f32 %v8834_v51, %v6119_v4  ;;  %v6144_v52 = vor.u32 1.1754944e-38, %v6143_v25  ;;  %v5674_v5 = vpop.f32.mrf.mxu3 }
 0x8d9   : > { %v5580_v8 = vpop.f32.mrf.mxu2 }
 0x8da   : > { %v8836_v9 = vpop.eup %8835  ;;  %v8334_v1 = vmul.f32 -1.442695, %v5667_v49  ;;  %v6121_v17 = vadd.f32 %v8834_v51, %v6120_v33 }
 0x8db   : > { %v8838_v20 = vpop.eup %8837  ;;  %v5807_v15 = vadd.f32 1.0, %v8836_v9  ;;  %v5491_v46 = vpop.f32.mrf.mxu1 }
 0x8dc   : > { %8839 = vpow2.f32 %v8334_v1  ;;  %v5492_v31 = vadd.f32 %v5491_v46, %v11952_v44  ;;  %v6125_v3 = vsel %vm6124_vm2, %v8834_v51, %v6121_v17  ;;  %v6133_v28 = vmul.f32 %v8838_v20, %v5806_v18 }
 0x8dd   : > { %8841 = vrcp.f32 %v5807_v15  ;;  %v6130_v57 = vsel %vm6127_vm0, %v6129_v61, %v6125_v3  ;;  %vm6138_vm3 = vweird.f32 %v8838_v20  ;;  %v6156_v14 = vand.u32 2147483647, %v5807_v15 }
 0x8de   : > { %v5581_v63 = vadd.f32 %v5580_v8, %v5492_v31  ;;  %6399 = vperm.xlu1 %8693, %v6130_v57   ;;  %v6134_v27 = vsub.f32 1.0, %v6133_v28  ;;  %vm6139_vm4 = vmor %vm6137_vm10, %vm6138_vm3  ;;  %v6158_v45 = vand.u32 2147483648, %v5807_v15  ;;  %vm6152_vm7 = vweird.f32 %v5807_v15 }
 0x8df   : > { %vm6157_vm9 = vcmp.eq.f32.partialorder %v6156_v14, 8.507059e+37 }
 0x8e0   : > { %v5670_v54 = vadd.f32 %v5669_v62, %v5581_v63  ;;  %v6135_v34 = vmul.f32 %v8838_v20, %v6134_v27  ;;  %v6159_v7 = vor.u32 1.1754944e-38, %v6158_v45 }
 0x8e1   : > { %v5582_v55 = vpop.f32.mrf.mxu2 }
 0x8e2   : > { %v8840_v36 = vpop.eup %8839  ;;  %v8335_v59 = vmul.f32 -1.442695, %v5670_v54  ;;  %v6136_v53 = vadd.f32 %v8838_v20, %v6135_v34 }
 0x8e3   : > { %v8842_v48 = vpop.eup %8841  ;;  %v5808_v50 = vadd.f32 1.0, %v8840_v36  ;;  %v5493_v32 = vpop.f32.mrf.mxu1 }
 0x8e4   : > { %8843 = vpow2.f32 %v8335_v59  ;;  %v5494_v26 = vadd.f32 %v5493_v32, %v11952_v44  ;;  %v6140_v42 = vsel %vm6139_vm4, %v8838_v20, %v6136_v53  ;;  %v6148_v6 = vmul.f32 %v8842_v48, %v5807_v15  ;;  %v5676_v15 = vpop.f32.mrf.mxu3 }
 0x8e5   : > { %8845 = vrcp.f32 %v5808_v50  ;;  %v6145_v24 = vsel %vm6142_vm5, %v6144_v52, %v6140_v42  ;;  %vm6153_vm6 = vweird.f32 %v8842_v48  ;;  %v6171_v9 = vand.u32 2147483647, %v5808_v50 }
 0x8e6   : > { %v5583_v22 = vadd.f32 %v5582_v55, %v5494_v26  ;;  %6404 = vperm.xlu0 %8694, %v6145_v24   ;;  %v6149_v56 = vsub.f32 1.0, %v6148_v6  ;;  %vm6154_vm8 = vmor %vm6152_vm7, %vm6153_vm6  ;;  %v6173_v1 = vand.u32 2147483648, %v5808_v50  ;;  %vm6167_vm14 = vweird.f32 %v5808_v50 }
 0x8e7   : > { %vm6172_vm2 = vcmp.eq.f32.partialorder %v6171_v9, 8.507059e+37 }
 0x8e8   : > { %v5672_v51 = vadd.f32 %v5671_v30, %v5583_v22  ;;  %v6150_v62 = vmul.f32 %v8842_v48, %v6149_v56  ;;  %v6174_v63 = vor.u32 1.1754944e-38, %v6173_v1 }
 0x8e9   : > { %v5585_v18 = vpop.f32.mrf.mxu2 }
 0x8ea   : > { %v8844_v40 = vpop.eup %8843  ;;  %v8336_v11 = vmul.f32 -1.442695, %v5672_v51  ;;  %v6151_v38 = vadd.f32 %v8842_v48, %v6150_v62 }
 0x8eb   : > { %v8846_v23 = vpop.eup %8845  ;;  %v5809_v2 = vadd.f32 1.0, %v8844_v40  ;;  %v5496_v19 = vpop.f32.mrf.mxu1 }
 0x8ec   : > { %8847 = vpow2.f32 %v8336_v11  ;;  %v5497_v4 = vadd.f32 %v5496_v19, %v11952_v44  ;;  %v6155_v12 = vsel %vm6154_vm8, %v8842_v48, %v6151_v38  ;;  %v6163_v41 = vmul.f32 %v8846_v23, %v5808_v50  ;;  %v5679_v6 = vpop.f32.mrf.mxu3 }
 0x8ed   : > { %8849 = vrcp.f32 %v5809_v2  ;;  %v6160_v49 = vsel %vm6157_vm9, %v6159_v7, %v6155_v12  ;;  %vm6168_vm11 = vweird.f32 %v8846_v23  ;;  %v6186_v36 = vand.u32 2147483647, %v5809_v2 }
 0x8ee   : > { %v5586_v33 = vadd.f32 %v5585_v18, %v5497_v4  ;;  %6409 = vperm.xlu2 %8695, %v6160_v49   ;;  %v6164_v8 = vsub.f32 1.0, %v6163_v41  ;;  %vm6169_vm15 = vmor %vm6167_vm14, %vm6168_vm11  ;;  %v6188_v59 = vand.u32 2147483648, %v5809_v2  ;;  %vm6182_vm3 = vweird.f32 %v5809_v2 }
 0x8ef   : > { %vm6187_vm4 = vcmp.eq.f32.partialorder %v6186_v36, 8.507059e+37 }
 0x8f0   : > { %v5675_v17 = vadd.f32 %v5674_v5, %v5586_v33  ;;  %v6165_v20 = vmul.f32 %v8846_v23, %v6164_v8  ;;  %v6189_v22 = vor.u32 1.1754944e-38, %v6188_v59 }
 0x8f1   : > { %v5587_v46 = vpop.f32.mrf.mxu2 }
 0x8f2   : > { %v8848_v61 = vpop.eup %8847  ;;  %v8337_v31 = vmul.f32 -1.442695, %v5675_v17  ;;  %v6166_v3 = vadd.f32 %v8846_v23, %v6165_v20 }
 0x8f3   : > { %v8850_v28 = vpop.eup %8849  ;;  %v5810_v30 = vadd.f32 1.0, %v8848_v61  ;;  %v5498_v57 = vpop.f32.mrf.mxu1 }
 0x8f4   : > { %8851 = vpow2.f32 %v8337_v31  ;;  %v5499_v27 = vadd.f32 %v5498_v57, %v11952_v44  ;;  %v6170_v10 = vsel %vm6169_vm15, %v8846_v23, %v6166_v3  ;;  %v6178_v25 = vmul.f32 %v8850_v28, %v5809_v2  ;;  %v5681_v1 = vpop.f32.mrf.mxu3 }
 0x8f5   : > { %8853 = vrcp.f32 %v5810_v30  ;;  %v6175_v54 = vsel %vm6172_vm2, %v6174_v63, %v6170_v10  ;;  %vm6183_vm0 = vweird.f32 %v8850_v28  ;;  %v6201_v18 = vand.u32 2147483647, %v5810_v30 }
 0x8f6   : > { %v5588_v34 = vadd.f32 %v5587_v46, %v5499_v27  ;;  %6414 = vperm.xlu1 %8693, %v6175_v54   ;;  %v6179_v55 = vsub.f32 1.0, %v6178_v25  ;;  %vm6184_vm10 = vmor %vm6182_vm3, %vm6183_vm0  ;;  %v6203_v40 = vand.u32 2147483648, %v5810_v30  ;;  %vm6197_vm6 = vweird.f32 %v5810_v30 }
 0x8f7   : > { %vm6202_vm8 = vcmp.eq.f32.partialorder %v6201_v18, 8.507059e+37 }
 0x8f8   : > { %v5677_v53 = vadd.f32 %v5676_v15, %v5588_v34  ;;  %v6180_v48 = vmul.f32 %v8850_v28, %v6179_v55  ;;  %v6204_v49 = vor.u32 1.1754944e-38, %v6203_v40 }
 0x8f9   : > { %v5590_v50 = vpop.f32.mrf.mxu2 }
 0x8fa   : > { %v8852_v32 = vpop.eup %8851  ;;  %v8338_v52 = vmul.f32 -1.442695, %v5677_v53  ;;  %v6181_v26 = vadd.f32 %v8850_v28, %v6180_v48 }
 0x8fb   : > { %v8854_v42 = vpop.eup %8853  ;;  %v5811_v24 = vadd.f32 1.0, %v8852_v32  ;;  %v5501_v35 = vpop.f32.mrf.mxu1 }
 0x8fc   : > { %8855 = vpow2.f32 %v8338_v52  ;;  %v5502_v56 = vadd.f32 %v5501_v35, %v11952_v44  ;;  %v6185_v5 = vsel %vm6184_vm10, %v8850_v28, %v6181_v26  ;;  %v6193_v14 = vmul.f32 %v8854_v42, %v5810_v30  ;;  %v5684_v59 = vpop.f32.mrf.mxu3 }
 0x8fd   : > { %8857 = vrcp.f32 %v5811_v24  ;;  %v6190_v45 = vsel %vm6187_vm4, %v6189_v22, %v6185_v5  ;;  %vm6198_vm5 = vweird.f32 %v8854_v42  ;;  %v6216_v46 = vand.u32 2147483647, %v5811_v24 }
 0x8fe   : > { %v5591_v51 = vadd.f32 %v5590_v50, %v5502_v56  ;;  %6419 = vperm.xlu0 %8694, %v6190_v45   ;;  %v6194_v62 = vsub.f32 1.0, %v6193_v14  ;;  %vm6199_vm7 = vmor %vm6197_vm6, %vm6198_vm5  ;;  %v6218_v61 = vand.u32 2147483648, %v5811_v24  ;;  %vm6212_vm11 = vweird.f32 %v5811_v24 }
 0x8ff   : > { %vm6217_vm15 = vcmp.eq.f32.partialorder %v6216_v46, 8.507059e+37 }
 0x900   : > { %v5680_v11 = vadd.f32 %v5679_v6, %v5591_v51  ;;  %v6195_v38 = vmul.f32 %v8854_v42, %v6194_v62  ;;  %v6219_v54 = vor.u32 1.1754944e-38, %v6218_v61 }
 0x901   : > { %v5592_v23 = vpop.f32.mrf.mxu2 }
 0x902   : > { %v8856_v2 = vpop.eup %8855  ;;  %v8339_v19 = vmul.f32 -1.442695, %v5680_v11  ;;  %v6196_v7 = vadd.f32 %v8854_v42, %v6195_v38 }
 0x903   : > { %v8858_v4 = vpop.eup %8857  ;;  %v5812_v12 = vadd.f32 1.0, %v8856_v2  ;;  %v5503_v41 = vpop.f32.mrf.mxu1 }
 0x904   : > { %8859 = vpow2.f32 %v8339_v19  ;;  %v5504_v33 = vadd.f32 %v5503_v41, %v11952_v44  ;;  %v6200_v8 = vsel %vm6199_vm7, %v8854_v42, %v6196_v7  ;;  %v6208_v9 = vmul.f32 %v8858_v4, %v5811_v24 }
 0x905   : > { %8861 = vrcp.f32 %v5812_v12  ;;  %v6205_v17 = vsel %vm6202_vm8, %v6204_v49, %v6200_v8  ;;  %vm6213_vm9 = vweird.f32 %v8858_v4  ;;  %v6231_v32 = vand.u32 2147483647, %v5812_v12 }
 0x906   : > { %v5593_v20 = vadd.f32 %v5592_v23, %v5504_v33  ;;  %6424 = vperm.xlu2 %8695, %v6205_v17   ;;  %v6209_v15 = vsub.f32 1.0, %v6208_v9  ;;  %vm6214_vm14 = vmor %vm6212_vm11, %vm6213_vm9  ;;  %v6233_v52 = vand.u32 2147483648, %v5812_v12  ;;  %vm6227_vm0 = vweird.f32 %v5812_v12  ;;  %v5686_v23 = vpop.f32.mrf.mxu3 }
 0x907   : > { %vm6232_vm10 = vcmp.eq.f32.partialorder %v6231_v32, 8.507059e+37 }
 0x908   : > { %v5682_v31 = vadd.f32 %v5681_v1, %v5593_v20  ;;  %v6210_v3 = vmul.f32 %v8858_v4, %v6209_v15  ;;  %v6234_v14 = vor.u32 1.1754944e-38, %v6233_v52 }
 0x909   : > { %v5595_v10 = vpop.f32.mrf.mxu2 }
 0x90a   : > { %v8860_v28 = vpop.eup %8859  ;;  %v8340_v30 = vmul.f32 -1.442695, %v5682_v31  ;;  %v6211_v57 = vadd.f32 %v8858_v4, %v6210_v3  ;;  %v6670_v31 = vld [vmem:[%s13213_s10 + $0x8] sm:$0xff] }
 0x90b   : > { %v8862_v63 = vpop.eup %8861  ;;  %v5813_v27 = vadd.f32 1.0, %v8860_v28  ;;  %v5506_v25 = vpop.f32.mrf.mxu1  ;;  %6694 = vmatpush.msra.mxu0 %v6670_v31 }
 0x90c   : > { %8863 = vpow2.f32 %v8340_v30  ;;  %v5507_v34 = vadd.f32 %v5506_v25, %v11952_v44  ;;  %v6215_v55 = vsel %vm6214_vm14, %v8858_v4, %v6211_v57  ;;  %v6223_v36 = vmul.f32 %v8862_v63, %v5812_v12 }
 0x90d   : > { %8865 = vrcp.f32 %v5813_v27  ;;  %v6220_v53 = vsel %vm6217_vm15, %v6219_v54, %v6215_v55  ;;  %vm6228_vm2 = vweird.f32 %v8862_v63  ;;  %v6248_v2 = vand.u32 2147483648, %v5813_v27 }
 0x90e   : > { %v5596_v48 = vadd.f32 %v5595_v10, %v5507_v34  ;;  %6429 = vperm.xlu1 %8693, %v6220_v53   ;;  %v6224_v50 = vsub.f32 1.0, %v6223_v36  ;;  %vm6229_vm3 = vmor %vm6227_vm0, %vm6228_vm2  ;;  %v6246_v4 = vand.u32 2147483647, %v5813_v27  ;;  %vm6242_vm5 = vweird.f32 %v5813_v27 }
 0x90f   : > { %v6249_v8 = vor.u32 1.1754944e-38, %v6248_v2  ;;  %v13547_v2 = vld [vmem:[#allocation57_spill] sm:$0xff] }
 0x910   : > { %v5685_v26 = vadd.f32 %v5684_v59, %v5596_v48  ;;  %v6225_v42 = vmul.f32 %v8862_v63, %v6224_v50  ;;  %vm6247_vm7 = vcmp.eq.f32.partialorder %v6246_v4, 8.507059e+37 }
 0x911   : > { %v5597_v18 = vpop.f32.mrf.mxu2 }
 0x912   : > { %v8864_v6 = vpop.eup %8863  ;;  %v8341_v24 = vmul.f32 -1.442695, %v5685_v26  ;;  %v6226_v35 = vadd.f32 %v8862_v63, %v6225_v42  ;;  %v13544_v42 = vld [vmem:[#allocation5_spill] sm:$0xff] }
 0x913   : > { %v8866_v22 = vpop.eup %8865  ;;  %v5814_v56 = vadd.f32 1.0, %v8864_v6  ;;  %v5508_v5 = vpop.f32.mrf.mxu1 }
 0x914   : > { %8867 = vpow2.f32 %v8341_v24  ;;  %v5509_v45 = vadd.f32 %v5508_v5, %v11952_v44  ;;  %v6230_v51 = vsel %vm6229_vm3, %v8862_v63, %v6226_v35  ;;  %v6238_v62 = vmul.f32 %v8866_v22, %v5813_v27 }
 0x915   : > { %8869 = vrcp.f32 %v5814_v56  ;;  %v6235_v40 = vsel %vm6232_vm10, %v6234_v14, %v6230_v51  ;;  %vm6243_vm4 = vweird.f32 %v8866_v22  ;;  %v6263_v15 = vand.u32 2147483648, %v5814_v56  ;;  %v6310_v51 = vpop.permute.xlu2 %6309 }
 0x916   : > { %v5598_v11 = vadd.f32 %v5597_v18, %v5509_v45  ;;  %6434 = vperm.xlu0 %8694, %v6235_v40   ;;  %v6239_v38 = vsub.f32 1.0, %v6238_v62  ;;  %vm6244_vm6 = vmor %vm6242_vm5, %vm6243_vm4  ;;  %v6261_v61 = vand.u32 2147483647, %v5814_v56  ;;  %vm6257_vm9 = vweird.f32 %v5814_v56  ;;  %v13545_v45 = vld [vmem:[#allocation4_spill] sm:$0xff]  ;;  %v6300_v62 = vpop.permute.xlu1 %6299  ;;  %v6305_v18 = vpop.permute.xlu0 %6304 }
 0x917   : > { %v6264_v63 = vor.u32 1.1754944e-38, %v6263_v15 }
 0x918   : > { %v5687_v19 = vadd.f32 %v5686_v23, %v5598_v11  ;;  %v6240_v7 = vmul.f32 %v8866_v22, %v6239_v38  ;;  %vm6262_vm14 = vcmp.eq.f32.partialorder %v6261_v61, 8.507059e+37  ;;  %v13546_v11 = vld [vmem:[#allocation58_spill] sm:$0xff] }
 0x919   : > { %v6458_v38 = vmul.f32 %v6305_v18, %v13546_v11  ;;  %v13553_v61 = vld [vmem:[#allocation22_spill] sm:$0xff]  ;;  %v13562_v11 = vld [vmem:[#allocation23_spill] sm:$0xff] }
 0x91a   : > { %v8868_v12 = vpop.eup %8867  ;;  %v8342_v41 = vmul.f32 -1.442695, %v5687_v19  ;;  %v6241_v49 = vadd.f32 %v8866_v22, %v6240_v7  ;;  %v6457_v19 = vmul.f32 %v6300_v62, %v13547_v2  ;;  %v13548_v7 = vld [vmem:[#allocation18_spill] sm:$0xff] }
 0x91b   : > { %v8870_v33 = vpop.eup %8869  ;;  %v5815_v44 = vadd.f32 1.0, %v8868_v12  ;;  %v12227_v4 = vadd.f32 %v6458_v38, %v13548_v7  ;;  %v13549_v12 = vld [vmem:[#allocation36_spill] sm:$0xff] }
 0x91c   : > { %8871 = vpow2.f32 %v8342_v41  ;;  %v6245_v9 = vsel %vm6244_vm6, %v8866_v22, %v6241_v49  ;;  %v6253_v1 = vmul.f32 %v8870_v33, %v5814_v56  ;;  %vm6258_vm8 = vweird.f32 %v8870_v33  ;;  %v13550_v49 = vld [vmem:[#allocation16_spill] sm:$0xff] }
 0x91d   : > { %8873 = vrcp.f32 %v5815_v44  ;;  %v6250_v17 = vsel %vm6247_vm7, %v6249_v8, %v6245_v9  ;;  %vm6259_vm11 = vmor %vm6257_vm9, %vm6258_vm8  ;;  %v6278_v34 = vand.u32 2147483648, %v5815_v44  ;;  %v6276_v36 = vand.u32 2147483647, %v5815_v44  ;;  %v6320_v40 = vpop.permute.xlu2 %6319 }
 0x91e   : > { %6439 = vperm.xlu2 %8695, %v6250_v17   ;;  %v6254_v20 = vsub.f32 1.0, %v6253_v1  ;;  %vm6272_vm2 = vweird.f32 %v5815_v44  ;;  %v6315_v23 = vpop.permute.xlu1 %6314  ;;  %v6459_v41 = vmul.f32 %v6310_v51, %v13549_v12  ;;  %v6522_v1 = vsel %vm1908_vm12, %v12227_v4, 0.0  ;;  %v13561_v51 = vld [vmem:[#allocation40_spill] sm:$0xff]  ;;  %v13564_v12 = vld [vmem:[#allocation39_spill] sm:$0xff] }
 0x91f   : > { %v6279_v48 = vor.u32 1.1754944e-38, %v6278_v34  ;;  %vm6277_vm3 = vcmp.eq.f32.partialorder %v6276_v36, 8.507059e+37  ;;  %vm6710_vm7 = vcmask 1041408   ;;  %vm6706_vm9 = vcmask 15360  }
 0x920   : > { %v6255_v46 = vmul.f32 %v8870_v33, %v6254_v20  ;;  %v13552_v20 = vld [vmem:[#allocation20_spill] sm:$0xff] }
 0x921   : > { %v12237_v15 = vadd.f32 %v6459_v41, %v13552_v20 }
 0x922   : > { %v8872_v3 = vpop.eup %8871  ;;  %v6256_v28 = vadd.f32 %v8870_v33, %v6255_v46 }
 0x923   : > { %v8874_v30 = vpop.eup %8873  ;;  %v5816_v57 = vadd.f32 1.0, %v8872_v3 }
 0x924   : > { %v6260_v27 = vsel %vm6259_vm11, %v8870_v33, %v6256_v28  ;;  %v6268_v10 = vmul.f32 %v8874_v30, %v5815_v44  ;;  %vm6273_vm15 = vweird.f32 %v8874_v30  ;;  %v12231_v33 = vadd.f32 %v6457_v19, %v13550_v49  ;;  %v13551_v44 = vld [vmem:[#allocation59_spill] sm:$0xff]  ;;  %v6330_v28 = vpop.permute.xlu0 %6329 }
 0x925   : > { %8875 = vrcp.f32 %v5816_v57  ;;  %v6265_v25 = vsel %vm6262_vm14, %v6264_v63, %v6260_v27  ;;  %vm6274_vm0 = vmor %vm6272_vm2, %vm6273_vm15  ;;  %v6293_v6 = vand.u32 2147483648, %v5816_v57  ;;  %v6291_v35 = vand.u32 2147483647, %v5816_v57  ;;  %v6335_v9 = vpop.permute.xlu2 %6334  ;;  %v13555_v63 = vld [vmem:[#allocation68_spill] sm:$0xff]  ;;  %v13563_v19 = vld [vmem:[#allocation35_spill] sm:$0xff] }
 0x926   : > { %6444 = vperm.xlu1 %8693, %v6265_v25   ;;  %v6269_v54 = vsub.f32 1.0, %v6268_v10  ;;  %vm6287_vm4 = vweird.f32 %v5816_v57  ;;  %v6460_v8 = vmul.f32 %v6315_v23, %v13551_v44  ;;  %v6325_v17 = vpop.permute.xlu1 %6324  ;;  %v6521_v46 = vsel %vm1908_vm12, %v12231_v33, 0.0 }
 0x927   : > { %v6294_v56 = vor.u32 1.1754944e-38, %v6293_v6  ;;  %vm6292_vm6 = vcmp.eq.f32.partialorder %v6291_v35, 8.507059e+37  ;;  %v6523_v3 = vadd.f32 %v6522_v1, %v6521_v46  ;;  %v6462_v27 = vmul.f32 %v6325_v17, %v13555_v63  ;;  %v13559_v6 = vld [vmem:[#allocation32_spill] sm:$0xff] }
 0x928   : > { %v6270_v55 = vmul.f32 %v8874_v30, %v6269_v54  ;;  %v12242_v31 = vadd.f32 %v6460_v8, %v13553_v61  ;;  %v6524_v10 = vsel %vm1908_vm12, %v12237_v15, 0.0  ;;  %v13556_v54 = vld [vmem:[#allocation61_spill] sm:$0xff]  ;;  %vm6923_vm2 = vcmask 130112  }
 0x929   : > { %v6463_v34 = vmul.f32 %v6330_v28, %v13556_v54  ;;  %v13565_v8 = vld [vmem:[#allocation41_spill] sm:$0xff]  ;;  %v6598_v28 = vsel %vm1908_vm12, %v12231_v33, -inf }
 0x92a   : > { %v6271_v59 = vadd.f32 %v8874_v30, %v6270_v55  ;;  %v6526_v25 = vsel %vm1908_vm12, %v12242_v31, 0.0  ;;  %v6525_v55 = vadd.f32 %v6524_v10, %v6523_v3 }
 0x92b   : > { %v8876_v53 = vpop.eup %8875 }
 0x92c   : > { %v6275_v50 = vsel %vm6274_vm0, %v8874_v30, %v6271_v59  ;;  %v6283_v32 = vmul.f32 %v8876_v53, %v5816_v57  ;;  %vm6288_vm10 = vweird.f32 %v8876_v53  ;;  %v13554_v30 = vld [vmem:[#allocation60_spill] sm:$0xff]  ;;  %v13557_v59 = vld [vmem:[#allocation26_spill] sm:$0xff]  ;;  %v6345_v35 = vpop.permute.xlu0 %6344  ;;  %vm6970_vm0 = vcmask 1044484  }
 0x92d   : > { %v6280_v52 = vsel %vm6277_vm3, %v6279_v48, %v6275_v50  ;;  %vm6289_vm5 = vmor %vm6287_vm4, %vm6288_vm10  ;;  %v6461_v57 = vmul.f32 %v6320_v40, %v13554_v30  ;;  %v6350_v36 = vpop.permute.xlu2 %6349  ;;  %v13558_v48 = vld [vmem:[#allocation29_spill] sm:$0xff]  ;;  %v6466_v38 = vmul.f32 %v6345_v35, %v13562_v11  ;;  %vm6972_vm3 = vcmask 1045509  }
 0x92e   : > { %6449 = vperm.xlu0 %8694, %v6280_v52   ;;  %v6284_v26 = vsub.f32 1.0, %v6283_v32  ;;  %8717 = vset.pattern.permute.xlu1 %v13544_v42  ;;  %v12255_v50 = vadd.f32 %v6462_v27, %v13558_v48  ;;  %v6527_v32 = vadd.f32 %v6526_v25, %v6525_v55  ;;  %v6340_v52 = vpop.permute.xlu1 %6339  ;;  %v6467_v46 = vmul.f32 %v6350_v36, %v11177_v39  ;;  %v13566_v55 = vld [vmem:[#allocation44_spill] sm:$0xff] }
 0x92f   : > { %v6465_v62 = vmul.f32 %v6340_v52, %v13561_v51  ;;  %vm6974_vm10 = vcmask 1046534   ;;  %vm6976_vm4 = vcmask 1047559  }
 0x930   : > { %v6285_v24 = vmul.f32 %v8876_v53, %v6284_v26  ;;  %v6669_v26 = vld [vmem:[%s13213_s10] sm:$0xff]  ;;  %v12303_v36 = vadd.f32 %v6467_v46, %v13566_v55 }
 0x931   : > { %6695 = vmatpush.msra.mxu0 %v6669_v26  ;;  %v12276_v41 = vadd.f32 %v6465_v62, %v13564_v12 }
 0x932   : > { %v6286_v22 = vadd.f32 %v8876_v53, %v6285_v24  ;;  %v12261_v24 = vadd.f32 %v6463_v34, %v13559_v6  ;;  %v6601_v34 = vsel %vm1908_vm12, %v12242_v31, -inf }
 0x933   : > { %v6536_v61 = vsel %vm1908_vm12, %v12276_v41, 0.0 }
 0x934   : > { %v6290_v5 = vsel %vm6289_vm5, %v8876_v53, %v6286_v22  ;;  %v12252_v53 = vadd.f32 %v6461_v57, %v13557_v59  ;;  %v6532_v40 = vsel %vm1908_vm12, %v12261_v24, 0.0  ;;  %v6360_v17 = vpop.permute.xlu0 %6359  ;;  %v6599_v57 = vsel %vm1908_vm12, %v12227_v4, -inf  ;;  %v13567_v59 = vld [vmem:[#allocation46_spill] sm:$0xff] }
 0x935   : > { %v6295_v14 = vsel %vm6292_vm6, %v6294_v56, %v6290_v5  ;;  %v13560_v56 = vld [vmem:[#allocation62_spill] sm:$0xff]  ;;  %v6365_v2 = vpop.permute.xlu2 %6364  ;;  %v6469_v39 = vmul.f32 %v6360_v17, %v11241_v16  ;;  %v13568_v16 = vld [vmem:[#allocation48_spill] sm:$0xff]  ;;  %vm6992_vm5 = vcmask 1042432   ;;  %vm6978_vm6 = vcmask 1041409  }
 0x936   : > { %6454 = vperm.xlu2 %8695, %v6295_v14   ;;  %8716 = vset.pattern.permute.xlu0 %v13545_v45  ;;  %v6528_v22 = vsel %vm1908_vm12, %v12252_v53, 0.0  ;;  %v6464_v5 = vmul.f32 %v6335_v9, %v13560_v56  ;;  %v6530_v14 = vsel %vm1908_vm12, %v12255_v50, 0.0  ;;  %v6355_v44 = vpop.permute.xlu1 %6354  ;;  %v12279_v9 = vadd.f32 %v6466_v38, %v13565_v8 }
 0x937   : > { %v6529_v18 = vadd.f32 %v6528_v22, %v6527_v32  ;;  %v6602_v1 = vsel %vm1908_vm12, %v12252_v53, -inf  ;;  %v6468_v3 = vmul.f32 %v6355_v44, %v11207_v13  ;;  %v6600_v13 = vsel %vm1908_vm12, %v12237_v15, -inf }
 0x938   : > { %v12273_v7 = vadd.f32 %v6464_v5, %v13563_v19  ;;  %v6538_v27 = vsel %vm1908_vm12, %v12279_v9, 0.0  ;;  %v6603_v10 = vmax.f32 %v6598_v28, %v6602_v1  ;;  %v6605_v32 = vmax.f32 %v6599_v57, %v6600_v13  ;;  %v13569_v19 = vld [vmem:[#allocation25_spill] sm:$0xff] }
 0x939   : > { %v6531_v23 = vadd.f32 %v6530_v14, %v6529_v18  ;;  %v12306_v48 = vadd.f32 %v6468_v3, %v13567_v59  ;;  %v12309_v35 = vadd.f32 %v6469_v39, %v13568_v16  ;;  %v6604_v56 = vsel %vm1908_vm12, %v12255_v50, -inf  ;;  %v13572_v28 = vld [vmem:[#allocation53_spill] sm:$0xff] }
 0x93a   : > { %v6534_v20 = vsel %vm1908_vm12, %v12273_v7, 0.0  ;;  %v6608_v63 = vsel %vm1908_vm12, %v12273_v7, -inf  ;;  %v6607_v22 = vmax.f32 %v6603_v10, %v6605_v32  ;;  %v6540_v14 = vsel %vm1908_vm12, %v12303_v36, 0.0  ;;  %v13573_v10 = vld [vmem:[#allocation69_spill] sm:$0xff] }
 0x93b   : > { %v6533_v49 = vadd.f32 %v6532_v40, %v6531_v23  ;;  %v6609_v52 = vmax.f32 %v6601_v34, %v6608_v63  ;;  %v6470_v51 = vmul.f32 %v6365_v2, %v11272_v0  ;;  %v6542_v62 = vsel %vm1908_vm12, %v12306_v48, 0.0  ;;  %v13570_v2 = vld [vmem:[#allocation51_spill] sm:$0xff]  ;;  %v13574_v34 = vld [vmem:[#allocation70_spill] sm:$0xff] }
 0x93c   : > { %v6375_v5 = vpop.permute.xlu0 %6374  ;;  %v6606_v38 = vsel %vm1908_vm12, %v12261_v24, -inf  ;;  %v6544_v23 = vsel %vm1908_vm12, %v12309_v35, 0.0  ;;  %v6614_v0 = vsel %vm1908_vm12, %v12303_v36, -inf  ;;  %v6610_v3 = vsel %vm1908_vm12, %v12276_v41, -inf }
 0x93d   : > { %v6535_v30 = vadd.f32 %v6534_v20, %v6533_v49  ;;  %v6380_v54 = vpop.permute.xlu2 %6379  ;;  %v6615_v40 = vmax.f32 %v6607_v22, %v6609_v52  ;;  %v6472_v12 = vmul.f32 %v6375_v5, %v13569_v19  ;;  %v12327_v1 = vadd.f32 %v6470_v51, %v13570_v2  ;;  %v13578_v19 = vld [vmem:[#allocation30_spill] sm:$0xff] }
 0x93e   : > { %8718 = vset.pattern.permute.xlu2 %v13545_v45  ;;  %v6370_v6 = vpop.permute.xlu1 %6369  ;;  %v6612_v63 = vsel %vm1908_vm12, %v12279_v9, -inf }
 0x93f   : > { %v6537_v25 = vadd.f32 %v6536_v61, %v6535_v30  ;;  %v6471_v18 = vmul.f32 %v6370_v6, %v11312_v43  ;;  %v6611_v49 = vmax.f32 %v6604_v56, %v6615_v40  ;;  %v13571_v43 = vld [vmem:[#allocation52_spill] sm:$0xff]  ;;  %v12335_v30 = vadd.f32 %v6472_v12, %v13572_v28  ;;  %v13575_v6 = vld [vmem:[#allocation27_spill] sm:$0xff] }
 0x940   : > { %v6546_v39 = vsel %vm1908_vm12, %v12327_v1, 0.0  ;;  %v6620_v52 = vsel %vm1908_vm12, %v12327_v1, -inf }
 0x941   : > { %v6539_v26 = vadd.f32 %v6538_v27, %v6537_v25  ;;  %v12330_v17 = vadd.f32 %v6471_v18, %v13571_v43  ;;  %v6613_v20 = vmax.f32 %v6606_v38, %v6611_v49  ;;  %v6473_v25 = vmul.f32 %v6380_v54, %v13573_v10  ;;  %v13579_v49 = vld [vmem:[#allocation10_spill] sm:$0xff]  ;;  %v13582_v10 = vld [vmem:[#allocation72_spill] sm:$0xff] }
 0x942   : > { %v6616_v54 = vsel %vm1908_vm12, %v12306_v48, -inf }
 0x943   : > { %v6541_v11 = vadd.f32 %v6540_v14, %v6539_v26  ;;  %v6621_v57 = vmax.f32 %v6613_v20, %v6614_v0  ;;  %v6548_v13 = vsel %vm1908_vm12, %v12330_v17, 0.0  ;;  %v6550_v26 = vsel %vm1908_vm12, %v12335_v30, 0.0  ;;  %v13576_v14 = vld [vmem:[#allocation7_spill] sm:$0xff] }
 0x944   : > { %v6390_v27 = vpop.permute.xlu0 %6389  ;;  %v12353_v51 = vadd.f32 %v6473_v25, %v13576_v14  ;;  %v13585_v14 = vld [vmem:[#allocation13_spill] sm:$0xff] }
 0x945   : > { %v6543_v44 = vadd.f32 %v6542_v62, %v6541_v11  ;;  %v6395_v8 = vpop.permute.xlu2 %6394  ;;  %v6617_v59 = vmax.f32 %v6610_v3, %v6621_v57  ;;  %v6475_v16 = vmul.f32 %v6390_v27, %v13575_v6  ;;  %v13577_v62 = vld [vmem:[#allocation8_spill] sm:$0xff] }
 0x946   : > { %v6385_v61 = vpop.permute.xlu1 %6384  ;;  %v6476_v12 = vmul.f32 %v6395_v8, %v13578_v19  ;;  %v6552_v43 = vsel %vm1908_vm12, %v12353_v51, 0.0  ;;  %v6626_v20 = vsel %vm1908_vm12, %v12353_v51, -inf  ;;  %v6622_v8 = vsel %vm1908_vm12, %v12330_v17, -inf }
 0x947   : > { %v6545_v46 = vadd.f32 %v6544_v23, %v6543_v44  ;;  %v6474_v55 = vmul.f32 %v6385_v61, %v13574_v34  ;;  %v6619_v22 = vmax.f32 %v6612_v63, %v6617_v59  ;;  %v6618_v23 = vsel %vm1908_vm12, %v12309_v35, -inf  ;;  %v13580_v61 = vld [vmem:[#allocation71_spill] sm:$0xff] }
 0x948   : > { %v12362_v44 = vadd.f32 %v6475_v16, %v13579_v49  ;;  %v13581_v63 = vld [vmem:[#allocation11_spill] sm:$0xff]  ;;  %v6624_v59 = vsel %vm1908_vm12, %v12335_v30, -inf  ;;  %v13587_v49 = vld [vmem:[#allocation42_spill] sm:$0xff] }
 0x949   : > { %v6547_v32 = vadd.f32 %v6546_v39, %v6545_v46  ;;  %v12356_v18 = vadd.f32 %v6474_v55, %v13577_v62  ;;  %v6627_v40 = vmax.f32 %v6619_v22, %v6620_v52  ;;  %v12374_v27 = vadd.f32 %v6476_v12, %v13581_v63 }
 0x94a   : > { %v6556_v39 = vsel %vm1908_vm12, %v12362_v44, 0.0 }
 0x94b   : > { %v6549_v56 = vadd.f32 %v6548_v13, %v6547_v32  ;;  %v6623_v0 = vmax.f32 %v6616_v54, %v6627_v40  ;;  %v6554_v46 = vsel %vm1908_vm12, %v12356_v18, 0.0  ;;  %v13583_v32 = vld [vmem:[#allocation66_spill] sm:$0xff]  ;;  %v6632_v54 = vsel %vm1908_vm12, %v12374_v27, -inf }
 0x94d   : > { %v6410_v5 = vpop.permute.xlu2 %6409  ;;  %v6551_v11 = vadd.f32 %v6550_v26, %v6549_v56  ;;  %v6625_v28 = vmax.f32 %v6618_v23, %v6623_v0  ;;  %v13584_v26 = vld [vmem:[#allocation12_spill] sm:$0xff]  ;;  %v13586_v23 = vld [vmem:[#allocation14_spill] sm:$0xff] }
 0x94e   : > { %v6479_v52 = vmul.f32 %v6410_v5, %v13583_v32  ;;  %v6628_v5 = vsel %vm1908_vm12, %v12356_v18, -inf }
 0x94f   : > { %v6553_v57 = vadd.f32 %v6552_v43, %v6551_v11  ;;  %v6633_v13 = vmax.f32 %v6625_v28, %v6626_v20  ;;  %v6558_v11 = vsel %vm1908_vm12, %v12374_v27, 0.0  ;;  %v6630_v20 = vsel %vm1908_vm12, %v12362_v44, -inf  ;;  %v13589_v28 = vld [vmem:[#allocation45_spill] sm:$0xff] }
 0x950   : > { %v6400_v38 = vpop.permute.xlu1 %6399  ;;  %v12395_v19 = vadd.f32 %v6479_v52, %v13586_v23 }
 0x951   : > { %v6477_v3 = vmul.f32 %v6400_v38, %v13580_v61  ;;  %v6555_v34 = vadd.f32 %v6554_v46, %v6553_v57  ;;  %v6629_v16 = vmax.f32 %v6622_v8, %v6633_v13  ;;  %v13588_v61 = vld [vmem:[#allocation47_spill] sm:$0xff] }
 0x953   : > { %v12383_v6 = vadd.f32 %v6477_v3, %v13584_v26  ;;  %v6557_v22 = vadd.f32 %v6556_v39, %v6555_v34  ;;  %v6631_v40 = vmax.f32 %v6624_v59, %v6629_v16  ;;  %v13591_v26 = vld [vmem:[#allocation19_spill] sm:$0xff] }
 0x955   : > { %v6560_v12 = vsel %vm1908_vm12, %v12383_v6, 0.0  ;;  %v6559_v43 = vadd.f32 %v6558_v11, %v6557_v22  ;;  %v6634_v52 = vsel %vm1908_vm12, %v12383_v6, -inf }
 0x957   : > { %v6561_v63 = vadd.f32 %v6560_v12, %v6559_v43 }
 0x958   : > { %v6405_v2 = vpop.permute.xlu0 %6404 }
 0x959   : > { %v6478_v25 = vmul.f32 %v6405_v2, %v13582_v10  ;;  %v6639_v2 = vmax.f32 %v6631_v40, %v6632_v54  ;;  %v6638_v10 = vsel %vm1908_vm12, %v12395_v19, -inf }
 0x95b   : > { %v12388_v62 = vadd.f32 %v6478_v25, %v13585_v14  ;;  %v6635_v8 = vmax.f32 %v6628_v5, %v6639_v2  ;;  %v13590_v25 = vld [vmem:[#allocation15_spill] sm:$0xff] }
 0x95d   : > { %v6562_v46 = vsel %vm1908_vm12, %v12388_v62, 0.0  ;;  %v6637_v34 = vmax.f32 %v6630_v20, %v6635_v8  ;;  %v6636_v40 = vsel %vm1908_vm12, %v12388_v62, -inf }
 0x95e   : > { %v6563_v59 = vadd.f32 %v6562_v46, %v6561_v63 }
 0x95f   : > { %v6645_v54 = vmax.f32 %v6637_v34, %v6638_v10 }
 0x960   : > { %v6425_v55 = vpop.permute.xlu2 %6424 }
 0x961   : > { %v6482_v3 = vmul.f32 %v6425_v55, %v13588_v61  ;;  %v13592_v55 = vld [vmem:[#allocation17_spill] sm:$0xff]  ;;  %v6641_v23 = vmax.f32 %v6634_v52, %v6645_v54  ;;  %v8907_v54 = vmov 256.0  }
 0x962   : > { %8877 = vrcp.f32 %v8907_v54 }
 0x963   : > { %v12414_v16 = vadd.f32 %v6482_v3, %v13591_v26  ;;  %v6643_v43 = vmax.f32 %v6636_v40, %v6641_v23  ;;  %v13593_v3 = vld [vmem:[#allocation28_spill] sm:$0xff] }
 0x968   : > { %v6415_v56 = vpop.permute.xlu1 %6414 }
 0x969   : > { %v6480_v0 = vmul.f32 %v6415_v56, %v13587_v49  ;;  %v6564_v56 = vsel %vm1908_vm12, %v12395_v19, 0.0  ;;  %v6644_v49 = vsel %vm1908_vm12, %v12414_v16, -inf }
 0x96a   : > { %v6565_v12 = vadd.f32 %v6564_v56, %v6563_v59 }
 0x96b   : > { %v12409_v13 = vadd.f32 %v6480_v0, %v13590_v25  ;;  %v6570_v25 = vsel %vm1908_vm12, %v12414_v16, 0.0 }
 0x96d   : > { %v6566_v11 = vsel %vm1908_vm12, %v12409_v13, 0.0  ;;  %v6640_v61 = vsel %vm1908_vm12, %v12409_v13, -inf }
 0x96e   : > { %v6567_v20 = vadd.f32 %v6566_v11, %v6565_v12  ;;  %v13596_v11 = vld [vmem:[#allocation37_spill] sm:$0xff]  ;;  %v13597_v12 = vld [vmem:[#allocation31_spill] sm:$0xff] }
 0x970   : > { %v6420_v38 = vpop.permute.xlu0 %6419 }
 0x971   : > { %v6481_v57 = vmul.f32 %v6420_v38, %v13589_v28 }
 0x973   : > { %v12417_v22 = vadd.f32 %v6481_v57, %v13592_v55  ;;  %v6651_v57 = vmax.f32 %v6643_v43, %v6644_v49  ;;  %v6701_v55 = vld [vmem:[%s13215_s12] sm:$0x3] }
 0x974   : > { %8344 = vmatpush.msk.msrb.mxu0 %vm6710_vm7, %v6701_v55 }
 0x975   : > { %v6568_v0 = vsel %vm1908_vm12, %v12417_v22, 0.0  ;;  %v6642_v63 = vsel %vm1908_vm12, %v12417_v22, -inf  ;;  %v6647_v34 = vmax.f32 %v6640_v61, %v6651_v57 }
 0x976   : > { %v6569_v8 = vadd.f32 %v6568_v0, %v6567_v20  ;;  %v8878_v20 = vpop.eup %8877 }
 0x977   : > { %v6649_v56 = vmax.f32 %v6642_v63, %v6647_v34  ;;  %v6591_v34 = vmul.f32 256.0, %v8878_v20  ;;  %vm6595_vm8 = vweird.f32 %v8878_v20 }
 0x978   : > { %v6440_v39 = vpop.permute.xlu2 %6439 }
 0x979   : > { %v6485_v38 = vmul.f32 %v6440_v39, %v11782_v21  ;;  %v13595_v39 = vld [vmem:[#allocation24_spill] sm:$0xff] }
 0x97b   : > { %v12435_v21 = vadd.f32 %v6485_v38, %v13593_v3 }
 0x97d   : > { %v6576_v3 = vsel %vm1908_vm12, %v12435_v21, 0.0 }
 0x980   : > { %v6430_v32 = vpop.permute.xlu1 %6429 }
 0x981   : > { %v6483_v5 = vmul.f32 %v6430_v32, %v11721_v60  ;;  %v13594_v60 = vld [vmem:[#allocation21_spill] sm:$0xff]  ;;  %v6650_v32 = vsel %vm1908_vm12, %v12435_v21, -inf }
 0x983   : > { %v12438_v28 = vadd.f32 %v6483_v5, %v13594_v60 }
 0x985   : > { %v6572_v52 = vsel %vm1908_vm12, %v12438_v28, 0.0 }
 0x988   : > { %v6435_v14 = vpop.permute.xlu0 %6434 }
 0x989   : > { %v6484_v2 = vmul.f32 %v6435_v14, %v11748_v58  ;;  %v6646_v14 = vsel %vm1908_vm12, %v12438_v28, -inf }
 0x98b   : > { %v12443_v10 = vadd.f32 %v6484_v2, %v13595_v39 }
 0x98d   : > { %v6574_v40 = vsel %vm1908_vm12, %v12443_v10, 0.0  ;;  %v6648_v23 = vsel %vm1908_vm12, %v12443_v10, -inf }
 0x990   : > { %v6455_v46 = vpop.permute.xlu2 %6454 }
 0x991   : > { %v6488_v58 = vmul.f32 %v6455_v46, %v11864_v37  ;;  %v6571_v37 = vadd.f32 %v6570_v25, %v6569_v8 }
 0x993   : > { %v12462_v38 = vadd.f32 %v6488_v58, %v13596_v11  ;;  %v6573_v5 = vadd.f32 %v6572_v52, %v6571_v37  ;;  %v13598_v58 = vld [vmem:[#allocation34_spill] sm:$0xff] }
 0x995   : > { %v6575_v2 = vadd.f32 %v6574_v40, %v6573_v5  ;;  %v6656_v43 = vsel %vm1908_vm12, %v12462_v38, -inf  ;;  %v6582_v37 = vsel %vm1908_vm12, %v12462_v38, 0.0 }
 0x997   : > { %v6577_v39 = vadd.f32 %v6576_v3, %v6575_v2 }
 0x998   : > { %v6445_v59 = vpop.permute.xlu1 %6444 }
 0x999   : > { %v6486_v26 = vmul.f32 %v6445_v59, %v11806_v29  ;;  %v6657_v29 = vmax.f32 %v6649_v56, %v6650_v32 }
 0x99b   : > { %v12467_v49 = vadd.f32 %v6486_v26, %v13597_v12  ;;  %v6653_v0 = vmax.f32 %v6646_v14, %v6657_v29 }
 0x99d   : > { %v6658_v46 = vmax.f32 %v6648_v23, %v6653_v0  ;;  %v6578_v60 = vsel %vm1908_vm12, %v12467_v49, 0.0  ;;  %v6652_v57 = vsel %vm1908_vm12, %v12467_v49, -inf }
 0x99e   : > { %v6579_v59 = vadd.f32 %v6578_v60, %v6577_v39  ;;  %v8739_v39 = vld [vmem:[%s13214_s11] ss:$0 sm:$0xff] }
 0x99f   : > { %v6655_v63 = vmax.f32 %v6656_v43, %v6658_v46 }
 0x9a0   : > { %v6450_v61 = vpop.permute.xlu0 %6449 }
 0x9a1   : > { %v6487_v8 = vmul.f32 %v6450_v61, %v11840_v47  ;;  %v6659_v32 = vmax.f32 %v6655_v63, %v6652_v57  ;;  %v6592_v47 = vsub.f32 1.0, %v6591_v34 }
 0x9a3   : > { %v12479_v25 = vadd.f32 %v6487_v8, %v13598_v58  ;;  %v6593_v29 = vmul.f32 %v8878_v20, %v6592_v47 }
 0x9a5   : > { %v6580_v52 = vsel %vm1908_vm12, %v12479_v25, 0.0  ;;  %v6654_v26 = vsel %vm1908_vm12, %v12479_v25, -inf  ;;  %v6594_v2 = vadd.f32 %v8878_v20, %v6593_v29 }
 0x9a6   : > { %v6581_v55 = vadd.f32 %v6580_v52, %v6579_v59  ;;  %v6660_v56 = vmax.f32 %v6654_v26, %v6659_v32 }
 0x9a7   : > { %v6596_v3 = vsel %vm6595_vm8, %v8878_v20, %v6594_v2  ;;  %v8740_v20 = vld [vmem:[%s13216_s13] ss:$0 sm:$0xff]  ;;  %vm6980_vm8 = vcmask 1042434  }
 0x9a8   : > { %v6583_v54 = vadd.f32 %v6582_v37, %v6581_v55  ;;  %v6661_v14 = vrot.slane %v6660_v56, 4 }
 0x9aa   : > { %v6584_v40 = vrot.slane %v6583_v54, 4  ;;  %v6662_v11 = vmax.f32 %v6660_v56, %v6661_v14 }
 0x9ac   : > { %v6585_v5 = vadd.f32 %v6584_v40, %v6583_v54  ;;  %v6663_v23 = vrot.slane %v6662_v11, 2 }
 0x9ae   : > { %v6586_v12 = vrot.slane %v6585_v5, 2  ;;  %v6664_v0 = vmax.f32 %v6662_v11, %v6663_v23 }
 0x9b0   : > { %v6587_v43 = vadd.f32 %v6586_v12, %v6585_v5  ;;  %v6665_v61 = vrot.slane %v6664_v0, 1 }
 0x9b2   : > { %v6588_v46 = vrot.slane %v6587_v43, 1  ;;  %v6666_v8 = vmax.f32 %v6664_v0, %v6665_v61 }
 0x9b4   : > { %v6589_v60 = vadd.f32 %v6588_v46, %v6587_v43 }
 0x9b6   : > { %v6597_v57 = vmul.f32 %v6596_v3, %v6589_v60 }
 0x9b8   : > { %v6668_v63 = vsel %vm2229_vm13, %v6597_v57, %v6666_v8 }
 0x9b9   : > { %8343 = vmatmul.msk.f32.vlgmr.msra.gmra.mxu0 %vm1908_vm12, %v6668_v63 }
 0xa36   : > { %v6697_v58 = vpop.f32.mrf.mxu0 }
 0xa37   : > { %v6698_v34 = vadd.f32 %v8739_v39, %v6697_v58 }
 0xa39   : > { %v6700_v59 = vmax.f32 %v6698_v34, 0.0 }
 0xa3b   : > { %8345 = vmatmul.msk.f32.vlgmr.msrb.gmra.mxu0 %vm6706_vm9, %v6700_v59  ;;  %vm6982_vm9 = vcmask 1043459  }
 0xab8   : > { %v6731_v32 = vpop.f32.mrf.mxu0 }
 0xab9   : > { %v6732_v52 = vadd.f32 %v8740_v20, %v6731_v32 }
 0xabb   : > { %v6735_v26 = vrot.slane %v6732_v52, 1 }
 0xabd   : > { %v6737_v55 = vadd.f32 %v6735_v26, %v6732_v52 }
 0xabf   : > { %v8346_v56 = vmul.f32 -1.442695, %v6737_v55 }
 0xac1   : > { %8879 = vpow2.f32 %v8346_v56 }
 0xac7   : > { %v8880_v37 = vpop.eup %8879 }
 0xac8   : > { %v6741_v47 = vadd.f32 1.0, %v8880_v37 }
 0xaca   : > { %8881 = vrcp.f32 %v6741_v47  ;;  %v6753_v11 = vand.u32 2147483648, %v6741_v47  ;;  %v6751_v5 = vand.u32 2147483647, %v6741_v47  ;;  %vm6747_vm11 = vweird.f32 %v6741_v47 }
 0xacc   : > { %v6754_v12 = vor.u32 1.1754944e-38, %v6753_v11  ;;  %vm6752_vm15 = vcmp.eq.f32.partialorder %v6751_v5, 8.507059e+37 }
 0xad0   : > { %v8882_v54 = vpop.eup %8881 }
 0xad1   : > { %v6743_v14 = vmul.f32 %v8882_v54, %v6741_v47  ;;  %vm6748_vm13 = vweird.f32 %v8882_v54 }
 0xad2   : > { %vm6749_vm14 = vmor %vm6747_vm11, %vm6748_vm13  ;;  %vm7006_vm11 = vcmask 23552  }
 0xad3   : > { %v6744_v40 = vsub.f32 1.0, %v6743_v14 }
 0xad5   : > { %v6745_v29 = vmul.f32 %v8882_v54, %v6744_v40 }
 0xad7   : > { %v6746_v23 = vadd.f32 %v8882_v54, %v6745_v29 }
 0xad9   : > { %v6750_v0 = vsel %vm6749_vm14, %v8882_v54, %v6746_v23  ;;  %vm7010_vm14 = vcmask 154624  }
 0xada   : > { %v6755_v2 = vsel %vm6752_vm15, %v6754_v12, %v6750_v0  ;;  %vm7275_vm15 = vcmask 179200  }
 0xadb   : > { %v12495_v43 = vperm.slane %v6755_v2, 0 }
 0xadd   : > { %v12499_v46 = vmul.f32 %v12495_v43, %v12237_v15  ;;  %v12503_v61 = vmul.f32 %v12495_v43, %v12227_v4  ;;  %v12507_v3 = vmul.f32 %v12495_v43, %v12231_v33  ;;  %v12517_v4 = vmul.f32 %v12495_v43, %v12252_v53 }
 0xade   : > { %v12521_v33 = vmul.f32 %v12495_v43, %v12255_v50  ;;  %v12525_v15 = vmul.f32 %v12495_v43, %v12242_v31  ;;  %v12535_v50 = vmul.f32 %v12495_v43, %v12273_v7  ;;  %v12539_v31 = vmul.f32 %v12495_v43, %v12276_v41 }
 0xadf   : > { %v6796_v60 = vsel %vm1908_vm12, %v12499_v46, -inf  ;;  %v6793_v57 = vsel %vm1908_vm12, %v12503_v61, -inf  ;;  %v6790_v8 = vsel %vm1908_vm12, %v12507_v3, -inf  ;;  %v6802_v63 = vsel %vm1908_vm12, %v12517_v4, -inf }
 0xae0   : > { %6797 = vmax.xlane.f32.xlu2 %v6796_v60  ;;  %6794 = vmax.xlane.f32.xlu0 %v6793_v57  ;;  %v6805_v39 = vsel %vm1908_vm12, %v12521_v33, -inf  ;;  %v6799_v53 = vsel %vm1908_vm12, %v12525_v15, -inf  ;;  %v12543_v58 = vmul.f32 %v12495_v43, %v12261_v24  ;;  %v6811_v34 = vsel %vm1908_vm12, %v12535_v50, -inf }
 0xae1   : > { %6791 = vmax.xlane.f32.xlu1 %v6790_v8  ;;  %v6814_v59 = vsel %vm1908_vm12, %v12539_v31, -inf  ;;  %v12553_v41 = vmul.f32 %v12495_v43, %v12303_v36  ;;  %v12557_v24 = vmul.f32 %v12495_v43, %v12306_v48  ;;  %v12561_v20 = vmul.f32 %v12495_v43, %v12279_v9 }
 0xae2   : > { %v6808_v7 = vsel %vm1908_vm12, %v12543_v58, -inf  ;;  %v12571_v48 = vmul.f32 %v12495_v43, %v12327_v1  ;;  %v12575_v9 = vmul.f32 %v12495_v43, %v12330_v17  ;;  %v12579_v26 = vmul.f32 %v12495_v43, %v12309_v35 }
 0xae3   : > { %v6820_v32 = vsel %vm1908_vm12, %v12553_v41, -inf  ;;  %v6823_v52 = vsel %vm1908_vm12, %v12557_v24, -inf  ;;  %v6817_v36 = vsel %vm1908_vm12, %v12561_v20, -inf  ;;  %v12589_v17 = vmul.f32 %v12495_v43, %v12353_v51 }
 0xae4   : > { %13599 = vst [vmem:[#allocation75_spill] sm:$0xff] %v12575_v9  ;;  %v6829_v55 = vsel %vm1908_vm12, %v12571_v48, -inf  ;;  %v6832_v56 = vsel %vm1908_vm12, %v12575_v9, -inf  ;;  %v6826_v1 = vsel %vm1908_vm12, %v12579_v26, -inf  ;;  %v12593_v35 = vmul.f32 %v12495_v43, %v12356_v18 }
 0xae5   : > { %v12597_v37 = vmul.f32 %v12495_v43, %v12335_v30  ;;  %v6838_v47 = vsel %vm1908_vm12, %v12589_v17, -inf  ;;  %v12607_v18 = vmul.f32 %v12495_v43, %v12374_v27  ;;  %v12611_v30 = vmul.f32 %v12495_v43, %v12383_v6 }
 0xae6   : > { %v6841_v54 = vsel %vm1908_vm12, %v12593_v35, -inf  ;;  %v12615_v14 = vmul.f32 %v12495_v43, %v12362_v44  ;;  %v12625_v6 = vmul.f32 %v12495_v43, %v12395_v19  ;;  %v12629_v44 = vmul.f32 %v12495_v43, %v12409_v13 }
 0xae7   : > { %13600 = vst [vmem:[#allocation76_spill] sm:$0xff] %v12597_v37  ;;  %v6835_v51 = vsel %vm1908_vm12, %v12597_v37, -inf  ;;  %v6847_v40 = vsel %vm1908_vm12, %v12607_v18, -inf  ;;  %v6850_v11 = vsel %vm1908_vm12, %v12611_v30, -inf  ;;  %v12633_v29 = vmul.f32 %v12495_v43, %v12388_v62 }
 0xae8   : > { %6803 = vmax.xlane.f32.xlu2 %v6802_v63  ;;  %6806 = vmax.xlane.f32.xlu0 %v6805_v39  ;;  %v6844_v27 = vsel %vm1908_vm12, %v12615_v14, -inf  ;;  %v6856_v5 = vsel %vm1908_vm12, %v12625_v6, -inf  ;;  %v6859_v23 = vsel %vm1908_vm12, %v12629_v44, -inf  ;;  %v12643_v13 = vmul.f32 %v12495_v43, %v12414_v16 }
 0xae9   : > { %6800 = vmax.xlane.f32.xlu1 %v6799_v53  ;;  %v6853_v19 = vsel %vm1908_vm12, %v12633_v29, -inf  ;;  %v12647_v62 = vmul.f32 %v12495_v43, %v12438_v28  ;;  %v12651_v12 = vmul.f32 %v12495_v43, %v12417_v22  ;;  %v12661_v28 = vmul.f32 %v12495_v43, %v12435_v21 }
 0xaea   : > { %v6865_v0 = vsel %vm1908_vm12, %v12643_v13, -inf  ;;  %v12665_v22 = vmul.f32 %v12495_v43, %v12467_v49  ;;  %v12669_v60 = vmul.f32 %v12495_v43, %v12443_v10  ;;  %v12679_v49 = vmul.f32 %v12495_v43, %v12462_v38 }
 0xaeb   : > { %v6868_v2 = vsel %vm1908_vm12, %v12647_v62, -inf  ;;  %v6862_v16 = vsel %vm1908_vm12, %v12651_v12, -inf  ;;  %13601 = vst [vmem:[#allocation54_spill] sm:$0xff] %v12661_v28  ;;  %v6874_v57 = vsel %vm1908_vm12, %v12661_v28, -inf  ;;  %v12683_v10 = vmul.f32 %v12495_v43, %v12479_v25 }
 0xaec   : > { %13602 = vst [vmem:[#allocation49_spill] sm:$0xff] %v12665_v22  ;;  %v6877_v8 = vsel %vm1908_vm12, %v12665_v22, -inf  ;;  %v6871_v21 = vsel %vm1908_vm12, %v12669_v60, -inf  ;;  %v6883_v63 = vsel %vm1908_vm12, %v12679_v49, -inf  ;;  %v7059_v39 = vsel %vm1908_vm12, %v12597_v37, 0.0 }
 0xaed   : > { %13603 = vst [vmem:[#allocation50_spill] sm:$0xff] %v12669_v60  ;;  %v6880_v53 = vsel %vm1908_vm12, %v12683_v10, -inf  ;;  %v7047_v38 = vsel %vm1908_vm12, %v12557_v24, 0.0  ;;  %v7044_v25 = vsel %vm1908_vm12, %v12553_v41, 0.0  ;;  %v7053_v43 = vsel %vm1908_vm12, %v12571_v48, 0.0 }
 0xaee   : > { %13604 = vst [vmem:[#allocation55_spill] sm:$0xff] %v12679_v49 }
 0xaef   : > { %13605 = vst [vmem:[#allocation56_spill] sm:$0xff] %v12683_v10 }
 0xaf0   : > { %6812 = vmax.xlane.f32.xlu2 %v6811_v34  ;;  %6815 = vmax.xlane.f32.xlu0 %v6814_v59  ;;  %v7032_v34 = vsel %vm1908_vm12, %v12543_v58, 0.0  ;;  %v7077_v59 = vsel %vm1908_vm12, %v12633_v29, 0.0 }
 0xaf1   : > { %6809 = vmax.xlane.f32.xlu1 %v6808_v7  ;;  %v7050_v7 = vsel %vm1908_vm12, %v12579_v26, 0.0 }
 0xaf8   : > { %6821 = vmax.xlane.f32.xlu2 %v6820_v32  ;;  %6824 = vmax.xlane.f32.xlu0 %v6823_v52  ;;  %v7080_v32 = vsel %vm1908_vm12, %v12625_v6, 0.0  ;;  %v7014_v52 = vsel %vm1908_vm12, %v12507_v3, 0.0 }
 0xaf9   : > { %6818 = vmax.xlane.f32.xlu1 %v6817_v36  ;;  %v7056_v36 = vsel %vm1908_vm12, %v12575_v9, 0.0 }
 0xb00   : > { %6830 = vmax.xlane.f32.xlu2 %v6829_v55  ;;  %6833 = vmax.xlane.f32.xlu0 %v6832_v56  ;;  %v7089_v55 = vsel %vm1908_vm12, %v12643_v13, 0.0  ;;  %v7020_v56 = vsel %vm1908_vm12, %v12499_v46, 0.0 }
 0xb01   : > { %6827 = vmax.xlane.f32.xlu1 %v6826_v1  ;;  %v7017_v1 = vsel %vm1908_vm12, %v12503_v61, 0.0 }
 0xb08   : > { %6839 = vmax.xlane.f32.xlu2 %v6838_v47  ;;  %6842 = vmax.xlane.f32.xlu0 %v6841_v54 }
 0xb09   : > { %6836 = vmax.xlane.f32.xlu1 %v6835_v51 }
 0xb10   : > { %6848 = vmax.xlane.f32.xlu2 %v6847_v40  ;;  %6851 = vmax.xlane.f32.xlu0 %v6850_v11  ;;  %v7098_v40 = vsel %vm1908_vm12, %v12661_v28, 0.0  ;;  %v7062_v11 = vsel %vm1908_vm12, %v12589_v17, 0.0 }
 0xb11   : > { %6845 = vmax.xlane.f32.xlu1 %v6844_v27  ;;  %v7023_v27 = vsel %vm1908_vm12, %v12525_v15, 0.0 }
 0xb18   : > { %6857 = vmax.xlane.f32.xlu2 %v6856_v5  ;;  %6860 = vmax.xlane.f32.xlu0 %v6859_v23 }
 0xb19   : > { %6854 = vmax.xlane.f32.xlu1 %v6853_v19 }
 0xb20   : > { %6866 = vmax.xlane.f32.xlu2 %v6865_v0  ;;  %6869 = vmax.xlane.f32.xlu0 %v6868_v2  ;;  %v13606_v0 = vlaneseq }
 0xb21   : > { %6863 = vmax.xlane.f32.xlu1 %v6862_v16  ;;  %v7107_v16 = vsel %vm1908_vm12, %v12679_v49, 0.0 }
 0xb22   : > { %v12722_v2 = vand.u32 127, %v13606_v0 }
 0xb28   : > { %6875 = vmax.xlane.f32.xlu2 %v6874_v57  ;;  %6878 = vmax.xlane.f32.xlu0 %v6877_v8  ;;  %v7026_v57 = vsel %vm1908_vm12, %v12517_v4, 0.0  ;;  %v7065_v8 = vsel %vm1908_vm12, %v12593_v35, 0.0 }
 0xb29   : > { %6872 = vmax.xlane.f32.xlu1 %v6871_v21  ;;  %v12731_v21 = vadd.s32 4294967288, %v12722_v2 }
 0xb30   : > { %6884 = vmax.xlane.f32.xlu2 %v6883_v63  ;;  %7060 = vadd.xlane.f32.xlu0 %v7059_v39 }
 0xb31   : > { %6881 = vmax.xlane.f32.xlu1 %v6880_v53 }
 0xb38   : > { %7048 = vadd.xlane.f32.xlu2 %v7047_v38  ;;  %7033 = vadd.xlane.f32.xlu0 %v7032_v34 }
 0xb39   : > { %7045 = vadd.xlane.f32.xlu1 %v7044_v25 }
 0xb40   : > { %7054 = vadd.xlane.f32.xlu2 %v7053_v43  ;;  %7078 = vadd.xlane.f32.xlu0 %v7077_v59  ;;  %v7068_v59 = vsel %vm1908_vm12, %v12615_v14, 0.0 }
 0xb41   : > { %7051 = vadd.xlane.f32.xlu1 %v7050_v7 }
 0xb48   : > { %7081 = vadd.xlane.f32.xlu0 %v7080_v32  ;;  %7015 = vadd.xlane.f32.xlu2 %v7014_v52  ;;  %v7029_v52 = vsel %vm1908_vm12, %v12521_v33, 0.0 }
 0xb49   : > { %7057 = vadd.xlane.f32.xlu1 %v7056_v36 }
 0xb50   : > { %7090 = vadd.xlane.f32.xlu0 %v7089_v55  ;;  %7021 = vadd.xlane.f32.xlu2 %v7020_v56 }
 0xb51   : > { %7018 = vadd.xlane.f32.xlu1 %v7017_v1 }
 0xb53   : > { %v6798_v47 = vpop.xlane.xlu2 %6797  ;;  %v6795_v54 = vpop.xlane.xlu0 %6794 }
 0xb54   : > { %v6792_v51 = vpop.xlane.xlu1 %6791  ;;  %v6925_v34 = vperm.slane %v6798_v47, %v12722_v2  ;;  %v6922_v25 = vperm.slane %v6795_v54, %v12731_v21 }
 0xb55   : > { %v6920_v43 = vperm.slane %v6792_v51, %v12722_v2 }
 0xb57   : > { %v6924_v1 = vsel %vm6923_vm2, %v6922_v25, %v6920_v43 }
 0xb58   : > { %7099 = vadd.xlane.f32.xlu0 %v7098_v40  ;;  %7063 = vadd.xlane.f32.xlu2 %v7062_v11 }
 0xb59   : > { %7024 = vadd.xlane.f32.xlu1 %v7023_v27 }
 0xb5b   : > { %v6804_v5 = vpop.xlane.xlu2 %6803  ;;  %v6807_v23 = vpop.xlane.xlu0 %6806 }
 0xb5c   : > { %v6801_v19 = vpop.xlane.xlu1 %6800  ;;  %v6928_v7 = vperm.slane %v6804_v5, %v12722_v2  ;;  %v6929_v32 = vperm.slane %v6807_v23, %v12731_v21 }
 0xb5d   : > { %v6926_v53 = vperm.slane %v6801_v19, %v12731_v21 }
 0xb5e   : > { %v6930_v47 = vsel %vm6923_vm2, %v6929_v32, %v6928_v7 }
 0xb5f   : > { %v6927_v36 = vsel %vm6923_vm2, %v6926_v53, %v6925_v34 }
 0xb60   : > { %7108 = vadd.xlane.f32.xlu0 %v7107_v16  ;;  %7027 = vadd.xlane.f32.xlu2 %v7026_v57  ;;  %v6971_v54 = vsel %vm6970_vm0, %v6927_v36, %v6924_v1  ;;  %v7038_v36 = vsel %vm1908_vm12, %v12539_v31, 0.0 }
 0xb61   : > { %7066 = vadd.xlane.f32.xlu1 %v7065_v8  ;;  %v6973_v57 = vsel %vm6972_vm3, %v6930_v47, %v6971_v54 }
 0xb63   : > { %v6813_v63 = vpop.xlane.xlu2 %6812  ;;  %v6816_v39 = vpop.xlane.xlu0 %6815 }
 0xb64   : > { %v6810_v38 = vpop.xlane.xlu1 %6809  ;;  %v6932_v55 = vperm.slane %v6813_v63, %v12731_v21  ;;  %v6934_v19 = vperm.slane %v6816_v39, %v12722_v2  ;;  %v7035_v63 = vsel %vm1908_vm12, %v12535_v50, 0.0 }
 0xb65   : > { %v6931_v56 = vperm.slane %v6810_v38, %v12722_v2  ;;  %v7071_v38 = vsel %vm1908_vm12, %v12607_v18, 0.0 }
 0xb67   : > { %v6933_v11 = vsel %vm6923_vm2, %v6932_v55, %v6931_v56  ;;  %v7074_v56 = vsel %vm1908_vm12, %v12611_v30, 0.0 }
 0xb68   : > { %7069 = vadd.xlane.f32.xlu2 %v7068_v59  ;;  %v6975_v53 = vsel %vm6974_vm10, %v6933_v11, %v6973_v57 }
 0xb69   : > { %7030 = vadd.xlane.f32.xlu1 %v7029_v52 }
 0xb6b   : > { %v6822_v51 = vpop.xlane.xlu2 %6821  ;;  %v6825_v40 = vpop.xlane.xlu0 %6824 }
 0xb6c   : > { %v6937_v27 = vperm.slane %v6822_v51, %v12722_v2  ;;  %v6938_v5 = vperm.slane %v6825_v40, %v12731_v21  ;;  %v6819_v23 = vpop.xlane.xlu1 %6818 }
 0xb6d   : > { %v6935_v0 = vperm.slane %v6819_v23, %v12731_v21 }
 0xb6e   : > { %v6939_v16 = vsel %vm6923_vm2, %v6938_v5, %v6937_v27 }
 0xb6f   : > { %v6936_v8 = vsel %vm6923_vm2, %v6935_v0, %v6934_v19  ;;  %v7083_v19 = vsel %vm1908_vm12, %v12629_v44, 0.0 }
 0xb70   : > { %7036 = vadd.xlane.f32.xlu2 %v7035_v63  ;;  %v6977_v39 = vsel %vm6976_vm4, %v6936_v8, %v6975_v53 }
 0xb71   : > { %7072 = vadd.xlane.f32.xlu1 %v7071_v38  ;;  %v6993_v43 = vsel %vm6992_vm5, 0.0, %v6977_v39 }
 0xb73   : > { %v6831_v34 = vpop.xlane.xlu2 %6830  ;;  %v6834_v25 = vpop.xlane.xlu0 %6833 }
 0xb74   : > { %v6941_v59 = vperm.slane %v6831_v34, %v12731_v21  ;;  %v6828_v7 = vpop.xlane.xlu1 %6827  ;;  %6997 = vrot.lane.b32.xlu0 %v6993_v43, %s8908_s22  ;;  %v6943_v11 = vperm.slane %v6834_v25, %v12722_v2  ;;  %v7092_v25 = vsel %vm1908_vm12, %v12647_v62, 0.0 }
 0xb75   : > { %v6940_v32 = vperm.slane %v6828_v7, %v12722_v2 }
 0xb77   : > { %v6942_v52 = vsel %vm6923_vm2, %v6941_v59, %v6940_v32  ;;  %v7086_v59 = vsel %vm1908_vm12, %v12651_v12, 0.0 }
 0xb78   : > { %v6979_v55 = vsel %vm6978_vm6, %v6942_v52, %v6939_v16  ;;  %7039 = vadd.xlane.f32.xlu2 %v7038_v36  ;;  %v7041_v16 = vsel %vm1908_vm12, %v12561_v20, 0.0 }
 0xb79   : > { %7075 = vadd.xlane.f32.xlu1 %v7074_v56 }
 0xb7b   : > { %v6840_v1 = vpop.xlane.xlu2 %6839  ;;  %v6843_v47 = vpop.xlane.xlu0 %6842 }
 0xb7c   : > { %v6946_v54 = vperm.slane %v6840_v1, %v12722_v2  ;;  %v6947_v51 = vperm.slane %v6843_v47, %v12731_v21  ;;  %v6837_v40 = vpop.xlane.xlu1 %6836 }
 0xb7d   : > { %v6944_v27 = vperm.slane %v6837_v40, %v12731_v21 }
 0xb7e   : > { %v6948_v5 = vsel %vm6923_vm2, %v6947_v51, %v6946_v54  ;;  %v7101_v51 = vsel %vm1908_vm12, %v12665_v22, 0.0 }
 0xb7f   : > { %v6945_v23 = vsel %vm6923_vm2, %v6944_v27, %v6943_v11  ;;  %v7095_v11 = vsel %vm1908_vm12, %v12669_v60, 0.0 }
 0xb80   : > { %v6981_v0 = vsel %vm6980_vm8, %v6945_v23, %v6979_v55  ;;  %7084 = vadd.xlane.f32.xlu2 %v7083_v19 }
 0xb81   : > { %7042 = vadd.xlane.f32.xlu1 %v7041_v16  ;;  %v6983_v57 = vsel %vm6982_vm9, %v6948_v5, %v6981_v0  ;;  %v8909_v5 = vmov 32.0  }
 0xb82   : > { %8883 = vrcp.f32 %v8909_v5 }
 0xb83   : > { %v6849_v8 = vpop.xlane.xlu2 %6848  ;;  %v6852_v63 = vpop.xlane.xlu0 %6851 }
 0xb84   : > { %v6950_v53 = vperm.slane %v6849_v8, %v12731_v21  ;;  %v6846_v38 = vpop.xlane.xlu1 %6845  ;;  %v6952_v56 = vperm.slane %v6852_v63, %v12722_v2 }
 0xb85   : > { %v6949_v39 = vperm.slane %v6846_v38, %v12722_v2 }
 0xb87   : > { %v6951_v34 = vsel %vm6923_vm2, %v6950_v53, %v6949_v39  ;;  %v7104_v53 = vsel %vm1908_vm12, %v12683_v10, 0.0 }
 0xb88   : > { %v6984_v43 = vsel %vm6970_vm0, %v6951_v34, %v6983_v57  ;;  %7093 = vadd.xlane.f32.xlu2 %v7092_v25  ;;  %v8884_v63 = vpop.eup %8883 }
 0xb89   : > { %7087 = vadd.xlane.f32.xlu1 %v7086_v59  ;;  %v7111_v25 = vmul.f32 32.0, %v8884_v63  ;;  %vm7115_vm13 = vweird.f32 %v8884_v63 }
 0xb8b   : > { %v6858_v7 = vpop.xlane.xlu2 %6857  ;;  %v6861_v32 = vpop.xlane.xlu0 %6860 }
 0xb8c   : > { %v6955_v52 = vperm.slane %v6858_v7, %v12722_v2  ;;  %v6956_v36 = vperm.slane %v6861_v32, %v12731_v21  ;;  %v6855_v55 = vpop.xlane.xlu1 %6854 }
 0xb8d   : > { %v6953_v1 = vperm.slane %v6855_v55, %v12731_v21 }
 0xb8e   : > { %v6957_v47 = vsel %vm6923_vm2, %v6956_v36, %v6955_v52 }
 0xb8f   : > { %v6954_v54 = vsel %vm6923_vm2, %v6953_v1, %v6952_v56  ;;  %v7112_v56 = vsub.f32 1.0, %v7111_v25 }
 0xb90   : > { %v6985_v40 = vsel %vm6972_vm3, %v6954_v54, %v6984_v43  ;;  %7102 = vadd.xlane.f32.xlu2 %v7101_v51 }
 0xb91   : > { %7096 = vadd.xlane.f32.xlu1 %v7095_v11  ;;  %v6986_v27 = vsel %vm6974_vm10, %v6957_v47, %v6985_v40  ;;  %v7113_v54 = vmul.f32 %v8884_v63, %v7112_v56 }
 0xb93   : > { %v6867_v23 = vpop.xlane.xlu2 %6866  ;;  %v6870_v19 = vpop.xlane.xlu0 %6869 }
 0xb94   : > { %v6959_v0 = vperm.slane %v6867_v23, %v12731_v21  ;;  %v6864_v16 = vpop.xlane.xlu1 %6863  ;;  %v6961_v32 = vperm.slane %v6870_v19, %v12722_v2 }
 0xb95   : > { %v6958_v57 = vperm.slane %v6864_v16, %v12722_v2 }
 0xb97   : > { %v6960_v8 = vsel %vm6923_vm2, %v6959_v0, %v6958_v57 }
 0xb98   : > { %v12811_v38 = vsel %vm6976_vm4, %v6960_v8, %v6986_v27  ;;  %v7114_v27 = vadd.f32 %v8884_v63, %v7113_v54 }
 0xb99   : > { %7105 = vadd.xlane.f32.xlu1 %v7104_v53 }
 0xb9a   : > { %v12826_v19 = vsel %vm7115_vm13, %v8884_v63, %v7114_v27 }
 0xb9b   : > { %v6876_v39 = vpop.xlane.xlu2 %6875  ;;  %v6879_v34 = vpop.xlane.xlu0 %6878 }
 0xb9c   : > { %v6964_v43 = vperm.slane %v6876_v39, %v12722_v2  ;;  %v6965_v59 = vperm.slane %v6879_v34, %v12731_v21  ;;  %v6873_v7 = vpop.xlane.xlu1 %6872 }
 0xb9d   : > { %v6962_v52 = vperm.slane %v6873_v7, %v12731_v21 }
 0xb9e   : > { %v6966_v36 = vsel %vm6923_vm2, %v6965_v59, %v6964_v43 }
 0xb9f   : > { %v6963_v55 = vsel %vm6923_vm2, %v6962_v52, %v6961_v32 }
 0xba0   : > { %v6988_v1 = vsel %vm6978_vm6, %v6966_v36, %v6963_v55 }
 0xba3   : > { %v6885_v47 = vpop.xlane.xlu2 %6884 }
 0xba4   : > { %v6968_v51 = vperm.slane %v6885_v47, %v12731_v21  ;;  %v6882_v40 = vpop.xlane.xlu1 %6881 }
 0xba5   : > { %v6967_v11 = vperm.slane %v6882_v40, %v12722_v2 }
 0xba7   : > { %v6969_v5 = vsel %vm6923_vm2, %v6968_v51, %v6967_v11  ;;  %v7061_v51 = vpop.xlane.xlu0 %7060 }
 0xba8   : > { %v12824_v23 = vsel %vm6980_vm8, %v6969_v5, %v6988_v1 }
 0xbab   : > { %v7049_v0 = vpop.xlane.xlu2 %7048 }
 0xbac   : > { %v7128_v16 = vmul.f32 %v12826_v19, %v7049_v0  ;;  %v7046_v57 = vpop.xlane.xlu1 %7045 }
 0xbad   : > { %v7127_v8 = vmul.f32 %v12826_v19, %v7046_v57 }
 0xbae   : > { %v7197_v53 = vperm.slane %v7128_v16, %v12731_v21 }
 0xbaf   : > { %v7196_v39 = vperm.slane %v7127_v8, %v12722_v2  ;;  %v7034_v5 = vpop.xlane.xlu0 %7033 }
 0xbb1   : > { %v7198_v34 = vsel %vm6923_vm2, %v7197_v53, %v7196_v39 }
 0xbb3   : > { %v7055_v25 = vpop.xlane.xlu2 %7054 }
 0xbb4   : > { %v7130_v43 = vmul.f32 %v12826_v19, %v7055_v25  ;;  %v7052_v59 = vpop.xlane.xlu1 %7051 }
 0xbb5   : > { %v7129_v7 = vmul.f32 %v12826_v19, %v7052_v59 }
 0xbb6   : > { %v7200_v63 = vperm.slane %v7130_v43, %v12731_v21 }
 0xbb7   : > { %v7199_v32 = vperm.slane %v7129_v7, %v12722_v2  ;;  %v7079_v57 = vpop.xlane.xlu0 %7078  ;;  %v7123_v7 = vmul.f32 %v12826_v19, %v7034_v5 }
 0xbb9   : > { %v7201_v52 = vsel %vm6923_vm2, %v7200_v63, %v7199_v32  ;;  %v7190_v5 = vperm.slane %v7123_v7, %v12722_v2 }
 0xbba   : > { %v12839_v36 = vsel %vm6978_vm6, %v7201_v52, %v7198_v34 }
 0xbbb   : > { %v7016_v55 = vpop.xlane.xlu2 %7015 }
 0xbbc   : > { %v7058_v56 = vpop.xlane.xlu1 %7057  ;;  %v7117_v10 = vmul.f32 %v12826_v19, %v7016_v55 }
 0xbbd   : > { %v7131_v22 = vmul.f32 %v12826_v19, %v7058_v56 }
 0xbbf   : > { %v7082_v39 = vpop.xlane.xlu0 %7081 }
 0xbc3   : > { %v7022_v1 = vpop.xlane.xlu2 %7021 }
 0xbc4   : > { %v7019_v47 = vpop.xlane.xlu1 %7018  ;;  %v7119_v63 = vmul.f32 %v12826_v19, %v7022_v1 }
 0xbc5   : > { %v7118_v32 = vmul.f32 %v12826_v19, %v7019_v47 }
 0xbc6   : > { %v7184_v1 = vperm.slane %v7119_v63, %v12722_v2 }
 0xbc7   : > { %v7182_v47 = vperm.slane %v7118_v32, %v12731_v21  ;;  %v7091_v7 = vpop.xlane.xlu0 %7090 }
 0xbcb   : > { %v7064_v54 = vpop.xlane.xlu2 %7063 }
 0xbcc   : > { %v7025_v40 = vpop.xlane.xlu1 %7024 }
 0xbcd   : > { %v7120_v34 = vmul.f32 %v12826_v19, %v7025_v40  ;;  %v7132_v40 = vmul.f32 %v12826_v19, %v7061_v51  ;;  %v7181_v51 = vperm.slane %v7117_v10, %v12722_v2 }
 0xbcf   : > { %v7185_v28 = vperm.slane %v7120_v34, %v12731_v21 }
 0xbd1   : > { %v7186_v63 = vsel %vm6923_vm2, %v7185_v28, %v7184_v1 }
 0xbd3   : > { %v7028_v11 = vpop.xlane.xlu2 %7027 }
 0xbd4   : > { %v7067_v27 = vpop.xlane.xlu1 %7066  ;;  %v7121_v49 = vmul.f32 %v12826_v19, %v7028_v11  ;;  %v7138_v11 = vmul.f32 %v12826_v19, %v7079_v57 }
 0xbd5   : > { %v7134_v56 = vmul.f32 %v12826_v19, %v7067_v27 }
 0xbd6   : > { %v7187_v55 = vperm.slane %v7121_v49, %v12722_v2 }
 0xbdb   : > { %v7070_v0 = vpop.xlane.xlu2 %7069 }
 0xbdc   : > { %v7031_v16 = vpop.xlane.xlu1 %7030  ;;  %v7135_v10 = vmul.f32 %v12826_v19, %v7070_v0 }
 0xbdd   : > { %v7122_v59 = vmul.f32 %v12826_v19, %v7031_v16 }
 0xbdf   : > { %v7188_v16 = vperm.slane %v7122_v59, %v12731_v21  ;;  %v7202_v59 = vperm.slane %v7131_v22, %v12722_v2 }
 0xbe1   : > { %v7189_v57 = vsel %vm6923_vm2, %v7188_v16, %v7187_v55 }
 0xbe3   : > { %v7037_v8 = vpop.xlane.xlu2 %7036 }
 0xbe4   : > { %v7073_v53 = vpop.xlane.xlu1 %7072  ;;  %v7124_v52 = vmul.f32 %v12826_v19, %v7037_v8 }
 0xbe5   : > { %v7136_v32 = vmul.f32 %v12826_v19, %v7073_v53  ;;  %v7206_v53 = vperm.slane %v7134_v56, %v12731_v21  ;;  %v7208_v56 = vperm.slane %v7135_v10, %v12722_v2 }
 0xbe6   : > { %v7191_v8 = vperm.slane %v7124_v52, %v12731_v21  ;;  %v7133_v52 = vmul.f32 %v12826_v19, %v7064_v54 }
 0xbe7   : > { %v7209_v1 = vperm.slane %v7136_v32, %v12731_v21 }
 0xbe8   : > { %v7192_v22 = vsel %vm6923_vm2, %v7191_v8, %v7190_v5  ;;  %v7205_v5 = vperm.slane %v7133_v52, %v12722_v2 }
 0xbeb   : > { %v7040_v25 = vpop.xlane.xlu2 %7039 }
 0xbec   : > { %v7076_v43 = vpop.xlane.xlu1 %7075  ;;  %v7125_v34 = vmul.f32 %v12826_v19, %v7040_v25  ;;  %v7183_v25 = vsel %vm6923_vm2, %v7182_v47, %v7181_v51  ;;  %v7142_v51 = vmul.f32 %v12826_v19, %v7091_v7  ;;  %v7100_v7 = vpop.xlane.xlu0 %7099 }
 0xbed   : > { %v7137_v49 = vmul.f32 %v12826_v19, %v7076_v43  ;;  %v7229_v28 = vsel %vm6970_vm0, %v7186_v63, %v7183_v25  ;;  %v7203_v43 = vperm.slane %v7132_v40, %v12731_v21  ;;  %v7207_v63 = vsel %vm6923_vm2, %v7206_v53, %v7205_v5 }
 0xbee   : > { %v7193_v54 = vperm.slane %v7125_v34, %v12722_v2  ;;  %v7230_v0 = vsel %vm6972_vm3, %v7189_v57, %v7229_v28  ;;  %v7212_v34 = vperm.slane %v7138_v11, %v12731_v21 }
 0xbef   : > { %v7231_v8 = vsel %vm6974_vm10, %v7192_v22, %v7230_v0  ;;  %v7204_v55 = vsel %vm6923_vm2, %v7203_v43, %v7202_v59  ;;  %v7218_v22 = vperm.slane %v7142_v51, %v12731_v21 }
 0xbf3   : > { %v7085_v37 = vpop.xlane.xlu2 %7084 }
 0xbf4   : > { %v7043_v60 = vpop.xlane.xlu1 %7042  ;;  %v7140_v9 = vmul.f32 %v12826_v19, %v7085_v37  ;;  %v7211_v37 = vperm.slane %v7137_v49, %v12722_v2  ;;  %v7210_v49 = vsel %vm6923_vm2, %v7209_v1, %v7208_v56 }
 0xbf5   : > { %v7126_v27 = vmul.f32 %v12826_v19, %v7043_v60  ;;  %v7139_v60 = vmul.f32 %v12826_v19, %v7082_v39 }
 0xbf6   : > { %v7215_v40 = vperm.slane %v7140_v9, %v12731_v21  ;;  %v7234_v9 = vsel %vm6980_vm8, %v7204_v55, %v12839_v36 }
 0xbf7   : > { %v7194_v16 = vperm.slane %v7126_v27, %v12731_v21  ;;  %v7214_v57 = vperm.slane %v7139_v60, %v12722_v2  ;;  %v7213_v27 = vsel %vm6923_vm2, %v7212_v34, %v7211_v37  ;;  %v7235_v25 = vsel %vm6982_vm9, %v7207_v63, %v7234_v9 }
 0xbf8   : > { %v7236_v28 = vsel %vm6970_vm0, %v7210_v49, %v7235_v25  ;;  %v7145_v37 = vmul.f32 %v12826_v19, %v7100_v7  ;;  %v7383_v25 = vld [vmem:[%s13217_s14 + $0x68] sm:$0xff]  ;;  %vm7294_vm0 = vcmask 1045504  }
 0xbf9   : > { %v7195_v47 = vsel %vm6923_vm2, %v7194_v16, %v7193_v54  ;;  %v7216_v10 = vsel %vm6923_vm2, %v7215_v40, %v7214_v57  ;;  %v7237_v54 = vsel %vm6972_vm3, %v7213_v27, %v7236_v28  ;;  %v7380_v28 = vld [vmem:[%s13217_s14 + $0x50] sm:$0xff]  ;;  %vm7318_vm3 = vcmask 1043456  }
 0xbfa   : > { %v7232_v39 = vsel %vm6976_vm4, %v7195_v47, %v7231_v8  ;;  %v7238_v36 = vsel %vm6974_vm10, %v7216_v10, %v7237_v54  ;;  %v7109_v47 = vpop.xlane.xlu0 %7108  ;;  %v7382_v10 = vld [vmem:[%s13217_s14 + $0x60] sm:$0xff]  ;;  %vm7358_vm10 = vcmask 31744  }
 0xbfb   : > { %v7094_v32 = vpop.xlane.xlu2 %7093  ;;  %v7244_v52 = vsel %vm6992_vm5, 0.0, %v7232_v39  ;;  %v7148_v40 = vmul.f32 %v12826_v19, %v7109_v47  ;;  %v6994_v39 = vsel %vm6992_vm5, %v12824_v23, 0.0  ;;  %v7376_v47 = vld [vmem:[%s13217_s14 + $0x30] sm:$0xff] }
 0xbfc   : > { %7248 = vrot.lane.b32.xlu2 %v7244_v52, %s8908_s22  ;;  %v7088_v59 = vpop.xlane.xlu1 %7087  ;;  %v7143_v8 = vmul.f32 %v12826_v19, %v7094_v32 }
 0xbfd   : > { %v7141_v11 = vmul.f32 %v12826_v19, %v7088_v59  ;;  %v7227_v57 = vperm.slane %v7148_v40, %v12731_v21  ;;  %v7375_v40 = vld [vmem:[%s13217_s14 + $0x28] sm:$0xff] }
 0xbfe   : > { %v7220_v34 = vperm.slane %v7143_v8, %v12722_v2 }
 0xbff   : > { %v7217_v53 = vperm.slane %v7141_v11, %v12722_v2 }
 0xc01   : > { %v7219_v16 = vsel %vm6923_vm2, %v7218_v22, %v7217_v53  ;;  %v7381_v22 = vld [vmem:[%s13217_s14 + $0x58] sm:$0xff] }
 0xc02   : > { %v7239_v43 = vsel %vm6976_vm4, %v7219_v16, %v7238_v36  ;;  %v6998_v36 = vpop.permute.xlu0 %6997  ;;  %vm7361_vm4 = vcmask 392192  }
 0xc03   : > { %7250 = vrot.lane.b32.xlu1 %v7239_v43, %s8908_s22  ;;  %v7103_v60 = vpop.xlane.xlu2 %7102 }
 0xc04   : > { %6999 = vrot.lane.b32.xlu2 %v12811_v38, %s8908_s22  ;;  %v7097_v1 = vpop.xlane.xlu1 %7096  ;;  %v7146_v0 = vmul.f32 %v12826_v19, %v7103_v60  ;;  %v7223_v38 = vperm.slane %v7145_v37, %v12722_v2  ;;  %v7377_v37 = vld [vmem:[%s13217_s14 + $0x38] sm:$0xff] }
 0xc05   : > { %v7144_v5 = vmul.f32 %v12826_v19, %v7097_v1 }
 0xc06   : > { %v7224_v55 = vperm.slane %v7146_v0, %v12731_v21  ;;  %v7379_v0 = vld [vmem:[%s13217_s14 + $0x48] sm:$0xff] }
 0xc07   : > { %v7221_v56 = vperm.slane %v7144_v5, %v12731_v21  ;;  %v7384_v21 = vld [vmem:[%s13217_s14 + $0x70] sm:$0xff]  ;;  %v7378_v5 = vld [vmem:[%s13217_s14 + $0x40] sm:$0xff] }
 0xc08   : > { %v7225_v32 = vsel %vm6923_vm2, %v7224_v55, %v7223_v38 }
 0xc09   : > { %v7222_v52 = vsel %vm6923_vm2, %v7221_v56, %v7220_v34  ;;  %v7007_v34 = vsel %vm7006_vm11, 0.0, %v6998_v36 }
 0xc0a   : > { %v7240_v23 = vsel %vm6978_vm6, %v7225_v32, %v7222_v52  ;;  %vm7367_vm6 = vcmask 64512  }
 0xc0c   : > { %7001 = vrot.lane.b32.xlu2 %v6994_v39, %s8908_s22  ;;  %v7106_v51 = vpop.xlane.xlu1 %7105  ;;  %v7374_v39 = vld [vmem:[%s13217_s14 + $0x20] sm:$0xff] }
 0xc0d   : > { %v7147_v63 = vmul.f32 %v12826_v19, %v7106_v51 }
 0xc0f   : > { %v7226_v49 = vperm.slane %v7147_v63, %v12722_v2  ;;  %v7385_v2 = vld [vmem:[%s13217_s14 + $0x78] sm:$0xff] }
 0xc10   : > { %7421 = vmatpush.msra.mxu1 %v7385_v2  ;;  %v7373_v63 = vld [vmem:[%s13217_s14 + $0x18] sm:$0xff] }
 0xc11   : > { %v7228_v59 = vsel %vm6923_vm2, %v7227_v57, %v7226_v49  ;;  %v7372_v57 = vld [vmem:[%s13217_s14 + $0x10] sm:$0xff]  ;;  %v7011_v49 = vsel %vm7010_vm14, %v7007_v34, 0.0  ;;  %vm7306_vm2 = vcmask 1044480  }
 0xc12   : > { %v7241_v9 = vsel %vm6980_vm8, %v7228_v59, %v7240_v23  ;;  %7422 = vmatpush.msra.mxu1 %v7384_v21  ;;  %vm7411_vm8 = vcmask 424960  }
 0xc13   : > { %v7245_v27 = vsel %vm6992_vm5, %v7241_v9, 0.0  ;;  %v7371_v9 = vld [vmem:[%s13217_s14 + $0x8] sm:$0xff] }
 0xc14   : > { %7252 = vrot.lane.b32.xlu0 %v7245_v27, %s8908_s22  ;;  %7423 = vmatpush.msra.mxu1 %v7383_v25 }
 0xc16   : > { %7424 = vmatpush.msra.mxu1 %v7382_v10 }
 0xc18   : > { %7425 = vmatpush.msra.mxu1 %v7381_v22 }
 0xc1a   : > { %7426 = vmatpush.msra.mxu1 %v7380_v28 }
 0xc1c   : > { %7427 = vmatpush.msra.mxu1 %v7379_v0 }
 0xc1e   : > { %7428 = vmatpush.msra.mxu1 %v7378_v5 }
 0xc20   : > { %7429 = vmatpush.msra.mxu1 %v7377_v37 }
 0xc22   : > { %7430 = vmatpush.msra.mxu1 %v7376_v47 }
 0xc24   : > { %7431 = vmatpush.msra.mxu1 %v7375_v40 }
 0xc26   : > { %7432 = vmatpush.msra.mxu1 %v7374_v39 }
 0xc28   : > { %7433 = vmatpush.msra.mxu1 %v7373_v63 }
 0xc2a   : > { %7434 = vmatpush.msra.mxu1 %v7372_v57 }
 0xc2c   : > { %7435 = vmatpush.msra.mxu1 %v7371_v9 }
 0xc56   : > { %v7249_v19 = vpop.permute.xlu2 %7248 }
 0xc57   : > { %v7257_v11 = vsel %vm7006_vm11, 0.0, %v7249_v19 }
 0xc58   : > { %v7260_v7 = vsel %vm7010_vm14, %v7257_v11, 0.0 }
 0xc59   : > { %7266 = vrot.lane.b32.xlu0 %v7260_v7, %s8910_s20 }
 0xc5e   : > { %v7000_v8 = vpop.permute.xlu2 %6999 }
 0xc5f   : > { %v7008_v55 = vsel %vm7006_vm11, 0.0, %v7000_v8 }
 0xc60   : > { %v7012_v32 = vsel %vm7010_vm14, %v7008_v55, 0.0 }
 0xc66   : > { %v7002_v51 = vpop.permute.xlu2 %7001 }
 0xc67   : > { %v7009_v59 = vsel %vm7006_vm11, 0.0, %v7002_v51 }
 0xc68   : > { %v7013_v11 = vsel %vm7010_vm14, %v7009_v59, 0.0 }
 0xc75   : > { %v7251_v53 = vpop.permute.xlu1 %7250 }
 0xc76   : > { %v7258_v54 = vsel %vm7006_vm11, 0.0, %v7251_v53 }
 0xc77   : > { %v7261_v16 = vsel %vm7010_vm14, %v7258_v54, 0.0 }
 0xc78   : > { %7268 = vrot.lane.b32.xlu1 %v7261_v16, %s8910_s20 }
 0xc86   : > { %v7253_v43 = vpop.permute.xlu0 %7252 }
 0xc87   : > { %v7259_v60 = vsel %vm7006_vm11, 0.0, %v7253_v43 }
 0xc88   : > { %v7262_v1 = vsel %vm7010_vm14, %v7259_v60, 0.0 }
 0xc89   : > { %7270 = vrot.lane.b32.xlu0 %v7262_v1, %s8910_s20  ;;  %s8915_s20 = smov 92  }
 0xccb   : > { %v7267_v56 = vpop.permute.xlu0 %7266 }
 0xccc   : > { %v12991_v23 = vsel %vm7275_vm15, %v7011_v49, %v7267_v56 }
 0xccd   : > { %v7307_v25 = vrot.slane %v12991_v23, 3  ;;  %v7295_v10 = vrot.slane %v12991_v23, 2  ;;  %v7283_v54 = vrot.slane %v12991_v23, 1  ;;  %v7319_v39 = vrot.slane %v12991_v23, 4 }
 0xcce   : > { %v7341_v34 = vrot.slane %v12991_v23, 6  ;;  %v7330_v51 = vrot.slane %v12991_v23, 5 }
 0xcea   : > { %v7269_v38 = vpop.permute.xlu1 %7268 }
 0xceb   : > { %v12983_v52 = vsel %vm7275_vm15, %v7012_v32, %v7269_v38 }
 0xcec   : > { %v7308_v27 = vrot.slane %v12983_v52, 3  ;;  %v7296_v19 = vrot.slane %v12983_v52, 2  ;;  %v7284_v2 = vrot.slane %v12983_v52, 1  ;;  %v7320_v55 = vrot.slane %v12983_v52, 4 }
 0xced   : > { %v7342_v56 = vrot.slane %v12983_v52, 6  ;;  %v7331_v40 = vrot.slane %v12983_v52, 5 }
 0xcee   : > { %v7309_v16 = vsel %vm7306_vm2, %v7307_v25, %v7308_v27  ;;  %v7297_v36 = vsel %vm7294_vm0, %v7295_v10, %v7296_v19  ;;  %v7285_v1 = vsel %vm2484_vm1, %v7283_v54, %v7284_v2  ;;  %v7321_v63 = vsel %vm7318_vm3, %v7319_v39, %v7320_v55  ;;  %v7370_v25 = vld [vmem:[%s13217_s14] sm:$0xff]  ;;  %v7397_v10 = vld [vmem:[%s13217_s14 + $0xd8] sm:$0xff] }
 0xcef   : > { %v7343_v32 = vsel %vm6710_vm7, %v7341_v34, %v7342_v56  ;;  %v7332_v57 = vsel %vm6992_vm5, %v7330_v51, %v7331_v40  ;;  %7436 = vmatpush.msra.mxu1 %v7370_v25  ;;  %v7393_v54 = vld [vmem:[%s13217_s14 + $0xb8] sm:$0xff]  ;;  %v7402_v39 = vld [vmem:[%s13217_s14 + $0x100] sm:$0xff] }
 0xcfb   : > { %v7271_v7 = vpop.permute.xlu0 %7270 }
 0xcfc   : > { %v7278_v21 = vsel %vm7275_vm15, %v7013_v11, %v7271_v7  ;;  %v7401_v11 = vld [vmem:[%s13217_s14 + $0xf8] sm:$0xff]  ;;  %v7400_v7 = vld [vmem:[%s13217_s14 + $0xf0] sm:$0xff] }
 0xcfd   : > { %v7286_v22 = vrot.slane %v7278_v21, 1  ;;  %v7298_v28 = vrot.slane %v7278_v21, 2  ;;  %v7310_v53 = vrot.slane %v7278_v21, 3  ;;  %v7322_v8 = vrot.slane %v7278_v21, 4  ;;  %7444 = vmatpush.msra.mxu0 %v7401_v11 }
 0xcfe   : > { %v7344_v59 = vrot.slane %v7278_v21, 6  ;;  %v7333_v9 = vrot.slane %v7278_v21, 5  ;;  %v7398_v21 = vld [vmem:[%s13217_s14 + $0xe0] sm:$0xff] }
 0xcff   : > { %v7311_v43 = vsel %vm7306_vm2, %v7308_v27, %v7310_v53  ;;  %v7299_v60 = vsel %vm7294_vm0, %v7296_v19, %v7298_v28  ;;  %v7287_v0 = vsel %vm2484_vm1, %v7284_v2, %v7286_v22  ;;  %v7323_v38 = vsel %vm7318_vm3, %v7320_v55, %v7322_v8  ;;  %7445 = vmatpush.msra.mxu0 %v7400_v7  ;;  %v7399_v2 = vld [vmem:[%s13217_s14 + $0xe8] sm:$0xff]  ;;  %v7396_v22 = vld [vmem:[%s13217_s14 + $0xd0] sm:$0xff]  ;;  %v7394_v53 = vld [vmem:[%s13217_s14 + $0xc0] sm:$0xff] }
 0xd00   : > { %v8706_v5 = vpack.i.bf16 %v7311_v43, %v7309_v16  ;;  %v8701_v37 = vpack.i.bf16 %v7299_v60, %v7297_v36  ;;  %v8696_v47 = vpack.i.bf16 %v7287_v0, %v7285_v1  ;;  %v8711_v49 = vpack.i.bf16 %v7323_v38, %v7321_v63  ;;  %v7395_v28 = vld [vmem:[%s13217_s14 + $0xc8] sm:$0xff]  ;;  %v7392_v16 = vld [vmem:[%s13217_s14 + $0xb0] sm:$0xff]  ;;  %v7390_v43 = vld [vmem:[%s13217_s14 + $0xa0] sm:$0xff] }
 0xd01   : > { %v7345_v27 = vsel %vm6710_vm7, %v7342_v56, %v7344_v59  ;;  %v7334_v19 = vsel %vm6992_vm5, %v7331_v40, %v7333_v9  ;;  %7446 = vmatpush.msra.mxu0 %v7399_v2  ;;  %v7391_v36 = vld [vmem:[%s13217_s14 + $0xa8] sm:$0xff]  ;;  %v7408_v60 = vld [vmem:[%s13217_s14 + $0x130] sm:$0xf]  ;;  %v7389_v1 = vld [vmem:[%s13217_s14 + $0x98] sm:$0xff]  ;;  %vm7352_vm1 = vcmask 359424   ;;  %vm7355_vm7 = vcmask 719872  }
 0xd02   : > { %8707 = vrot.lane.b32.xlu0 %v8706_v5, %s8911_s24  ;;  %8702 = vrot.lane.b32.xlu2 %v8701_v37, %s8912_s21  ;;  %v7407_v0 = vld [vmem:[%s13217_s14 + $0x128] sm:$0xff]  ;;  %v7388_v5 = vld [vmem:[%s13217_s14 + $0x90] sm:$0xff]  ;;  %vm7364_vm5 = vcmask 752640   ;;  %s590_s21 = scalar_lea.vmem %s13220_s17, %s8354_s18 }
 0xd03   : > { %8697 = vrot.lane.b32.xlu1 %v8696_v47, %s8913_s25  ;;  %7447 = vmatpush.msra.mxu0 %v7398_v21  ;;  %v7387_v37 = vld [vmem:[%s13217_s14 + $0x88] sm:$0xff]  ;;  %v7406_v47 = vld [vmem:[%s13217_s14 + $0x120] sm:$0xff]  ;;  %v7405_v55 = vld [vmem:[%s13217_s14 + $0x118] sm:$0xff] }
 0xd04   : > { %8347 = vmatpush.msk.msrb.mxu1 %vm7318_vm3, %v7408_v60  ;;  %v7386_v8 = vld [vmem:[%s13217_s14 + $0x80] sm:$0xff]  ;;  %v7404_v56 = vld [vmem:[%s13217_s14 + $0x110] sm:$0xff]  ;;  %v7403_v40 = vld [vmem:[%s13217_s14 + $0x108] sm:$0xff] }
 0xd05   : > { %7448 = vmatpush.msra.mxu0 %v7397_v10 }
 0xd06   : > { %7477 = vmatpush.msrb.mxu1 %v7407_v0 }
 0xd07   : > { %7449 = vmatpush.msra.mxu0 %v7396_v22 }
 0xd08   : > { %7478 = vmatpush.msrb.mxu1 %v7406_v47 }
 0xd09   : > { %7450 = vmatpush.msra.mxu0 %v7395_v28 }
 0xd0a   : > { %7346 = vrot.lane.b32.xlu0 %v7343_v32, %s8914_s26  ;;  %7335 = vrot.lane.b32.xlu2 %v7332_v57, %s8915_s20 }
 0xd0b   : > { %8712 = vrot.lane.b32.xlu1 %v8711_v49, %s8916_s15  ;;  %7451 = vmatpush.msra.mxu0 %v7394_v53 }
 0xd0c   : > { %7479 = vmatpush.msrb.mxu1 %v7405_v55 }
 0xd0d   : > { %7452 = vmatpush.msra.mxu0 %v7393_v54 }
 0xd0e   : > { %7480 = vmatpush.msrb.mxu1 %v7404_v56 }
 0xd0f   : > { %7453 = vmatpush.msra.mxu0 %v7392_v16 }
 0xd10   : > { %7481 = vmatpush.msrb.mxu1 %v7403_v40 }
 0xd11   : > { %7454 = vmatpush.msra.mxu0 %v7391_v36 }
 0xd12   : > { %7348 = vrot.lane.b32.xlu2 %v7345_v27, %s8914_s26  ;;  %7482 = vmatpush.msrb.mxu1 %v7402_v39 }
 0xd13   : > { %7337 = vrot.lane.b32.xlu1 %v7334_v19, %s8915_s20  ;;  %7455 = vmatpush.msra.mxu0 %v7390_v43 }
 0xd15   : > { %7456 = vmatpush.msra.mxu0 %v7389_v1 }
 0xd17   : > { %7457 = vmatpush.msra.mxu0 %v7388_v5  ;;  %v7410_v5 = vstv %s7409_s27 }
 0xd19   : > { %7458 = vmatpush.msra.mxu0 %v7387_v37 }
 0xd1b   : > { %7459 = vmatpush.msra.mxu0 %v7386_v8 }
 0xd5c   : > { %v8703_v38 = vpop.permute.xlu2 %8702 }
 0xd5d   : > { %v8704_v63 = vunpack.i.l.bf16 %v8703_v38  ;;  %v8705_v7 = vunpack.i.h.bf16 %v8703_v38 }
 0xd64   : > { %v7336_v21 = vpop.permute.xlu2 %7335 }
 0xd6c   : > { %v7349_v60 = vpop.permute.xlu2 %7348 }
 0xd74   : > { %v8708_v32 = vpop.permute.xlu0 %8707 }
 0xd75   : > { %v8698_v34 = vpop.permute.xlu1 %8697  ;;  %v8709_v9 = vunpack.i.l.bf16 %v8708_v32  ;;  %v8710_v22 = vunpack.i.h.bf16 %v8708_v32 }
 0xd76   : > { %v8699_v51 = vunpack.i.l.bf16 %v8698_v34  ;;  %v8700_v59 = vunpack.i.h.bf16 %v8698_v34 }
 0xd77   : > { %v7359_v2 = vsel %vm7358_vm10, %v8704_v63, %v8709_v9 }
 0xd78   : > { %v7353_v57 = vsel %vm7352_vm1, %v12991_v23, %v8699_v51  ;;  %v7354_v11 = vsel %vm7352_vm1, %v12983_v52, %v8700_v59  ;;  %v7360_v52 = vsel %vm7358_vm10, %v8705_v7, %v8710_v22 }
 0xd79   : > { %v7356_v49 = vsel %vm7355_vm7, %v7353_v57, %v8704_v63  ;;  %v7357_v23 = vsel %vm7355_vm7, %v7354_v11, %v8705_v7 }
 0xd7a   : > { %7437 = vmatmul.f32.vlgmr.msra.gmra.mxu1 %v7356_v49 }
 0xd7c   : > { %v7347_v53 = vpop.permute.xlu0 %7346 }
 0xd7d   : > { %v8713_v27 = vpop.permute.xlu1 %8712  ;;  %v7368_v36 = vsel %vm7367_vm6, %v7336_v21, %v7347_v53 }
 0xd7e   : > { %v8714_v19 = vunpack.i.l.bf16 %v8713_v27  ;;  %v8715_v28 = vunpack.i.h.bf16 %v8713_v27 }
 0xd80   : > { %v7362_v25 = vsel %vm7361_vm4, %v7359_v2, %v8714_v19  ;;  %v7363_v16 = vsel %vm7361_vm4, %v7360_v52, %v8715_v28 }
 0xd81   : > { %v7365_v10 = vsel %vm7364_vm5, %v7362_v25, %v7336_v21 }
 0xd82   : > { %7440 = vmatmul.f32.gmra.mxu1 %v7357_v23  ;;  %7460 = vmatmul.f32.vlgmr.msra.gmra.mxu0 %v7365_v10 }
 0xd85   : > { %v7338_v54 = vpop.permute.xlu1 %7337 }
 0xd86   : > { %v7366_v43 = vsel %vm7364_vm5, %v7363_v16, %v7338_v54  ;;  %v7369_v1 = vsel %vm7367_vm6, %v7338_v54, %v7349_v60 }
 0xd8a   : > { %7463 = vmatmul.f32.gmra.mxu0 %v7366_v43  ;;  %8348 = vmatmul.msk.f32.vlgmr.msrb.gmra.mxu1 %vm7411_vm8, %v7368_v36 }
 0xd92   : > { %8349 = vmatmul.msk.f32.gmra.mxu1 %vm7411_vm8, %v7369_v1 }
 0xdf7   : > { %v7438_v0 = vpop.f32.mrf.mxu1 }
 0xdf8   : > { %v7439_v55 = vadd.f32 %v7438_v0, %v7410_v5 }
 0xdff   : > { %v7441_v37 = vpop.f32.mrf.mxu1  ;;  %v7461_v8 = vpop.f32.mrf.mxu0 }
 0xe00   : > { %v7442_v47 = vadd.f32 %v7441_v37, %v7410_v5  ;;  %v7462_v56 = vadd.f32 %v7461_v8, %v7439_v55 }
 0xe07   : > { %v7484_v40 = vpop.f32.mrf.mxu1  ;;  %v7464_v25 = vpop.f32.mrf.mxu0 }
 0xe08   : > { %v7485_v39 = vadd.f32 %v7484_v40, %v7462_v56  ;;  %v7465_v22 = vadd.f32 %v7464_v25, %v7442_v47 }
 0xe0a   : > { %v8350_v38 = vmul.f32 -1.442695, %v7485_v39 }
 0xe0c   : > { %8885 = vpow2.f32 %v8350_v38 }
 0xe0f   : > { %v7487_v10 = vpop.f32.mrf.mxu1 }
 0xe10   : > { %v7488_v28 = vadd.f32 %v7487_v10, %v7465_v22 }
 0xe12   : > { %v8886_v34 = vpop.eup %8885  ;;  %v8351_v53 = vmul.f32 -1.442695, %v7488_v28 }
 0xe13   : > { %v7496_v51 = vadd.f32 1.0, %v8886_v34 }
 0xe15   : > { %8887 = vrcp.f32 %v7496_v51  ;;  %v7509_v49 = vand.u32 2147483648, %v7496_v51  ;;  %v7507_v9 = vand.u32 2147483647, %v7496_v51  ;;  %vm7503_vm13 = vweird.f32 %v7496_v51 }
 0xe16   : > { %8889 = vpow2.f32 %v8351_v53 }
 0xe17   : > { %v7510_v19 = vor.u32 1.1754944e-38, %v7509_v49  ;;  %vm7508_vm14 = vcmp.eq.f32.partialorder %v7507_v9, 8.507059e+37 }
 0xe1b   : > { %v8888_v63 = vpop.eup %8887 }
 0xe1c   : > { %v7499_v32 = vmul.f32 %v8888_v63, %v7496_v51  ;;  %vm7504_vm9 = vweird.f32 %v8888_v63  ;;  %v8890_v52 = vpop.eup %8889 }
 0xe1d   : > { %vm7505_vm11 = vmor %vm7503_vm13, %vm7504_vm9  ;;  %v7497_v16 = vadd.f32 1.0, %v8890_v52 }
 0xe1e   : > { %v7500_v57 = vsub.f32 1.0, %v7499_v32 }
 0xe1f   : > { %8891 = vrcp.f32 %v7497_v16  ;;  %v7524_v55 = vand.u32 2147483648, %v7497_v16  ;;  %vm7518_vm2 = vweird.f32 %v7497_v16  ;;  %v7522_v56 = vand.u32 2147483647, %v7497_v16 }
 0xe20   : > { %v7501_v59 = vmul.f32 %v8888_v63, %v7500_v57 }
 0xe21   : > { %v7525_v39 = vor.u32 1.1754944e-38, %v7524_v55  ;;  %vm7523_vm3 = vcmp.eq.f32.partialorder %v7522_v56, 8.507059e+37 }
 0xe22   : > { %v7502_v27 = vadd.f32 %v8888_v63, %v7501_v59 }
 0xe24   : > { %v7506_v11 = vsel %vm7505_vm11, %v8888_v63, %v7502_v27 }
 0xe25   : > { %v7511_v7 = vsel %vm7508_vm14, %v7510_v19, %v7506_v11  ;;  %v8892_v60 = vpop.eup %8891 }
 0xe26   : > { %v7541_v2 = vperm.slane %v7511_v7, 1  ;;  %v7528_v21 = vperm.slane %v7511_v7, 0  ;;  %v7554_v23 = vperm.slane %v7511_v7, 2  ;;  %v7567_v54 = vperm.slane %v7511_v7, 3 }
 0xe27   : > { %v7580_v36 = vperm.slane %v7511_v7, 4  ;;  %v7593_v43 = vperm.slane %v7511_v7, 5  ;;  %v7514_v1 = vmul.f32 %v8892_v60, %v7497_v16  ;;  %v7606_v5 = vperm.slane %v7511_v7, 6 }
 0xe28   : > { %7546 = vperm.xlu2 %8718, %v7541_v2   ;;  %7539 = vperm.xlu1 %8717, %v7528_v21   ;;  %v7619_v37 = vperm.slane %v7511_v7, 7  ;;  %vm7519_vm15 = vweird.f32 %v8892_v60 }
 0xe29   : > { %7533 = vperm.xlu0 %8716, %v7528_v21   ;;  %v7515_v0 = vsub.f32 1.0, %v7514_v1  ;;  %vm7520_vm0 = vmor %vm7518_vm2, %vm7519_vm15 }
 0xe2b   : > { %v7516_v47 = vmul.f32 %v8892_v60, %v7515_v0 }
 0xe2d   : > { %v7517_v8 = vadd.f32 %v8892_v60, %v7516_v47 }
 0xe2f   : > { %v7521_v40 = vsel %vm7520_vm0, %v8892_v60, %v7517_v8 }
 0xe30   : > { %7559 = vperm.xlu2 %8718, %v7554_v23   ;;  %7552 = vperm.xlu1 %8717, %v7541_v2   ;;  %v7526_v38 = vsel %vm7523_vm3, %v7525_v39, %v7521_v40 }
 0xe31   : > { %8719 = vset.pattern.permute.xlu0 %v13544_v42  ;;  %v7658_v34 = vperm.slane %v7526_v38, 2  ;;  %v7632_v51 = vperm.slane %v7526_v38, 0  ;;  %v7645_v63 = vperm.slane %v7526_v38, 1  ;;  %v7684_v32 = vperm.slane %v7526_v38, 4 }
 0xe32   : > { %v7671_v57 = vperm.slane %v7526_v38, 3  ;;  %v7723_v49 = vperm.slane %v7526_v38, 7  ;;  %v7697_v59 = vperm.slane %v7526_v38, 5  ;;  %v7710_v9 = vperm.slane %v7526_v38, 6 }
 0xe38   : > { %8721 = vset.pattern.permute.xlu2 %v13544_v42  ;;  %8720 = vset.pattern.permute.xlu1 %v13545_v45 }
 0xe39   : > { %7565 = vperm.xlu0 %8719, %v7554_v23  }
 0xe40   : > { %7578 = vperm.xlu2 %8721, %v7567_v54   ;;  %7572 = vperm.xlu1 %8720, %v7567_v54  }
 0xe41   : > { %8722 = vset.pattern.permute.xlu0 %v13545_v45 }
 0xe48   : > { %7591 = vperm.xlu2 %8721, %v7580_v36   ;;  %7585 = vperm.xlu1 %8720, %v7580_v36  }
 0xe49   : > { %7598 = vperm.xlu0 %8722, %v7593_v43  }
 0xe50   : > { %8724 = vset.pattern.permute.xlu2 %v13545_v45  ;;  %8723 = vset.pattern.permute.xlu1 %v13544_v42 }
 0xe51   : > { %8725 = vset.pattern.permute.xlu0 %v13544_v42 }
 0xe58   : > { %7611 = vperm.xlu2 %8724, %v7606_v5   ;;  %7604 = vperm.xlu1 %8723, %v7593_v43  }
 0xe59   : > { %7630 = vperm.xlu0 %8725, %v7619_v37  }
 0xe60   : > { %7624 = vperm.xlu2 %8724, %v7619_v37   ;;  %7617 = vperm.xlu1 %8723, %v7606_v5  }
 0xe61   : > { %8728 = vset.pattern.permute.xlu0 %v13545_v45 }
 0xe68   : > { %8727 = vset.pattern.permute.xlu2 %v13544_v42  ;;  %8726 = vset.pattern.permute.xlu1 %v13545_v45 }
 0xe69   : > { %7663 = vperm.xlu0 %8728, %v7658_v34  }
 0xe70   : > { %7643 = vperm.xlu2 %8727, %v7632_v51   ;;  %7637 = vperm.xlu1 %8726, %v7632_v51  }
 0xe71   : > { %8731 = vset.pattern.permute.xlu0 %v13544_v42 }
 0xe78   : > { %7656 = vperm.xlu2 %8727, %v7645_v63   ;;  %7650 = vperm.xlu1 %8726, %v7645_v63  }
 0xe79   : > { %7695 = vperm.xlu0 %8731, %v7684_v32  }
 0xe80   : > { %8730 = vset.pattern.permute.xlu2 %v13545_v45  ;;  %8729 = vset.pattern.permute.xlu1 %v13544_v42 }
 0xe81   : > { %8734 = vset.pattern.permute.xlu0 %v13545_v45 }
 0xe82   : > { %v7547_v19 = vpop.permute.xlu2 %7546 }
 0xe83   : > { %v7738_v54 = vmul.f32 %v7547_v19, %v12499_v46 }
 0xe85   : > { %v7770_v16 = vsel %vm1908_vm12, %v7738_v54, 0.0 }
 0xe88   : > { %7676 = vperm.xlu2 %8730, %v7671_v57   ;;  %7669 = vperm.xlu1 %8729, %v7658_v34  }
 0xe89   : > { %7728 = vperm.xlu0 %8734, %v7723_v49  }
 0xe8a   : > { %v7560_v7 = vpop.permute.xlu2 %7559 }
 0xe8b   : > { %v7740_v0 = vmul.f32 %v7560_v7, %v12517_v4 }
 0xe8d   : > { %v7772_v5 = vsel %vm1908_vm12, %v7740_v0, 0.0 }
 0xe90   : > { %7689 = vperm.xlu2 %8730, %v7684_v32   ;;  %7682 = vperm.xlu1 %8729, %v7671_v57  }
 0xe91   : > { %8736 = vset.pattern.permute.xlu0 %v13544_v42 }
 0xe98   : > { %8733 = vset.pattern.permute.xlu2 %v13544_v42  ;;  %8732 = vset.pattern.permute.xlu1 %v13545_v45 }
 0xe9a   : > { %v7540_v27 = vpop.permute.xlu1 %7539  ;;  %v7579_v25 = vpop.permute.xlu2 %7578 }
 0xe9b   : > { %v7534_v21 = vpop.permute.xlu0 %7533  ;;  %v7737_v22 = vmul.f32 %v7540_v27, %v12503_v61  ;;  %v7743_v63 = vmul.f32 %v7579_v25, %v12535_v50 }
 0xe9c   : > { %v7736_v23 = vmul.f32 %v7534_v21, %v12507_v3 }
 0xe9d   : > { %v7775_v57 = vsel %vm1908_vm12, %v7743_v63, 0.0 }
 0xe9e   : > { %v7768_v45 = vsel %vm1908_vm12, %v7736_v23, 0.0 }
 0xea0   : > { %7708 = vperm.xlu2 %8733, %v7697_v59   ;;  %7702 = vperm.xlu1 %8732, %v7697_v59  }
 0xea2   : > { %v7553_v11 = vpop.permute.xlu1 %7552  ;;  %v7592_v28 = vpop.permute.xlu2 %7591 }
 0xea3   : > { %v7739_v3 = vmul.f32 %v7553_v11, %v12525_v15 }
 0xea5   : > { %v7771_v43 = vsel %vm1908_vm12, %v7739_v3, 0.0 }
 0xea8   : > { %7721 = vperm.xlu2 %8733, %v7710_v9   ;;  %7715 = vperm.xlu1 %8732, %v7710_v9  }
 0xeab   : > { %v7566_v37 = vpop.permute.xlu0 %7565 }
 0xeac   : > { %v7741_v8 = vmul.f32 %v7566_v37, %v12521_v33 }
 0xeae   : > { %v7773_v56 = vsel %vm1908_vm12, %v7741_v8, 0.0 }
 0xeb0   : > { %8735 = vset.pattern.permute.xlu1 %v13544_v42  ;;  %v7769_v42 = vsel %vm1908_vm12, %v7737_v22, 0.0 }
 0xeb2   : > { %v7573_v2 = vpop.permute.xlu1 %7572  ;;  %v13126_v52 = vpop.permute.xlu2 %7611 }
 0xeb3   : > { %v7742_v39 = vmul.f32 %v7573_v2, %v12543_v58 }
 0xeb5   : > { %v7774_v34 = vsel %vm1908_vm12, %v7742_v39, 0.0 }
 0xeb8   : > { %7734 = vperm.xlu1 %8735, %v7723_v49  }
 0xeba   : > { %v7586_v10 = vpop.permute.xlu1 %7585  ;;  %v13133_v61 = vpop.permute.xlu2 %7624 }
 0xebb   : > { %v7599_v40 = vpop.permute.xlu0 %7598 }
 0xeca   : > { %v13122_v53 = vpop.permute.xlu1 %7604  ;;  %v7644_v47 = vpop.permute.xlu2 %7643 }
 0xecb   : > { %v7753_v15 = vmul.f32 %v7644_v47, %v12593_v35  ;;  %v7631_v51 = vpop.permute.xlu0 %7630 }
 0xecd   : > { %v7785_v55 = vsel %vm1908_vm12, %v7753_v15, 0.0  ;;  %v13611_v15 = vld [vmem:[#allocation49_spill] sm:$0xff] }
 0xece   : > { %7800 = vxpose.xlu2.b32.start [1/16] (narrow) %v7768_v45, 32 }
 0xed2   : > { %v13129_v36 = vpop.permute.xlu1 %7617  ;;  %v7657_v35 = vpop.permute.xlu2 %7656 }
 0xed3   : > { %v7755_v33 = vmul.f32 %v7657_v35, %v12607_v18  ;;  %v7745_v18 = vmul.f32 %v7592_v28, %v12561_v20 }
 0xed5   : > { %v7787_v32 = vsel %vm1908_vm12, %v7755_v33, 0.0  ;;  %v7777_v11 = vsel %vm1908_vm12, %v7745_v18, 0.0 }
 0xed6   : > { %7801 = vxpose.xlu2.b32.cont [2/16] (narrow) %v7769_v42, 32 }
 0xedb   : > { %v7664_v49 = vpop.permute.xlu0 %7663 }
 0xedc   : > { %v7756_v58 = vmul.f32 %v7664_v49, %v12611_v30  ;;  %v7746_v30 = vmul.f32 %v7599_v40, %v12553_v41  ;;  %v13612_v40 = vld [vmem:[#allocation56_spill] sm:$0xff] }
 0xede   : > { %7802 = vxpose.xlu2.b32.cont [3/16] (narrow) %v7770_v16, 32  ;;  %v7788_v59 = vsel %vm1908_vm12, %v7756_v58, 0.0  ;;  %v7778_v21 = vsel %vm1908_vm12, %v7746_v30, 0.0 }
 0xee2   : > { %v7638_v60 = vpop.permute.xlu1 %7637  ;;  %v7677_v7 = vpop.permute.xlu2 %7676 }
 0xee3   : > { %v7752_v1 = vmul.f32 %v7638_v60, %v12589_v17  ;;  %v13609_v60 = vld [vmem:[#allocation76_spill] sm:$0xff] }
 0xee5   : > { %v7784_v46 = vsel %vm1908_vm12, %v7752_v1, 0.0  ;;  %v7751_v1 = vmul.f32 %v7631_v51, %v13609_v60 }
 0xee6   : > { %7803 = vxpose.xlu2.b32.cont [4/16] (narrow) %v7771_v43, 32 }
 0xeea   : > { %v7651_v17 = vpop.permute.xlu1 %7650  ;;  %v7690_v45 = vpop.permute.xlu2 %7689 }
 0xeeb   : > { %v7754_v4 = vmul.f32 %v7651_v17, %v12615_v14  ;;  %v7744_v14 = vmul.f32 %v7586_v10, %v12539_v31  ;;  %v7758_v31 = vmul.f32 %v7677_v7, %v12625_v6  ;;  %v7760_v41 = vmul.f32 %v7690_v45, %v12651_v12 }
 0xeec   : > { %v7748_v6 = vmul.f32 %v13126_v52, %v12579_v26  ;;  %v13607_v52 = vld [vmem:[#allocation75_spill] sm:$0xff] }
 0xeed   : > { %7832 = vxpose.xlu1.b32.start [1/16] (narrow) %v7784_v46, 32  ;;  %v7786_v38 = vsel %vm1908_vm12, %v7754_v4, 0.0  ;;  %v7776_v9 = vsel %vm1908_vm12, %v7744_v14, 0.0  ;;  %v7790_v2 = vsel %vm1908_vm12, %v7758_v31, 0.0  ;;  %v7792_v22 = vsel %vm1908_vm12, %v7760_v41, 0.0 }
 0xeee   : > { %7804 = vxpose.xlu2.b32.cont [5/16] (narrow) %v7772_v5, 32  ;;  %v7780_v28 = vsel %vm1908_vm12, %v7748_v6, 0.0  ;;  %v7750_v16 = vmul.f32 %v13133_v61, %v13607_v52  ;;  %v7783_v46 = vsel %vm1908_vm12, %v7751_v1, 0.0 }
 0xef0   : > { %v7782_v43 = vsel %vm1908_vm12, %v7750_v16, 0.0 }
 0xef5   : > { %7833 = vxpose.xlu1.b32.cont [2/16] (narrow) %v7785_v55, 32 }
 0xef6   : > { %7805 = vxpose.xlu2.b32.cont [6/16] (narrow) %v7773_v56, 32 }
 0xefa   : > { %v7670_v27 = vpop.permute.xlu1 %7669 }
 0xefb   : > { %v7757_v50 = vmul.f32 %v7670_v27, %v12633_v29  ;;  %v7747_v29 = vmul.f32 %v13122_v53, %v12557_v24  ;;  %v7749_v53 = vmul.f32 %v13129_v36, %v12571_v48  ;;  %v13608_v48 = vld [vmem:[#allocation50_spill] sm:$0xff] }
 0xefd   : > { %7834 = vxpose.xlu1.b32.cont [3/16] (narrow) %v7786_v38, 32  ;;  %v7789_v19 = vsel %vm1908_vm12, %v7757_v50, 0.0  ;;  %v7779_v10 = vsel %vm1908_vm12, %v7747_v29, 0.0  ;;  %v7781_v54 = vsel %vm1908_vm12, %v7749_v53, 0.0  ;;  %v13613_v38 = vld [vmem:[#allocation55_spill] sm:$0xff] }
 0xefe   : > { %7806 = vxpose.xlu2.b32.cont [7/16] (narrow) %v7774_v34, 32 }
 0xf02   : > { %v7683_v25 = vpop.permute.xlu1 %7682 }
 0xf03   : > { %v7759_v20 = vmul.f32 %v7683_v25, %v12629_v44  ;;  %v7696_v44 = vpop.permute.xlu0 %7695 }
 0xf04   : > { %v7761_v24 = vmul.f32 %v7696_v44, %v12643_v13  ;;  %v7709_v13 = vpop.permute.xlu2 %7708 }
 0xf05   : > { %7835 = vxpose.xlu1.b32.cont [4/16] (narrow) %v7787_v32, 32  ;;  %v7791_v23 = vsel %vm1908_vm12, %v7759_v20, 0.0  ;;  %v7763_v36 = vmul.f32 %v7709_v13, %v13608_v48 }
 0xf06   : > { %7807 = vxpose.xlu2.b32.cont [8/16] (narrow) %v7775_v57, 32  ;;  %v7793_v42 = vsel %vm1908_vm12, %v7761_v24, 0.0 }
 0xf07   : > { %v7795_v0 = vsel %vm1908_vm12, %v7763_v36, 0.0 }
 0xf0b   : > { %v7729_v56 = vpop.permute.xlu0 %7728 }
 0xf0c   : > { %v7722_v47 = vpop.permute.xlu2 %7721  ;;  %v7766_v17 = vmul.f32 %v7729_v56, %v13612_v40 }
 0xf0d   : > { %7836 = vxpose.xlu1.b32.cont [5/16] (narrow) %v7788_v59, 32  ;;  %v7765_v8 = vmul.f32 %v7722_v47, %v13611_v15 }
 0xf0e   : > { %7808 = vxpose.xlu2.b32.cont [9/16] (narrow) %v7776_v9, 32  ;;  %v7798_v4 = vsel %vm1908_vm12, %v7766_v17, 0.0 }
 0xf0f   : > { %v7797_v55 = vsel %vm1908_vm12, %v7765_v8, 0.0 }
 0xf12   : > { %v7703_v12 = vpop.permute.xlu1 %7702 }
 0xf13   : > { %v7762_v26 = vmul.f32 %v7703_v12, %v12647_v62  ;;  %v13610_v62 = vld [vmem:[#allocation54_spill] sm:$0xff] }
 0xf15   : > { %7837 = vxpose.xlu1.b32.cont [6/16] (narrow) %v7789_v19, 32  ;;  %v7794_v3 = vsel %vm1908_vm12, %v7762_v26, 0.0 }
 0xf16   : > { %7809 = vxpose.xlu2.b32.cont [10/16] (narrow) %v7777_v11, 32 }
 0xf1a   : > { %v7716_v5 = vpop.permute.xlu1 %7715 }
 0xf1b   : > { %v7764_v61 = vmul.f32 %v7716_v5, %v13610_v62 }
 0xf1d   : > { %7838 = vxpose.xlu1.b32.cont [7/16] (narrow) %v7790_v2, 32  ;;  %v7796_v37 = vsel %vm1908_vm12, %v7764_v61, 0.0 }
 0xf1e   : > { %7810 = vxpose.xlu2.b32.cont [11/16] (narrow) %v7778_v21, 32 }
 0xf25   : > { %7839 = vxpose.xlu1.b32.cont [8/16] (narrow) %v7791_v23, 32 }
 0xf26   : > { %7811 = vxpose.xlu2.b32.cont [12/16] (narrow) %v7779_v10, 32 }
 0xf2a   : > { %v7735_v39 = vpop.permute.xlu1 %7734 }
 0xf2b   : > { %v7767_v34 = vmul.f32 %v7735_v39, %v13613_v38 }
 0xf2d   : > { %7840 = vxpose.xlu1.b32.cont [9/16] (narrow) %v7792_v22, 32  ;;  %v7799_v51 = vsel %vm1908_vm12, %v7767_v34, 0.0 }
 0xf2e   : > { %7812 = vxpose.xlu2.b32.cont [13/16] (narrow) %v7780_v28, 32 }
 0xf35   : > { %7841 = vxpose.xlu1.b32.cont [10/16] (narrow) %v7793_v42, 32 }
 0xf36   : > { %7813 = vxpose.xlu2.b32.cont [14/16] (narrow) %v7781_v54, 32 }
 0xf3d   : > { %7842 = vxpose.xlu1.b32.cont [11/16] (narrow) %v7794_v3, 32 }
 0xf3e   : > { %7814 = vxpose.xlu2.b32.cont [15/16] (narrow) %v7782_v43, 32 }
 0xf45   : > { %7843 = vxpose.xlu1.b32.cont [12/16] (narrow) %v7795_v0, 32 }
 0xf46   : > { %7815 = vxpose.xlu2.b32.end [16/16] (narrow) %v7783_v46, 32 }
 0xf4d   : > { %7844 = vxpose.xlu1.b32.cont [13/16] (narrow) %v7796_v37, 32 }
 0xf55   : > { %7845 = vxpose.xlu1.b32.cont [14/16] (narrow) %v7797_v55, 32 }
 0xf5d   : > { %7846 = vxpose.xlu1.b32.cont [15/16] (narrow) %v7798_v4, 32 }
 0xf65   : > { %7847 = vxpose.xlu1.b32.end [16/16] (narrow) %v7799_v51, 32 }
 0xf67   : > { %v7816_v35 = vpop.trf.xlu2 }
 0xf68   : > { %7864 = vst [vmem:[%s590_s21] sm:$0xff] %v7816_v35 }
 0xf6f   : > { %v7817_v33 = vpop.trf.xlu2 }
 0xf70   : > { %7866 = vst [vmem:[%s590_s21 + $0x10] sm:$0xff] %v7817_v33 }
 0xf77   : > { %v7818_v63 = vpop.trf.xlu2 }
 0xf78   : > { %7868 = vst [vmem:[%s590_s21 + $0x20] sm:$0xff] %v7818_v63 }
 0xf7f   : > { %v7819_v32 = vpop.trf.xlu2 }
 0xf80   : > { %7870 = vst [vmem:[%s590_s21 + $0x30] sm:$0xff] %v7819_v32 }
 0xf91   : > { %v7848_v57 = vpop.trf.xlu1 }
 0xf92   : > { %7865 = vst [vmem:[%s590_s21 + $0x8] sm:$0xff] %v7848_v57 }
 0xf99   : > { %v7849_v49 = vpop.trf.xlu1 }
 0xf9a   : > { %7867 = vst [vmem:[%s590_s21 + $0x18] sm:$0xff] %v7849_v49 }
 0xfa1   : > { %v7850_v58 = vpop.trf.xlu1 }
 0xfa2   : > { %7869 = vst [vmem:[%s590_s21 + $0x28] sm:$0xff] %v7850_v58 }
 0xfa9   : > { %v7851_v14 = vpop.trf.xlu1 }
 0xfaa   : > { %7871 = vst [vmem:[%s590_s21 + $0x38] sm:$0xff] %v7851_v14 }
 0xfab PF: > { %s29_s28 = sadd.s32 1, %s8901_s28  }
 0xfac   : > { %p26_p4 = scmp.ge.s32.totalorder %s29_s28, 4  }
 0xfae   :  { %28 = sbr.rel (!%p26_p4) target bundleno = 5 (0x5), region = 126 }

</bundles_post_ra>
